<compile_context>
chip_gen: v6e
topology: v6e:2x2x1
jax: 0.10.0
libtpu: 0.0.40
codegen_flags: <defaults>
</compile_context>

<pallas_src>
import functools
import math

import jax
import jax.numpy as jnp
from jax.experimental import pallas as pl
from jax.experimental.pallas import tpu as pltpu


MXU_DTYPE = jnp.bfloat16       # dtype of MXU matmul inputs / stored weights
_INV_SQRT2 = 0.7071067811865476


# ----------------------------------------------------------------------------
# In-kernel helpers
# ----------------------------------------------------------------------------

def _erf_poly(x):
    # Abramowitz & Stegun 7.1.26 (|err| < 1.5e-7 ~ f32 ulp), built only from
    # mul/add/div/exp/where so it is guaranteed to lower on Mosaic.
    # TODO(synk): switch to lax.erf if/when its Mosaic lowering is guaranteed.
    a1, a2, a3, a4, a5 = 0.254829592, -0.284496736, 1.421413741, -1.453152027, 1.061405429
    p = 0.3275911
    ax = jnp.abs(x)
    t = 1.0 / (1.0 + p * ax)
    poly = ((((a5 * t + a4) * t + a3) * t + a2) * t + a1) * t
    y = 1.0 - poly * jnp.exp(-ax * ax)
    return jnp.where(x >= 0, y, -y)


def _gelu(x):
    # Exact (erf-based) GELU, matching PyTorch F.gelu default.
    return 0.5 * x * (1.0 + _erf_poly(x * _INV_SQRT2))


def _pick_tile(m, candidates=(512, 384, 256, 128)):
    # Largest lane-friendly tile that exactly divides m; otherwise the full extent.
    for t in candidates:
        if m >= t and m % t == 0:
            return t
    return m


# ----------------------------------------------------------------------------
# Pallas kernels
# ----------------------------------------------------------------------------

def _linear_kernel(x_ref, w_ref, b_ref, o_ref, *, activation):
    # o = act(x @ w + b);  matmul inputs in bf16, accumulation f32.
    acc = jnp.dot(x_ref[...].astype(w_ref.dtype), w_ref[...],
                  preferred_element_type=jnp.float32)
    y = acc + b_ref[...]
    if activation == "gelu":
        y = _gelu(y)
    o_ref[...] = y.astype(o_ref.dtype)


def _ln_gelu_linear_kernel(x_ref, g_ref, be_ref, w_ref, b_ref, o_ref):
    # Fused LayerNorm(last dim) -> exact GELU -> x @ w + b   (BiGRU pre-projection).
    x = x_ref[...]
    mu = jnp.mean(x, axis=-1, keepdims=True)
    xc = x - mu
    var = jnp.mean(xc * xc, axis=-1, keepdims=True)
    y = xc * jax.lax.rsqrt(var + 1e-5) * g_ref[...] + be_ref[...]
    y = _gelu(y)
    o_ref[...] = (jnp.dot(y.astype(w_ref.dtype), w_ref[...],
                          preferred_element_type=jnp.float32) + b_ref[...])


def _cnn_ln_gelu_kernel(x_ref, g_ref, b_ref, o_ref):
    # Fused CNNLayerNorm (+GELU) directly on (1, C, F, T): normalize the F axis.
    x = x_ref[...].astype(jnp.float32)
    mu = jnp.mean(x, axis=2, keepdims=True)
    xc = x - mu
    var = jnp.mean(xc * xc, axis=2, keepdims=True)
    y = xc * jax.lax.rsqrt(var + 1e-5) * g_ref[...] + b_ref[...]
    o_ref[...] = _gelu(y).astype(o_ref.dtype)


def _conv_kernel(col_ref, w_ref, b_ref, o_ref):
    # o(Cout, M) = W(Cout, 9*Cin) @ col(9*Cin, M) + b   -- lane axis = M (lane dense).
    o_ref[0] = (jnp.dot(w_ref[...], col_ref[0], preferred_element_type=jnp.float32)
                + b_ref[...])


def _conv_res_kernel(col_ref, w_ref, b_ref, r_ref, o_ref):
    # Same as _conv_kernel, with the ResidualCNN skip-connection add fused in.
    o_ref[0] = (jnp.dot(w_ref[...], col_ref[0], preferred_element_type=jnp.float32)
                + b_ref[...] + r_ref[0])


def _gru_scan_kernel(gi_ref, whh_ref, bhh_ref, o_ref, h_ref, *, ts, hidden):
    # Grid = (direction, time-block).  Hidden state carried in VMEM scratch; the three
    # gate matmuls are fused into one (Nb,H)@(H,3H); ts timesteps unrolled per step.
    H = hidden

    @pl.when(pl.program_id(1) == 0)
    def _init():
        h_ref[...] = jnp.zeros_like(h_ref)

    whh = whh_ref[0]                                             # (H, 3H) bf16
    bhh = bhh_ref[0]                                             # (1, 3H) f32
    for s in range(ts):                                          # static unroll
        h_prev = h_ref[...]                                      # (Nb, H) f32
        gi = gi_ref[0, s]                                        # (Nb, 3H) f32
        gh = jnp.dot(h_prev.astype(whh.dtype), whh,
                     preferred_element_type=jnp.float32) + bhh   # (Nb, 3H)
        r = jax.nn.sigmoid(gi[:, :H] + gh[:, :H])
        z = jax.nn.sigmoid(gi[:, H:2 * H] + gh[:, H:2 * H])
        n = jnp.tanh(gi[:, 2 * H:] + r * gh[:, 2 * H:])
        h_new = (1.0 - z) * n + z * h_prev
        h_ref[...] = h_new
        o_ref[0, s] = h_new


def _mha_kernel(x_ref, inw_ref, inb_ref, outw_ref, outb_ref, o_ref, *, num_heads, scale):
    # Fully-fused multi-head self-attention for a tile of batch columns:
    #   qkv proj -> per-head softmax(q k^T / sqrt(hd)) v -> concat heads -> out proj.
    # x_ref: (TN, L, E) bf16;  all intermediates stay in VMEM.
    TN, L, E = x_ref.shape
    hd = E // num_heads
    x2 = x_ref[...].reshape(TN * L, E)                           # leading merge: free
    qkv = (jnp.dot(x2, inw_ref[...], preferred_element_type=jnp.float32)
           + inb_ref[...])                                       # (TN*L, 3E) f32
    qkv = qkv.reshape(TN, L, 3 * E)
    head_outs = []
    for h in range(num_heads):                                   # static unroll (2 heads)
        q = qkv[:, :, h * hd:(h + 1) * hd].astype(MXU_DTYPE)
        k = qkv[:, :, E + h * hd:E + (h + 1) * hd].astype(MXU_DTYPE)
        v = qkv[:, :, 2 * E + h * hd:2 * E + (h + 1) * hd].astype(MXU_DTYPE)
        s = jnp.einsum("nld,nmd->nlm", q, k,
                       preferred_element_type=jnp.float32) * scale
        s = s - jnp.max(s, axis=-1, keepdims=True)
        p = jnp.exp(s)
        p = p * pl.reciprocal(jnp.sum(p, axis=-1, keepdims=True), approx=True)
        head_outs.append(jnp.einsum("nlm,nmd->nld", p.astype(MXU_DTYPE), v,
                                    preferred_element_type=jnp.float32))
    attn = jnp.concatenate(head_outs, axis=-1).reshape(TN * L, E).astype(MXU_DTYPE)
    out = (jnp.dot(attn, outw_ref[...], preferred_element_type=jnp.float32)
           + outb_ref[...])
    o_ref[...] = out.reshape(TN, L, E)


def _classifier_kernel(x_ref, w1_ref, b1_ref, w2_ref, b2_ref, o_ref):
    # Fused classifier: Linear -> GELU -> Linear -> LogSoftmax (dropout = identity).
    h = (jnp.dot(x_ref[...].astype(w1_ref.dtype), w1_ref[...],
                 preferred_element_type=jnp.float32) + b1_ref[...])
    h = _gelu(h)
    y = (jnp.dot(h.astype(w2_ref.dtype), w2_ref[...],
                 preferred_element_type=jnp.float32) + b2_ref[...])
    m = jnp.max(y, axis=-1, keepdims=True)
    e = jnp.exp(y - m)
    o_ref[...] = (y - (jnp.log(jnp.sum(e, axis=-1, keepdims=True)) + m)
                  ).astype(o_ref.dtype)


# ----------------------------------------------------------------------------
# Wrappers (glue: reshapes / transposes / padding only)
# ----------------------------------------------------------------------------

def linear_pallas(x2d, w, b, *, activation="none", out_dtype=jnp.float32):
    M, K = x2d.shape
    N = w.shape[1]
    TM = _pick_tile(M)
    return pl.pallas_call(
        functools.partial(_linear_kernel, activation=activation),
        out_shape=jax.ShapeDtypeStruct((M, N), out_dtype),
        grid=(M // TM,),
        in_specs=[
            pl.BlockSpec((TM, K), lambda i: (i, 0)),
            pl.BlockSpec((K, N), lambda i: (0, 0)),
            pl.BlockSpec((1, N), lambda i: (0, 0)),
        ],
        out_specs=pl.BlockSpec((TM, N), lambda i: (i, 0)),
        compiler_params=pltpu.CompilerParams(dimension_semantics=("parallel",)),
    )(x2d, w, b.reshape(1, N))


def ln_gelu_linear_pallas(x2d, gamma, beta, w, b):
    M, K = x2d.shape
    N = w.shape[1]
    TM = _pick_tile(M)
    return pl.pallas_call(
        _ln_gelu_linear_kernel,
        out_shape=jax.ShapeDtypeStruct((M, N), jnp.float32),
        grid=(M // TM,),
        in_specs=[
            pl.BlockSpec((TM, K), lambda i: (i, 0)),
            pl.BlockSpec((1, K), lambda i: (0, 0)),
            pl.BlockSpec((1, K), lambda i: (0, 0)),
            pl.BlockSpec((K, N), lambda i: (0, 0)),
            pl.BlockSpec((1, N), lambda i: (0, 0)),
        ],
        out_specs=pl.BlockSpec((TM, N), lambda i: (i, 0)),
        compiler_params=pltpu.CompilerParams(dimension_semantics=("parallel",)),
    )(x2d, gamma.reshape(1, K), beta.reshape(1, K), w, b.reshape(1, N))


def cnn_ln_gelu(x, gamma, beta):
    # x: (B, C, F, T); normalizes F (PyTorch CNNLayerNorm) then exact GELU; bf16 out
    # because the result only feeds the next conv's im2col + bf16 matmul.
    B, C, F, T = x.shape
    return pl.pallas_call(
        _cnn_ln_gelu_kernel,
        out_shape=jax.ShapeDtypeStruct((B, C, F, T), MXU_DTYPE),
        grid=(B,),
        in_specs=[
            pl.BlockSpec((1, C, F, T), lambda b: (b, 0, 0, 0)),
            pl.BlockSpec((1, 1, F, 1), lambda b: (0, 0, 0, 0)),
            pl.BlockSpec((1, 1, F, 1), lambda b: (0, 0, 0, 0)),
        ],
        out_specs=pl.BlockSpec((1, C, F, T), lambda b: (b, 0, 0, 0)),
        compiler_params=pltpu.CompilerParams(dimension_semantics=("parallel",)),
    )(x, gamma.reshape(1, 1, F, 1), beta.reshape(1, 1, F, 1))


def _im2col_nchw(x, KH, KW, stride, padding):
    # x: (B, Cin, H, W) -> col: (B, Cin*KH*KW, Ho*Wo); K index = ci*KH*KW + kh*KW + kw
    # (matches PyTorch conv weight (Cout, Cin, KH, KW).reshape(Cout, -1)).
    # TODO(synk): gather the halo inside the kernel (pl.ANY HBM ref + manual DMA) to
    #             avoid materializing the 9x im2col matrix for large activations.
    B, Cin, H, W = x.shape
    s, p = stride, padding
    Ho = (H + 2 * p - KH) // s + 1
    Wo = (W + 2 * p - KW) // s + 1
    xp = jnp.pad(x, ((0, 0), (0, 0), (p, p), (p, p)))
    taps = []
    for kh in range(KH):
        row = []
        for kw in range(KW):
            row.append(xp[:, :, kh:kh + s * (Ho - 1) + 1:s, kw:kw + s * (Wo - 1) + 1:s])
        taps.append(jnp.stack(row, axis=2))          # (B, Cin, KW, Ho, Wo)
    col = jnp.stack(taps, axis=2)                    # (B, Cin, KH, KW, Ho, Wo)
    return col.reshape(B, Cin * KH * KW, Ho * Wo), Ho, Wo


def conv2d_pallas(x, w_flat, b, *, stride, padding, residual=None):
    # x: (B, Cin, H, W)   w_flat: (Cout, Cin*3*3) bf16   b: (Cout,) f32
    # Returns (B, Cout, Ho, Wo) f32;  optional residual (B, Cout, Ho, Wo) is fused.
    B, Cin, _, _ = x.shape
    Cout, K9 = w_flat.shape
    col, Ho, Wo = _im2col_nchw(x, 3, 3, stride, padding)
    col = col.astype(MXU_DTYPE)
    M = Ho * Wo
    TM = _pick_tile(M)
    grid = (B, M // TM)

    in_specs = [
        pl.BlockSpec((1, K9, TM), lambda bb, mm: (bb, 0, mm)),
        pl.BlockSpec((Cout, K9), lambda bb, mm: (0, 0)),
        pl.BlockSpec((Cout, 1), lambda bb, mm: (0, 0)),
    ]
    args = [col, w_flat, b.reshape(Cout, 1)]
    kern = _conv_kernel
    if residual is not None:
        in_specs.append(pl.BlockSpec((1, Cout, TM), lambda bb, mm: (bb, 0, mm)))
        args.append(residual.reshape(B, Cout, M))
        kern = _conv_res_kernel

    out = pl.pallas_call(
        kern,
        out_shape=jax.ShapeDtypeStruct((B, Cout, M), jnp.float32),
        grid=grid,
        in_specs=in_specs,
        out_specs=pl.BlockSpec((1, Cout, TM), lambda bb, mm: (bb, 0, mm)),
        compiler_params=pltpu.CompilerParams(
            dimension_semantics=("parallel", "parallel")),
    )(*args)
    return out.reshape(B, Cout, Ho, Wo)


def gru_scan_pallas(gi_stack, w_hh, b_hh):
    # gi_stack: (2, S, Nb, 3H)  (direction 1 already time-reversed)
    # w_hh: (2, H, 3H) bf16     b_hh: (2, 1, 3H) f32
    _, S, Nb, H3 = gi_stack.shape
    H = H3 // 3
    TS = max(t for t in (16, 8, 4, 2, 1) if S % t == 0)
    return pl.pallas_call(
        functools.partial(_gru_scan_kernel, ts=TS, hidden=H),
        out_shape=jax.ShapeDtypeStruct((2, S, Nb, H), jnp.float32),
        grid=(2, S // TS),
        in_specs=[
            pl.BlockSpec((1, TS, Nb, H3), lambda d, t: (d, t, 0, 0)),
            pl.BlockSpec((1, H, H3), lambda d, t: (d, 0, 0)),
            pl.BlockSpec((1, 1, H3), lambda d, t: (d, 0, 0)),
        ],
        out_specs=pl.BlockSpec((1, TS, Nb, H), lambda d, t: (d, t, 0, 0)),
        scratch_shapes=[pltpu.VMEM((Nb, H), jnp.float32)],
        compiler_params=pltpu.CompilerParams(
            dimension_semantics=("parallel", "arbitrary")),
    )(gi_stack, w_hh, b_hh)


def bigru_layer(x_sm, p):
    # x_sm: (S, Nb, In) with S = the GRU's sequence axis (pre-LayerNorm input).
    # Applies LayerNorm + GELU + bidirectional single-layer GRU; returns (S, Nb, 2H).
    S, Nb, In = x_sm.shape
    H = p["w_hh"].shape[1]
    gi = ln_gelu_linear_pallas(x_sm.reshape(S * Nb, In),
                               p["ln_g"], p["ln_b"], p["w_ih"], p["b_ih"])
    gi = gi.reshape(S, Nb, 6 * H)
    gi_f = gi[..., :3 * H]                          # forward direction, gates [r|z|n]
    gi_r = gi[..., 3 * H:][::-1]                    # backward direction, time-reversed
    gi_stack = jnp.stack([gi_f, gi_r], axis=0)      # (2, S, Nb, 3H)
    out = gru_scan_pallas(gi_stack, p["w_hh"], p["b_hh"])        # (2, S, Nb, H)
    return jnp.concatenate([out[0], out[1][::-1]], axis=-1)      # (S, Nb, 2H)


def mha_pallas(x, ap, *, num_heads):
    # x: (L, N, E) with batch_first=False semantics (matching nn.MultiheadAttention).
    # Single fused kernel per tile of batch columns (qkv proj + attention + out proj).
    L, N, E = x.shape
    hd = E // num_heads
    xb = jnp.transpose(x, (1, 0, 2)).astype(MXU_DTYPE)           # (N, L, E)
    TN = _pick_tile(N)
    out = pl.pallas_call(
        functools.partial(_mha_kernel, num_heads=num_heads,
                          scale=1.0 / math.sqrt(hd)),
        out_shape=jax.ShapeDtypeStruct((N, L, E), jnp.float32),
        grid=(N // TN,),
        in_specs=[
            pl.BlockSpec((TN, L, E), lambda i: (i, 0, 0)),
            pl.BlockSpec((E, 3 * E), lambda i: (0, 0)),
            pl.BlockSpec((1, 3 * E), lambda i: (0, 0)),
            pl.BlockSpec((E, E), lambda i: (0, 0)),
            pl.BlockSpec((1, E), lambda i: (0, 0)),
        ],
        out_specs=pl.BlockSpec((TN, L, E), lambda i: (i, 0, 0)),
        compiler_params=pltpu.CompilerParams(dimension_semantics=("parallel",)),
    )(xb, ap["in_w"], ap["in_b"].reshape(1, 3 * E),
      ap["out_w"], ap["out_b"].reshape(1, E))
    return jnp.transpose(out, (1, 0, 2))                         # back to (L, N, E)


def classifier_pallas(x2d, w1, b1, w2, b2):
    # Fused Linear -> GELU -> Linear -> LogSoftmax.
    M, E = x2d.shape
    R = w1.shape[1]
    C = w2.shape[1]
    TM = _pick_tile(M)
    return pl.pallas_call(
        _classifier_kernel,
        out_shape=jax.ShapeDtypeStruct((M, C), jnp.float32),
        grid=(M // TM,),
        in_specs=[
            pl.BlockSpec((TM, E), lambda i: (i, 0)),
            pl.BlockSpec((E, R), lambda i: (0, 0)),
            pl.BlockSpec((1, R), lambda i: (0, 0)),
            pl.BlockSpec((R, C), lambda i: (0, 0)),
            pl.BlockSpec((1, C), lambda i: (0, 0)),
        ],
        out_specs=pl.BlockSpec((TM, C), lambda i: (i, 0)),
        compiler_params=pltpu.CompilerParams(dimension_semantics=("parallel",)),
    )(x2d, w1, b1.reshape(1, R), w2, b2.reshape(1, C))


# ----------------------------------------------------------------------------
# Full forward pass
# ----------------------------------------------------------------------------

def forward(params, x):
    # x: (B, T, n_feats)  — matches the PyTorch input (batch, time, feats).
    # PyTorch: x.transpose(1,2).unsqueeze(1) -> NCHW (B, 1, F, T); we keep NCHW throughout.
    h = jnp.transpose(x, (0, 2, 1))[:, None, :, :]
    h = conv2d_pallas(h, params["cnn0_w"], params["cnn0_b"], stride=2, padding=1)

    for lp in params["rescnn"]:
        res = h
        g = cnn_ln_gelu(h, lp["ln1_g"], lp["ln1_b"])             # LN(F)+GELU (dropout=id)
        h = conv2d_pallas(g, lp["cnn1_w"], lp["cnn1_b"], stride=1, padding=1)
        g = cnn_ln_gelu(h, lp["ln2_g"], lp["ln2_b"])             # LN(F)+GELU (dropout=id)
        h = conv2d_pallas(g, lp["cnn2_w"], lp["cnn2_b"], stride=1, padding=1,
                          residual=res)                          # conv + residual fused

    Bc, C, Fc, Tc = h.shape
    # PyTorch: (B, C, F, T).view(B, C*F, T).transpose(1,2) -> (B, T, C*F), feat = c*F + f
    h = jnp.transpose(h.reshape(Bc, C * Fc, Tc), (0, 2, 1))
    rnn_dim = params["fc_w"].shape[1]
    h = linear_pallas(h.reshape(Bc * Tc, C * Fc), params["fc_w"], params["fc_b"])
    h = h.reshape(Bc, Tc, rnn_dim)

    for li, pp in enumerate(params["birnn"]):
        if li == 0:
            # batch_first=True: sequence axis = Tc
            g = bigru_layer(jnp.transpose(h, (1, 0, 2)), pp)     # (Tc, B, 2H)
            h = jnp.transpose(g, (1, 0, 2))                      # (B, Tc, 2H)
        else:
            # batch_first=False quirk preserved: seq axis = B, batch axis = Tc
            h = bigru_layer(h, pp)                               # (B, Tc, 2H)

    # MultiheadAttention with batch_first=False: (L=B, N=Tc, E=2H) — quirk preserved.
    h = mha_pallas(h, params["attn"], num_heads=2)

    # Classifier: Linear+GELU -> (dropout: identity) -> Linear+LogSoftmax, fully fused.
    L, N, E = h.shape
    c = classifier_pallas(h.reshape(L * N, E),
                          params["cls_w1"], params["cls_b1"],
                          params["cls_w2"], params["cls_b2"])
    return c.reshape(L, N, -1)                                   # (B, Tc, n_class)


# ----------------------------------------------------------------------------
# Deterministic synthetic parameters
# ----------------------------------------------------------------------------

def init_params(*, n_cnn_layers, n_rnn_layers, rnn_dim, n_class, n_feats):
    nf = n_feats // 2
    kit = iter(jax.random.split(jax.random.PRNGKey(0), 256))

    def rnd(shape, scale=0.05):
        return (scale * jax.random.normal(next(kit), shape)).astype(jnp.float32)

    def wmat(shape, scale=0.05):
        return rnd(shape, scale).astype(MXU_DTYPE)

    params = {
        # conv weights stored flattened (Cout, Cin*KH*KW) == PyTorch weight.reshape(Cout,-1)
        "cnn0_w": wmat((32, 1 * 3 * 3)), "cnn0_b": rnd((32,)),
        "rescnn": [], "birnn": [],
    }
    for _ in range(n_cnn_layers):
        params["rescnn"].append(dict(
            ln1_g=jnp.ones((nf,), jnp.float32), ln1_b=jnp.zeros((nf,), jnp.float32),
            cnn1_w=wmat((32, 32 * 3 * 3)), cnn1_b=rnd((32,)),
            ln2_g=jnp.ones((nf,), jnp.float32), ln2_b=jnp.zeros((nf,), jnp.float32),
            cnn2_w=wmat((32, 32 * 3 * 3)), cnn2_b=rnd((32,)),
        ))
    params["fc_w"] = wmat((nf * 32, rnn_dim))
    params["fc_b"] = rnd((rnn_dim,))
    for i in range(n_rnn_layers):
        in_dim = rnn_dim if i == 0 else 2 * rnn_dim
        H = rnn_dim
        params["birnn"].append(dict(
            ln_g=jnp.ones((in_dim,), jnp.float32), ln_b=jnp.zeros((in_dim,), jnp.float32),
            # columns = [fwd r|z|n | bwd r|z|n] == concat of the two directions' W_ih^T
            w_ih=wmat((in_dim, 6 * H)), b_ih=rnd((6 * H,)),
            # w_hh[d] == direction-d weight_hh^T laid out (H, 3H), gates [r|z|n]
            w_hh=wmat((2, H, 3 * H)), b_hh=rnd((2, 1, 3 * H)),
        ))
    E = 2 * rnn_dim
    params["attn"] = dict(in_w=wmat((E, 3 * E)), in_b=rnd((3 * E,)),
                          out_w=wmat((E, E)), out_b=rnd((E,)))
    params["cls_w1"] = wmat((E, rnn_dim)); params["cls_b1"] = rnd((rnn_dim,))
    params["cls_w2"] = wmat((rnn_dim, n_class)); params["cls_b2"] = rnd((n_class,))
    return params


if __name__ == "__main__":
    B, T, N_FEATS = 2, 16, 16
    RNN_DIM, N_CLASS = 32, 30
    params = init_params(n_cnn_layers=3, n_rnn_layers=2, rnn_dim=RNN_DIM,
                         n_class=N_CLASS, n_feats=N_FEATS)
    x = jax.random.normal(jax.random.PRNGKey(0), (B, T, N_FEATS), dtype=jnp.float32)

    out = jax.jit(forward)(params, x)
    out = jax.block_until_ready(out)
    assert out.shape == (B, T // 2, N_CLASS), out.shape
    assert bool(jnp.all(jnp.isfinite(out)))
    print("KERNEL_OK")
</pallas_src>

<mosaic_0001>
module attributes {stable_mosaic.version = 11 : i64} {
  func.func @_cnn_ln_gelu_kernel(%arg0: i32, %arg1: memref<1x32x8x8xf32, #tpu.memory_space<vmem>>, %arg2: memref<1x1x8x1xf32, #tpu.memory_space<vmem>>, %arg3: memref<1x1x8x1xf32, #tpu.memory_space<vmem>>, %arg4: memref<1x32x8x8xbf16, #tpu.memory_space<vmem>>) attributes {dimension_semantics = [#tpu.dimension_semantics<parallel>], iteration_bounds = array<i64: 2>, scalar_prefetch = 0 : i64, scratch_operands = 0 : i64, tpu.core_type = #tpu.core_type<tc>, window_params = [{transform_indices = @transform_0, window_bounds = array<i64: 1, 32, 8, 8>}, {pipeline_mode = #tpu.pipeline_mode<synchronous>, transform_indices = @transform_1, window_bounds = array<i64: 1, 1, 8, 1>}, {pipeline_mode = #tpu.pipeline_mode<synchronous>, transform_indices = @transform_2, window_bounds = array<i64: 1, 1, 8, 1>}, {transform_indices = @transform_3, window_bounds = array<i64: 1, 32, 8, 8>}]} {
    %c0 = arith.constant 0 : index
    %c0_0 = arith.constant 0 : index
    %c0_1 = arith.constant 0 : index
    %c0_2 = arith.constant 0 : index
    %0 = vector.load %arg1[%c0, %c0_0, %c0_1, %c0_2] : memref<1x32x8x8xf32, #tpu.memory_space<vmem>>, vector<1x32x8x8xf32>
    %cst = arith.constant dense<0.000000e+00> : vector<1x32x8xf32>
    %1 = vector.multi_reduction <add>, %0, %cst [2] : vector<1x32x8x8xf32> to vector<1x32x8xf32>
    %2 = vector.shape_cast %1 : vector<1x32x8xf32> to vector<1x32x1x8xf32>
    %cst_3 = arith.constant 8.000000e+00 : f32
    %3 = vector.broadcast %cst_3 : f32 to vector<1x32x1x8xf32>
    %4 = arith.divf %2, %3 : vector<1x32x1x8xf32>
    %5 = vector.broadcast %4 : vector<1x32x1x8xf32> to vector<1x32x8x8xf32>
    %6 = arith.subf %0, %5 : vector<1x32x8x8xf32>
    %7 = arith.mulf %6, %6 : vector<1x32x8x8xf32>
    %cst_4 = arith.constant dense<0.000000e+00> : vector<1x32x8xf32>
    %8 = vector.multi_reduction <add>, %7, %cst_4 [2] : vector<1x32x8x8xf32> to vector<1x32x8xf32>
    %9 = vector.shape_cast %8 : vector<1x32x8xf32> to vector<1x32x1x8xf32>
    %cst_5 = arith.constant 8.000000e+00 : f32
    %10 = vector.broadcast %cst_5 : f32 to vector<1x32x1x8xf32>
    %11 = arith.divf %9, %10 : vector<1x32x1x8xf32>
    %cst_6 = arith.constant 9.99999974E-6 : f32
    %12 = vector.broadcast %cst_6 : f32 to vector<1x32x1x8xf32>
    %13 = arith.addf %11, %12 : vector<1x32x1x8xf32>
    %14 = math.rsqrt %13 : vector<1x32x1x8xf32>
    %15 = vector.broadcast %14 : vector<1x32x1x8xf32> to vector<1x32x8x8xf32>
    %16 = arith.mulf %6, %15 : vector<1x32x8x8xf32>
    %c0_7 = arith.constant 0 : index
    %c0_8 = arith.constant 0 : index
    %c0_9 = arith.constant 0 : index
    %c0_10 = arith.constant 0 : index
    %17 = vector.load %arg2[%c0_7, %c0_8, %c0_9, %c0_10] : memref<1x1x8x1xf32, #tpu.memory_space<vmem>>, vector<1x1x8x1xf32>
    %18 = vector.broadcast %17 : vector<1x1x8x1xf32> to vector<1x32x8x8xf32>
    %19 = arith.mulf %16, %18 : vector<1x32x8x8xf32>
    %c0_11 = arith.constant 0 : index
    %c0_12 = arith.constant 0 : index
    %c0_13 = arith.constant 0 : index
    %c0_14 = arith.constant 0 : index
    %20 = vector.load %arg3[%c0_11, %c0_12, %c0_13, %c0_14] : memref<1x1x8x1xf32, #tpu.memory_space<vmem>>, vector<1x1x8x1xf32>
    %21 = vector.broadcast %20 : vector<1x1x8x1xf32> to vector<1x32x8x8xf32>
    %22 = arith.addf %19, %21 : vector<1x32x8x8xf32>
    %cst_15 = arith.constant 5.000000e-01 : f32
    %23 = vector.broadcast %cst_15 : f32 to vector<1x32x8x8xf32>
    %24 = arith.mulf %23, %22 : vector<1x32x8x8xf32>
    %cst_16 = arith.constant 0.707106769 : f32
    %25 = vector.broadcast %cst_16 : f32 to vector<1x32x8x8xf32>
    %26 = arith.mulf %22, %25 : vector<1x32x8x8xf32>
    %27 = math.absf %26 : vector<1x32x8x8xf32>
    %cst_17 = arith.constant 0.327591091 : f32
    %28 = vector.broadcast %cst_17 : f32 to vector<1x32x8x8xf32>
    %29 = arith.mulf %28, %27 : vector<1x32x8x8xf32>
    %cst_18 = arith.constant 1.000000e+00 : f32
    %30 = vector.broadcast %cst_18 : f32 to vector<1x32x8x8xf32>
    %31 = arith.addf %30, %29 : vector<1x32x8x8xf32>
    %cst_19 = arith.constant 1.000000e+00 : f32
    %32 = vector.broadcast %cst_19 : f32 to vector<1x32x8x8xf32>
    %33 = arith.divf %32, %31 : vector<1x32x8x8xf32>
    %cst_20 = arith.constant 1.06140542 : f32
    %34 = vector.broadcast %cst_20 : f32 to vector<1x32x8x8xf32>
    %35 = arith.mulf %34, %33 : vector<1x32x8x8xf32>
    %cst_21 = arith.constant -1.45315206 : f32
    %36 = vector.broadcast %cst_21 : f32 to vector<1x32x8x8xf32>
    %37 = arith.addf %35, %36 : vector<1x32x8x8xf32>
    %38 = arith.mulf %37, %33 : vector<1x32x8x8xf32>
    %cst_22 = arith.constant 1.42141378 : f32
    %39 = vector.broadcast %cst_22 : f32 to vector<1x32x8x8xf32>
    %40 = arith.addf %38, %39 : vector<1x32x8x8xf32>
    %41 = arith.mulf %40, %33 : vector<1x32x8x8xf32>
    %cst_23 = arith.constant -0.284496725 : f32
    %42 = vector.broadcast %cst_23 : f32 to vector<1x32x8x8xf32>
    %43 = arith.addf %41, %42 : vector<1x32x8x8xf32>
    %44 = arith.mulf %43, %33 : vector<1x32x8x8xf32>
    %cst_24 = arith.constant 0.254829586 : f32
    %45 = vector.broadcast %cst_24 : f32 to vector<1x32x8x8xf32>
    %46 = arith.addf %44, %45 : vector<1x32x8x8xf32>
    %47 = arith.mulf %46, %33 : vector<1x32x8x8xf32>
    %cst_25 = arith.constant 0.000000e+00 : f32
    %48 = vector.broadcast %cst_25 : f32 to vector<1x32x8x8xf32>
    %49 = arith.subf %48, %27 : vector<1x32x8x8xf32>
    %50 = arith.mulf %49, %27 : vector<1x32x8x8xf32>
    %51 = math.exp %50 : vector<1x32x8x8xf32>
    %52 = arith.mulf %47, %51 : vector<1x32x8x8xf32>
    %cst_26 = arith.constant 1.000000e+00 : f32
    %53 = vector.broadcast %cst_26 : f32 to vector<1x32x8x8xf32>
    %54 = arith.subf %53, %52 : vector<1x32x8x8xf32>
    %cst_27 = arith.constant 0.000000e+00 : f32
    %55 = vector.broadcast %cst_27 : f32 to vector<1x32x8x8xf32>
    %56 = arith.cmpf oge, %26, %55 : vector<1x32x8x8xf32>
    %cst_28 = arith.constant 0.000000e+00 : f32
    %57 = vector.broadcast %cst_28 : f32 to vector<1x32x8x8xf32>
    %58 = arith.subf %57, %54 : vector<1x32x8x8xf32>
    %59 = arith.select %56, %54, %58 : vector<1x32x8x8xi1>, vector<1x32x8x8xf32>
    %cst_29 = arith.constant 1.000000e+00 : f32
    %60 = vector.broadcast %cst_29 : f32 to vector<1x32x8x8xf32>
    %61 = arith.addf %60, %59 : vector<1x32x8x8xf32>
    %62 = arith.mulf %24, %61 : vector<1x32x8x8xf32>
    %63 = arith.truncf %62 : vector<1x32x8x8xf32> to vector<1x32x8x8xbf16>
    %c0_30 = arith.constant 0 : index
    %c0_31 = arith.constant 0 : index
    %c0_32 = arith.constant 0 : index
    %c0_33 = arith.constant 0 : index
    %64 = vector.load %arg4[%c0_30, %c0_31, %c0_32, %c0_33] : memref<1x32x8x8xbf16, #tpu.memory_space<vmem>>, vector<1x32x8x8xbf16>
    tpu.vector_store %arg4[%c0_30, %c0_31, %c0_32, %c0_33], %63 {strides = array<i32>} : memref<1x32x8x8xbf16, #tpu.memory_space<vmem>>, vector<1x32x8x8xbf16>,
    return
  }
  func.func @transform_0(%arg0: i32) -> (i32, i32, i32, i32) {
    %c0_i32 = arith.constant 0 : i32
    %c0_i32_0 = arith.constant 0 : i32
    %c0_i32_1 = arith.constant 0 : i32
    %c0_i32_2 = arith.constant 0 : i32
    return %arg0, %c0_i32, %c0_i32_0, %c0_i32_1 : i32, i32, i32, i32
  }
  func.func @transform_1(%arg0: i32) -> (i32, i32, i32, i32) {
    %c0_i32 = arith.constant 0 : i32
    %c0_i32_0 = arith.constant 0 : i32
    %c0_i32_1 = arith.constant 0 : i32
    %c0_i32_2 = arith.constant 0 : i32
    %c0_i32_3 = arith.constant 0 : i32
    return %c0_i32, %c0_i32_0, %c0_i32_1, %c0_i32_2 : i32, i32, i32, i32
  }
  func.func @transform_2(%arg0: i32) -> (i32, i32, i32, i32) {
    %c0_i32 = arith.constant 0 : i32
    %c0_i32_0 = arith.constant 0 : i32
    %c0_i32_1 = arith.constant 0 : i32
    %c0_i32_2 = arith.constant 0 : i32
    %c0_i32_3 = arith.constant 0 : i32
    return %c0_i32, %c0_i32_0, %c0_i32_1, %c0_i32_2 : i32, i32, i32, i32
  }
  func.func @transform_3(%arg0: i32) -> (i32, i32, i32, i32) {
    %c0_i32 = arith.constant 0 : i32
    %c0_i32_0 = arith.constant 0 : i32
    %c0_i32_1 = arith.constant 0 : i32
    %c0_i32_2 = arith.constant 0 : i32
    return %arg0, %c0_i32, %c0_i32_0, %c0_i32_1 : i32, i32, i32, i32
  }
}

module attributes {stable_mosaic.version = 11 : i64} {
  func.func @_conv_kernel(%arg0: i32, %arg1: i32, %arg2: memref<1x9x64xbf16, #tpu.memory_space<vmem>>, %arg3: memref<32x9xbf16, #tpu.memory_space<vmem>>, %arg4: memref<32x1xf32, #tpu.memory_space<vmem>>, %arg5: memref<1x32x64xf32, #tpu.memory_space<vmem>>) attributes {dimension_semantics = [#tpu.dimension_semantics<parallel>, #tpu.dimension_semantics<parallel>], iteration_bounds = array<i64: 2, 1>, scalar_prefetch = 0 : i64, scratch_operands = 0 : i64, tpu.core_type = #tpu.core_type<tc>, window_params = [{transform_indices = @transform_0, window_bounds = array<i64: 1, 9, 64>}, {pipeline_mode = #tpu.pipeline_mode<synchronous>, transform_indices = @transform_1, window_bounds = array<i64: 32, 9>}, {pipeline_mode = #tpu.pipeline_mode<synchronous>, transform_indices = @transform_2, window_bounds = array<i64: 32, 1>}, {transform_indices = @transform_3, window_bounds = array<i64: 1, 32, 64>}]} {
    %c0 = arith.constant 0 : index
    %c0_0 = arith.constant 0 : index
    %0 = vector.load %arg3[%c0, %c0_0] : memref<32x9xbf16, #tpu.memory_space<vmem>>, vector<32x9xbf16>
    %c0_1 = arith.constant 0 : index
    %c0_2 = arith.constant 0 : index
    %c0_3 = arith.constant 0 : index
    %1 = vector.load %arg2[%c0_1, %c0_2, %c0_3] : memref<1x9x64xbf16, #tpu.memory_space<vmem>>, vector<1x9x64xbf16>
    %2 = vector.shape_cast %1 : vector<1x9x64xbf16> to vector<9x64xbf16>
    %cst = arith.constant dense<0.000000e+00> : vector<32x64xf32>
    %3 = tpu.matmul %0, %2, %cst {dimension_numbers = #tpu.dot_dimension_numbers<[1], [0], [0], [1], [0, 0, 1, 1], [], []>} : vector<32x9xbf16>, vector<9x64xbf16>, vector<32x64xf32> -> vector<32x64xf32>
    %c0_4 = arith.constant 0 : index
    %c0_5 = arith.constant 0 : index
    %4 = vector.load %arg4[%c0_4, %c0_5] : memref<32x1xf32, #tpu.memory_space<vmem>>, vector<32x1xf32>
    %5 = vector.broadcast %4 : vector<32x1xf32> to vector<32x64xf32>
    %6 = arith.addf %3, %5 : vector<32x64xf32>
    %c0_6 = arith.constant 0 : index
    %c0_7 = arith.constant 0 : index
    %c0_8 = arith.constant 0 : index
    %7 = vector.load %arg5[%c0_6, %c0_7, %c0_8] : memref<1x32x64xf32, #tpu.memory_space<vmem>>, vector<1x32x64xf32>
    %8 = vector.shape_cast %7 : vector<1x32x64xf32> to vector<32x64xf32>
    %9 = vector.shape_cast %6 : vector<32x64xf32> to vector<1x32x64xf32>
    tpu.vector_store %arg5[%c0_6, %c0_7, %c0_8], %9 {strides = array<i32>} : memref<1x32x64xf32, #tpu.memory_space<vmem>>, vector<1x32x64xf32>,
    return
  }
  func.func @transform_0(%arg0: i32, %arg1: i32) -> (i32, i32, i32) {
    %c0_i32 = arith.constant 0 : i32
    %c0_i32_0 = arith.constant 0 : i32
    return %arg0, %c0_i32, %arg1 : i32, i32, i32
  }
  func.func @transform_1(%arg0: i32, %arg1: i32) -> (i32, i32) {
    %c0_i32 = arith.constant 0 : i32
    %c0_i32_0 = arith.constant 0 : i32
    %c0_i32_1 = arith.constant 0 : i32
    return %c0_i32, %c0_i32_0 : i32, i32
  }
  func.func @transform_2(%arg0: i32, %arg1: i32) -> (i32, i32) {
    %c0_i32 = arith.constant 0 : i32
    %c0_i32_0 = arith.constant 0 : i32
    %c0_i32_1 = arith.constant 0 : i32
    return %c0_i32, %c0_i32_0 : i32, i32
  }
  func.func @transform_3(%arg0: i32, %arg1: i32) -> (i32, i32, i32) {
    %c0_i32 = arith.constant 0 : i32
    %c0_i32_0 = arith.constant 0 : i32
    return %arg0, %c0_i32, %arg1 : i32, i32, i32
  }
}

module attributes {stable_mosaic.version = 11 : i64} {
  func.func @_conv_kernel(%arg0: i32, %arg1: i32, %arg2: memref<1x288x64xbf16, #tpu.memory_space<vmem>>, %arg3: memref<32x288xbf16, #tpu.memory_space<vmem>>, %arg4: memref<32x1xf32, #tpu.memory_space<vmem>>, %arg5: memref<1x32x64xf32, #tpu.memory_space<vmem>>) attributes {dimension_semantics = [#tpu.dimension_semantics<parallel>, #tpu.dimension_semantics<parallel>], iteration_bounds = array<i64: 2, 1>, scalar_prefetch = 0 : i64, scratch_operands = 0 : i64, tpu.core_type = #tpu.core_type<tc>, window_params = [{transform_indices = @transform_0, window_bounds = array<i64: 1, 288, 64>}, {pipeline_mode = #tpu.pipeline_mode<synchronous>, transform_indices = @transform_1, window_bounds = array<i64: 32, 288>}, {pipeline_mode = #tpu.pipeline_mode<synchronous>, transform_indices = @transform_2, window_bounds = array<i64: 32, 1>}, {transform_indices = @transform_3, window_bounds = array<i64: 1, 32, 64>}]} {
    %c0 = arith.constant 0 : index
    %c0_0 = arith.constant 0 : index
    %0 = vector.load %arg3[%c0, %c0_0] : memref<32x288xbf16, #tpu.memory_space<vmem>>, vector<32x288xbf16>
    %c0_1 = arith.constant 0 : index
    %c0_2 = arith.constant 0 : index
    %c0_3 = arith.constant 0 : index
    %1 = vector.load %arg2[%c0_1, %c0_2, %c0_3] : memref<1x288x64xbf16, #tpu.memory_space<vmem>>, vector<1x288x64xbf16>
    %2 = vector.shape_cast %1 : vector<1x288x64xbf16> to vector<288x64xbf16>
    %cst = arith.constant dense<0.000000e+00> : vector<32x64xf32>
    %3 = tpu.matmul %0, %2, %cst {dimension_numbers = #tpu.dot_dimension_numbers<[1], [0], [0], [1], [0, 0, 1, 1], [], []>} : vector<32x288xbf16>, vector<288x64xbf16>, vector<32x64xf32> -> vector<32x64xf32>
    %c0_4 = arith.constant 0 : index
    %c0_5 = arith.constant 0 : index
    %4 = vector.load %arg4[%c0_4, %c0_5] : memref<32x1xf32, #tpu.memory_space<vmem>>, vector<32x1xf32>
    %5 = vector.broadcast %4 : vector<32x1xf32> to vector<32x64xf32>
    %6 = arith.addf %3, %5 : vector<32x64xf32>
    %c0_6 = arith.constant 0 : index
    %c0_7 = arith.constant 0 : index
    %c0_8 = arith.constant 0 : index
    %7 = vector.load %arg5[%c0_6, %c0_7, %c0_8] : memref<1x32x64xf32, #tpu.memory_space<vmem>>, vector<1x32x64xf32>
    %8 = vector.shape_cast %7 : vector<1x32x64xf32> to vector<32x64xf32>
    %9 = vector.shape_cast %6 : vector<32x64xf32> to vector<1x32x64xf32>
    tpu.vector_store %arg5[%c0_6, %c0_7, %c0_8], %9 {strides = array<i32>} : memref<1x32x64xf32, #tpu.memory_space<vmem>>, vector<1x32x64xf32>,
    return
  }
  func.func @transform_0(%arg0: i32, %arg1: i32) -> (i32, i32, i32) {
    %c0_i32 = arith.constant 0 : i32
    %c0_i32_0 = arith.constant 0 : i32
    return %arg0, %c0_i32, %arg1 : i32, i32, i32
  }
  func.func @transform_1(%arg0: i32, %arg1: i32) -> (i32, i32) {
    %c0_i32 = arith.constant 0 : i32
    %c0_i32_0 = arith.constant 0 : i32
    %c0_i32_1 = arith.constant 0 : i32
    return %c0_i32, %c0_i32_0 : i32, i32
  }
  func.func @transform_2(%arg0: i32, %arg1: i32) -> (i32, i32) {
    %c0_i32 = arith.constant 0 : i32
    %c0_i32_0 = arith.constant 0 : i32
    %c0_i32_1 = arith.constant 0 : i32
    return %c0_i32, %c0_i32_0 : i32, i32
  }
  func.func @transform_3(%arg0: i32, %arg1: i32) -> (i32, i32, i32) {
    %c0_i32 = arith.constant 0 : i32
    %c0_i32_0 = arith.constant 0 : i32
    return %arg0, %c0_i32, %arg1 : i32, i32, i32
  }
}

module attributes {stable_mosaic.version = 11 : i64} {
  func.func @_conv_res_kernel(%arg0: i32, %arg1: i32, %arg2: memref<1x288x64xbf16, #tpu.memory_space<vmem>>, %arg3: memref<32x288xbf16, #tpu.memory_space<vmem>>, %arg4: memref<32x1xf32, #tpu.memory_space<vmem>>, %arg5: memref<1x32x64xf32, #tpu.memory_space<vmem>>, %arg6: memref<1x32x64xf32, #tpu.memory_space<vmem>>) attributes {dimension_semantics = [#tpu.dimension_semantics<parallel>, #tpu.dimension_semantics<parallel>], iteration_bounds = array<i64: 2, 1>, scalar_prefetch = 0 : i64, scratch_operands = 0 : i64, tpu.core_type = #tpu.core_type<tc>, window_params = [{transform_indices = @transform_0, window_bounds = array<i64: 1, 288, 64>}, {pipeline_mode = #tpu.pipeline_mode<synchronous>, transform_indices = @transform_1, window_bounds = array<i64: 32, 288>}, {pipeline_mode = #tpu.pipeline_mode<synchronous>, transform_indices = @transform_2, window_bounds = array<i64: 32, 1>}, {transform_indices = @transform_3, window_bounds = array<i64: 1, 32, 64>}, {transform_indices = @transform_4, window_bounds = array<i64: 1, 32, 64>}]} {
    %c0 = arith.constant 0 : index
    %c0_0 = arith.constant 0 : index
    %0 = vector.load %arg3[%c0, %c0_0] : memref<32x288xbf16, #tpu.memory_space<vmem>>, vector<32x288xbf16>
    %c0_1 = arith.constant 0 : index
    %c0_2 = arith.constant 0 : index
    %c0_3 = arith.constant 0 : index
    %1 = vector.load %arg2[%c0_1, %c0_2, %c0_3] : memref<1x288x64xbf16, #tpu.memory_space<vmem>>, vector<1x288x64xbf16>
    %2 = vector.shape_cast %1 : vector<1x288x64xbf16> to vector<288x64xbf16>
    %cst = arith.constant dense<0.000000e+00> : vector<32x64xf32>
    %3 = tpu.matmul %0, %2, %cst {dimension_numbers = #tpu.dot_dimension_numbers<[1], [0], [0], [1], [0, 0, 1, 1], [], []>} : vector<32x288xbf16>, vector<288x64xbf16>, vector<32x64xf32> -> vector<32x64xf32>
    %c0_4 = arith.constant 0 : index
    %c0_5 = arith.constant 0 : index
    %4 = vector.load %arg4[%c0_4, %c0_5] : memref<32x1xf32, #tpu.memory_space<vmem>>, vector<32x1xf32>
    %5 = vector.broadcast %4 : vector<32x1xf32> to vector<32x64xf32>
    %6 = arith.addf %3, %5 : vector<32x64xf32>
    %c0_6 = arith.constant 0 : index
    %c0_7 = arith.constant 0 : index
    %c0_8 = arith.constant 0 : index
    %7 = vector.load %arg5[%c0_6, %c0_7, %c0_8] : memref<1x32x64xf32, #tpu.memory_space<vmem>>, vector<1x32x64xf32>
    %8 = vector.shape_cast %7 : vector<1x32x64xf32> to vector<32x64xf32>
    %9 = arith.addf %6, %8 : vector<32x64xf32>
    %c0_9 = arith.constant 0 : index
    %c0_10 = arith.constant 0 : index
    %c0_11 = arith.constant 0 : index
    %10 = vector.load %arg6[%c0_9, %c0_10, %c0_11] : memref<1x32x64xf32, #tpu.memory_space<vmem>>, vector<1x32x64xf32>
    %11 = vector.shape_cast %10 : vector<1x32x64xf32> to vector<32x64xf32>
    %12 = vector.shape_cast %9 : vector<32x64xf32> to vector<1x32x64xf32>
    tpu.vector_store %arg6[%c0_9, %c0_10, %c0_11], %12 {strides = array<i32>} : memref<1x32x64xf32, #tpu.memory_space<vmem>>, vector<1x32x64xf32>,
    return
  }
  func.func @transform_0(%arg0: i32, %arg1: i32) -> (i32, i32, i32) {
    %c0_i32 = arith.constant 0 : i32
    %c0_i32_0 = arith.constant 0 : i32
    return %arg0, %c0_i32, %arg1 : i32, i32, i32
  }
  func.func @transform_1(%arg0: i32, %arg1: i32) -> (i32, i32) {
    %c0_i32 = arith.constant 0 : i32
    %c0_i32_0 = arith.constant 0 : i32
    %c0_i32_1 = arith.constant 0 : i32
    return %c0_i32, %c0_i32_0 : i32, i32
  }
  func.func @transform_2(%arg0: i32, %arg1: i32) -> (i32, i32) {
    %c0_i32 = arith.constant 0 : i32
    %c0_i32_0 = arith.constant 0 : i32
    %c0_i32_1 = arith.constant 0 : i32
    return %c0_i32, %c0_i32_0 : i32, i32
  }
  func.func @transform_3(%arg0: i32, %arg1: i32) -> (i32, i32, i32) {
    %c0_i32 = arith.constant 0 : i32
    %c0_i32_0 = arith.constant 0 : i32
    return %arg0, %c0_i32, %arg1 : i32, i32, i32
  }
  func.func @transform_4(%arg0: i32, %arg1: i32) -> (i32, i32, i32) {
    %c0_i32 = arith.constant 0 : i32
    %c0_i32_0 = arith.constant 0 : i32
    return %arg0, %c0_i32, %arg1 : i32, i32, i32
  }
}

module attributes {stable_mosaic.version = 11 : i64} {
  func.func @_ln_gelu_linear_kernel(%arg0: i32, %arg1: memref<16x32xf32, #tpu.memory_space<vmem>>, %arg2: memref<1x32xf32, #tpu.memory_space<vmem>>, %arg3: memref<1x32xf32, #tpu.memory_space<vmem>>, %arg4: memref<32x192xbf16, #tpu.memory_space<vmem>>, %arg5: memref<1x192xf32, #tpu.memory_space<vmem>>, %arg6: memref<16x192xf32, #tpu.memory_space<vmem>>) attributes {dimension_semantics = [#tpu.dimension_semantics<parallel>], iteration_bounds = array<i64: 1>, scalar_prefetch = 0 : i64, scratch_operands = 0 : i64, tpu.core_type = #tpu.core_type<tc>, window_params = [{transform_indices = @transform_0, window_bounds = array<i64: 16, 32>}, {pipeline_mode = #tpu.pipeline_mode<synchronous>, transform_indices = @transform_1, window_bounds = array<i64: 1, 32>}, {pipeline_mode = #tpu.pipeline_mode<synchronous>, transform_indices = @transform_2, window_bounds = array<i64: 1, 32>}, {pipeline_mode = #tpu.pipeline_mode<synchronous>, transform_indices = @transform_3, window_bounds = array<i64: 32, 192>}, {pipeline_mode = #tpu.pipeline_mode<synchronous>, transform_indices = @transform_4, window_bounds = array<i64: 1, 192>}, {transform_indices = @transform_5, window_bounds = array<i64: 16, 192>}]} {
    %c0 = arith.constant 0 : index
    %c0_0 = arith.constant 0 : index
    %0 = vector.load %arg1[%c0, %c0_0] : memref<16x32xf32, #tpu.memory_space<vmem>>, vector<16x32xf32>
    %cst = arith.constant dense<0.000000e+00> : vector<16xf32>
    %1 = vector.multi_reduction <add>, %0, %cst [1] : vector<16x32xf32> to vector<16xf32>
    %2 = vector.shape_cast %1 : vector<16xf32> to vector<16x1xf32>
    %cst_1 = arith.constant 3.200000e+01 : f32
    %3 = vector.broadcast %cst_1 : f32 to vector<16x1xf32>
    %4 = arith.divf %2, %3 : vector<16x1xf32>
    %5 = vector.broadcast %4 : vector<16x1xf32> to vector<16x32xf32>
    %6 = arith.subf %0, %5 : vector<16x32xf32>
    %7 = arith.mulf %6, %6 : vector<16x32xf32>
    %cst_2 = arith.constant dense<0.000000e+00> : vector<16xf32>
    %8 = vector.multi_reduction <add>, %7, %cst_2 [1] : vector<16x32xf32> to vector<16xf32>
    %9 = vector.shape_cast %8 : vector<16xf32> to vector<16x1xf32>
    %cst_3 = arith.constant 3.200000e+01 : f32
    %10 = vector.broadcast %cst_3 : f32 to vector<16x1xf32>
    %11 = arith.divf %9, %10 : vector<16x1xf32>
    %cst_4 = arith.constant 9.99999974E-6 : f32
    %12 = vector.broadcast %cst_4 : f32 to vector<16x1xf32>
    %13 = arith.addf %11, %12 : vector<16x1xf32>
    %14 = math.rsqrt %13 : vector<16x1xf32>
    %15 = vector.broadcast %14 : vector<16x1xf32> to vector<16x32xf32>
    %16 = arith.mulf %6, %15 : vector<16x32xf32>
    %c0_5 = arith.constant 0 : index
    %c0_6 = arith.constant 0 : index
    %17 = vector.load %arg2[%c0_5, %c0_6] : memref<1x32xf32, #tpu.memory_space<vmem>>, vector<1x32xf32>
    %18 = vector.broadcast %17 : vector<1x32xf32> to vector<16x32xf32>
    %19 = arith.mulf %16, %18 : vector<16x32xf32>
    %c0_7 = arith.constant 0 : index
    %c0_8 = arith.constant 0 : index
    %20 = vector.load %arg3[%c0_7, %c0_8] : memref<1x32xf32, #tpu.memory_space<vmem>>, vector<1x32xf32>
    %21 = vector.broadcast %20 : vector<1x32xf32> to vector<16x32xf32>
    %22 = arith.addf %19, %21 : vector<16x32xf32>
    %cst_9 = arith.constant 5.000000e-01 : f32
    %23 = vector.broadcast %cst_9 : f32 to vector<16x32xf32>
    %24 = arith.mulf %23, %22 : vector<16x32xf32>
    %cst_10 = arith.constant 0.707106769 : f32
    %25 = vector.broadcast %cst_10 : f32 to vector<16x32xf32>
    %26 = arith.mulf %22, %25 : vector<16x32xf32>
    %27 = math.absf %26 : vector<16x32xf32>
    %cst_11 = arith.constant 0.327591091 : f32
    %28 = vector.broadcast %cst_11 : f32 to vector<16x32xf32>
    %29 = arith.mulf %28, %27 : vector<16x32xf32>
    %cst_12 = arith.constant 1.000000e+00 : f32
    %30 = vector.broadcast %cst_12 : f32 to vector<16x32xf32>
    %31 = arith.addf %30, %29 : vector<16x32xf32>
    %cst_13 = arith.constant 1.000000e+00 : f32
    %32 = vector.broadcast %cst_13 : f32 to vector<16x32xf32>
    %33 = arith.divf %32, %31 : vector<16x32xf32>
    %cst_14 = arith.constant 1.06140542 : f32
    %34 = vector.broadcast %cst_14 : f32 to vector<16x32xf32>
    %35 = arith.mulf %34, %33 : vector<16x32xf32>
    %cst_15 = arith.constant -1.45315206 : f32
    %36 = vector.broadcast %cst_15 : f32 to vector<16x32xf32>
    %37 = arith.addf %35, %36 : vector<16x32xf32>
    %38 = arith.mulf %37, %33 : vector<16x32xf32>
    %cst_16 = arith.constant 1.42141378 : f32
    %39 = vector.broadcast %cst_16 : f32 to vector<16x32xf32>
    %40 = arith.addf %38, %39 : vector<16x32xf32>
    %41 = arith.mulf %40, %33 : vector<16x32xf32>
    %cst_17 = arith.constant -0.284496725 : f32
    %42 = vector.broadcast %cst_17 : f32 to vector<16x32xf32>
    %43 = arith.addf %41, %42 : vector<16x32xf32>
    %44 = arith.mulf %43, %33 : vector<16x32xf32>
    %cst_18 = arith.constant 0.254829586 : f32
    %45 = vector.broadcast %cst_18 : f32 to vector<16x32xf32>
    %46 = arith.addf %44, %45 : vector<16x32xf32>
    %47 = arith.mulf %46, %33 : vector<16x32xf32>
    %cst_19 = arith.constant 0.000000e+00 : f32
    %48 = vector.broadcast %cst_19 : f32 to vector<16x32xf32>
    %49 = arith.subf %48, %27 : vector<16x32xf32>
    %50 = arith.mulf %49, %27 : vector<16x32xf32>
    %51 = math.exp %50 : vector<16x32xf32>
    %52 = arith.mulf %47, %51 : vector<16x32xf32>
    %cst_20 = arith.constant 1.000000e+00 : f32
    %53 = vector.broadcast %cst_20 : f32 to vector<16x32xf32>
    %54 = arith.subf %53, %52 : vector<16x32xf32>
    %cst_21 = arith.constant 0.000000e+00 : f32
    %55 = vector.broadcast %cst_21 : f32 to vector<16x32xf32>
    %56 = arith.cmpf oge, %26, %55 : vector<16x32xf32>
    %cst_22 = arith.constant 0.000000e+00 : f32
    %57 = vector.broadcast %cst_22 : f32 to vector<16x32xf32>
    %58 = arith.subf %57, %54 : vector<16x32xf32>
    %59 = arith.select %56, %54, %58 : vector<16x32xi1>, vector<16x32xf32>
    %cst_23 = arith.constant 1.000000e+00 : f32
    %60 = vector.broadcast %cst_23 : f32 to vector<16x32xf32>
    %61 = arith.addf %60, %59 : vector<16x32xf32>
    %62 = arith.mulf %24, %61 : vector<16x32xf32>
    %63 = arith.truncf %62 : vector<16x32xf32> to vector<16x32xbf16>
    %c0_24 = arith.constant 0 : index
    %c0_25 = arith.constant 0 : index
    %64 = vector.load %arg4[%c0_24, %c0_25] : memref<32x192xbf16, #tpu.memory_space<vmem>>, vector<32x192xbf16>
    %cst_26 = arith.constant dense<0.000000e+00> : vector<16x192xf32>
    %65 = tpu.matmul %63, %64, %cst_26 {dimension_numbers = #tpu.dot_dimension_numbers<[1], [0], [0], [1], [0, 0, 1, 1], [], []>} : vector<16x32xbf16>, vector<32x192xbf16>, vector<16x192xf32> -> vector<16x192xf32>
    %c0_27 = arith.constant 0 : index
    %c0_28 = arith.constant 0 : index
    %66 = vector.load %arg5[%c0_27, %c0_28] : memref<1x192xf32, #tpu.memory_space<vmem>>, vector<1x192xf32>
    %67 = vector.broadcast %66 : vector<1x192xf32> to vector<16x192xf32>
    %68 = arith.addf %65, %67 : vector<16x192xf32>
    %c0_29 = arith.constant 0 : index
    %c0_30 = arith.constant 0 : index
    %69 = vector.load %arg6[%c0_29, %c0_30] : memref<16x192xf32, #tpu.memory_space<vmem>>, vector<16x192xf32>
    tpu.vector_store %arg6[%c0_29, %c0_30], %68 {strides = array<i32>} : memref<16x192xf32, #tpu.memory_space<vmem>>, vector<16x192xf32>,
    return
  }
  func.func @transform_0(%arg0: i32) -> (i32, i32) {
    %c0_i32 = arith.constant 0 : i32
    %c0_i32_0 = arith.constant 0 : i32
    return %arg0, %c0_i32 : i32, i32
  }
  func.func @transform_1(%arg0: i32) -> (i32, i32) {
    %c0_i32 = arith.constant 0 : i32
    %c0_i32_0 = arith.constant 0 : i32
    %c0_i32_1 = arith.constant 0 : i32
    return %c0_i32, %c0_i32_0 : i32, i32
  }
  func.func @transform_2(%arg0: i32) -> (i32, i32) {
    %c0_i32 = arith.constant 0 : i32
    %c0_i32_0 = arith.constant 0 : i32
    %c0_i32_1 = arith.constant 0 : i32
    return %c0_i32, %c0_i32_0 : i32, i32
  }
  func.func @transform_3(%arg0: i32) -> (i32, i32) {
    %c0_i32 = arith.constant 0 : i32
    %c0_i32_0 = arith.constant 0 : i32
    %c0_i32_1 = arith.constant 0 : i32
    return %c0_i32, %c0_i32_0 : i32, i32
  }
  func.func @transform_4(%arg0: i32) -> (i32, i32) {
    %c0_i32 = arith.constant 0 : i32
    %c0_i32_0 = arith.constant 0 : i32
    %c0_i32_1 = arith.constant 0 : i32
    return %c0_i32, %c0_i32_0 : i32, i32
  }
  func.func @transform_5(%arg0: i32) -> (i32, i32) {
    %c0_i32 = arith.constant 0 : i32
    %c0_i32_0 = arith.constant 0 : i32
    return %arg0, %c0_i32 : i32, i32
  }
}

module attributes {stable_mosaic.version = 11 : i64} {
  func.func @_linear_kernel(%arg0: i32, %arg1: memref<16x256xf32, #tpu.memory_space<vmem>>, %arg2: memref<256x32xbf16, #tpu.memory_space<vmem>>, %arg3: memref<1x32xf32, #tpu.memory_space<vmem>>, %arg4: memref<16x32xf32, #tpu.memory_space<vmem>>) attributes {dimension_semantics = [#tpu.dimension_semantics<parallel>], iteration_bounds = array<i64: 1>, scalar_prefetch = 0 : i64, scratch_operands = 0 : i64, tpu.core_type = #tpu.core_type<tc>, window_params = [{transform_indices = @transform_0, window_bounds = array<i64: 16, 256>}, {pipeline_mode = #tpu.pipeline_mode<synchronous>, transform_indices = @transform_1, window_bounds = array<i64: 256, 32>}, {pipeline_mode = #tpu.pipeline_mode<synchronous>, transform_indices = @transform_2, window_bounds = array<i64: 1, 32>}, {transform_indices = @transform_3, window_bounds = array<i64: 16, 32>}]} {
    %c0 = arith.constant 0 : index
    %c0_0 = arith.constant 0 : index
    %0 = vector.load %arg1[%c0, %c0_0] : memref<16x256xf32, #tpu.memory_space<vmem>>, vector<16x256xf32>
    %1 = arith.truncf %0 : vector<16x256xf32> to vector<16x256xbf16>
    %c0_1 = arith.constant 0 : index
    %c0_2 = arith.constant 0 : index
    %2 = vector.load %arg2[%c0_1, %c0_2] : memref<256x32xbf16, #tpu.memory_space<vmem>>, vector<256x32xbf16>
    %cst = arith.constant dense<0.000000e+00> : vector<16x32xf32>
    %3 = tpu.matmul %1, %2, %cst {dimension_numbers = #tpu.dot_dimension_numbers<[1], [0], [0], [1], [0, 0, 1, 1], [], []>} : vector<16x256xbf16>, vector<256x32xbf16>, vector<16x32xf32> -> vector<16x32xf32>
    %c0_3 = arith.constant 0 : index
    %c0_4 = arith.constant 0 : index
    %4 = vector.load %arg3[%c0_3, %c0_4] : memref<1x32xf32, #tpu.memory_space<vmem>>, vector<1x32xf32>
    %5 = vector.broadcast %4 : vector<1x32xf32> to vector<16x32xf32>
    %6 = arith.addf %3, %5 : vector<16x32xf32>
    %c0_5 = arith.constant 0 : index
    %c0_6 = arith.constant 0 : index
    %7 = vector.load %arg4[%c0_5, %c0_6] : memref<16x32xf32, #tpu.memory_space<vmem>>, vector<16x32xf32>
    tpu.vector_store %arg4[%c0_5, %c0_6], %6 {strides = array<i32>} : memref<16x32xf32, #tpu.memory_space<vmem>>, vector<16x32xf32>,
    return
  }
  func.func @transform_0(%arg0: i32) -> (i32, i32) {
    %c0_i32 = arith.constant 0 : i32
    %c0_i32_0 = arith.constant 0 : i32
    return %arg0, %c0_i32 : i32, i32
  }
  func.func @transform_1(%arg0: i32) -> (i32, i32) {
    %c0_i32 = arith.constant 0 : i32
    %c0_i32_0 = arith.constant 0 : i32
    %c0_i32_1 = arith.constant 0 : i32
    return %c0_i32, %c0_i32_0 : i32, i32
  }
  func.func @transform_2(%arg0: i32) -> (i32, i32) {
    %c0_i32 = arith.constant 0 : i32
    %c0_i32_0 = arith.constant 0 : i32
    %c0_i32_1 = arith.constant 0 : i32
    return %c0_i32, %c0_i32_0 : i32, i32
  }
  func.func @transform_3(%arg0: i32) -> (i32, i32) {
    %c0_i32 = arith.constant 0 : i32
    %c0_i32_0 = arith.constant 0 : i32
    return %arg0, %c0_i32 : i32, i32
  }
}

module attributes {stable_mosaic.version = 11 : i64} {
  func.func @_gru_scan_kernel(%arg0: i32, %arg1: i32, %arg2: memref<1x8x2x96xf32, #tpu.memory_space<vmem>>, %arg3: memref<1x32x96xbf16, #tpu.memory_space<vmem>>, %arg4: memref<1x1x96xf32, #tpu.memory_space<vmem>>, %arg5: memref<1x8x2x32xf32, #tpu.memory_space<vmem>>, %arg6: memref<2x32xf32, #tpu.memory_space<vmem>>) attributes {dimension_semantics = [#tpu.dimension_semantics<parallel>, #tpu.dimension_semantics<arbitrary>], iteration_bounds = array<i64: 2, 1>, scalar_prefetch = 0 : i64, scratch_operands = 1 : i64, tpu.core_type = #tpu.core_type<tc>, window_params = [{transform_indices = @transform_0, window_bounds = array<i64: 1, 8, 2, 96>}, {transform_indices = @transform_1, window_bounds = array<i64: 1, 32, 96>}, {transform_indices = @transform_2, window_bounds = array<i64: 1, 1, 96>}, {transform_indices = @transform_3, window_bounds = array<i64: 1, 8, 2, 32>}]} {
    %c0_i32 = arith.constant 0 : i32
    %0 = arith.cmpi eq, %arg1, %c0_i32 : i32
    %1 = arith.extui %0 : i1 to i32
    %c0_i32_0 = arith.constant 0 : i32
    %2 = arith.cmpi ne, %1, %c0_i32_0 : i32
    scf.if %2 {
      %cst_126 = arith.constant 0.000000e+00 : f32
      %303 = vector.broadcast %cst_126 : f32 to vector<2x32xf32>
      %c0_127 = arith.constant 0 : index
      %c0_128 = arith.constant 0 : index
      %304 = vector.load %arg6[%c0_127, %c0_128] : memref<2x32xf32, #tpu.memory_space<vmem>>, vector<2x32xf32>
      tpu.vector_store %arg6[%c0_127, %c0_128], %303 {strides = array<i32>} : memref<2x32xf32, #tpu.memory_space<vmem>>, vector<2x32xf32>,
    } else {
    }
    %c0 = arith.constant 0 : index
    %c0_1 = arith.constant 0 : index
    %c0_2 = arith.constant 0 : index
    %3 = vector.load %arg3[%c0, %c0_1, %c0_2] : memref<1x32x96xbf16, #tpu.memory_space<vmem>>, vector<1x32x96xbf16>
    %4 = vector.shape_cast %3 : vector<1x32x96xbf16> to vector<32x96xbf16>
    %c0_3 = arith.constant 0 : index
    %c0_4 = arith.constant 0 : index
    %c0_5 = arith.constant 0 : index
    %5 = vector.load %arg4[%c0_3, %c0_4, %c0_5] : memref<1x1x96xf32, #tpu.memory_space<vmem>>, vector<1x1x96xf32>
    %6 = vector.shape_cast %5 : vector<1x1x96xf32> to vector<1x96xf32>
    %c0_6 = arith.constant 0 : index
    %c0_7 = arith.constant 0 : index
    %7 = vector.load %arg6[%c0_6, %c0_7] : memref<2x32xf32, #tpu.memory_space<vmem>>, vector<2x32xf32>
    %c0_8 = arith.constant 0 : index
    %c0_9 = arith.constant 0 : index
    %c0_10 = arith.constant 0 : index
    %c0_11 = arith.constant 0 : index
    %8 = vector.load %arg2[%c0_8, %c0_9, %c0_10, %c0_11] : memref<1x8x2x96xf32, #tpu.memory_space<vmem>>, vector<1x1x2x96xf32>
    %9 = vector.shape_cast %8 : vector<1x1x2x96xf32> to vector<2x96xf32>
    %10 = arith.truncf %7 : vector<2x32xf32> to vector<2x32xbf16>
    %cst = arith.constant dense<0.000000e+00> : vector<2x96xf32>
    %11 = tpu.matmul %10, %4, %cst {dimension_numbers = #tpu.dot_dimension_numbers<[1], [0], [0], [1], [0, 0, 1, 1], [], []>} : vector<2x32xbf16>, vector<32x96xbf16>, vector<2x96xf32> -> vector<2x96xf32>
    %12 = vector.broadcast %6 : vector<1x96xf32> to vector<2x96xf32>
    %13 = arith.addf %11, %12 : vector<2x96xf32>
    %14 = vector.extract_strided_slice %9 {offsets = [0, 0], sizes = [2, 32], strides = [1, 1]} : vector<2x96xf32> to vector<2x32xf32>
    %15 = vector.extract_strided_slice %13 {offsets = [0, 0], sizes = [2, 32], strides = [1, 1]} : vector<2x96xf32> to vector<2x32xf32>
    %16 = arith.addf %14, %15 : vector<2x32xf32>
    %17 = arith.negf %16 : vector<2x32xf32>
    %18 = math.exp %17 : vector<2x32xf32>
    %cst_12 = arith.constant 1.000000e+00 : f32
    %19 = vector.broadcast %cst_12 : f32 to vector<2x32xf32>
    %20 = arith.addf %19, %18 : vector<2x32xf32>
    %21 = arith.divf %19, %20 : vector<2x32xf32>
    %22 = vector.extract_strided_slice %9 {offsets = [0, 32], sizes = [2, 32], strides = [1, 1]} : vector<2x96xf32> to vector<2x32xf32>
    %23 = vector.extract_strided_slice %13 {offsets = [0, 32], sizes = [2, 32], strides = [1, 1]} : vector<2x96xf32> to vector<2x32xf32>
    %24 = arith.addf %22, %23 : vector<2x32xf32>
    %25 = arith.negf %24 : vector<2x32xf32>
    %26 = math.exp %25 : vector<2x32xf32>
    %cst_13 = arith.constant 1.000000e+00 : f32
    %27 = vector.broadcast %cst_13 : f32 to vector<2x32xf32>
    %28 = arith.addf %27, %26 : vector<2x32xf32>
    %29 = arith.divf %27, %28 : vector<2x32xf32>
    %30 = vector.extract_strided_slice %9 {offsets = [0, 64], sizes = [2, 32], strides = [1, 1]} : vector<2x96xf32> to vector<2x32xf32>
    %31 = vector.extract_strided_slice %13 {offsets = [0, 64], sizes = [2, 32], strides = [1, 1]} : vector<2x96xf32> to vector<2x32xf32>
    %32 = arith.mulf %21, %31 : vector<2x32xf32>
    %33 = arith.addf %30, %32 : vector<2x32xf32>
    %34 = math.tanh %33 : vector<2x32xf32>
    %cst_14 = arith.constant 1.000000e+00 : f32
    %35 = vector.broadcast %cst_14 : f32 to vector<2x32xf32>
    %36 = arith.subf %35, %29 : vector<2x32xf32>
    %37 = arith.mulf %36, %34 : vector<2x32xf32>
    %38 = arith.mulf %29, %7 : vector<2x32xf32>
    %39 = arith.addf %37, %38 : vector<2x32xf32>
    %c0_15 = arith.constant 0 : index
    %c0_16 = arith.constant 0 : index
    %40 = vector.load %arg6[%c0_15, %c0_16] : memref<2x32xf32, #tpu.memory_space<vmem>>, vector<2x32xf32>
    tpu.vector_store %arg6[%c0_15, %c0_16], %39 {strides = array<i32>} : memref<2x32xf32, #tpu.memory_space<vmem>>, vector<2x32xf32>,
    %c0_17 = arith.constant 0 : index
    %c0_18 = arith.constant 0 : index
    %c0_19 = arith.constant 0 : index
    %c0_20 = arith.constant 0 : index
    %41 = vector.load %arg5[%c0_17, %c0_18, %c0_19, %c0_20] : memref<1x8x2x32xf32, #tpu.memory_space<vmem>>, vector<1x1x2x32xf32>
    %42 = vector.shape_cast %41 : vector<1x1x2x32xf32> to vector<2x32xf32>
    %43 = vector.shape_cast %39 : vector<2x32xf32> to vector<1x1x2x32xf32>
    tpu.vector_store %arg5[%c0_17, %c0_18, %c0_19, %c0_20], %43 {strides = array<i32>} : memref<1x8x2x32xf32, #tpu.memory_space<vmem>>, vector<1x1x2x32xf32>,
    %c0_21 = arith.constant 0 : index
    %c0_22 = arith.constant 0 : index
    %44 = vector.load %arg6[%c0_21, %c0_22] : memref<2x32xf32, #tpu.memory_space<vmem>>, vector<2x32xf32>
    %c0_23 = arith.constant 0 : index
    %c1 = arith.constant 1 : index
    %c0_24 = arith.constant 0 : index
    %c0_25 = arith.constant 0 : index
    %45 = vector.load %arg2[%c0_23, %c1, %c0_24, %c0_25] : memref<1x8x2x96xf32, #tpu.memory_space<vmem>>, vector<1x1x2x96xf32>
    %46 = vector.shape_cast %45 : vector<1x1x2x96xf32> to vector<2x96xf32>
    %47 = arith.truncf %44 : vector<2x32xf32> to vector<2x32xbf16>
    %cst_26 = arith.constant dense<0.000000e+00> : vector<2x96xf32>
    %48 = tpu.matmul %47, %4, %cst_26 {dimension_numbers = #tpu.dot_dimension_numbers<[1], [0], [0], [1], [0, 0, 1, 1], [], []>} : vector<2x32xbf16>, vector<32x96xbf16>, vector<2x96xf32> -> vector<2x96xf32>
    %49 = vector.broadcast %6 : vector<1x96xf32> to vector<2x96xf32>
    %50 = arith.addf %48, %49 : vector<2x96xf32>
    %51 = vector.extract_strided_slice %46 {offsets = [0, 0], sizes = [2, 32], strides = [1, 1]} : vector<2x96xf32> to vector<2x32xf32>
    %52 = vector.extract_strided_slice %50 {offsets = [0, 0], sizes = [2, 32], strides = [1, 1]} : vector<2x96xf32> to vector<2x32xf32>
    %53 = arith.addf %51, %52 : vector<2x32xf32>
    %54 = arith.negf %53 : vector<2x32xf32>
    %55 = math.exp %54 : vector<2x32xf32>
    %cst_27 = arith.constant 1.000000e+00 : f32
    %56 = vector.broadcast %cst_27 : f32 to vector<2x32xf32>
    %57 = arith.addf %56, %55 : vector<2x32xf32>
    %58 = arith.divf %56, %57 : vector<2x32xf32>
    %59 = vector.extract_strided_slice %46 {offsets = [0, 32], sizes = [2, 32], strides = [1, 1]} : vector<2x96xf32> to vector<2x32xf32>
    %60 = vector.extract_strided_slice %50 {offsets = [0, 32], sizes = [2, 32], strides = [1, 1]} : vector<2x96xf32> to vector<2x32xf32>
    %61 = arith.addf %59, %60 : vector<2x32xf32>
    %62 = arith.negf %61 : vector<2x32xf32>
    %63 = math.exp %62 : vector<2x32xf32>
    %cst_28 = arith.constant 1.000000e+00 : f32
    %64 = vector.broadcast %cst_28 : f32 to vector<2x32xf32>
    %65 = arith.addf %64, %63 : vector<2x32xf32>
    %66 = arith.divf %64, %65 : vector<2x32xf32>
    %67 = vector.extract_strided_slice %46 {offsets = [0, 64], sizes = [2, 32], strides = [1, 1]} : vector<2x96xf32> to vector<2x32xf32>
    %68 = vector.extract_strided_slice %50 {offsets = [0, 64], sizes = [2, 32], strides = [1, 1]} : vector<2x96xf32> to vector<2x32xf32>
    %69 = arith.mulf %58, %68 : vector<2x32xf32>
    %70 = arith.addf %67, %69 : vector<2x32xf32>
    %71 = math.tanh %70 : vector<2x32xf32>
    %cst_29 = arith.constant 1.000000e+00 : f32
    %72 = vector.broadcast %cst_29 : f32 to vector<2x32xf32>
    %73 = arith.subf %72, %66 : vector<2x32xf32>
    %74 = arith.mulf %73, %71 : vector<2x32xf32>
    %75 = arith.mulf %66, %44 : vector<2x32xf32>
    %76 = arith.addf %74, %75 : vector<2x32xf32>
    %c0_30 = arith.constant 0 : index
    %c0_31 = arith.constant 0 : index
    %77 = vector.load %arg6[%c0_30, %c0_31] : memref<2x32xf32, #tpu.memory_space<vmem>>, vector<2x32xf32>
    tpu.vector_store %arg6[%c0_30, %c0_31], %76 {strides = array<i32>} : memref<2x32xf32, #tpu.memory_space<vmem>>, vector<2x32xf32>,
    %c0_32 = arith.constant 0 : index
    %c1_33 = arith.constant 1 : index
    %c0_34 = arith.constant 0 : index
    %c0_35 = arith.constant 0 : index
    %78 = vector.load %arg5[%c0_32, %c1_33, %c0_34, %c0_35] : memref<1x8x2x32xf32, #tpu.memory_space<vmem>>, vector<1x1x2x32xf32>
    %79 = vector.shape_cast %78 : vector<1x1x2x32xf32> to vector<2x32xf32>
    %80 = vector.shape_cast %76 : vector<2x32xf32> to vector<1x1x2x32xf32>
    tpu.vector_store %arg5[%c0_32, %c1_33, %c0_34, %c0_35], %80 {strides = array<i32>} : memref<1x8x2x32xf32, #tpu.memory_space<vmem>>, vector<1x1x2x32xf32>,
    %c0_36 = arith.constant 0 : index
    %c0_37 = arith.constant 0 : index
    %81 = vector.load %arg6[%c0_36, %c0_37] : memref<2x32xf32, #tpu.memory_space<vmem>>, vector<2x32xf32>
    %c0_38 = arith.constant 0 : index
    %c2 = arith.constant 2 : index
    %c0_39 = arith.constant 0 : index
    %c0_40 = arith.constant 0 : index
    %82 = vector.load %arg2[%c0_38, %c2, %c0_39, %c0_40] : memref<1x8x2x96xf32, #tpu.memory_space<vmem>>, vector<1x1x2x96xf32>
    %83 = vector.shape_cast %82 : vector<1x1x2x96xf32> to vector<2x96xf32>
    %84 = arith.truncf %81 : vector<2x32xf32> to vector<2x32xbf16>
    %cst_41 = arith.constant dense<0.000000e+00> : vector<2x96xf32>
    %85 = tpu.matmul %84, %4, %cst_41 {dimension_numbers = #tpu.dot_dimension_numbers<[1], [0], [0], [1], [0, 0, 1, 1], [], []>} : vector<2x32xbf16>, vector<32x96xbf16>, vector<2x96xf32> -> vector<2x96xf32>
    %86 = vector.broadcast %6 : vector<1x96xf32> to vector<2x96xf32>
    %87 = arith.addf %85, %86 : vector<2x96xf32>
    %88 = vector.extract_strided_slice %83 {offsets = [0, 0], sizes = [2, 32], strides = [1, 1]} : vector<2x96xf32> to vector<2x32xf32>
    %89 = vector.extract_strided_slice %87 {offsets = [0, 0], sizes = [2, 32], strides = [1, 1]} : vector<2x96xf32> to vector<2x32xf32>
    %90 = arith.addf %88, %89 : vector<2x32xf32>
    %91 = arith.negf %90 : vector<2x32xf32>
    %92 = math.exp %91 : vector<2x32xf32>
    %cst_42 = arith.constant 1.000000e+00 : f32
    %93 = vector.broadcast %cst_42 : f32 to vector<2x32xf32>
    %94 = arith.addf %93, %92 : vector<2x32xf32>
    %95 = arith.divf %93, %94 : vector<2x32xf32>
    %96 = vector.extract_strided_slice %83 {offsets = [0, 32], sizes = [2, 32], strides = [1, 1]} : vector<2x96xf32> to vector<2x32xf32>
    %97 = vector.extract_strided_slice %87 {offsets = [0, 32], sizes = [2, 32], strides = [1, 1]} : vector<2x96xf32> to vector<2x32xf32>
    %98 = arith.addf %96, %97 : vector<2x32xf32>
    %99 = arith.negf %98 : vector<2x32xf32>
    %100 = math.exp %99 : vector<2x32xf32>
    %cst_43 = arith.constant 1.000000e+00 : f32
    %101 = vector.broadcast %cst_43 : f32 to vector<2x32xf32>
    %102 = arith.addf %101, %100 : vector<2x32xf32>
    %103 = arith.divf %101, %102 : vector<2x32xf32>
    %104 = vector.extract_strided_slice %83 {offsets = [0, 64], sizes = [2, 32], strides = [1, 1]} : vector<2x96xf32> to vector<2x32xf32>
    %105 = vector.extract_strided_slice %87 {offsets = [0, 64], sizes = [2, 32], strides = [1, 1]} : vector<2x96xf32> to vector<2x32xf32>
    %106 = arith.mulf %95, %105 : vector<2x32xf32>
    %107 = arith.addf %104, %106 : vector<2x32xf32>
    %108 = math.tanh %107 : vector<2x32xf32>
    %cst_44 = arith.constant 1.000000e+00 : f32
    %109 = vector.broadcast %cst_44 : f32 to vector<2x32xf32>
    %110 = arith.subf %109, %103 : vector<2x32xf32>
    %111 = arith.mulf %110, %108 : vector<2x32xf32>
    %112 = arith.mulf %103, %81 : vector<2x32xf32>
    %113 = arith.addf %111, %112 : vector<2x32xf32>
    %c0_45 = arith.constant 0 : index
    %c0_46 = arith.constant 0 : index
    %114 = vector.load %arg6[%c0_45, %c0_46] : memref<2x32xf32, #tpu.memory_space<vmem>>, vector<2x32xf32>
    tpu.vector_store %arg6[%c0_45, %c0_46], %113 {strides = array<i32>} : memref<2x32xf32, #tpu.memory_space<vmem>>, vector<2x32xf32>,
    %c0_47 = arith.constant 0 : index
    %c2_48 = arith.constant 2 : index
    %c0_49 = arith.constant 0 : index
    %c0_50 = arith.constant 0 : index
    %115 = vector.load %arg5[%c0_47, %c2_48, %c0_49, %c0_50] : memref<1x8x2x32xf32, #tpu.memory_space<vmem>>, vector<1x1x2x32xf32>
    %116 = vector.shape_cast %115 : vector<1x1x2x32xf32> to vector<2x32xf32>
    %117 = vector.shape_cast %113 : vector<2x32xf32> to vector<1x1x2x32xf32>
    tpu.vector_store %arg5[%c0_47, %c2_48, %c0_49, %c0_50], %117 {strides = array<i32>} : memref<1x8x2x32xf32, #tpu.memory_space<vmem>>, vector<1x1x2x32xf32>,
    %c0_51 = arith.constant 0 : index
    %c0_52 = arith.constant 0 : index
    %118 = vector.load %arg6[%c0_51, %c0_52] : memref<2x32xf32, #tpu.memory_space<vmem>>, vector<2x32xf32>
    %c0_53 = arith.constant 0 : index
    %c3 = arith.constant 3 : index
    %c0_54 = arith.constant 0 : index
    %c0_55 = arith.constant 0 : index
    %119 = vector.load %arg2[%c0_53, %c3, %c0_54, %c0_55] : memref<1x8x2x96xf32, #tpu.memory_space<vmem>>, vector<1x1x2x96xf32>
    %120 = vector.shape_cast %119 : vector<1x1x2x96xf32> to vector<2x96xf32>
    %121 = arith.truncf %118 : vector<2x32xf32> to vector<2x32xbf16>
    %cst_56 = arith.constant dense<0.000000e+00> : vector<2x96xf32>
    %122 = tpu.matmul %121, %4, %cst_56 {dimension_numbers = #tpu.dot_dimension_numbers<[1], [0], [0], [1], [0, 0, 1, 1], [], []>} : vector<2x32xbf16>, vector<32x96xbf16>, vector<2x96xf32> -> vector<2x96xf32>
    %123 = vector.broadcast %6 : vector<1x96xf32> to vector<2x96xf32>
    %124 = arith.addf %122, %123 : vector<2x96xf32>
    %125 = vector.extract_strided_slice %120 {offsets = [0, 0], sizes = [2, 32], strides = [1, 1]} : vector<2x96xf32> to vector<2x32xf32>
    %126 = vector.extract_strided_slice %124 {offsets = [0, 0], sizes = [2, 32], strides = [1, 1]} : vector<2x96xf32> to vector<2x32xf32>
    %127 = arith.addf %125, %126 : vector<2x32xf32>
    %128 = arith.negf %127 : vector<2x32xf32>
    %129 = math.exp %128 : vector<2x32xf32>
    %cst_57 = arith.constant 1.000000e+00 : f32
    %130 = vector.broadcast %cst_57 : f32 to vector<2x32xf32>
    %131 = arith.addf %130, %129 : vector<2x32xf32>
    %132 = arith.divf %130, %131 : vector<2x32xf32>
    %133 = vector.extract_strided_slice %120 {offsets = [0, 32], sizes = [2, 32], strides = [1, 1]} : vector<2x96xf32> to vector<2x32xf32>
    %134 = vector.extract_strided_slice %124 {offsets = [0, 32], sizes = [2, 32], strides = [1, 1]} : vector<2x96xf32> to vector<2x32xf32>
    %135 = arith.addf %133, %134 : vector<2x32xf32>
    %136 = arith.negf %135 : vector<2x32xf32>
    %137 = math.exp %136 : vector<2x32xf32>
    %cst_58 = arith.constant 1.000000e+00 : f32
    %138 = vector.broadcast %cst_58 : f32 to vector<2x32xf32>
    %139 = arith.addf %138, %137 : vector<2x32xf32>
    %140 = arith.divf %138, %139 : vector<2x32xf32>
    %141 = vector.extract_strided_slice %120 {offsets = [0, 64], sizes = [2, 32], strides = [1, 1]} : vector<2x96xf32> to vector<2x32xf32>
    %142 = vector.extract_strided_slice %124 {offsets = [0, 64], sizes = [2, 32], strides = [1, 1]} : vector<2x96xf32> to vector<2x32xf32>
    %143 = arith.mulf %132, %142 : vector<2x32xf32>
    %144 = arith.addf %141, %143 : vector<2x32xf32>
    %145 = math.tanh %144 : vector<2x32xf32>
    %cst_59 = arith.constant 1.000000e+00 : f32
    %146 = vector.broadcast %cst_59 : f32 to vector<2x32xf32>
    %147 = arith.subf %146, %140 : vector<2x32xf32>
    %148 = arith.mulf %147, %145 : vector<2x32xf32>
    %149 = arith.mulf %140, %118 : vector<2x32xf32>
    %150 = arith.addf %148, %149 : vector<2x32xf32>
    %c0_60 = arith.constant 0 : index
    %c0_61 = arith.constant 0 : index
    %151 = vector.load %arg6[%c0_60, %c0_61] : memref<2x32xf32, #tpu.memory_space<vmem>>, vector<2x32xf32>
    tpu.vector_store %arg6[%c0_60, %c0_61], %150 {strides = array<i32>} : memref<2x32xf32, #tpu.memory_space<vmem>>, vector<2x32xf32>,
    %c0_62 = arith.constant 0 : index
    %c3_63 = arith.constant 3 : index
    %c0_64 = arith.constant 0 : index
    %c0_65 = arith.constant 0 : index
    %152 = vector.load %arg5[%c0_62, %c3_63, %c0_64, %c0_65] : memref<1x8x2x32xf32, #tpu.memory_space<vmem>>, vector<1x1x2x32xf32>
    %153 = vector.shape_cast %152 : vector<1x1x2x32xf32> to vector<2x32xf32>
    %154 = vector.shape_cast %150 : vector<2x32xf32> to vector<1x1x2x32xf32>
    tpu.vector_store %arg5[%c0_62, %c3_63, %c0_64, %c0_65], %154 {strides = array<i32>} : memref<1x8x2x32xf32, #tpu.memory_space<vmem>>, vector<1x1x2x32xf32>,
    %c0_66 = arith.constant 0 : index
    %c0_67 = arith.constant 0 : index
    %155 = vector.load %arg6[%c0_66, %c0_67] : memref<2x32xf32, #tpu.memory_space<vmem>>, vector<2x32xf32>
    %c0_68 = arith.constant 0 : index
    %c4 = arith.constant 4 : index
    %c0_69 = arith.constant 0 : index
    %c0_70 = arith.constant 0 : index
    %156 = vector.load %arg2[%c0_68, %c4, %c0_69, %c0_70] : memref<1x8x2x96xf32, #tpu.memory_space<vmem>>, vector<1x1x2x96xf32>
    %157 = vector.shape_cast %156 : vector<1x1x2x96xf32> to vector<2x96xf32>
    %158 = arith.truncf %155 : vector<2x32xf32> to vector<2x32xbf16>
    %cst_71 = arith.constant dense<0.000000e+00> : vector<2x96xf32>
    %159 = tpu.matmul %158, %4, %cst_71 {dimension_numbers = #tpu.dot_dimension_numbers<[1], [0], [0], [1], [0, 0, 1, 1], [], []>} : vector<2x32xbf16>, vector<32x96xbf16>, vector<2x96xf32> -> vector<2x96xf32>
    %160 = vector.broadcast %6 : vector<1x96xf32> to vector<2x96xf32>
    %161 = arith.addf %159, %160 : vector<2x96xf32>
    %162 = vector.extract_strided_slice %157 {offsets = [0, 0], sizes = [2, 32], strides = [1, 1]} : vector<2x96xf32> to vector<2x32xf32>
    %163 = vector.extract_strided_slice %161 {offsets = [0, 0], sizes = [2, 32], strides = [1, 1]} : vector<2x96xf32> to vector<2x32xf32>
    %164 = arith.addf %162, %163 : vector<2x32xf32>
    %165 = arith.negf %164 : vector<2x32xf32>
    %166 = math.exp %165 : vector<2x32xf32>
    %cst_72 = arith.constant 1.000000e+00 : f32
    %167 = vector.broadcast %cst_72 : f32 to vector<2x32xf32>
    %168 = arith.addf %167, %166 : vector<2x32xf32>
    %169 = arith.divf %167, %168 : vector<2x32xf32>
    %170 = vector.extract_strided_slice %157 {offsets = [0, 32], sizes = [2, 32], strides = [1, 1]} : vector<2x96xf32> to vector<2x32xf32>
    %171 = vector.extract_strided_slice %161 {offsets = [0, 32], sizes = [2, 32], strides = [1, 1]} : vector<2x96xf32> to vector<2x32xf32>
    %172 = arith.addf %170, %171 : vector<2x32xf32>
    %173 = arith.negf %172 : vector<2x32xf32>
    %174 = math.exp %173 : vector<2x32xf32>
    %cst_73 = arith.constant 1.000000e+00 : f32
    %175 = vector.broadcast %cst_73 : f32 to vector<2x32xf32>
    %176 = arith.addf %175, %174 : vector<2x32xf32>
    %177 = arith.divf %175, %176 : vector<2x32xf32>
    %178 = vector.extract_strided_slice %157 {offsets = [0, 64], sizes = [2, 32], strides = [1, 1]} : vector<2x96xf32> to vector<2x32xf32>
    %179 = vector.extract_strided_slice %161 {offsets = [0, 64], sizes = [2, 32], strides = [1, 1]} : vector<2x96xf32> to vector<2x32xf32>
    %180 = arith.mulf %169, %179 : vector<2x32xf32>
    %181 = arith.addf %178, %180 : vector<2x32xf32>
    %182 = math.tanh %181 : vector<2x32xf32>
    %cst_74 = arith.constant 1.000000e+00 : f32
    %183 = vector.broadcast %cst_74 : f32 to vector<2x32xf32>
    %184 = arith.subf %183, %177 : vector<2x32xf32>
    %185 = arith.mulf %184, %182 : vector<2x32xf32>
    %186 = arith.mulf %177, %155 : vector<2x32xf32>
    %187 = arith.addf %185, %186 : vector<2x32xf32>
    %c0_75 = arith.constant 0 : index
    %c0_76 = arith.constant 0 : index
    %188 = vector.load %arg6[%c0_75, %c0_76] : memref<2x32xf32, #tpu.memory_space<vmem>>, vector<2x32xf32>
    tpu.vector_store %arg6[%c0_75, %c0_76], %187 {strides = array<i32>} : memref<2x32xf32, #tpu.memory_space<vmem>>, vector<2x32xf32>,
    %c0_77 = arith.constant 0 : index
    %c4_78 = arith.constant 4 : index
    %c0_79 = arith.constant 0 : index
    %c0_80 = arith.constant 0 : index
    %189 = vector.load %arg5[%c0_77, %c4_78, %c0_79, %c0_80] : memref<1x8x2x32xf32, #tpu.memory_space<vmem>>, vector<1x1x2x32xf32>
    %190 = vector.shape_cast %189 : vector<1x1x2x32xf32> to vector<2x32xf32>
    %191 = vector.shape_cast %187 : vector<2x32xf32> to vector<1x1x2x32xf32>
    tpu.vector_store %arg5[%c0_77, %c4_78, %c0_79, %c0_80], %191 {strides = array<i32>} : memref<1x8x2x32xf32, #tpu.memory_space<vmem>>, vector<1x1x2x32xf32>,
    %c0_81 = arith.constant 0 : index
    %c0_82 = arith.constant 0 : index
    %192 = vector.load %arg6[%c0_81, %c0_82] : memref<2x32xf32, #tpu.memory_space<vmem>>, vector<2x32xf32>
    %c0_83 = arith.constant 0 : index
    %c5 = arith.constant 5 : index
    %c0_84 = arith.constant 0 : index
    %c0_85 = arith.constant 0 : index
    %193 = vector.load %arg2[%c0_83, %c5, %c0_84, %c0_85] : memref<1x8x2x96xf32, #tpu.memory_space<vmem>>, vector<1x1x2x96xf32>
    %194 = vector.shape_cast %193 : vector<1x1x2x96xf32> to vector<2x96xf32>
    %195 = arith.truncf %192 : vector<2x32xf32> to vector<2x32xbf16>
    %cst_86 = arith.constant dense<0.000000e+00> : vector<2x96xf32>
    %196 = tpu.matmul %195, %4, %cst_86 {dimension_numbers = #tpu.dot_dimension_numbers<[1], [0], [0], [1], [0, 0, 1, 1], [], []>} : vector<2x32xbf16>, vector<32x96xbf16>, vector<2x96xf32> -> vector<2x96xf32>
    %197 = vector.broadcast %6 : vector<1x96xf32> to vector<2x96xf32>
    %198 = arith.addf %196, %197 : vector<2x96xf32>
    %199 = vector.extract_strided_slice %194 {offsets = [0, 0], sizes = [2, 32], strides = [1, 1]} : vector<2x96xf32> to vector<2x32xf32>
    %200 = vector.extract_strided_slice %198 {offsets = [0, 0], sizes = [2, 32], strides = [1, 1]} : vector<2x96xf32> to vector<2x32xf32>
    %201 = arith.addf %199, %200 : vector<2x32xf32>
    %202 = arith.negf %201 : vector<2x32xf32>
    %203 = math.exp %202 : vector<2x32xf32>
    %cst_87 = arith.constant 1.000000e+00 : f32
    %204 = vector.broadcast %cst_87 : f32 to vector<2x32xf32>
    %205 = arith.addf %204, %203 : vector<2x32xf32>
    %206 = arith.divf %204, %205 : vector<2x32xf32>
    %207 = vector.extract_strided_slice %194 {offsets = [0, 32], sizes = [2, 32], strides = [1, 1]} : vector<2x96xf32> to vector<2x32xf32>
    %208 = vector.extract_strided_slice %198 {offsets = [0, 32], sizes = [2, 32], strides = [1, 1]} : vector<2x96xf32> to vector<2x32xf32>
    %209 = arith.addf %207, %208 : vector<2x32xf32>
    %210 = arith.negf %209 : vector<2x32xf32>
    %211 = math.exp %210 : vector<2x32xf32>
    %cst_88 = arith.constant 1.000000e+00 : f32
    %212 = vector.broadcast %cst_88 : f32 to vector<2x32xf32>
    %213 = arith.addf %212, %211 : vector<2x32xf32>
    %214 = arith.divf %212, %213 : vector<2x32xf32>
    %215 = vector.extract_strided_slice %194 {offsets = [0, 64], sizes = [2, 32], strides = [1, 1]} : vector<2x96xf32> to vector<2x32xf32>
    %216 = vector.extract_strided_slice %198 {offsets = [0, 64], sizes = [2, 32], strides = [1, 1]} : vector<2x96xf32> to vector<2x32xf32>
    %217 = arith.mulf %206, %216 : vector<2x32xf32>
    %218 = arith.addf %215, %217 : vector<2x32xf32>
    %219 = math.tanh %218 : vector<2x32xf32>
    %cst_89 = arith.constant 1.000000e+00 : f32
    %220 = vector.broadcast %cst_89 : f32 to vector<2x32xf32>
    %221 = arith.subf %220, %214 : vector<2x32xf32>
    %222 = arith.mulf %221, %219 : vector<2x32xf32>
    %223 = arith.mulf %214, %192 : vector<2x32xf32>
    %224 = arith.addf %222, %223 : vector<2x32xf32>
    %c0_90 = arith.constant 0 : index
    %c0_91 = arith.constant 0 : index
    %225 = vector.load %arg6[%c0_90, %c0_91] : memref<2x32xf32, #tpu.memory_space<vmem>>, vector<2x32xf32>
    tpu.vector_store %arg6[%c0_90, %c0_91], %224 {strides = array<i32>} : memref<2x32xf32, #tpu.memory_space<vmem>>, vector<2x32xf32>,
    %c0_92 = arith.constant 0 : index
    %c5_93 = arith.constant 5 : index
    %c0_94 = arith.constant 0 : index
    %c0_95 = arith.constant 0 : index
    %226 = vector.load %arg5[%c0_92, %c5_93, %c0_94, %c0_95] : memref<1x8x2x32xf32, #tpu.memory_space<vmem>>, vector<1x1x2x32xf32>
    %227 = vector.shape_cast %226 : vector<1x1x2x32xf32> to vector<2x32xf32>
    %228 = vector.shape_cast %224 : vector<2x32xf32> to vector<1x1x2x32xf32>
    tpu.vector_store %arg5[%c0_92, %c5_93, %c0_94, %c0_95], %228 {strides = array<i32>} : memref<1x8x2x32xf32, #tpu.memory_space<vmem>>, vector<1x1x2x32xf32>,
    %c0_96 = arith.constant 0 : index
    %c0_97 = arith.constant 0 : index
    %229 = vector.load %arg6[%c0_96, %c0_97] : memref<2x32xf32, #tpu.memory_space<vmem>>, vector<2x32xf32>
    %c0_98 = arith.constant 0 : index
    %c6 = arith.constant 6 : index
    %c0_99 = arith.constant 0 : index
    %c0_100 = arith.constant 0 : index
    %230 = vector.load %arg2[%c0_98, %c6, %c0_99, %c0_100] : memref<1x8x2x96xf32, #tpu.memory_space<vmem>>, vector<1x1x2x96xf32>
    %231 = vector.shape_cast %230 : vector<1x1x2x96xf32> to vector<2x96xf32>
    %232 = arith.truncf %229 : vector<2x32xf32> to vector<2x32xbf16>
    %cst_101 = arith.constant dense<0.000000e+00> : vector<2x96xf32>
    %233 = tpu.matmul %232, %4, %cst_101 {dimension_numbers = #tpu.dot_dimension_numbers<[1], [0], [0], [1], [0, 0, 1, 1], [], []>} : vector<2x32xbf16>, vector<32x96xbf16>, vector<2x96xf32> -> vector<2x96xf32>
    %234 = vector.broadcast %6 : vector<1x96xf32> to vector<2x96xf32>
    %235 = arith.addf %233, %234 : vector<2x96xf32>
    %236 = vector.extract_strided_slice %231 {offsets = [0, 0], sizes = [2, 32], strides = [1, 1]} : vector<2x96xf32> to vector<2x32xf32>
    %237 = vector.extract_strided_slice %235 {offsets = [0, 0], sizes = [2, 32], strides = [1, 1]} : vector<2x96xf32> to vector<2x32xf32>
    %238 = arith.addf %236, %237 : vector<2x32xf32>
    %239 = arith.negf %238 : vector<2x32xf32>
    %240 = math.exp %239 : vector<2x32xf32>
    %cst_102 = arith.constant 1.000000e+00 : f32
    %241 = vector.broadcast %cst_102 : f32 to vector<2x32xf32>
    %242 = arith.addf %241, %240 : vector<2x32xf32>
    %243 = arith.divf %241, %242 : vector<2x32xf32>
    %244 = vector.extract_strided_slice %231 {offsets = [0, 32], sizes = [2, 32], strides = [1, 1]} : vector<2x96xf32> to vector<2x32xf32>
    %245 = vector.extract_strided_slice %235 {offsets = [0, 32], sizes = [2, 32], strides = [1, 1]} : vector<2x96xf32> to vector<2x32xf32>
    %246 = arith.addf %244, %245 : vector<2x32xf32>
    %247 = arith.negf %246 : vector<2x32xf32>
    %248 = math.exp %247 : vector<2x32xf32>
    %cst_103 = arith.constant 1.000000e+00 : f32
    %249 = vector.broadcast %cst_103 : f32 to vector<2x32xf32>
    %250 = arith.addf %249, %248 : vector<2x32xf32>
    %251 = arith.divf %249, %250 : vector<2x32xf32>
    %252 = vector.extract_strided_slice %231 {offsets = [0, 64], sizes = [2, 32], strides = [1, 1]} : vector<2x96xf32> to vector<2x32xf32>
    %253 = vector.extract_strided_slice %235 {offsets = [0, 64], sizes = [2, 32], strides = [1, 1]} : vector<2x96xf32> to vector<2x32xf32>
    %254 = arith.mulf %243, %253 : vector<2x32xf32>
    %255 = arith.addf %252, %254 : vector<2x32xf32>
    %256 = math.tanh %255 : vector<2x32xf32>
    %cst_104 = arith.constant 1.000000e+00 : f32
    %257 = vector.broadcast %cst_104 : f32 to vector<2x32xf32>
    %258 = arith.subf %257, %251 : vector<2x32xf32>
    %259 = arith.mulf %258, %256 : vector<2x32xf32>
    %260 = arith.mulf %251, %229 : vector<2x32xf32>
    %261 = arith.addf %259, %260 : vector<2x32xf32>
    %c0_105 = arith.constant 0 : index
    %c0_106 = arith.constant 0 : index
    %262 = vector.load %arg6[%c0_105, %c0_106] : memref<2x32xf32, #tpu.memory_space<vmem>>, vector<2x32xf32>
    tpu.vector_store %arg6[%c0_105, %c0_106], %261 {strides = array<i32>} : memref<2x32xf32, #tpu.memory_space<vmem>>, vector<2x32xf32>,
    %c0_107 = arith.constant 0 : index
    %c6_108 = arith.constant 6 : index
    %c0_109 = arith.constant 0 : index
    %c0_110 = arith.constant 0 : index
    %263 = vector.load %arg5[%c0_107, %c6_108, %c0_109, %c0_110] : memref<1x8x2x32xf32, #tpu.memory_space<vmem>>, vector<1x1x2x32xf32>
    %264 = vector.shape_cast %263 : vector<1x1x2x32xf32> to vector<2x32xf32>
    %265 = vector.shape_cast %261 : vector<2x32xf32> to vector<1x1x2x32xf32>
    tpu.vector_store %arg5[%c0_107, %c6_108, %c0_109, %c0_110], %265 {strides = array<i32>} : memref<1x8x2x32xf32, #tpu.memory_space<vmem>>, vector<1x1x2x32xf32>,
    %c0_111 = arith.constant 0 : index
    %c0_112 = arith.constant 0 : index
    %266 = vector.load %arg6[%c0_111, %c0_112] : memref<2x32xf32, #tpu.memory_space<vmem>>, vector<2x32xf32>
    %c0_113 = arith.constant 0 : index
    %c7 = arith.constant 7 : index
    %c0_114 = arith.constant 0 : index
    %c0_115 = arith.constant 0 : index
    %267 = vector.load %arg2[%c0_113, %c7, %c0_114, %c0_115] : memref<1x8x2x96xf32, #tpu.memory_space<vmem>>, vector<1x1x2x96xf32>
    %268 = vector.shape_cast %267 : vector<1x1x2x96xf32> to vector<2x96xf32>
    %269 = arith.truncf %266 : vector<2x32xf32> to vector<2x32xbf16>
    %cst_116 = arith.constant dense<0.000000e+00> : vector<2x96xf32>
    %270 = tpu.matmul %269, %4, %cst_116 {dimension_numbers = #tpu.dot_dimension_numbers<[1], [0], [0], [1], [0, 0, 1, 1], [], []>} : vector<2x32xbf16>, vector<32x96xbf16>, vector<2x96xf32> -> vector<2x96xf32>
    %271 = vector.broadcast %6 : vector<1x96xf32> to vector<2x96xf32>
    %272 = arith.addf %270, %271 : vector<2x96xf32>
    %273 = vector.extract_strided_slice %268 {offsets = [0, 0], sizes = [2, 32], strides = [1, 1]} : vector<2x96xf32> to vector<2x32xf32>
    %274 = vector.extract_strided_slice %272 {offsets = [0, 0], sizes = [2, 32], strides = [1, 1]} : vector<2x96xf32> to vector<2x32xf32>
    %275 = arith.addf %273, %274 : vector<2x32xf32>
    %276 = arith.negf %275 : vector<2x32xf32>
    %277 = math.exp %276 : vector<2x32xf32>
    %cst_117 = arith.constant 1.000000e+00 : f32
    %278 = vector.broadcast %cst_117 : f32 to vector<2x32xf32>
    %279 = arith.addf %278, %277 : vector<2x32xf32>
    %280 = arith.divf %278, %279 : vector<2x32xf32>
    %281 = vector.extract_strided_slice %268 {offsets = [0, 32], sizes = [2, 32], strides = [1, 1]} : vector<2x96xf32> to vector<2x32xf32>
    %282 = vector.extract_strided_slice %272 {offsets = [0, 32], sizes = [2, 32], strides = [1, 1]} : vector<2x96xf32> to vector<2x32xf32>
    %283 = arith.addf %281, %282 : vector<2x32xf32>
    %284 = arith.negf %283 : vector<2x32xf32>
    %285 = math.exp %284 : vector<2x32xf32>
    %cst_118 = arith.constant 1.000000e+00 : f32
    %286 = vector.broadcast %cst_118 : f32 to vector<2x32xf32>
    %287 = arith.addf %286, %285 : vector<2x32xf32>
    %288 = arith.divf %286, %287 : vector<2x32xf32>
    %289 = vector.extract_strided_slice %268 {offsets = [0, 64], sizes = [2, 32], strides = [1, 1]} : vector<2x96xf32> to vector<2x32xf32>
    %290 = vector.extract_strided_slice %272 {offsets = [0, 64], sizes = [2, 32], strides = [1, 1]} : vector<2x96xf32> to vector<2x32xf32>
    %291 = arith.mulf %280, %290 : vector<2x32xf32>
    %292 = arith.addf %289, %291 : vector<2x32xf32>
    %293 = math.tanh %292 : vector<2x32xf32>
    %cst_119 = arith.constant 1.000000e+00 : f32
    %294 = vector.broadcast %cst_119 : f32 to vector<2x32xf32>
    %295 = arith.subf %294, %288 : vector<2x32xf32>
    %296 = arith.mulf %295, %293 : vector<2x32xf32>
    %297 = arith.mulf %288, %266 : vector<2x32xf32>
    %298 = arith.addf %296, %297 : vector<2x32xf32>
    %c0_120 = arith.constant 0 : index
    %c0_121 = arith.constant 0 : index
    %299 = vector.load %arg6[%c0_120, %c0_121] : memref<2x32xf32, #tpu.memory_space<vmem>>, vector<2x32xf32>
    tpu.vector_store %arg6[%c0_120, %c0_121], %298 {strides = array<i32>} : memref<2x32xf32, #tpu.memory_space<vmem>>, vector<2x32xf32>,
    %c0_122 = arith.constant 0 : index
    %c7_123 = arith.constant 7 : index
    %c0_124 = arith.constant 0 : index
    %c0_125 = arith.constant 0 : index
    %300 = vector.load %arg5[%c0_122, %c7_123, %c0_124, %c0_125] : memref<1x8x2x32xf32, #tpu.memory_space<vmem>>, vector<1x1x2x32xf32>
    %301 = vector.shape_cast %300 : vector<1x1x2x32xf32> to vector<2x32xf32>
    %302 = vector.shape_cast %298 : vector<2x32xf32> to vector<1x1x2x32xf32>
    tpu.vector_store %arg5[%c0_122, %c7_123, %c0_124, %c0_125], %302 {strides = array<i32>} : memref<1x8x2x32xf32, #tpu.memory_space<vmem>>, vector<1x1x2x32xf32>,
    return
  }
  func.func @transform_0(%arg0: i32, %arg1: i32) -> (i32, i32, i32, i32) {
    %c0_i32 = arith.constant 0 : i32
    %c0_i32_0 = arith.constant 0 : i32
    %c0_i32_1 = arith.constant 0 : i32
    return %arg0, %arg1, %c0_i32, %c0_i32_0 : i32, i32, i32, i32
  }
  func.func @transform_1(%arg0: i32, %arg1: i32) -> (i32, i32, i32) {
    %c0_i32 = arith.constant 0 : i32
    %c0_i32_0 = arith.constant 0 : i32
    %c0_i32_1 = arith.constant 0 : i32
    return %arg0, %c0_i32, %c0_i32_0 : i32, i32, i32
  }
  func.func @transform_2(%arg0: i32, %arg1: i32) -> (i32, i32, i32) {
    %c0_i32 = arith.constant 0 : i32
    %c0_i32_0 = arith.constant 0 : i32
    %c0_i32_1 = arith.constant 0 : i32
    return %arg0, %c0_i32, %c0_i32_0 : i32, i32, i32
  }
  func.func @transform_3(%arg0: i32, %arg1: i32) -> (i32, i32, i32, i32) {
    %c0_i32 = arith.constant 0 : i32
    %c0_i32_0 = arith.constant 0 : i32
    %c0_i32_1 = arith.constant 0 : i32
    return %arg0, %arg1, %c0_i32, %c0_i32_0 : i32, i32, i32, i32
  }
}

module attributes {stable_mosaic.version = 11 : i64} {
  func.func @_ln_gelu_linear_kernel(%arg0: i32, %arg1: memref<16x64xf32, #tpu.memory_space<vmem>>, %arg2: memref<1x64xf32, #tpu.memory_space<vmem>>, %arg3: memref<1x64xf32, #tpu.memory_space<vmem>>, %arg4: memref<64x192xbf16, #tpu.memory_space<vmem>>, %arg5: memref<1x192xf32, #tpu.memory_space<vmem>>, %arg6: memref<16x192xf32, #tpu.memory_space<vmem>>) attributes {dimension_semantics = [#tpu.dimension_semantics<parallel>], iteration_bounds = array<i64: 1>, scalar_prefetch = 0 : i64, scratch_operands = 0 : i64, tpu.core_type = #tpu.core_type<tc>, window_params = [{transform_indices = @transform_0, window_bounds = array<i64: 16, 64>}, {pipeline_mode = #tpu.pipeline_mode<synchronous>, transform_indices = @transform_1, window_bounds = array<i64: 1, 64>}, {pipeline_mode = #tpu.pipeline_mode<synchronous>, transform_indices = @transform_2, window_bounds = array<i64: 1, 64>}, {pipeline_mode = #tpu.pipeline_mode<synchronous>, transform_indices = @transform_3, window_bounds = array<i64: 64, 192>}, {pipeline_mode = #tpu.pipeline_mode<synchronous>, transform_indices = @transform_4, window_bounds = array<i64: 1, 192>}, {transform_indices = @transform_5, window_bounds = array<i64: 16, 192>}]} {
    %c0 = arith.constant 0 : index
    %c0_0 = arith.constant 0 : index
    %0 = vector.load %arg1[%c0, %c0_0] : memref<16x64xf32, #tpu.memory_space<vmem>>, vector<16x64xf32>
    %cst = arith.constant dense<0.000000e+00> : vector<16xf32>
    %1 = vector.multi_reduction <add>, %0, %cst [1] : vector<16x64xf32> to vector<16xf32>
    %2 = vector.shape_cast %1 : vector<16xf32> to vector<16x1xf32>
    %cst_1 = arith.constant 6.400000e+01 : f32
    %3 = vector.broadcast %cst_1 : f32 to vector<16x1xf32>
    %4 = arith.divf %2, %3 : vector<16x1xf32>
    %5 = vector.broadcast %4 : vector<16x1xf32> to vector<16x64xf32>
    %6 = arith.subf %0, %5 : vector<16x64xf32>
    %7 = arith.mulf %6, %6 : vector<16x64xf32>
    %cst_2 = arith.constant dense<0.000000e+00> : vector<16xf32>
    %8 = vector.multi_reduction <add>, %7, %cst_2 [1] : vector<16x64xf32> to vector<16xf32>
    %9 = vector.shape_cast %8 : vector<16xf32> to vector<16x1xf32>
    %cst_3 = arith.constant 6.400000e+01 : f32
    %10 = vector.broadcast %cst_3 : f32 to vector<16x1xf32>
    %11 = arith.divf %9, %10 : vector<16x1xf32>
    %cst_4 = arith.constant 9.99999974E-6 : f32
    %12 = vector.broadcast %cst_4 : f32 to vector<16x1xf32>
    %13 = arith.addf %11, %12 : vector<16x1xf32>
    %14 = math.rsqrt %13 : vector<16x1xf32>
    %15 = vector.broadcast %14 : vector<16x1xf32> to vector<16x64xf32>
    %16 = arith.mulf %6, %15 : vector<16x64xf32>
    %c0_5 = arith.constant 0 : index
    %c0_6 = arith.constant 0 : index
    %17 = vector.load %arg2[%c0_5, %c0_6] : memref<1x64xf32, #tpu.memory_space<vmem>>, vector<1x64xf32>
    %18 = vector.broadcast %17 : vector<1x64xf32> to vector<16x64xf32>
    %19 = arith.mulf %16, %18 : vector<16x64xf32>
    %c0_7 = arith.constant 0 : index
    %c0_8 = arith.constant 0 : index
    %20 = vector.load %arg3[%c0_7, %c0_8] : memref<1x64xf32, #tpu.memory_space<vmem>>, vector<1x64xf32>
    %21 = vector.broadcast %20 : vector<1x64xf32> to vector<16x64xf32>
    %22 = arith.addf %19, %21 : vector<16x64xf32>
    %cst_9 = arith.constant 5.000000e-01 : f32
    %23 = vector.broadcast %cst_9 : f32 to vector<16x64xf32>
    %24 = arith.mulf %23, %22 : vector<16x64xf32>
    %cst_10 = arith.constant 0.707106769 : f32
    %25 = vector.broadcast %cst_10 : f32 to vector<16x64xf32>
    %26 = arith.mulf %22, %25 : vector<16x64xf32>
    %27 = math.absf %26 : vector<16x64xf32>
    %cst_11 = arith.constant 0.327591091 : f32
    %28 = vector.broadcast %cst_11 : f32 to vector<16x64xf32>
    %29 = arith.mulf %28, %27 : vector<16x64xf32>
    %cst_12 = arith.constant 1.000000e+00 : f32
    %30 = vector.broadcast %cst_12 : f32 to vector<16x64xf32>
    %31 = arith.addf %30, %29 : vector<16x64xf32>
    %cst_13 = arith.constant 1.000000e+00 : f32
    %32 = vector.broadcast %cst_13 : f32 to vector<16x64xf32>
    %33 = arith.divf %32, %31 : vector<16x64xf32>
    %cst_14 = arith.constant 1.06140542 : f32
    %34 = vector.broadcast %cst_14 : f32 to vector<16x64xf32>
    %35 = arith.mulf %34, %33 : vector<16x64xf32>
    %cst_15 = arith.constant -1.45315206 : f32
    %36 = vector.broadcast %cst_15 : f32 to vector<16x64xf32>
    %37 = arith.addf %35, %36 : vector<16x64xf32>
    %38 = arith.mulf %37, %33 : vector<16x64xf32>
    %cst_16 = arith.constant 1.42141378 : f32
    %39 = vector.broadcast %cst_16 : f32 to vector<16x64xf32>
    %40 = arith.addf %38, %39 : vector<16x64xf32>
    %41 = arith.mulf %40, %33 : vector<16x64xf32>
    %cst_17 = arith.constant -0.284496725 : f32
    %42 = vector.broadcast %cst_17 : f32 to vector<16x64xf32>
    %43 = arith.addf %41, %42 : vector<16x64xf32>
    %44 = arith.mulf %43, %33 : vector<16x64xf32>
    %cst_18 = arith.constant 0.254829586 : f32
    %45 = vector.broadcast %cst_18 : f32 to vector<16x64xf32>
    %46 = arith.addf %44, %45 : vector<16x64xf32>
    %47 = arith.mulf %46, %33 : vector<16x64xf32>
    %cst_19 = arith.constant 0.000000e+00 : f32
    %48 = vector.broadcast %cst_19 : f32 to vector<16x64xf32>
    %49 = arith.subf %48, %27 : vector<16x64xf32>
    %50 = arith.mulf %49, %27 : vector<16x64xf32>
    %51 = math.exp %50 : vector<16x64xf32>
    %52 = arith.mulf %47, %51 : vector<16x64xf32>
    %cst_20 = arith.constant 1.000000e+00 : f32
    %53 = vector.broadcast %cst_20 : f32 to vector<16x64xf32>
    %54 = arith.subf %53, %52 : vector<16x64xf32>
    %cst_21 = arith.constant 0.000000e+00 : f32
    %55 = vector.broadcast %cst_21 : f32 to vector<16x64xf32>
    %56 = arith.cmpf oge, %26, %55 : vector<16x64xf32>
    %cst_22 = arith.constant 0.000000e+00 : f32
    %57 = vector.broadcast %cst_22 : f32 to vector<16x64xf32>
    %58 = arith.subf %57, %54 : vector<16x64xf32>
    %59 = arith.select %56, %54, %58 : vector<16x64xi1>, vector<16x64xf32>
    %cst_23 = arith.constant 1.000000e+00 : f32
    %60 = vector.broadcast %cst_23 : f32 to vector<16x64xf32>
    %61 = arith.addf %60, %59 : vector<16x64xf32>
    %62 = arith.mulf %24, %61 : vector<16x64xf32>
    %63 = arith.truncf %62 : vector<16x64xf32> to vector<16x64xbf16>
    %c0_24 = arith.constant 0 : index
    %c0_25 = arith.constant 0 : index
    %64 = vector.load %arg4[%c0_24, %c0_25] : memref<64x192xbf16, #tpu.memory_space<vmem>>, vector<64x192xbf16>
    %cst_26 = arith.constant dense<0.000000e+00> : vector<16x192xf32>
    %65 = tpu.matmul %63, %64, %cst_26 {dimension_numbers = #tpu.dot_dimension_numbers<[1], [0], [0], [1], [0, 0, 1, 1], [], []>} : vector<16x64xbf16>, vector<64x192xbf16>, vector<16x192xf32> -> vector<16x192xf32>
    %c0_27 = arith.constant 0 : index
    %c0_28 = arith.constant 0 : index
    %66 = vector.load %arg5[%c0_27, %c0_28] : memref<1x192xf32, #tpu.memory_space<vmem>>, vector<1x192xf32>
    %67 = vector.broadcast %66 : vector<1x192xf32> to vector<16x192xf32>
    %68 = arith.addf %65, %67 : vector<16x192xf32>
    %c0_29 = arith.constant 0 : index
    %c0_30 = arith.constant 0 : index
    %69 = vector.load %arg6[%c0_29, %c0_30] : memref<16x192xf32, #tpu.memory_space<vmem>>, vector<16x192xf32>
    tpu.vector_store %arg6[%c0_29, %c0_30], %68 {strides = array<i32>} : memref<16x192xf32, #tpu.memory_space<vmem>>, vector<16x192xf32>,
    return
  }
  func.func @transform_0(%arg0: i32) -> (i32, i32) {
    %c0_i32 = arith.constant 0 : i32
    %c0_i32_0 = arith.constant 0 : i32
    return %arg0, %c0_i32 : i32, i32
  }
  func.func @transform_1(%arg0: i32) -> (i32, i32) {
    %c0_i32 = arith.constant 0 : i32
    %c0_i32_0 = arith.constant 0 : i32
    %c0_i32_1 = arith.constant 0 : i32
    return %c0_i32, %c0_i32_0 : i32, i32
  }
  func.func @transform_2(%arg0: i32) -> (i32, i32) {
    %c0_i32 = arith.constant 0 : i32
    %c0_i32_0 = arith.constant 0 : i32
    %c0_i32_1 = arith.constant 0 : i32
    return %c0_i32, %c0_i32_0 : i32, i32
  }
  func.func @transform_3(%arg0: i32) -> (i32, i32) {
    %c0_i32 = arith.constant 0 : i32
    %c0_i32_0 = arith.constant 0 : i32
    %c0_i32_1 = arith.constant 0 : i32
    return %c0_i32, %c0_i32_0 : i32, i32
  }
  func.func @transform_4(%arg0: i32) -> (i32, i32) {
    %c0_i32 = arith.constant 0 : i32
    %c0_i32_0 = arith.constant 0 : i32
    %c0_i32_1 = arith.constant 0 : i32
    return %c0_i32, %c0_i32_0 : i32, i32
  }
  func.func @transform_5(%arg0: i32) -> (i32, i32) {
    %c0_i32 = arith.constant 0 : i32
    %c0_i32_0 = arith.constant 0 : i32
    return %arg0, %c0_i32 : i32, i32
  }
}

module attributes {stable_mosaic.version = 11 : i64} {
  func.func @_gru_scan_kernel(%arg0: i32, %arg1: i32, %arg2: memref<1x2x8x96xf32, #tpu.memory_space<vmem>>, %arg3: memref<1x32x96xbf16, #tpu.memory_space<vmem>>, %arg4: memref<1x1x96xf32, #tpu.memory_space<vmem>>, %arg5: memref<1x2x8x32xf32, #tpu.memory_space<vmem>>, %arg6: memref<8x32xf32, #tpu.memory_space<vmem>>) attributes {dimension_semantics = [#tpu.dimension_semantics<parallel>, #tpu.dimension_semantics<arbitrary>], iteration_bounds = array<i64: 2, 1>, scalar_prefetch = 0 : i64, scratch_operands = 1 : i64, tpu.core_type = #tpu.core_type<tc>, window_params = [{transform_indices = @transform_0, window_bounds = array<i64: 1, 2, 8, 96>}, {transform_indices = @transform_1, window_bounds = array<i64: 1, 32, 96>}, {transform_indices = @transform_2, window_bounds = array<i64: 1, 1, 96>}, {transform_indices = @transform_3, window_bounds = array<i64: 1, 2, 8, 32>}]} {
    %c0_i32 = arith.constant 0 : i32
    %0 = arith.cmpi eq, %arg1, %c0_i32 : i32
    %1 = arith.extui %0 : i1 to i32
    %c0_i32_0 = arith.constant 0 : i32
    %2 = arith.cmpi ne, %1, %c0_i32_0 : i32
    scf.if %2 {
      %cst_36 = arith.constant 0.000000e+00 : f32
      %81 = vector.broadcast %cst_36 : f32 to vector<8x32xf32>
      %c0_37 = arith.constant 0 : index
      %c0_38 = arith.constant 0 : index
      %82 = vector.load %arg6[%c0_37, %c0_38] : memref<8x32xf32, #tpu.memory_space<vmem>>, vector<8x32xf32>
      tpu.vector_store %arg6[%c0_37, %c0_38], %81 {strides = array<i32>} : memref<8x32xf32, #tpu.memory_space<vmem>>, vector<8x32xf32>,
    } else {
    }
    %c0 = arith.constant 0 : index
    %c0_1 = arith.constant 0 : index
    %c0_2 = arith.constant 0 : index
    %3 = vector.load %arg3[%c0, %c0_1, %c0_2] : memref<1x32x96xbf16, #tpu.memory_space<vmem>>, vector<1x32x96xbf16>
    %4 = vector.shape_cast %3 : vector<1x32x96xbf16> to vector<32x96xbf16>
    %c0_3 = arith.constant 0 : index
    %c0_4 = arith.constant 0 : index
    %c0_5 = arith.constant 0 : index
    %5 = vector.load %arg4[%c0_3, %c0_4, %c0_5] : memref<1x1x96xf32, #tpu.memory_space<vmem>>, vector<1x1x96xf32>
    %6 = vector.shape_cast %5 : vector<1x1x96xf32> to vector<1x96xf32>
    %c0_6 = arith.constant 0 : index
    %c0_7 = arith.constant 0 : index
    %7 = vector.load %arg6[%c0_6, %c0_7] : memref<8x32xf32, #tpu.memory_space<vmem>>, vector<8x32xf32>
    %c0_8 = arith.constant 0 : index
    %c0_9 = arith.constant 0 : index
    %c0_10 = arith.constant 0 : index
    %c0_11 = arith.constant 0 : index
    %8 = vector.load %arg2[%c0_8, %c0_9, %c0_10, %c0_11] : memref<1x2x8x96xf32, #tpu.memory_space<vmem>>, vector<1x1x8x96xf32>
    %9 = vector.shape_cast %8 : vector<1x1x8x96xf32> to vector<8x96xf32>
    %10 = arith.truncf %7 : vector<8x32xf32> to vector<8x32xbf16>
    %cst = arith.constant dense<0.000000e+00> : vector<8x96xf32>
    %11 = tpu.matmul %10, %4, %cst {dimension_numbers = #tpu.dot_dimension_numbers<[1], [0], [0], [1], [0, 0, 1, 1], [], []>} : vector<8x32xbf16>, vector<32x96xbf16>, vector<8x96xf32> -> vector<8x96xf32>
    %12 = vector.broadcast %6 : vector<1x96xf32> to vector<8x96xf32>
    %13 = arith.addf %11, %12 : vector<8x96xf32>
    %14 = vector.extract_strided_slice %9 {offsets = [0, 0], sizes = [8, 32], strides = [1, 1]} : vector<8x96xf32> to vector<8x32xf32>
    %15 = vector.extract_strided_slice %13 {offsets = [0, 0], sizes = [8, 32], strides = [1, 1]} : vector<8x96xf32> to vector<8x32xf32>
    %16 = arith.addf %14, %15 : vector<8x32xf32>
    %17 = arith.negf %16 : vector<8x32xf32>
    %18 = math.exp %17 : vector<8x32xf32>
    %cst_12 = arith.constant 1.000000e+00 : f32
    %19 = vector.broadcast %cst_12 : f32 to vector<8x32xf32>
    %20 = arith.addf %19, %18 : vector<8x32xf32>
    %21 = arith.divf %19, %20 : vector<8x32xf32>
    %22 = vector.extract_strided_slice %9 {offsets = [0, 32], sizes = [8, 32], strides = [1, 1]} : vector<8x96xf32> to vector<8x32xf32>
    %23 = vector.extract_strided_slice %13 {offsets = [0, 32], sizes = [8, 32], strides = [1, 1]} : vector<8x96xf32> to vector<8x32xf32>
    %24 = arith.addf %22, %23 : vector<8x32xf32>
    %25 = arith.negf %24 : vector<8x32xf32>
    %26 = math.exp %25 : vector<8x32xf32>
    %cst_13 = arith.constant 1.000000e+00 : f32
    %27 = vector.broadcast %cst_13 : f32 to vector<8x32xf32>
    %28 = arith.addf %27, %26 : vector<8x32xf32>
    %29 = arith.divf %27, %28 : vector<8x32xf32>
    %30 = vector.extract_strided_slice %9 {offsets = [0, 64], sizes = [8, 32], strides = [1, 1]} : vector<8x96xf32> to vector<8x32xf32>
    %31 = vector.extract_strided_slice %13 {offsets = [0, 64], sizes = [8, 32], strides = [1, 1]} : vector<8x96xf32> to vector<8x32xf32>
    %32 = arith.mulf %21, %31 : vector<8x32xf32>
    %33 = arith.addf %30, %32 : vector<8x32xf32>
    %34 = math.tanh %33 : vector<8x32xf32>
    %cst_14 = arith.constant 1.000000e+00 : f32
    %35 = vector.broadcast %cst_14 : f32 to vector<8x32xf32>
    %36 = arith.subf %35, %29 : vector<8x32xf32>
    %37 = arith.mulf %36, %34 : vector<8x32xf32>
    %38 = arith.mulf %29, %7 : vector<8x32xf32>
    %39 = arith.addf %37, %38 : vector<8x32xf32>
    %c0_15 = arith.constant 0 : index
    %c0_16 = arith.constant 0 : index
    %40 = vector.load %arg6[%c0_15, %c0_16] : memref<8x32xf32, #tpu.memory_space<vmem>>, vector<8x32xf32>
    tpu.vector_store %arg6[%c0_15, %c0_16], %39 {strides = array<i32>} : memref<8x32xf32, #tpu.memory_space<vmem>>, vector<8x32xf32>,
    %c0_17 = arith.constant 0 : index
    %c0_18 = arith.constant 0 : index
    %c0_19 = arith.constant 0 : index
    %c0_20 = arith.constant 0 : index
    %41 = vector.load %arg5[%c0_17, %c0_18, %c0_19, %c0_20] : memref<1x2x8x32xf32, #tpu.memory_space<vmem>>, vector<1x1x8x32xf32>
    %42 = vector.shape_cast %41 : vector<1x1x8x32xf32> to vector<8x32xf32>
    %43 = vector.shape_cast %39 : vector<8x32xf32> to vector<1x1x8x32xf32>
    tpu.vector_store %arg5[%c0_17, %c0_18, %c0_19, %c0_20], %43 {strides = array<i32>} : memref<1x2x8x32xf32, #tpu.memory_space<vmem>>, vector<1x1x8x32xf32>,
    %c0_21 = arith.constant 0 : index
    %c0_22 = arith.constant 0 : index
    %44 = vector.load %arg6[%c0_21, %c0_22] : memref<8x32xf32, #tpu.memory_space<vmem>>, vector<8x32xf32>
    %c0_23 = arith.constant 0 : index
    %c1 = arith.constant 1 : index
    %c0_24 = arith.constant 0 : index
    %c0_25 = arith.constant 0 : index
    %45 = vector.load %arg2[%c0_23, %c1, %c0_24, %c0_25] : memref<1x2x8x96xf32, #tpu.memory_space<vmem>>, vector<1x1x8x96xf32>
    %46 = vector.shape_cast %45 : vector<1x1x8x96xf32> to vector<8x96xf32>
    %47 = arith.truncf %44 : vector<8x32xf32> to vector<8x32xbf16>
    %cst_26 = arith.constant dense<0.000000e+00> : vector<8x96xf32>
    %48 = tpu.matmul %47, %4, %cst_26 {dimension_numbers = #tpu.dot_dimension_numbers<[1], [0], [0], [1], [0, 0, 1, 1], [], []>} : vector<8x32xbf16>, vector<32x96xbf16>, vector<8x96xf32> -> vector<8x96xf32>
    %49 = vector.broadcast %6 : vector<1x96xf32> to vector<8x96xf32>
    %50 = arith.addf %48, %49 : vector<8x96xf32>
    %51 = vector.extract_strided_slice %46 {offsets = [0, 0], sizes = [8, 32], strides = [1, 1]} : vector<8x96xf32> to vector<8x32xf32>
    %52 = vector.extract_strided_slice %50 {offsets = [0, 0], sizes = [8, 32], strides = [1, 1]} : vector<8x96xf32> to vector<8x32xf32>
    %53 = arith.addf %51, %52 : vector<8x32xf32>
    %54 = arith.negf %53 : vector<8x32xf32>
    %55 = math.exp %54 : vector<8x32xf32>
    %cst_27 = arith.constant 1.000000e+00 : f32
    %56 = vector.broadcast %cst_27 : f32 to vector<8x32xf32>
    %57 = arith.addf %56, %55 : vector<8x32xf32>
    %58 = arith.divf %56, %57 : vector<8x32xf32>
    %59 = vector.extract_strided_slice %46 {offsets = [0, 32], sizes = [8, 32], strides = [1, 1]} : vector<8x96xf32> to vector<8x32xf32>
    %60 = vector.extract_strided_slice %50 {offsets = [0, 32], sizes = [8, 32], strides = [1, 1]} : vector<8x96xf32> to vector<8x32xf32>
    %61 = arith.addf %59, %60 : vector<8x32xf32>
    %62 = arith.negf %61 : vector<8x32xf32>
    %63 = math.exp %62 : vector<8x32xf32>
    %cst_28 = arith.constant 1.000000e+00 : f32
    %64 = vector.broadcast %cst_28 : f32 to vector<8x32xf32>
    %65 = arith.addf %64, %63 : vector<8x32xf32>
    %66 = arith.divf %64, %65 : vector<8x32xf32>
    %67 = vector.extract_strided_slice %46 {offsets = [0, 64], sizes = [8, 32], strides = [1, 1]} : vector<8x96xf32> to vector<8x32xf32>
    %68 = vector.extract_strided_slice %50 {offsets = [0, 64], sizes = [8, 32], strides = [1, 1]} : vector<8x96xf32> to vector<8x32xf32>
    %69 = arith.mulf %58, %68 : vector<8x32xf32>
    %70 = arith.addf %67, %69 : vector<8x32xf32>
    %71 = math.tanh %70 : vector<8x32xf32>
    %cst_29 = arith.constant 1.000000e+00 : f32
    %72 = vector.broadcast %cst_29 : f32 to vector<8x32xf32>
    %73 = arith.subf %72, %66 : vector<8x32xf32>
    %74 = arith.mulf %73, %71 : vector<8x32xf32>
    %75 = arith.mulf %66, %44 : vector<8x32xf32>
    %76 = arith.addf %74, %75 : vector<8x32xf32>
    %c0_30 = arith.constant 0 : index
    %c0_31 = arith.constant 0 : index
    %77 = vector.load %arg6[%c0_30, %c0_31] : memref<8x32xf32, #tpu.memory_space<vmem>>, vector<8x32xf32>
    tpu.vector_store %arg6[%c0_30, %c0_31], %76 {strides = array<i32>} : memref<8x32xf32, #tpu.memory_space<vmem>>, vector<8x32xf32>,
    %c0_32 = arith.constant 0 : index
    %c1_33 = arith.constant 1 : index
    %c0_34 = arith.constant 0 : index
    %c0_35 = arith.constant 0 : index
    %78 = vector.load %arg5[%c0_32, %c1_33, %c0_34, %c0_35] : memref<1x2x8x32xf32, #tpu.memory_space<vmem>>, vector<1x1x8x32xf32>
    %79 = vector.shape_cast %78 : vector<1x1x8x32xf32> to vector<8x32xf32>
    %80 = vector.shape_cast %76 : vector<8x32xf32> to vector<1x1x8x32xf32>
    tpu.vector_store %arg5[%c0_32, %c1_33, %c0_34, %c0_35], %80 {strides = array<i32>} : memref<1x2x8x32xf32, #tpu.memory_space<vmem>>, vector<1x1x8x32xf32>,
    return
  }
  func.func @transform_0(%arg0: i32, %arg1: i32) -> (i32, i32, i32, i32) {
    %c0_i32 = arith.constant 0 : i32
    %c0_i32_0 = arith.constant 0 : i32
    %c0_i32_1 = arith.constant 0 : i32
    return %arg0, %arg1, %c0_i32, %c0_i32_0 : i32, i32, i32, i32
  }
  func.func @transform_1(%arg0: i32, %arg1: i32) -> (i32, i32, i32) {
    %c0_i32 = arith.constant 0 : i32
    %c0_i32_0 = arith.constant 0 : i32
    %c0_i32_1 = arith.constant 0 : i32
    return %arg0, %c0_i32, %c0_i32_0 : i32, i32, i32
  }
  func.func @transform_2(%arg0: i32, %arg1: i32) -> (i32, i32, i32) {
    %c0_i32 = arith.constant 0 : i32
    %c0_i32_0 = arith.constant 0 : i32
    %c0_i32_1 = arith.constant 0 : i32
    return %arg0, %c0_i32, %c0_i32_0 : i32, i32, i32
  }
  func.func @transform_3(%arg0: i32, %arg1: i32) -> (i32, i32, i32, i32) {
    %c0_i32 = arith.constant 0 : i32
    %c0_i32_0 = arith.constant 0 : i32
    %c0_i32_1 = arith.constant 0 : i32
    return %arg0, %arg1, %c0_i32, %c0_i32_0 : i32, i32, i32, i32
  }
}

module attributes {stable_mosaic.version = 11 : i64} {
  func.func @_mha_kernel(%arg0: i32, %arg1: memref<8x2x64xbf16, #tpu.memory_space<vmem>>, %arg2: memref<64x192xbf16, #tpu.memory_space<vmem>>, %arg3: memref<1x192xf32, #tpu.memory_space<vmem>>, %arg4: memref<64x64xbf16, #tpu.memory_space<vmem>>, %arg5: memref<1x64xf32, #tpu.memory_space<vmem>>, %arg6: memref<8x2x64xf32, #tpu.memory_space<vmem>>) attributes {dimension_semantics = [#tpu.dimension_semantics<parallel>], iteration_bounds = array<i64: 1>, scalar_prefetch = 0 : i64, scratch_operands = 0 : i64, tpu.core_type = #tpu.core_type<tc>, window_params = [{transform_indices = @transform_0, window_bounds = array<i64: 8, 2, 64>}, {pipeline_mode = #tpu.pipeline_mode<synchronous>, transform_indices = @transform_1, window_bounds = array<i64: 64, 192>}, {pipeline_mode = #tpu.pipeline_mode<synchronous>, transform_indices = @transform_2, window_bounds = array<i64: 1, 192>}, {pipeline_mode = #tpu.pipeline_mode<synchronous>, transform_indices = @transform_3, window_bounds = array<i64: 64, 64>}, {pipeline_mode = #tpu.pipeline_mode<synchronous>, transform_indices = @transform_4, window_bounds = array<i64: 1, 64>}, {transform_indices = @transform_5, window_bounds = array<i64: 8, 2, 64>}]} {
    %c0 = arith.constant 0 : index
    %c0_0 = arith.constant 0 : index
    %c0_1 = arith.constant 0 : index
    %0 = vector.load %arg1[%c0, %c0_0, %c0_1] : memref<8x2x64xbf16, #tpu.memory_space<vmem>>, vector<8x2x64xbf16>
    %1 = vector.shape_cast %0 : vector<8x2x64xbf16> to vector<16x64xbf16>
    %c0_2 = arith.constant 0 : index
    %c0_3 = arith.constant 0 : index
    %2 = vector.load %arg2[%c0_2, %c0_3] : memref<64x192xbf16, #tpu.memory_space<vmem>>, vector<64x192xbf16>
    %cst = arith.constant dense<0.000000e+00> : vector<16x192xf32>
    %3 = tpu.matmul %1, %2, %cst {dimension_numbers = #tpu.dot_dimension_numbers<[1], [0], [0], [1], [0, 0, 1, 1], [], []>} : vector<16x64xbf16>, vector<64x192xbf16>, vector<16x192xf32> -> vector<16x192xf32>
    %c0_4 = arith.constant 0 : index
    %c0_5 = arith.constant 0 : index
    %4 = vector.load %arg3[%c0_4, %c0_5] : memref<1x192xf32, #tpu.memory_space<vmem>>, vector<1x192xf32>
    %5 = vector.broadcast %4 : vector<1x192xf32> to vector<16x192xf32>
    %6 = arith.addf %3, %5 : vector<16x192xf32>
    %7 = vector.shape_cast %6 : vector<16x192xf32> to vector<8x2x192xf32>
    %8 = vector.extract_strided_slice %7 {offsets = [0, 0, 0], sizes = [8, 2, 32], strides = [1, 1, 1]} : vector<8x2x192xf32> to vector<8x2x32xf32>
    %9 = arith.truncf %8 : vector<8x2x32xf32> to vector<8x2x32xbf16>
    %10 = vector.extract_strided_slice %7 {offsets = [0, 0, 64], sizes = [8, 2, 32], strides = [1, 1, 1]} : vector<8x2x192xf32> to vector<8x2x32xf32>
    %11 = arith.truncf %10 : vector<8x2x32xf32> to vector<8x2x32xbf16>
    %12 = vector.extract_strided_slice %7 {offsets = [0, 0, 128], sizes = [8, 2, 32], strides = [1, 1, 1]} : vector<8x2x192xf32> to vector<8x2x32xf32>
    %13 = arith.truncf %12 : vector<8x2x32xf32> to vector<8x2x32xbf16>
    "tpu.trace_start"() <{level = 10 : i32, message = "nld,nmd->nlm"}> : () -> ()
    %cst_6 = arith.constant dense<0.000000e+00> : vector<8x2x2xf32>
    %14 = tpu.matmul %9, %11, %cst_6 {dimension_numbers = #tpu.dot_dimension_numbers<[2], [2], [1], [1], [0, 0, 0, 1, 1, 1], [0], [0]>} : vector<8x2x32xbf16>, vector<8x2x32xbf16>, vector<8x2x2xf32> -> vector<8x2x2xf32>
    "tpu.trace_stop"() : () -> ()
    %cst_7 = arith.constant 0.176776692 : f32
    %15 = vector.broadcast %cst_7 : f32 to vector<8x2x2xf32>
    %16 = arith.mulf %14, %15 : vector<8x2x2xf32>
    %cst_8 = arith.constant dense<0xFF800000> : vector<8x2xf32>
    %17 = vector.multi_reduction <maximumf>, %16, %cst_8 [2] : vector<8x2x2xf32> to vector<8x2xf32>
    %18 = vector.shape_cast %17 : vector<8x2xf32> to vector<8x2x1xf32>
    %19 = vector.broadcast %18 : vector<8x2x1xf32> to vector<8x2x2xf32>
    %20 = arith.subf %16, %19 : vector<8x2x2xf32>
    %21 = math.exp %20 : vector<8x2x2xf32>
    %cst_9 = arith.constant dense<0.000000e+00> : vector<8x2xf32>
    %22 = vector.multi_reduction <add>, %21, %cst_9 [2] : vector<8x2x2xf32> to vector<8x2xf32>
    %23 = vector.shape_cast %22 : vector<8x2xf32> to vector<8x2x1xf32>
    %24 = tpu.reciprocal %23 {approx = true} : vector<8x2x1xf32> -> vector<8x2x1xf32>
    %25 = vector.broadcast %24 : vector<8x2x1xf32> to vector<8x2x2xf32>
    %26 = arith.mulf %21, %25 : vector<8x2x2xf32>
    %27 = arith.truncf %26 : vector<8x2x2xf32> to vector<8x2x2xbf16>
    "tpu.trace_start"() <{level = 10 : i32, message = "nlm,nmd->nld"}> : () -> ()
    %cst_10 = arith.constant dense<0.000000e+00> : vector<8x2x32xf32>
    %28 = tpu.matmul %27, %13, %cst_10 {dimension_numbers = #tpu.dot_dimension_numbers<[2], [1], [1], [2], [0, 0, 0, 1, 1, 2], [0], [0]>} : vector<8x2x2xbf16>, vector<8x2x32xbf16>, vector<8x2x32xf32> -> vector<8x2x32xf32>
    "tpu.trace_stop"() : () -> ()
    %29 = vector.extract_strided_slice %7 {offsets = [0, 0, 32], sizes = [8, 2, 32], strides = [1, 1, 1]} : vector<8x2x192xf32> to vector<8x2x32xf32>
    %30 = arith.truncf %29 : vector<8x2x32xf32> to vector<8x2x32xbf16>
    %31 = vector.extract_strided_slice %7 {offsets = [0, 0, 96], sizes = [8, 2, 32], strides = [1, 1, 1]} : vector<8x2x192xf32> to vector<8x2x32xf32>
    %32 = arith.truncf %31 : vector<8x2x32xf32> to vector<8x2x32xbf16>
    %33 = vector.extract_strided_slice %7 {offsets = [0, 0, 160], sizes = [8, 2, 32], strides = [1, 1, 1]} : vector<8x2x192xf32> to vector<8x2x32xf32>
    %34 = arith.truncf %33 : vector<8x2x32xf32> to vector<8x2x32xbf16>
    "tpu.trace_start"() <{level = 10 : i32, message = "nld,nmd->nlm"}> : () -> ()
    %cst_11 = arith.constant dense<0.000000e+00> : vector<8x2x2xf32>
    %35 = tpu.matmul %30, %32, %cst_11 {dimension_numbers = #tpu.dot_dimension_numbers<[2], [2], [1], [1], [0, 0, 0, 1, 1, 1], [0], [0]>} : vector<8x2x32xbf16>, vector<8x2x32xbf16>, vector<8x2x2xf32> -> vector<8x2x2xf32>
    "tpu.trace_stop"() : () -> ()
    %cst_12 = arith.constant 0.176776692 : f32
    %36 = vector.broadcast %cst_12 : f32 to vector<8x2x2xf32>
    %37 = arith.mulf %35, %36 : vector<8x2x2xf32>
    %cst_13 = arith.constant dense<0xFF800000> : vector<8x2xf32>
    %38 = vector.multi_reduction <maximumf>, %37, %cst_13 [2] : vector<8x2x2xf32> to vector<8x2xf32>
    %39 = vector.shape_cast %38 : vector<8x2xf32> to vector<8x2x1xf32>
    %40 = vector.broadcast %39 : vector<8x2x1xf32> to vector<8x2x2xf32>
    %41 = arith.subf %37, %40 : vector<8x2x2xf32>
    %42 = math.exp %41 : vector<8x2x2xf32>
    %cst_14 = arith.constant dense<0.000000e+00> : vector<8x2xf32>
    %43 = vector.multi_reduction <add>, %42, %cst_14 [2] : vector<8x2x2xf32> to vector<8x2xf32>
    %44 = vector.shape_cast %43 : vector<8x2xf32> to vector<8x2x1xf32>
    %45 = tpu.reciprocal %44 {approx = true} : vector<8x2x1xf32> -> vector<8x2x1xf32>
    %46 = vector.broadcast %45 : vector<8x2x1xf32> to vector<8x2x2xf32>
    %47 = arith.mulf %42, %46 : vector<8x2x2xf32>
    %48 = arith.truncf %47 : vector<8x2x2xf32> to vector<8x2x2xbf16>
    "tpu.trace_start"() <{level = 10 : i32, message = "nlm,nmd->nld"}> : () -> ()
    %cst_15 = arith.constant dense<0.000000e+00> : vector<8x2x32xf32>
    %49 = tpu.matmul %48, %34, %cst_15 {dimension_numbers = #tpu.dot_dimension_numbers<[2], [1], [1], [2], [0, 0, 0, 1, 1, 2], [0], [0]>} : vector<8x2x2xbf16>, vector<8x2x32xbf16>, vector<8x2x32xf32> -> vector<8x2x32xf32>
    "tpu.trace_stop"() : () -> ()
    %50 = tpu.concatenate %28, %49 in 2 : vector<8x2x32xf32>, vector<8x2x32xf32> -> vector<8x2x64xf32>
    %51 = vector.shape_cast %50 : vector<8x2x64xf32> to vector<16x64xf32>
    %52 = arith.truncf %51 : vector<16x64xf32> to vector<16x64xbf16>
    %c0_16 = arith.constant 0 : index
    %c0_17 = arith.constant 0 : index
    %53 = vector.load %arg4[%c0_16, %c0_17] : memref<64x64xbf16, #tpu.memory_space<vmem>>, vector<64x64xbf16>
    %cst_18 = arith.constant dense<0.000000e+00> : vector<16x64xf32>
    %54 = tpu.matmul %52, %53, %cst_18 {dimension_numbers = #tpu.dot_dimension_numbers<[1], [0], [0], [1], [0, 0, 1, 1], [], []>} : vector<16x64xbf16>, vector<64x64xbf16>, vector<16x64xf32> -> vector<16x64xf32>
    %c0_19 = arith.constant 0 : index
    %c0_20 = arith.constant 0 : index
    %55 = vector.load %arg5[%c0_19, %c0_20] : memref<1x64xf32, #tpu.memory_space<vmem>>, vector<1x64xf32>
    %56 = vector.broadcast %55 : vector<1x64xf32> to vector<16x64xf32>
    %57 = arith.addf %54, %56 : vector<16x64xf32>
    %58 = vector.shape_cast %57 : vector<16x64xf32> to vector<8x2x64xf32>
    %c0_21 = arith.constant 0 : index
    %c0_22 = arith.constant 0 : index
    %c0_23 = arith.constant 0 : index
    %59 = vector.load %arg6[%c0_21, %c0_22, %c0_23] : memref<8x2x64xf32, #tpu.memory_space<vmem>>, vector<8x2x64xf32>
    tpu.vector_store %arg6[%c0_21, %c0_22, %c0_23], %58 {strides = array<i32>} : memref<8x2x64xf32, #tpu.memory_space<vmem>>, vector<8x2x64xf32>,
    return
  }
  func.func @transform_0(%arg0: i32) -> (i32, i32, i32) {
    %c0_i32 = arith.constant 0 : i32
    %c0_i32_0 = arith.constant 0 : i32
    %c0_i32_1 = arith.constant 0 : i32
    return %arg0, %c0_i32, %c0_i32_0 : i32, i32, i32
  }
  func.func @transform_1(%arg0: i32) -> (i32, i32) {
    %c0_i32 = arith.constant 0 : i32
    %c0_i32_0 = arith.constant 0 : i32
    %c0_i32_1 = arith.constant 0 : i32
    return %c0_i32, %c0_i32_0 : i32, i32
  }
  func.func @transform_2(%arg0: i32) -> (i32, i32) {
    %c0_i32 = arith.constant 0 : i32
    %c0_i32_0 = arith.constant 0 : i32
    %c0_i32_1 = arith.constant 0 : i32
    return %c0_i32, %c0_i32_0 : i32, i32
  }
  func.func @transform_3(%arg0: i32) -> (i32, i32) {
    %c0_i32 = arith.constant 0 : i32
    %c0_i32_0 = arith.constant 0 : i32
    %c0_i32_1 = arith.constant 0 : i32
    return %c0_i32, %c0_i32_0 : i32, i32
  }
  func.func @transform_4(%arg0: i32) -> (i32, i32) {
    %c0_i32 = arith.constant 0 : i32
    %c0_i32_0 = arith.constant 0 : i32
    %c0_i32_1 = arith.constant 0 : i32
    return %c0_i32, %c0_i32_0 : i32, i32
  }
  func.func @transform_5(%arg0: i32) -> (i32, i32, i32) {
    %c0_i32 = arith.constant 0 : i32
    %c0_i32_0 = arith.constant 0 : i32
    %c0_i32_1 = arith.constant 0 : i32
    return %arg0, %c0_i32, %c0_i32_0 : i32, i32, i32
  }
}

module attributes {stable_mosaic.version = 11 : i64} {
  func.func @_classifier_kernel(%arg0: i32, %arg1: memref<16x64xf32, #tpu.memory_space<vmem>>, %arg2: memref<64x32xbf16, #tpu.memory_space<vmem>>, %arg3: memref<1x32xf32, #tpu.memory_space<vmem>>, %arg4: memref<32x30xbf16, #tpu.memory_space<vmem>>, %arg5: memref<1x30xf32, #tpu.memory_space<vmem>>, %arg6: memref<16x30xf32, #tpu.memory_space<vmem>>) attributes {dimension_semantics = [#tpu.dimension_semantics<parallel>], iteration_bounds = array<i64: 1>, scalar_prefetch = 0 : i64, scratch_operands = 0 : i64, tpu.core_type = #tpu.core_type<tc>, window_params = [{transform_indices = @transform_0, window_bounds = array<i64: 16, 64>}, {pipeline_mode = #tpu.pipeline_mode<synchronous>, transform_indices = @transform_1, window_bounds = array<i64: 64, 32>}, {pipeline_mode = #tpu.pipeline_mode<synchronous>, transform_indices = @transform_2, window_bounds = array<i64: 1, 32>}, {pipeline_mode = #tpu.pipeline_mode<synchronous>, transform_indices = @transform_3, window_bounds = array<i64: 32, 30>}, {pipeline_mode = #tpu.pipeline_mode<synchronous>, transform_indices = @transform_4, window_bounds = array<i64: 1, 30>}, {transform_indices = @transform_5, window_bounds = array<i64: 16, 30>}]} {
    %c0 = arith.constant 0 : index
    %c0_0 = arith.constant 0 : index
    %0 = vector.load %arg1[%c0, %c0_0] : memref<16x64xf32, #tpu.memory_space<vmem>>, vector<16x64xf32>
    %1 = arith.truncf %0 : vector<16x64xf32> to vector<16x64xbf16>
    %c0_1 = arith.constant 0 : index
    %c0_2 = arith.constant 0 : index
    %2 = vector.load %arg2[%c0_1, %c0_2] : memref<64x32xbf16, #tpu.memory_space<vmem>>, vector<64x32xbf16>
    %cst = arith.constant dense<0.000000e+00> : vector<16x32xf32>
    %3 = tpu.matmul %1, %2, %cst {dimension_numbers = #tpu.dot_dimension_numbers<[1], [0], [0], [1], [0, 0, 1, 1], [], []>} : vector<16x64xbf16>, vector<64x32xbf16>, vector<16x32xf32> -> vector<16x32xf32>
    %c0_3 = arith.constant 0 : index
    %c0_4 = arith.constant 0 : index
    %4 = vector.load %arg3[%c0_3, %c0_4] : memref<1x32xf32, #tpu.memory_space<vmem>>, vector<1x32xf32>
    %5 = vector.broadcast %4 : vector<1x32xf32> to vector<16x32xf32>
    %6 = arith.addf %3, %5 : vector<16x32xf32>
    %cst_5 = arith.constant 5.000000e-01 : f32
    %7 = vector.broadcast %cst_5 : f32 to vector<16x32xf32>
    %8 = arith.mulf %7, %6 : vector<16x32xf32>
    %cst_6 = arith.constant 0.707106769 : f32
    %9 = vector.broadcast %cst_6 : f32 to vector<16x32xf32>
    %10 = arith.mulf %6, %9 : vector<16x32xf32>
    %11 = math.absf %10 : vector<16x32xf32>
    %cst_7 = arith.constant 0.327591091 : f32
    %12 = vector.broadcast %cst_7 : f32 to vector<16x32xf32>
    %13 = arith.mulf %12, %11 : vector<16x32xf32>
    %cst_8 = arith.constant 1.000000e+00 : f32
    %14 = vector.broadcast %cst_8 : f32 to vector<16x32xf32>
    %15 = arith.addf %14, %13 : vector<16x32xf32>
    %cst_9 = arith.constant 1.000000e+00 : f32
    %16 = vector.broadcast %cst_9 : f32 to vector<16x32xf32>
    %17 = arith.divf %16, %15 : vector<16x32xf32>
    %cst_10 = arith.constant 1.06140542 : f32
    %18 = vector.broadcast %cst_10 : f32 to vector<16x32xf32>
    %19 = arith.mulf %18, %17 : vector<16x32xf32>
    %cst_11 = arith.constant -1.45315206 : f32
    %20 = vector.broadcast %cst_11 : f32 to vector<16x32xf32>
    %21 = arith.addf %19, %20 : vector<16x32xf32>
    %22 = arith.mulf %21, %17 : vector<16x32xf32>
    %cst_12 = arith.constant 1.42141378 : f32
    %23 = vector.broadcast %cst_12 : f32 to vector<16x32xf32>
    %24 = arith.addf %22, %23 : vector<16x32xf32>
    %25 = arith.mulf %24, %17 : vector<16x32xf32>
    %cst_13 = arith.constant -0.284496725 : f32
    %26 = vector.broadcast %cst_13 : f32 to vector<16x32xf32>
    %27 = arith.addf %25, %26 : vector<16x32xf32>
    %28 = arith.mulf %27, %17 : vector<16x32xf32>
    %cst_14 = arith.constant 0.254829586 : f32
    %29 = vector.broadcast %cst_14 : f32 to vector<16x32xf32>
    %30 = arith.addf %28, %29 : vector<16x32xf32>
    %31 = arith.mulf %30, %17 : vector<16x32xf32>
    %cst_15 = arith.constant 0.000000e+00 : f32
    %32 = vector.broadcast %cst_15 : f32 to vector<16x32xf32>
    %33 = arith.subf %32, %11 : vector<16x32xf32>
    %34 = arith.mulf %33, %11 : vector<16x32xf32>
    %35 = math.exp %34 : vector<16x32xf32>
    %36 = arith.mulf %31, %35 : vector<16x32xf32>
    %cst_16 = arith.constant 1.000000e+00 : f32
    %37 = vector.broadcast %cst_16 : f32 to vector<16x32xf32>
    %38 = arith.subf %37, %36 : vector<16x32xf32>
    %cst_17 = arith.constant 0.000000e+00 : f32
    %39 = vector.broadcast %cst_17 : f32 to vector<16x32xf32>
    %40 = arith.cmpf oge, %10, %39 : vector<16x32xf32>
    %cst_18 = arith.constant 0.000000e+00 : f32
    %41 = vector.broadcast %cst_18 : f32 to vector<16x32xf32>
    %42 = arith.subf %41, %38 : vector<16x32xf32>
    %43 = arith.select %40, %38, %42 : vector<16x32xi1>, vector<16x32xf32>
    %cst_19 = arith.constant 1.000000e+00 : f32
    %44 = vector.broadcast %cst_19 : f32 to vector<16x32xf32>
    %45 = arith.addf %44, %43 : vector<16x32xf32>
    %46 = arith.mulf %8, %45 : vector<16x32xf32>
    %47 = arith.truncf %46 : vector<16x32xf32> to vector<16x32xbf16>
    %c0_20 = arith.constant 0 : index
    %c0_21 = arith.constant 0 : index
    %48 = vector.load %arg4[%c0_20, %c0_21] : memref<32x30xbf16, #tpu.memory_space<vmem>>, vector<32x30xbf16>
    %cst_22 = arith.constant dense<0.000000e+00> : vector<16x30xf32>
    %49 = tpu.matmul %47, %48, %cst_22 {dimension_numbers = #tpu.dot_dimension_numbers<[1], [0], [0], [1], [0, 0, 1, 1], [], []>} : vector<16x32xbf16>, vector<32x30xbf16>, vector<16x30xf32> -> vector<16x30xf32>
    %c0_23 = arith.constant 0 : index
    %c0_24 = arith.constant 0 : index
    %50 = vector.load %arg5[%c0_23, %c0_24] : memref<1x30xf32, #tpu.memory_space<vmem>>, vector<1x30xf32>
    %51 = vector.broadcast %50 : vector<1x30xf32> to vector<16x30xf32>
    %52 = arith.addf %49, %51 : vector<16x30xf32>
    %cst_25 = arith.constant dense<0xFF800000> : vector<16xf32>
    %53 = vector.multi_reduction <maximumf>, %52, %cst_25 [1] : vector<16x30xf32> to vector<16xf32>
    %54 = vector.shape_cast %53 : vector<16xf32> to vector<16x1xf32>
    %55 = vector.broadcast %54 : vector<16x1xf32> to vector<16x30xf32>
    %56 = arith.subf %52, %55 : vector<16x30xf32>
    %57 = math.exp %56 : vector<16x30xf32>
    %cst_26 = arith.constant dense<0.000000e+00> : vector<16xf32>
    %58 = vector.multi_reduction <add>, %57, %cst_26 [1] : vector<16x30xf32> to vector<16xf32>
    %59 = vector.shape_cast %58 : vector<16xf32> to vector<16x1xf32>
    %60 = math.log %59 : vector<16x1xf32>
    %61 = arith.addf %60, %54 : vector<16x1xf32>
    %62 = vector.broadcast %61 : vector<16x1xf32> to vector<16x30xf32>
    %63 = arith.subf %52, %62 : vector<16x30xf32>
    %c0_27 = arith.constant 0 : index
    %c0_28 = arith.constant 0 : index
    %64 = vector.load %arg6[%c0_27, %c0_28] : memref<16x30xf32, #tpu.memory_space<vmem>>, vector<16x30xf32>
    tpu.vector_store %arg6[%c0_27, %c0_28], %63 {strides = array<i32>} : memref<16x30xf32, #tpu.memory_space<vmem>>, vector<16x30xf32>,
    return
  }
  func.func @transform_0(%arg0: i32) -> (i32, i32) {
    %c0_i32 = arith.constant 0 : i32
    %c0_i32_0 = arith.constant 0 : i32
    return %arg0, %c0_i32 : i32, i32
  }
  func.func @transform_1(%arg0: i32) -> (i32, i32) {
    %c0_i32 = arith.constant 0 : i32
    %c0_i32_0 = arith.constant 0 : i32
    %c0_i32_1 = arith.constant 0 : i32
    return %c0_i32, %c0_i32_0 : i32, i32
  }
  func.func @transform_2(%arg0: i32) -> (i32, i32) {
    %c0_i32 = arith.constant 0 : i32
    %c0_i32_0 = arith.constant 0 : i32
    %c0_i32_1 = arith.constant 0 : i32
    return %c0_i32, %c0_i32_0 : i32, i32
  }
  func.func @transform_3(%arg0: i32) -> (i32, i32) {
    %c0_i32 = arith.constant 0 : i32
    %c0_i32_0 = arith.constant 0 : i32
    %c0_i32_1 = arith.constant 0 : i32
    return %c0_i32, %c0_i32_0 : i32, i32
  }
  func.func @transform_4(%arg0: i32) -> (i32, i32) {
    %c0_i32 = arith.constant 0 : i32
    %c0_i32_0 = arith.constant 0 : i32
    %c0_i32_1 = arith.constant 0 : i32
    return %c0_i32, %c0_i32_0 : i32, i32
  }
  func.func @transform_5(%arg0: i32) -> (i32, i32) {
    %c0_i32 = arith.constant 0 : i32
    %c0_i32_0 = arith.constant 0 : i32
    return %arg0, %c0_i32 : i32, i32
  }
}

</mosaic_0001>

<bundles_post_ra>
// kernel: forward.20
= control target key start
LH: loop header
LB: loop body
LE: loop exit
PB: predicated region body
PF: predicated region fallthrough
CT: control target
= control target key end

     0   :  { %s503_s12 = smov 0   ;;  %s505_s13 = smov 0   ;;  %s556_s0 = inlined_call_operand.vmem [shape: bf16[2,9,64], index: 0, kind: input, shape index: {}]   ;;  %s557_s1 = inlined_call_operand.vmem [shape: bf16[32,9], index: 1, kind: input, shape index: {}]   ;;  %s558_s2 = inlined_call_operand.vmem [shape: f32[32,1], index: 2, kind: input, shape index: {}]   ;;  %s559_s3 = inlined_call_operand.vmem [shape: f32[2,32,64], index: 3, kind: output, shape index: {}]  }
   0x1   :  { %s507_s14 = smov 0  }
   0x2 LB: > { %s25_s15 = sadd.s32 1, %s475_s13  ;;  %p403_p0 = scmp.ge.s32.totalorder %s479_s14, 1  ;;  %s479_s14 = sphi %s507_s14, %s13_s14   ;;  %s475_s13 = sphi %s505_s13, %s561_s13   ;;  %s471_s12 = sphi %s503_s12, %s560_s12  }
   0x3   : > { %p27_p1 = scmp.ge.s32.totalorder %s25_s15, 2  ;;  %p156_p2 = scmp.lt.s32.totalorder %s479_s14, 3 }
   0x5   : > { %s563_s15 = smov (%p27_p1, %s25_s15), 0  ;;  %p157_p3 = pnand %p403_p0, %p156_p2 }
   0x6   : > { %p186_p4 = scmp.lt.s32.totalorder (!%p157_p3), %s471_s12, 1 }
   0x7   : > { %160 = sbr.rel (%p157_p3) target bundleno = 225 (0xe1), region = 32 }
   0xc   : > { %vm255_vm0 = vcmask 1043456   ;;  %vm256_vm1 = vcmask 1044480   ;;  %v455_v0 = vld [vmem:[%s557_s1] sm:$0xff]   ;;  %vm248_vm2 = vcmask 72704   ;;  %s565_s12 = smov (!%p186_p4, %s471_s12), 1  ;;  %v481_v1 = vmov 65535  }
   0xd   : > { %v257_v2 = vsel %vm255_vm0, 4294967295, %v481_v1  ;;  %422 = vmatprep.mubr.msk.bf16.mxu0 %vm248_vm2, %v455_v0  ;;  %v211_v3 = vld [vmem:[%s558_s2 + $0x10] sm:$0xff]  ;;  %v209_v4 = vld [vmem:[%s558_s2] sm:$0xff]  ;;  %s415_s22 = sshll.u32 %s565_s12, 3  ;;  %v482_v5 = vmov 0   ;;  %v212_v7 = vld [vmem:[%s558_s2 + $0x18] sm:$0xff] }
   0xe   : > { %453 = vset.pattern.permute.xlu1 %v482_v5  ;;  %452 = vset.pattern.permute.xlu0 %v482_v5  ;;  %s193_s25 = scalar_lea.vmem %s556_s0, %s415_s22  ;;  %v258_v6 = vsel %vm256_vm1, %v257_v2, 0  ;;  %v210_v8 = vld [vmem:[%s558_s2 + $0x8] sm:$0xff]  ;;  %s416_s5 = sshll.u32 %s565_s12, 5  ;;  %vm311_vm3 = vcmask 523264  }
   0xf   : > { %225 = vperm.xlu1 %453, %v211_v3   ;;  %215 = vperm.xlu0 %452, %v209_v4   ;;  %v454_v9 = vld [vmem:[%s193_s25] sm:$0x1f]   ;;  %v456_v11 = vld [vmem:[%s557_s1 + $0x8] sm:$0xff]   ;;  %s201_s8 = scalar_lea.vmem %s559_s3, %s416_s5 }
  0x10   : > { %v260_v10 = vand.u32 %v454_v9, %v258_v6 }
  0x12   : > { %420 = vmatprep.subr.bf16.mxu0 %v260_v10 }
  0x13   : > { %230 = vperm.xlu1 %453, %v212_v7   ;;  %220 = vperm.xlu0 %452, %v210_v8  }
  0x14   : > { %421 = vmatpush3.bf16.msra.mxu0 %v260_v10 }
  0x17   : > { %423 = vmatmul.mubr.msk.bf16.vlgmr.msra.gmra.mxu0 %vm248_vm2, %v456_v11 }
  0x8a   : > { %v226_v12 = vpop.permute.xlu1 %225  ;;  %v216_v13 = vpop.permute.xlu0 %215 }
  0x8e   : > { %v231_v18 = vpop.permute.xlu1 %230  ;;  %v221_v21 = vpop.permute.xlu0 %220 }
  0xd7   : > { %v424_v14 = vpop.f32.mrf.mxu0 }
  0xd8   : > { %v305_v15 = vadd.f32 %v424_v14, %v226_v12 }
  0xd9   : > { %v296_v16 = vpop.f32.mrf.mxu0 }
  0xda   : > { %314 = vst.msk [vmem:[%s201_s8 + $0x10] sm:$0xff] %vm311_vm3, %v305_v15  ;;  %v297_v17 = vadd.f32 %v296_v16, %v216_v13 }
  0xdb   : > { %v425_v19 = vpop.f32.mrf.mxu0 }
  0xdc   : > { %312 = vst.msk [vmem:[%s201_s8] sm:$0xff] %vm311_vm3, %v297_v17  ;;  %v308_v20 = vadd.f32 %v425_v19, %v231_v18 }
  0xdd   : > { %v299_v22 = vpop.f32.mrf.mxu0 }
  0xde   : > { %315 = vst.msk [vmem:[%s201_s8 + $0x18] sm:$0xff] %vm311_vm3, %v308_v20  ;;  %v300_v23 = vadd.f32 %v299_v22, %v221_v21 }
  0xe0   : > { %313 = vst.msk [vmem:[%s201_s8 + $0x8] sm:$0xff] %vm311_vm3, %v300_v23 }
  0xe1 PF: > { %s13_s14 = sadd.s32 1, %s479_s14   ;;  %s560_s12 = smov %s475_s13 }
  0xe2   : > { %p10_p5 = scmp.ge.s32.totalorder %s13_s14, 4   ;;  %s561_s13 = smov %s563_s15 }
  0xe4   :  { %12 = sbr.rel (!%p10_p5) target bundleno = 2 (0x2), region = 62 }

// kernel: forward.21
= control target key start
LH: loop header
LB: loop body
LE: loop exit
PB: predicated region body
PF: predicated region fallthrough
CT: control target
= control target key end

     0   :  { %s2181_s12 = smov 0   ;;  %s4297_s0 = inlined_call_operand.vmem [shape: f32[2,32,8,8], index: 0, kind: input, shape index: {}]   ;;  %s4298_s1 = inlined_call_operand.vmem [shape: f32[1,1,8,1], index: 1, kind: input, shape index: {}]   ;;  %s4299_s2 = inlined_call_operand.vmem [shape: f32[1,1,8,1], index: 2, kind: input, shape index: {}]   ;;  %s4300_s3 = inlined_call_operand.vmem [shape: bf16[2,32,8,8], index: 3, kind: output, shape index: {}]  }
   0x1 LB: > { %s1937_s13 = sadd.s32 4294967295, %s2158_s12   ;;  %p1941_p0 = scmp.ge.s32.totalorder %s2158_s12, 1  ;;  %s2158_s12 = sphi %s2181_s12, %s13_s12  }
   0x2   : > { %p137_p1 = scmp.lt.s32.totalorder %s2158_s12, 3 }
   0x4   : > { %p138_p2 = pnand %p1941_p0, %p137_p1 }
   0x6   : > { %141 = sbr.rel (%p138_p2) target bundleno = 467 (0x1d3), region = 32 }
   0xb   : > { %v877_v0 = vld [vmem:[%s4298_s1] sm:$0xff]  ;;  %v2160_v1 = vmov 0   ;;  %p161_p3 = scmp.lt.s32.totalorder %s1937_s13, 1  ;;  %vm203_vm0 = vcmask 64512  }
   0xc   : > { %1959 = vset.pattern.permute.xlu0 %v2160_v1  ;;  %v915_v2 = vld [vmem:[%s4299_s2] sm:$0xff] }
   0xd   : > { %880 = vperm.xlu0 %1959, %v877_v0   ;;  %s5104_s13 = smov (!%p161_p3, %s1937_s13), 1 }
   0xe   : > { %s1948_s18 = sshll.u32 %s5104_s13, 8  ;;  %s1949_s22 = sshll.u32 %s5104_s13, 7 }
   0xf   : > { %s2201_s21 = scalar_lea.vmem %s4297_s0, %s1948_s18  ;;  %s4208_s25 = scalar_lea.vmem %s4300_s3, %s1949_s22 }
  0x10   : > { %v2204_v3 = vld [vmem:[%s2201_s21] sm:$0xff]  ;;  %v2209_v5 = vld [vmem:[%s2201_s21 + $0x8] sm:$0xff]  ;;  %v2212_v6 = vld [vmem:[%s2201_s21 + $0x10] sm:$0xff] }
  0x11   : > { %918 = vperm.xlu0 %1959, %v915_v2   ;;  %4558 = vst [vmem:[#allocation2_spill] sm:$0xff] %v2204_v3  ;;  %v204_v4 = vsel %vm203_vm0, %v2204_v3, 0.0  ;;  %4559 = vst [vmem:[#allocation3_spill] sm:$0xff] %v2209_v5  ;;  %v2215_v7 = vld [vmem:[%s2201_s21 + $0x18] sm:$0xff]  ;;  %v2218_v8 = vld [vmem:[%s2201_s21 + $0x20] sm:$0xff]  ;;  %v211_v12 = vsel %vm203_vm0, %v2209_v5, 0.0 }
  0x12   : > { %4560 = vst [vmem:[#allocation4_spill] sm:$0xff] %v2212_v6  ;;  %4561 = vst [vmem:[#allocation5_spill] sm:$0xff] %v2215_v7  ;;  %v2221_v9 = vld [vmem:[%s2201_s21 + $0x28] sm:$0xff]  ;;  %v205_v10 = vrot.slane %v204_v4, 4  ;;  %v2224_v11 = vld [vmem:[%s2201_s21 + $0x30] sm:$0xff]  ;;  %v218_v13 = vsel %vm203_vm0, %v2212_v6, 0.0 }
  0x13   : > { %4562 = vst [vmem:[#allocation6_spill] sm:$0xff] %v2218_v8  ;;  %4563 = vst [vmem:[#allocation7_spill] sm:$0xff] %v2221_v9  ;;  %v2231_v14 = vld [vmem:[%s2201_s21 + $0x38] sm:$0xff]  ;;  %v225_v15 = vsel %vm203_vm0, %v2215_v7, 0.0  ;;  %v2236_v16 = vld [vmem:[%s2201_s21 + $0x40] sm:$0xff]  ;;  %v232_v18 = vsel %vm203_vm0, %v2218_v8, 0.0 }
  0x14   : > { %4564 = vst [vmem:[#allocation8_spill] sm:$0xff] %v2224_v11  ;;  %4565 = vst [vmem:[#allocation9_spill] sm:$0xff] %v2231_v14  ;;  %v2239_v17 = vld [vmem:[%s2201_s21 + $0x48] sm:$0xff]  ;;  %v239_v19 = vsel %vm203_vm0, %v2221_v9, 0.0  ;;  %v2246_v20 = vld [vmem:[%s2201_s21 + $0x50] sm:$0xff]  ;;  %v206_v23 = vadd.f32 %v205_v10, %v204_v4  ;;  %v212_v24 = vrot.slane %v211_v12, 4 }
  0x15   : > { %4566 = vst [vmem:[#allocation10_spill] sm:$0xff] %v2236_v16  ;;  %4567 = vst [vmem:[#allocation11_spill] sm:$0xff] %v2239_v17  ;;  %v2249_v21 = vld [vmem:[%s2201_s21 + $0x58] sm:$0xff]  ;;  %v2252_v22 = vld [vmem:[%s2201_s21 + $0x60] sm:$0xff]  ;;  %v219_v25 = vrot.slane %v218_v13, 4  ;;  %v246_v26 = vsel %vm203_vm0, %v2224_v11, 0.0 }
  0x16   : > { %4568 = vst [vmem:[#allocation12_spill] sm:$0xff] %v2246_v20  ;;  %4569 = vst [vmem:[#allocation13_spill] sm:$0xff] %v2249_v21  ;;  %v226_v27 = vrot.slane %v225_v15, 4  ;;  %v253_v28 = vsel %vm203_vm0, %v2231_v14, 0.0  ;;  %v2259_v29 = vld [vmem:[%s2201_s21 + $0x68] sm:$0xff]  ;;  %v2262_v30 = vld [vmem:[%s2201_s21 + $0x70] sm:$0xff]  ;;  %v213_v40 = vadd.f32 %v212_v24, %v211_v12 }
  0x17   : > { %4570 = vst [vmem:[#allocation14_spill] sm:$0xff] %v2252_v22  ;;  %4571 = vst [vmem:[#allocation15_spill] sm:$0xff] %v2259_v29  ;;  %v233_v31 = vrot.slane %v232_v18, 4  ;;  %v240_v32 = vrot.slane %v239_v19, 4  ;;  %v260_v33 = vsel %vm203_vm0, %v2236_v16, 0.0  ;;  %v267_v34 = vsel %vm203_vm0, %v2239_v17, 0.0 }
  0x18   : > { %4572 = vst [vmem:[#allocation16_spill] sm:$0xff] %v2262_v30  ;;  %v247_v35 = vrot.slane %v246_v26, 4  ;;  %v274_v36 = vsel %vm203_vm0, %v2246_v20, 0.0  ;;  %v281_v37 = vsel %vm203_vm0, %v2249_v21, 0.0  ;;  %v288_v38 = vsel %vm203_vm0, %v2252_v22, 0.0  ;;  %v2279_v50 = vld [vmem:[%s2201_s21 + $0x78] sm:$0xff] }
  0x19   : > { %v207_v39 = vrot.slane %v206_v23, 2  ;;  %v220_v41 = vadd.f32 %v219_v25, %v218_v13  ;;  %v254_v42 = vrot.slane %v253_v28, 4  ;;  %v261_v43 = vrot.slane %v260_v33, 4  ;;  %4573 = vst [vmem:[#allocation17_spill] sm:$0xff] %v2279_v50 }
  0x1a   : > { %v268_v44 = vrot.slane %v267_v34, 4  ;;  %v295_v45 = vsel %vm203_vm0, %v2259_v29, 0.0  ;;  %v302_v46 = vsel %vm203_vm0, %v2262_v30, 0.0  ;;  %v275_v47 = vrot.slane %v274_v36, 4 }
  0x1b   : > { %v282_v48 = vrot.slane %v281_v37, 4  ;;  %v289_v49 = vrot.slane %v288_v38, 4  ;;  %v227_v51 = vadd.f32 %v226_v27, %v225_v15  ;;  %v234_v52 = vadd.f32 %v233_v31, %v232_v18 }
  0x1c   : > { %v241_v53 = vadd.f32 %v240_v32, %v239_v19  ;;  %v248_v54 = vadd.f32 %v247_v35, %v246_v26  ;;  %v214_v55 = vrot.slane %v213_v40, 2  ;;  %v221_v56 = vrot.slane %v220_v41, 2 }
  0x1d   : > { %v296_v57 = vrot.slane %v295_v45, 4  ;;  %v303_v58 = vrot.slane %v302_v46, 4  ;;  %v208_v59 = vadd.f32 %v207_v39, %v206_v23  ;;  %v255_v60 = vadd.f32 %v254_v42, %v253_v28 }
  0x1e   : > { %v262_v61 = vadd.f32 %v261_v43, %v260_v33  ;;  %v269_v62 = vadd.f32 %v268_v44, %v267_v34  ;;  %v276_v63 = vadd.f32 %v275_v47, %v274_v36  ;;  %v283_v0 = vadd.f32 %v282_v48, %v281_v37 }
  0x1f   : > { %v290_v1 = vadd.f32 %v289_v49, %v288_v38  ;;  %v309_v2 = vsel %vm203_vm0, %v2279_v50, 0.0  ;;  %v228_v4 = vrot.slane %v227_v51, 2  ;;  %v235_v10 = vrot.slane %v234_v52, 2 }
  0x20   : > { %v242_v12 = vrot.slane %v241_v53, 2  ;;  %v249_v13 = vrot.slane %v248_v54, 2  ;;  %v215_v15 = vadd.f32 %v214_v55, %v213_v40  ;;  %v222_v18 = vadd.f32 %v221_v56, %v220_v41 }
  0x21   : > { %v297_v19 = vadd.f32 %v296_v57, %v295_v45  ;;  %v304_v24 = vadd.f32 %v303_v58, %v302_v46  ;;  %v256_v25 = vrot.slane %v255_v60, 2  ;;  %v263_v26 = vrot.slane %v262_v61, 2 }
  0x22   : > { %v270_v23 = vrot.slane %v269_v62, 2  ;;  %v310_v27 = vrot.slane %v309_v2, 4  ;;  %v209_v28 = vrot.slane %v208_v59, 1  ;;  %v277_v31 = vrot.slane %v276_v63, 2 }
  0x23   : > { %v284_v32 = vrot.slane %v283_v0, 2  ;;  %v291_v33 = vrot.slane %v290_v1, 2  ;;  %v229_v34 = vadd.f32 %v228_v4, %v227_v51  ;;  %v236_v35 = vadd.f32 %v235_v10, %v234_v52  ;;  %v2286_v51 = vld [vmem:[%s2201_s21 + $0x80] sm:$0xff] }
  0x24   : > { %v243_v36 = vadd.f32 %v242_v12, %v241_v53  ;;  %v250_v37 = vadd.f32 %v249_v13, %v248_v54  ;;  %v216_v38 = vrot.slane %v215_v15, 1  ;;  %v223_v39 = vrot.slane %v222_v18, 1  ;;  %4574 = vst [vmem:[#allocation18_spill] sm:$0xff] %v2286_v51 }
  0x25   : > { %v298_v42 = vrot.slane %v297_v19, 2  ;;  %v305_v40 = vrot.slane %v304_v24, 2  ;;  %v257_v41 = vadd.f32 %v256_v25, %v255_v60  ;;  %v264_v43 = vadd.f32 %v263_v26, %v262_v61  ;;  %v2293_v61 = vld [vmem:[%s2201_s21 + $0x88] sm:$0xff]  ;;  %v2312_v25 = vld [vmem:[%s2201_s21 + $0xa0] sm:$0xff] }
  0x26   : > { %v271_v44 = vadd.f32 %v270_v23, %v269_v62  ;;  %v311_v45 = vadd.f32 %v310_v27, %v309_v2  ;;  %v2283_v46 = vadd.f32 %v209_v28, %v208_v59  ;;  %v278_v47 = vadd.f32 %v277_v31, %v276_v63  ;;  %4575 = vst [vmem:[#allocation19_spill] sm:$0xff] %v2293_v61  ;;  %v2296_v59 = vld [vmem:[%s2201_s21 + $0x90] sm:$0xff]  ;;  %v2319_v31 = vld [vmem:[%s2201_s21 + $0xa8] sm:$0xff] }
  0x27   : > { %v285_v48 = vadd.f32 %v284_v32, %v283_v0  ;;  %v292_v49 = vadd.f32 %v291_v33, %v290_v1  ;;  %v230_v52 = vrot.slane %v229_v34, 1  ;;  %v237_v53 = vrot.slane %v236_v35, 1  ;;  %4576 = vst [vmem:[#allocation20_spill] sm:$0xff] %v2296_v59  ;;  %4578 = vst [vmem:[#allocation22_spill] sm:$0xff] %v2312_v25  ;;  %v2322_v32 = vld [vmem:[%s2201_s21 + $0xb0] sm:$0xff] }
  0x28   : > { %v244_v54 = vrot.slane %v243_v36, 1  ;;  %v251_v55 = vrot.slane %v250_v37, 1  ;;  %v2288_v56 = vadd.f32 %v216_v38, %v215_v15  ;;  %v2290_v57 = vadd.f32 %v223_v39, %v222_v18  ;;  %4579 = vst [vmem:[#allocation23_spill] sm:$0xff] %v2319_v31  ;;  %4580 = vst [vmem:[#allocation24_spill] sm:$0xff] %v2322_v32  ;;  %v2332_v38 = vld [vmem:[%s2201_s21 + $0xc0] sm:$0xff] }
  0x29   : > { %v299_v58 = vadd.f32 %v298_v42, %v297_v19  ;;  %v306_v60 = vadd.f32 %v305_v40, %v304_v24  ;;  %v258_v62 = vrot.slane %v257_v41, 1  ;;  %v265_v63 = vrot.slane %v264_v43, 1  ;;  %v2309_v24 = vld [vmem:[%s2201_s21 + $0x98] sm:$0xff]  ;;  %4582 = vst [vmem:[#allocation26_spill] sm:$0xff] %v2332_v38 }
  0x2a   : > { %v272_v0 = vrot.slane %v271_v44, 1  ;;  %v312_v1 = vrot.slane %v311_v45, 2  ;;  %v279_v2 = vrot.slane %v278_v47, 1  ;;  %v286_v4 = vrot.slane %v285_v48, 1  ;;  %4577 = vst [vmem:[#allocation21_spill] sm:$0xff] %v2309_v24 }
  0x2b   : > { %v293_v10 = vrot.slane %v292_v49, 1  ;;  %v316_v12 = vsel %vm203_vm0, %v2286_v51, 0.0  ;;  %v2300_v13 = vadd.f32 %v230_v52, %v229_v34  ;;  %v2302_v15 = vadd.f32 %v237_v53, %v236_v35 }
  0x2c   : > { %v2304_v18 = vadd.f32 %v244_v54, %v243_v36  ;;  %v2306_v19 = vadd.f32 %v251_v55, %v250_v37  ;;  %v300_v26 = vrot.slane %v299_v58, 1  ;;  %v307_v23 = vrot.slane %v306_v60, 1  ;;  %v2329_v37 = vld [vmem:[%s2201_s21 + $0xb8] sm:$0xff] }
  0x2d   : > { %v323_v27 = vsel %vm203_vm0, %v2293_v61, 0.0  ;;  %v330_v28 = vsel %vm203_vm0, %v2296_v59, 0.0  ;;  %v2324_v33 = vadd.f32 %v258_v62, %v257_v41  ;;  %v2326_v34 = vadd.f32 %v265_v63, %v264_v43  ;;  %4581 = vst [vmem:[#allocation25_spill] sm:$0xff] %v2329_v37  ;;  %v2343_v41 = vld [vmem:[%s2201_s21 + $0xc8] sm:$0xff]  ;;  %v2346_v43 = vld [vmem:[%s2201_s21 + $0xd0] sm:$0xff] }
  0x2e   : > { %v313_v35 = vadd.f32 %v312_v1, %v311_v45  ;;  %v317_v36 = vrot.slane %v316_v12, 4  ;;  %v2334_v39 = vadd.f32 %v272_v0, %v271_v44  ;;  %v2336_v42 = vadd.f32 %v279_v2, %v278_v47  ;;  %4583 = vst [vmem:[#allocation27_spill] sm:$0xff] %v2343_v41  ;;  %4584 = vst [vmem:[#allocation28_spill] sm:$0xff] %v2346_v43  ;;  %v2353_v47 = vld [vmem:[%s2201_s21 + $0xd8] sm:$0xff] }
  0x2f   : > { %v2338_v40 = vadd.f32 %v286_v4, %v285_v48  ;;  %v2340_v52 = vadd.f32 %v293_v10, %v292_v49  ;;  %v324_v45 = vrot.slane %v323_v27, 4  ;;  %v331_v53 = vrot.slane %v330_v28, 4  ;;  %4585 = vst [vmem:[#allocation29_spill] sm:$0xff] %v2353_v47  ;;  %v2356_v48 = vld [vmem:[%s2201_s21 + $0xe0] sm:$0xff]  ;;  %v2371_v10 = vld [vmem:[%s2201_s21 + $0xe8] sm:$0xff] }
  0x30   : > { %v337_v54 = vsel %vm203_vm0, %v2309_v24, 0.0  ;;  %v344_v44 = vsel %vm203_vm0, %v2312_v25, 0.0  ;;  %4586 = vst [vmem:[#allocation30_spill] sm:$0xff] %v2356_v48  ;;  %v2358_v49 = vadd.f32 %v300_v26, %v299_v58  ;;  %v2360_v55 = vadd.f32 %v307_v23, %v306_v60  ;;  %4587 = vst [vmem:[#allocation31_spill] sm:$0xff] %v2371_v10  ;;  %v2374_v58 = vld [vmem:[%s2201_s21 + $0xf0] sm:$0xff] }
  0x31   : > { %v351_v62 = vsel %vm203_vm0, %v2319_v31, 0.0  ;;  %v358_v63 = vsel %vm203_vm0, %v2322_v32, 0.0  ;;  %v314_v0 = vrot.slane %v313_v35, 1  ;;  %v318_v1 = vadd.f32 %v317_v36, %v316_v12  ;;  %4588 = vst [vmem:[#allocation32_spill] sm:$0xff] %v2374_v58 }
  0x32   : > { %v365_v2 = vsel %vm203_vm0, %v2329_v37, 0.0  ;;  %v372_v4 = vsel %vm203_vm0, %v2332_v38, 0.0  ;;  %v338_v60 = vrot.slane %v337_v54, 4  ;;  %v345_v26 = vrot.slane %v344_v44, 4  ;;  %v2385_v37 = vld [vmem:[%s2201_s21 + $0xf8] sm:$0xff] }
  0x33   : > { %v379_v23 = vsel %vm203_vm0, %v2343_v41, 0.0  ;;  %v386_v32 = vsel %vm203_vm0, %v2346_v43, 0.0  ;;  %v352_v31 = vrot.slane %v351_v62, 4  ;;  %v359_v12 = vrot.slane %v358_v63, 4  ;;  %4589 = vst [vmem:[#allocation33_spill] sm:$0xff] %v2385_v37 }
  0x34   : > { %v393_v36 = vsel %vm203_vm0, %v2353_v47, 0.0  ;;  %v400_v38 = vsel %vm203_vm0, %v2356_v48, 0.0  ;;  %v325_v25 = vadd.f32 %v324_v45, %v323_v27  ;;  %v332_v24 = vadd.f32 %v331_v53, %v330_v28 }
  0x35   : > { %v366_v59 = vrot.slane %v365_v2, 4  ;;  %v373_v61 = vrot.slane %v372_v4, 4  ;;  %v380_v51 = vrot.slane %v379_v23, 4  ;;  %v387_v50 = vrot.slane %v386_v32, 4 }
  0x36   : > { %v407_v41 = vsel %vm203_vm0, %v2371_v10, 0.0  ;;  %v414_v43 = vsel %vm203_vm0, %v2374_v58, 0.0  ;;  %v2391_v30 = vadd.f32 %v314_v0, %v313_v35  ;;  %v339_v47 = vadd.f32 %v338_v60, %v337_v54 }
  0x37   : > { %v394_v29 = vrot.slane %v393_v36, 4  ;;  %v401_v22 = vrot.slane %v400_v38, 4  ;;  %v346_v48 = vadd.f32 %v345_v26, %v344_v44  ;;  %v353_v21 = vadd.f32 %v352_v31, %v351_v62 }
  0x38   : > { %v360_v20 = vadd.f32 %v359_v12, %v358_v63  ;;  %v421_v27 = vsel %vm203_vm0, %v2385_v37, 0.0  ;;  %v367_v28 = vadd.f32 %v366_v59, %v365_v2  ;;  %v374_v45 = vadd.f32 %v373_v61, %v372_v4 }
  0x39   : > { %v408_v53 = vrot.slane %v407_v41, 4  ;;  %v415_v17 = vrot.slane %v414_v43, 4  ;;  %v319_v16 = vrot.slane %v318_v1, 2  ;;  %v326_v10 = vrot.slane %v325_v25, 2 }
  0x3a   : > { %v381_v14 = vadd.f32 %v380_v51, %v379_v23  ;;  %v388_v11 = vadd.f32 %v387_v50, %v386_v32  ;;  %v333_v58 = vrot.slane %v332_v24, 2  ;;  %v395_v35 = vadd.f32 %v394_v29, %v393_v36 }
  0x3b   : > { %v402_v0 = vadd.f32 %v401_v22, %v400_v38  ;;  %v422_v54 = vrot.slane %v421_v27, 4  ;;  %v340_v60 = vrot.slane %v339_v47, 2  ;;  %v347_v9 = vrot.slane %v346_v48, 2 }
  0x3c   : > { %v354_v44 = vrot.slane %v353_v21, 2  ;;  %v361_v31 = vrot.slane %v360_v20, 2  ;;  %v368_v62 = vrot.slane %v367_v28, 2  ;;  %v375_v63 = vrot.slane %v374_v45, 2 }
  0x3d   : > { %v409_v26 = vadd.f32 %v408_v53, %v407_v41  ;;  %v416_v12 = vadd.f32 %v415_v17, %v414_v43  ;;  %v320_v59 = vadd.f32 %v319_v16, %v318_v1  ;;  %v327_v61 = vadd.f32 %v326_v10, %v325_v25 }
  0x3e   : > { %v382_v2 = vrot.slane %v381_v14, 2  ;;  %v389_v4 = vrot.slane %v388_v11, 2  ;;  %v334_v37 = vadd.f32 %v333_v58, %v332_v24  ;;  %v396_v8 = vrot.slane %v395_v35, 2 }
  0x3f   : > { %v403_v51 = vrot.slane %v402_v0, 2  ;;  %v423_v50 = vadd.f32 %v422_v54, %v421_v27  ;;  %v341_v32 = vadd.f32 %v340_v60, %v339_v47  ;;  %v348_v29 = vadd.f32 %v347_v9, %v346_v48 }
  0x40   : > { %v355_v22 = vadd.f32 %v354_v44, %v353_v21  ;;  %v362_v38 = vadd.f32 %v361_v31, %v360_v20  ;;  %v369_v23 = vadd.f32 %v368_v62, %v367_v28  ;;  %v376_v36 = vadd.f32 %v375_v63, %v374_v45 }
  0x41   : > { %v410_v7 = vrot.slane %v409_v26, 2  ;;  %v417_v6 = vrot.slane %v416_v12, 2  ;;  %v321_v5 = vrot.slane %v320_v59, 1  ;;  %v328_v3 = vrot.slane %v327_v61, 1 }
  0x42   : > { %v383_v41 = vadd.f32 %v382_v2, %v381_v14  ;;  %v390_v17 = vadd.f32 %v389_v4, %v388_v11  ;;  %v335_v16 = vrot.slane %v334_v37, 1  ;;  %v397_v25 = vadd.f32 %v396_v8, %v395_v35 }
  0x43   : > { %v404_v43 = vadd.f32 %v403_v51, %v402_v0  ;;  %v424_v1 = vrot.slane %v423_v50, 2  ;;  %v342_v24 = vrot.slane %v341_v32, 1  ;;  %v349_v10 = vrot.slane %v348_v29, 1 }
  0x44   : > { %v356_v58 = vrot.slane %v355_v22, 1  ;;  %v363_v27 = vrot.slane %v362_v38, 1  ;;  %v370_v47 = vrot.slane %v369_v23, 1  ;;  %v377_v9 = vrot.slane %v376_v36, 1 }
  0x45   : > { %v411_v21 = vadd.f32 %v410_v7, %v409_v26  ;;  %v418_v20 = vadd.f32 %v417_v6, %v416_v12  ;;  %v322_v48 = vadd.f32 %v321_v5, %v320_v59  ;;  %v329_v28 = vadd.f32 %v328_v3, %v327_v61 }
  0x46   : > { %v384_v45 = vrot.slane %v383_v41, 1  ;;  %v391_v53 = vrot.slane %v390_v17, 1  ;;  %v336_v54 = vadd.f32 %v335_v16, %v334_v37  ;;  %v398_v60 = vrot.slane %v397_v25, 1 }
  0x47   : > { %v405_v14 = vrot.slane %v404_v43, 1  ;;  %v425_v11 = vadd.f32 %v424_v1, %v423_v50  ;;  %v343_v44 = vadd.f32 %v342_v24, %v341_v32  ;;  %v350_v8 = vadd.f32 %v349_v10, %v348_v29 }
  0x48   : > { %v357_v35 = vadd.f32 %v356_v58, %v355_v22  ;;  %v364_v0 = vadd.f32 %v363_v27, %v362_v38  ;;  %v371_v31 = vadd.f32 %v370_v47, %v369_v23  ;;  %v378_v62 = vadd.f32 %v377_v9, %v376_v36  ;;  %v4590_v58 = vld [vmem:[#allocation2_spill] sm:$0xff]  ;;  %v4592_v47 = vld [vmem:[#allocation4_spill] sm:$0xff] }
  0x49   : > { %v412_v63 = vrot.slane %v411_v21, 1  ;;  %v419_v2 = vrot.slane %v418_v20, 1  ;;  %v385_v4 = vadd.f32 %v384_v45, %v383_v41  ;;  %v392_v51 = vadd.f32 %v391_v53, %v390_v17  ;;  %v4595_v45 = vld [vmem:[#allocation7_spill] sm:$0xff] }
  0x4a   : > { %v429_v6 = vmul.f32 0.125, %v2283_v46  ;;  %v430_v3 = vmul.f32 0.125, %v2288_v56  ;;  %v399_v5 = vadd.f32 %v398_v60, %v397_v25  ;;  %v406_v7 = vadd.f32 %v405_v14, %v404_v43  ;;  %v4599_v14 = vld [vmem:[#allocation9_spill] sm:$0xff] }
  0x4b   : > { %v426_v37 = vrot.slane %v425_v11, 1  ;;  %v431_v26 = vmul.f32 0.125, %v2290_v57  ;;  %v432_v12 = vmul.f32 0.125, %v2300_v13  ;;  %v433_v59 = vmul.f32 0.125, %v2302_v15 }
  0x4c   : > { %v434_v61 = vmul.f32 0.125, %v2304_v18  ;;  %v435_v50 = vmul.f32 0.125, %v2306_v19  ;;  %v413_v32 = vadd.f32 %v412_v63, %v411_v21  ;;  %v420_v29 = vadd.f32 %v419_v2, %v418_v20  ;;  %v4593_v21 = vld [vmem:[#allocation5_spill] sm:$0xff] }
  0x4d   : > { %v436_v22 = vmul.f32 0.125, %v2324_v33  ;;  %v437_v46 = vmul.f32 0.125, %v2326_v34  ;;  %v438_v56 = vmul.f32 0.125, %v2334_v39  ;;  %v439_v38 = vmul.f32 0.125, %v2336_v42  ;;  %v4607_v63 = vld [vmem:[#allocation13_spill] sm:$0xff] }
  0x4e   : > { %v440_v57 = vmul.f32 0.125, %v2338_v40  ;;  %v441_v13 = vmul.f32 0.125, %v2340_v52  ;;  %v427_v23 = vadd.f32 %v426_v37, %v425_v11  ;;  %v442_v15 = vmul.f32 0.125, %v2358_v49  ;;  %v4615_v37 = vld [vmem:[#allocation17_spill] sm:$0xff] }
  0x4f   : > { %v443_v18 = vmul.f32 0.125, %v2360_v55  ;;  %v444_v19 = vmul.f32 0.125, %v2391_v30  ;;  %v445_v36 = vmul.f32 0.125, %v322_v48  ;;  %v446_v41 = vmul.f32 0.125, %v329_v28  ;;  %v4591_v30 = vld [vmem:[#allocation3_spill] sm:$0xff]  ;;  %v4594_v48 = vld [vmem:[#allocation6_spill] sm:$0xff] }
  0x50   : > { %v447_v33 = vmul.f32 0.125, %v336_v54  ;;  %v448_v17 = vmul.f32 0.125, %v343_v44  ;;  %v449_v34 = vmul.f32 0.125, %v350_v8  ;;  %v450_v16 = vmul.f32 0.125, %v357_v35  ;;  %v4597_v54 = vld [vmem:[#allocation8_spill] sm:$0xff]  ;;  %v4601_v44 = vld [vmem:[#allocation10_spill] sm:$0xff] }
  0x51   : > { %v451_v39 = vmul.f32 0.125, %v364_v0  ;;  %v452_v25 = vmul.f32 0.125, %v371_v31  ;;  %v453_v42 = vmul.f32 0.125, %v378_v62  ;;  %v454_v43 = vmul.f32 0.125, %v385_v4  ;;  %v4603_v35 = vld [vmem:[#allocation11_spill] sm:$0xff]  ;;  %v4605_v31 = vld [vmem:[#allocation12_spill] sm:$0xff] }
  0x52   : > { %v455_v40 = vmul.f32 0.125, %v392_v51  ;;  %v456_v1 = vmul.f32 0.125, %v399_v5  ;;  %v457_v52 = vmul.f32 0.125, %v406_v7  ;;  %v458_v24 = vmul.f32 0.125, %v413_v32  ;;  %v4609_v4 = vld [vmem:[#allocation14_spill] sm:$0xff]  ;;  %v4613_v5 = vld [vmem:[#allocation16_spill] sm:$0xff] }
  0x53   : > { %v459_v10 = vmul.f32 0.125, %v420_v29  ;;  %v460_v49 = vmul.f32 0.125, %v427_v23  ;;  %v2412_v55 = vsub.f32 %v4590_v58, %v429_v6  ;;  %v2415_v27 = vsub.f32 %v4591_v30, %v430_v3  ;;  %v4611_v6 = vld [vmem:[#allocation15_spill] sm:$0xff]  ;;  %v4621_v32 = vld [vmem:[#allocation20_spill] sm:$0xff] }
  0x54   : > { %v2418_v9 = vsub.f32 %v4592_v47, %v431_v26  ;;  %v2421_v20 = vsub.f32 %v4593_v21, %v432_v12  ;;  %v2424_v28 = vsub.f32 %v4594_v48, %v433_v59  ;;  %v2427_v53 = vsub.f32 %v4595_v45, %v434_v61  ;;  %v4617_v12 = vld [vmem:[#allocation18_spill] sm:$0xff]  ;;  %v4619_v61 = vld [vmem:[#allocation19_spill] sm:$0xff]  ;;  %v4637_v47 = vld [vmem:[#allocation28_spill] sm:$0xff] }
  0x55   : > { %v2430_v60 = vsub.f32 %v4597_v54, %v435_v50  ;;  %v2433_v11 = vsub.f32 %v4599_v14, %v436_v22  ;;  %v2436_v8 = vsub.f32 %v4601_v44, %v437_v46  ;;  %v2439_v0 = vsub.f32 %v4603_v35, %v438_v56  ;;  %v4623_v46 = vld [vmem:[#allocation21_spill] sm:$0xff]  ;;  %v4643_v54 = vld [vmem:[#allocation31_spill] sm:$0xff]  ;;  %v4645_v35 = vld [vmem:[#allocation32_spill] sm:$0xff] }
  0x56   : > { %4596 = vst [vmem:[#allocation2_spill] sm:$0xff] %v2427_v53  ;;  %v2442_v62 = vsub.f32 %v4605_v31, %v439_v38  ;;  %v2445_v2 = vsub.f32 %v4607_v63, %v440_v57  ;;  %v2448_v51 = vsub.f32 %v4609_v4, %v441_v13  ;;  %v2451_v3 = vsub.f32 %v4611_v6, %v442_v15  ;;  %v4625_v38 = vld [vmem:[#allocation22_spill] sm:$0xff]  ;;  %v4627_v13 = vld [vmem:[#allocation23_spill] sm:$0xff]  ;;  %v4647_v31 = vld [vmem:[#allocation33_spill] sm:$0xff] }
  0x57   : > { %4598 = vst [vmem:[#allocation3_spill] sm:$0xff] %v2430_v60  ;;  %4600 = vst [vmem:[#allocation4_spill] sm:$0xff] %v2433_v11  ;;  %v2454_v7 = vsub.f32 %v4613_v5, %v443_v18  ;;  %v2457_v26 = vsub.f32 %v4615_v37, %v444_v19  ;;  %v2460_v59 = vsub.f32 %v4617_v12, %v445_v36  ;;  %v4629_v18 = vld [vmem:[#allocation24_spill] sm:$0xff]  ;;  %v4631_v36 = vld [vmem:[#allocation25_spill] sm:$0xff] }
  0x58   : > { %4602 = vst [vmem:[#allocation5_spill] sm:$0xff] %v2436_v8  ;;  %4604 = vst [vmem:[#allocation6_spill] sm:$0xff] %v2439_v0  ;;  %v2463_v50 = vsub.f32 %v4619_v61, %v446_v41  ;;  %v2466_v29 = vsub.f32 %v4621_v32, %v447_v33  ;;  %v493_v22 = vmul.f32 %v2412_v55, %v2412_v55 }
  0x59   : > { %4606 = vst [vmem:[#allocation7_spill] sm:$0xff] %v2442_v62  ;;  %4608 = vst [vmem:[#allocation8_spill] sm:$0xff] %v2445_v2  ;;  %v2471_v56 = vsub.f32 %v4623_v46, %v448_v17  ;;  %v2474_v57 = vsub.f32 %v4625_v38, %v449_v34  ;;  %v2477_v23 = vsub.f32 %v4627_v13, %v450_v16  ;;  %v4633_v34 = vld [vmem:[#allocation26_spill] sm:$0xff]  ;;  %v4635_v16 = vld [vmem:[#allocation27_spill] sm:$0xff] }
  0x5a   : > { %4610 = vst [vmem:[#allocation9_spill] sm:$0xff] %v2448_v51  ;;  %4612 = vst [vmem:[#allocation10_spill] sm:$0xff] %v2451_v3  ;;  %v494_v15 = vmul.f32 %v2415_v27, %v2415_v27  ;;  %v2482_v19 = vsub.f32 %v4629_v18, %v451_v39  ;;  %v2485_v41 = vsub.f32 %v4631_v36, %v452_v25  ;;  %v4639_v39 = vld [vmem:[#allocation29_spill] sm:$0xff]  ;;  %v4641_v25 = vld [vmem:[#allocation30_spill] sm:$0xff] }
  0x5b   : > { %4614 = vst [vmem:[#allocation11_spill] sm:$0xff] %v2454_v7  ;;  %4616 = vst [vmem:[#allocation12_spill] sm:$0xff] %v2457_v26  ;;  %v495_v33 = vmul.f32 %v2418_v9, %v2418_v9  ;;  %v496_v17 = vmul.f32 %v2421_v20, %v2421_v20  ;;  %v2492_v58 = vsub.f32 %v4633_v34, %v453_v42  ;;  %v525_v42 = vsel %vm203_vm0, %v493_v22, 0.0 }
  0x5c   : > { %4618 = vst [vmem:[#allocation13_spill] sm:$0xff] %v2460_v59  ;;  %4620 = vst [vmem:[#allocation14_spill] sm:$0xff] %v2463_v50  ;;  %v2495_v30 = vsub.f32 %v4635_v16, %v454_v43  ;;  %v2498_v21 = vsub.f32 %v4637_v47, %v455_v40  ;;  %v2501_v48 = vsub.f32 %v4639_v39, %v456_v1  ;;  %v526_v37 = vrot.slane %v525_v42, 4 }
  0x5d   : > { %4622 = vst [vmem:[#allocation15_spill] sm:$0xff] %v2466_v29  ;;  %4624 = vst [vmem:[#allocation16_spill] sm:$0xff] %v2471_v56  ;;  %v2504_v45 = vsub.f32 %v4641_v25, %v457_v52  ;;  %v2507_v14 = vsub.f32 %v4643_v54, %v458_v24  ;;  %v497_v44 = vmul.f32 %v2424_v28, %v2424_v28  ;;  %v532_v52 = vsel %vm203_vm0, %v494_v15, 0.0 }
  0x5e   : > { %4626 = vst [vmem:[#allocation17_spill] sm:$0xff] %v2474_v57  ;;  %4628 = vst [vmem:[#allocation18_spill] sm:$0xff] %v2477_v23  ;;  %v2513_v43 = vsub.f32 %v4645_v35, %v459_v10  ;;  %v2516_v40 = vsub.f32 %v4647_v31, %v460_v49  ;;  %v498_v1 = vmul.f32 %v2427_v53, %v2427_v53  ;;  %v539_v4 = vsel %vm203_vm0, %v495_v33, 0.0 }
  0x5f   : > { %4630 = vst [vmem:[#allocation19_spill] sm:$0xff] %v2482_v19  ;;  %4632 = vst [vmem:[#allocation20_spill] sm:$0xff] %v2485_v41  ;;  %v499_v24 = vmul.f32 %v2430_v60, %v2430_v60  ;;  %v500_v63 = vmul.f32 %v2433_v11, %v2433_v11  ;;  %v546_v6 = vsel %vm203_vm0, %v496_v17, 0.0  ;;  %v501_v10 = vmul.f32 %v2436_v8, %v2436_v8 }
  0x60   : > { %4634 = vst [vmem:[#allocation21_spill] sm:$0xff] %v2492_v58  ;;  %4636 = vst [vmem:[#allocation22_spill] sm:$0xff] %v2495_v30  ;;  %v502_v49 = vmul.f32 %v2439_v0, %v2439_v0  ;;  %v503_v5 = vmul.f32 %v2442_v62, %v2442_v62  ;;  %v504_v12 = vmul.f32 %v2445_v2, %v2445_v2  ;;  %v533_v32 = vrot.slane %v532_v52, 4 }
  0x61   : > { %4638 = vst [vmem:[#allocation23_spill] sm:$0xff] %v2498_v21  ;;  %4640 = vst [vmem:[#allocation24_spill] sm:$0xff] %v2501_v48  ;;  %v505_v61 = vmul.f32 %v2448_v51, %v2448_v51  ;;  %v553_v22 = vsel %vm203_vm0, %v497_v44, 0.0  ;;  %v506_v46 = vmul.f32 %v2451_v3, %v2451_v3  ;;  %v540_v38 = vrot.slane %v539_v4, 4 }
  0x62   : > { %4642 = vst [vmem:[#allocation25_spill] sm:$0xff] %v2504_v45  ;;  %4644 = vst [vmem:[#allocation26_spill] sm:$0xff] %v2507_v14  ;;  %v547_v13 = vrot.slane %v546_v6, 4  ;;  %v560_v15 = vsel %vm203_vm0, %v498_v1, 0.0  ;;  %v507_v18 = vmul.f32 %v2454_v7, %v2454_v7  ;;  %v508_v36 = vmul.f32 %v2457_v26, %v2457_v26 }
  0x63   : > { %4646 = vst [vmem:[#allocation27_spill] sm:$0xff] %v2513_v43  ;;  %4648 = vst [vmem:[#allocation28_spill] sm:$0xff] %v2516_v40  ;;  %v2547_v33 = vmul.f32 %v2460_v59, %v2460_v59  ;;  %v2551_v17 = vmul.f32 %v2463_v50, %v2463_v50  ;;  %v527_v34 = vadd.f32 %v526_v37, %v525_v42  ;;  %v554_v16 = vrot.slane %v553_v22, 4 }
  0x64   : > { %v567_v47 = vsel %vm203_vm0, %v499_v24, 0.0  ;;  %v574_v39 = vsel %vm203_vm0, %v500_v63, 0.0  ;;  %v2557_v25 = vmul.f32 %v2466_v29, %v2466_v29  ;;  %v2561_v54 = vmul.f32 %v2471_v56, %v2471_v56 }
  0x65   : > { %v534_v44 = vadd.f32 %v533_v32, %v532_v52  ;;  %v561_v35 = vrot.slane %v560_v15, 4  ;;  %v2565_v31 = vmul.f32 %v2474_v57, %v2474_v57  ;;  %v2569_v42 = vmul.f32 %v2477_v23, %v2477_v23 }
  0x66   : > { %v541_v1 = vadd.f32 %v540_v38, %v539_v4  ;;  %v548_v24 = vadd.f32 %v547_v13, %v546_v6  ;;  %v2573_v63 = vmul.f32 %v2482_v19, %v2482_v19  ;;  %v2577_v37 = vmul.f32 %v2485_v41, %v2485_v41 }
  0x67   : > { %v568_v52 = vrot.slane %v567_v47, 4  ;;  %v575_v32 = vrot.slane %v574_v39, 4  ;;  %v2581_v57 = vmul.f32 %v2492_v58, %v2492_v58  ;;  %v2585_v23 = vmul.f32 %v2495_v30, %v2495_v30 }
  0x68   : > { %v528_v4 = vrot.slane %v527_v34, 2  ;;  %v555_v6 = vadd.f32 %v554_v16, %v553_v22  ;;  %v2589_v38 = vmul.f32 %v2498_v21, %v2498_v21  ;;  %v2593_v13 = vmul.f32 %v2501_v48, %v2501_v48 }
  0x69   : > { %v535_v41 = vrot.slane %v534_v44, 2  ;;  %v562_v19 = vadd.f32 %v561_v35, %v560_v15  ;;  %v2597_v58 = vmul.f32 %v2504_v45, %v2504_v45  ;;  %v542_v56 = vrot.slane %v541_v1, 2 }
  0x6a   : > { %v549_v29 = vrot.slane %v548_v24, 2  ;;  %v581_v30 = vsel %vm203_vm0, %v501_v10, 0.0  ;;  %v569_v50 = vadd.f32 %v568_v52, %v567_v47  ;;  %v576_v22 = vadd.f32 %v575_v32, %v574_v39 }
  0x6b   : > { %v588_v16 = vsel %vm203_vm0, %v502_v49, 0.0  ;;  %v595_v21 = vsel %vm203_vm0, %v503_v5, 0.0  ;;  %v2604_v48 = vmul.f32 %v2507_v14, %v2507_v14  ;;  %v529_v59 = vadd.f32 %v528_v4, %v527_v34 }
  0x6c   : > { %v556_v15 = vrot.slane %v555_v6, 2  ;;  %v602_v35 = vsel %vm203_vm0, %v504_v12, 0.0  ;;  %v2609_v45 = vmul.f32 %v2513_v43, %v2513_v43  ;;  %v536_v26 = vadd.f32 %v535_v41, %v534_v44 }
  0x6d   : > { %v563_v10 = vrot.slane %v562_v19, 2  ;;  %v582_v47 = vrot.slane %v581_v30, 4  ;;  %v2613_v49 = vmul.f32 %v2516_v40, %v2516_v40  ;;  %v543_v5 = vadd.f32 %v542_v56, %v541_v1 }
  0x6e   : > { %v589_v39 = vrot.slane %v588_v16, 4  ;;  %v596_v52 = vrot.slane %v595_v21, 4  ;;  %v550_v32 = vadd.f32 %v549_v29, %v548_v24  ;;  %v570_v14 = vrot.slane %v569_v50, 2 }
  0x6f   : > { %v577_v34 = vrot.slane %v576_v22, 2  ;;  %v603_v4 = vrot.slane %v602_v35, 4  ;;  %v530_v7 = vrot.slane %v529_v59, 1  ;;  %v557_v12 = vadd.f32 %v556_v15, %v555_v6 }
  0x70   : > { %v609_v3 = vsel %vm203_vm0, %v505_v61, 0.0  ;;  %v616_v43 = vsel %vm203_vm0, %v506_v46, 0.0  ;;  %v537_v41 = vrot.slane %v536_v26, 1  ;;  %v564_v44 = vadd.f32 %v563_v10, %v562_v19 }
  0x71   : > { %v583_v51 = vadd.f32 %v582_v47, %v581_v30  ;;  %v623_v2 = vsel %vm203_vm0, %v507_v18, 0.0  ;;  %v544_v40 = vrot.slane %v543_v5, 1  ;;  %v590_v62 = vadd.f32 %v589_v39, %v588_v16 }
  0x72   : > { %v597_v56 = vadd.f32 %v596_v52, %v595_v21  ;;  %v630_v1 = vsel %vm203_vm0, %v508_v36, 0.0  ;;  %v551_v29 = vrot.slane %v550_v32, 1  ;;  %v604_v24 = vadd.f32 %v603_v4, %v602_v35 }
  0x73   : > { %v610_v0 = vrot.slane %v609_v3, 4  ;;  %v617_v8 = vrot.slane %v616_v43, 4  ;;  %v558_v11 = vrot.slane %v557_v12, 1  ;;  %v571_v6 = vadd.f32 %v570_v14, %v569_v50 }
  0x74   : > { %v578_v15 = vadd.f32 %v577_v34, %v576_v22  ;;  %v624_v61 = vrot.slane %v623_v2, 4  ;;  %v2619_v60 = vadd.f32 %v530_v7, %v529_v59  ;;  %v565_v46 = vrot.slane %v564_v44, 1 }
  0x75   : > { %v584_v19 = vrot.slane %v583_v51, 2  ;;  %v631_v30 = vrot.slane %v630_v1, 4  ;;  %v2621_v10 = vadd.f32 %v537_v41, %v536_v26  ;;  %v2623_v18 = vadd.f32 %v544_v40, %v543_v5 }
  0x76   : > { %v591_v21 = vrot.slane %v590_v62, 2  ;;  %v598_v16 = vrot.slane %v597_v56, 2  ;;  %v2625_v36 = vadd.f32 %v551_v29, %v550_v32  ;;  %v605_v35 = vrot.slane %v604_v24, 2 }
  0x77   : > { %v611_v47 = vadd.f32 %v610_v0, %v609_v3  ;;  %v618_v39 = vadd.f32 %v617_v8, %v616_v43  ;;  %v2627_v52 = vadd.f32 %v558_v11, %v557_v12  ;;  %v572_v50 = vrot.slane %v571_v6, 1 }
  0x78   : > { %v579_v14 = vrot.slane %v578_v15, 1  ;;  %v625_v7 = vadd.f32 %v624_v61, %v623_v2  ;;  %v2629_v59 = vadd.f32 %v565_v46, %v564_v44  ;;  %v585_v22 = vadd.f32 %v584_v19, %v583_v51 }
  0x79   : > { %v632_v34 = vadd.f32 %v631_v30, %v630_v1  ;;  %v637_v26 = vsel %vm203_vm0, %v2547_v33, 0.0  ;;  %v592_v40 = vadd.f32 %v591_v21, %v590_v62  ;;  %v599_v5 = vadd.f32 %v598_v16, %v597_v56 }
  0x7a   : > { %v644_v32 = vsel %vm203_vm0, %v2551_v17, 0.0  ;;  %v651_v8 = vsel %vm203_vm0, %v2557_v25, 0.0  ;;  %v606_v11 = vadd.f32 %v605_v35, %v604_v24  ;;  %v612_v0 = vrot.slane %v611_v47, 2 }
  0x7b   : > { %v619_v3 = vrot.slane %v618_v39, 2  ;;  %v658_v2 = vsel %vm203_vm0, %v2561_v54, 0.0  ;;  %v2639_v43 = vadd.f32 %v572_v50, %v571_v6  ;;  %v2641_v51 = vadd.f32 %v579_v14, %v578_v15 }
  0x7c   : > { %v626_v4 = vrot.slane %v625_v7, 2  ;;  %v638_v33 = vrot.slane %v637_v26, 4  ;;  %v633_v62 = vrot.slane %v632_v34, 2  ;;  %v645_v12 = vrot.slane %v644_v32, 4 }
  0x7d   : > { %v652_v41 = vrot.slane %v651_v8, 4  ;;  %v665_v17 = vsel %vm203_vm0, %v2565_v31, 0.0  ;;  %v586_v44 = vrot.slane %v585_v22, 1  ;;  %v593_v25 = vrot.slane %v592_v40, 1 }
  0x7e   : > { %v600_v56 = vrot.slane %v599_v5, 1  ;;  %v659_v1 = vrot.slane %v658_v2, 4  ;;  %v607_v29 = vrot.slane %v606_v11, 1  ;;  %v613_v24 = vadd.f32 %v612_v0, %v611_v47 }
  0x7f   : > { %v620_v61 = vadd.f32 %v619_v3, %v618_v39  ;;  %v672_v54 = vsel %vm203_vm0, %v2569_v42, 0.0  ;;  %v639_v6 = vadd.f32 %v638_v33, %v637_v26  ;;  %v666_v15 = vrot.slane %v665_v17, 4 }
  0x80   : > { %v679_v46 = vsel %vm203_vm0, %v2573_v63, 0.0  ;;  %v686_v19 = vsel %vm203_vm0, %v2577_v37, 0.0  ;;  %v627_v30 = vadd.f32 %v626_v4, %v625_v7  ;;  %v634_v31 = vadd.f32 %v633_v62, %v632_v34 }
  0x81   : > { %v646_v21 = vadd.f32 %v645_v12, %v644_v32  ;;  %v653_v16 = vadd.f32 %v652_v41, %v651_v8  ;;  %v2651_v35 = vadd.f32 %v586_v44, %v585_v22  ;;  %v2653_v50 = vadd.f32 %v593_v25, %v592_v40 }
  0x82   : > { %v660_v47 = vadd.f32 %v659_v1, %v658_v2  ;;  %v673_v39 = vrot.slane %v672_v54, 4  ;;  %v2655_v14 = vadd.f32 %v600_v56, %v599_v5  ;;  %v2657_v42 = vadd.f32 %v607_v29, %v606_v11 }
  0x83   : > { %v680_v26 = vrot.slane %v679_v46, 4  ;;  %v687_v0 = vrot.slane %v686_v19, 4  ;;  %v614_v63 = vrot.slane %v613_v24, 1  ;;  %v621_v3 = vrot.slane %v620_v61, 1 }
  0x84   : > { %v640_v33 = vrot.slane %v639_v6, 2  ;;  %v667_v37 = vadd.f32 %v666_v15, %v665_v17  ;;  %v628_v7 = vrot.slane %v627_v30, 1  ;;  %v635_v34 = vrot.slane %v634_v31, 1 }
  0x85   : > { %v647_v32 = vrot.slane %v646_v21, 2  ;;  %v654_v8 = vrot.slane %v653_v16, 2  ;;  %v661_v22 = vrot.slane %v660_v47, 2  ;;  %v674_v4 = vadd.f32 %v673_v39, %v672_v54 }
  0x86   : > { %v693_v40 = vsel %vm203_vm0, %v2581_v57, 0.0  ;;  %v700_v5 = vsel %vm203_vm0, %v2585_v23, 0.0  ;;  %v681_v11 = vadd.f32 %v680_v26, %v679_v46  ;;  %v688_v2 = vadd.f32 %v687_v0, %v686_v19 }
  0x87   : > { %v707_v62 = vsel %vm203_vm0, %v2589_v38, 0.0  ;;  %v714_v12 = vsel %vm203_vm0, %v2593_v13, 0.0  ;;  %v2667_v41 = vadd.f32 %v614_v63, %v613_v24  ;;  %v2669_v17 = vadd.f32 %v621_v3, %v620_v61 }
  0x88   : > { %v641_v44 = vadd.f32 %v640_v33, %v639_v6  ;;  %v668_v25 = vrot.slane %v667_v37, 2  ;;  %v2671_v56 = vadd.f32 %v628_v7, %v627_v30  ;;  %v2673_v57 = vadd.f32 %v635_v34, %v634_v31 }
  0x89   : > { %v694_v1 = vrot.slane %v693_v40, 4  ;;  %v701_v23 = vrot.slane %v700_v5, 4  ;;  %v648_v29 = vadd.f32 %v647_v32, %v646_v21  ;;  %v675_v54 = vrot.slane %v674_v4, 2 }
  0x8a   : > { %v708_v15 = vrot.slane %v707_v62, 4  ;;  %v715_v46 = vrot.slane %v714_v12, 4  ;;  %v655_v38 = vadd.f32 %v654_v8, %v653_v16  ;;  %v662_v19 = vadd.f32 %v661_v22, %v660_v47 }
  0x8b   : > { %v682_v39 = vrot.slane %v681_v11, 2  ;;  %v689_v13 = vrot.slane %v688_v2, 2  ;;  %v642_v24 = vrot.slane %v641_v44, 1  ;;  %v669_v26 = vadd.f32 %v668_v25, %v667_v37 }
  0x8c   : > { %v721_v61 = vsel %vm203_vm0, %v2597_v58, 0.0  ;;  %v728_v6 = vsel %vm203_vm0, %v2604_v48, 0.0  ;;  %v695_v30 = vadd.f32 %v694_v1, %v693_v40  ;;  %v702_v31 = vadd.f32 %v701_v23, %v700_v5 }
  0x8d   : > { %v735_v21 = vsel %vm203_vm0, %v2609_v45, 0.0  ;;  %v742_v0 = vsel %vm203_vm0, %v2613_v49, 0.0  ;;  %v649_v16 = vrot.slane %v648_v29, 1  ;;  %v676_v47 = vadd.f32 %v675_v54, %v674_v4 }
  0x8e   : > { %v709_v63 = vadd.f32 %v708_v15, %v707_v62  ;;  %v716_v3 = vadd.f32 %v715_v46, %v714_v12  ;;  %v656_v33 = vrot.slane %v655_v38, 1  ;;  %v683_v37 = vadd.f32 %v682_v39, %v681_v11 }
  0x8f   : > { %v722_v7 = vrot.slane %v721_v61, 4  ;;  %v729_v34 = vrot.slane %v728_v6, 4  ;;  %v663_v58 = vrot.slane %v662_v19, 1  ;;  %v690_v32 = vadd.f32 %v689_v13, %v688_v2 }
  0x90   : > { %v736_v8 = vrot.slane %v735_v21, 4  ;;  %v743_v48 = vrot.slane %v742_v0, 4  ;;  %v2683_v22 = vadd.f32 %v642_v24, %v641_v44  ;;  %v670_v40 = vrot.slane %v669_v26, 1 }
  0x91   : > { %v696_v5 = vrot.slane %v695_v30, 2  ;;  %v703_v45 = vrot.slane %v702_v31, 2  ;;  %v2685_v25 = vadd.f32 %v649_v16, %v648_v29  ;;  %v677_v49 = vrot.slane %v676_v47, 1 }
  0x92   : > { %v710_v1 = vrot.slane %v709_v63, 2  ;;  %v717_v4 = vrot.slane %v716_v3, 2  ;;  %v2687_v62 = vadd.f32 %v656_v33, %v655_v38  ;;  %v684_v12 = vrot.slane %v683_v37, 1 }
  0x93   : > { %v723_v11 = vadd.f32 %v722_v7, %v721_v61  ;;  %v730_v23 = vadd.f32 %v729_v34, %v728_v6  ;;  %v2689_v54 = vadd.f32 %v663_v58, %v662_v19  ;;  %v691_v2 = vrot.slane %v690_v32, 1 }
  0x94   : > { %v737_v15 = vadd.f32 %v736_v8, %v735_v21  ;;  %v744_v46 = vadd.f32 %v743_v48, %v742_v0  ;;  %v2691_v44 = vadd.f32 %v670_v40, %v669_v26  ;;  %v697_v39 = vadd.f32 %v696_v5, %v695_v30 }
  0x95   : > { %v704_v13 = vadd.f32 %v703_v45, %v702_v31  ;;  %v749_v29 = vmul.f32 0.125, %v2619_v60  ;;  %v2694_v24 = vadd.f32 %v677_v49, %v676_v47  ;;  %v711_v16 = vadd.f32 %v710_v1, %v709_v63 }
  0x96   : > { %v718_v53 = vadd.f32 %v717_v4, %v716_v3  ;;  %v750_v38 = vmul.f32 0.125, %v2621_v10  ;;  %v2697_v33 = vadd.f32 %v684_v12, %v683_v37  ;;  %v724_v61 = vrot.slane %v723_v11, 2 }
  0x97   : > { %v731_v19 = vrot.slane %v730_v23, 2  ;;  %v751_v6 = vmul.f32 0.125, %v2623_v18  ;;  %v2700_v21 = vadd.f32 %v691_v2, %v690_v32  ;;  %v738_v26 = vrot.slane %v737_v15, 2 }
  0x98   : > { %v745_v0 = vrot.slane %v744_v46, 2  ;;  %v752_v30 = vmul.f32 0.125, %v2625_v36  ;;  %v698_v31 = vrot.slane %v697_v39, 1  ;;  %v705_v60 = vrot.slane %v704_v13, 1 }
  0x99   : > { %v753_v47 = vmul.f32 0.125, %v2627_v52  ;;  %v781_v63 = vadd.f32 1e-05, %v749_v29  ;;  %v712_v3 = vrot.slane %v711_v16, 1  ;;  %v719_v7 = vrot.slane %v718_v53, 1 }
  0x9a   : > { %v754_v10 = vmul.f32 0.125, %v2629_v59  ;;  %v782_v37 = vadd.f32 1e-05, %v750_v38  ;;  %v725_v34 = vadd.f32 %v724_v61, %v723_v11  ;;  %v732_v58 = vadd.f32 %v731_v19, %v730_v23 }
  0x9b   : > { %v755_v18 = vmul.f32 0.125, %v2639_v43  ;;  %v783_v32 = vadd.f32 1e-05, %v751_v6  ;;  %v739_v8 = vadd.f32 %v738_v26, %v737_v15  ;;  %v746_v48 = vadd.f32 %v745_v0, %v744_v46 }
  0x9c   : > { %v756_v40 = vmul.f32 0.125, %v2641_v51  ;;  %v784_v36 = vadd.f32 1e-05, %v752_v30  ;;  %v699_v5 = vadd.f32 %v698_v31, %v697_v39  ;;  %v757_v45 = vmul.f32 0.125, %v2651_v35 }
  0x9d   : > { %v785_v52 = vadd.f32 1e-05, %v753_v47  ;;  %1960 = vrsqrt.f32 %v781_v63  ;;  %v706_v49 = vadd.f32 %v705_v60, %v704_v13  ;;  %v758_v1 = vmul.f32 0.125, %v2653_v50 }
  0x9e   : > { %v786_v59 = vadd.f32 1e-05, %v754_v10  ;;  %1962 = vrsqrt.f32 %v782_v37  ;;  %v713_v4 = vadd.f32 %v712_v3, %v711_v16  ;;  %v759_v12 = vmul.f32 0.125, %v2655_v14 }
  0x9f   : > { %v787_v43 = vadd.f32 1e-05, %v755_v18  ;;  %1964 = vrsqrt.f32 %v783_v32  ;;  %v720_v11 = vadd.f32 %v719_v7, %v718_v53  ;;  %v760_v23 = vmul.f32 0.125, %v2657_v42 }
  0xa0   : > { %v788_v51 = vadd.f32 1e-05, %v756_v40  ;;  %1966 = vrsqrt.f32 %v784_v36  ;;  %v726_v2 = vrot.slane %v725_v34, 1  ;;  %v761_v35 = vmul.f32 0.125, %v2667_v41 }
  0xa1   : > { %v789_v15 = vadd.f32 1e-05, %v757_v45  ;;  %1968 = vrsqrt.f32 %v785_v52  ;;  %v733_v46 = vrot.slane %v732_v58, 1  ;;  %v762_v50 = vmul.f32 0.125, %v2669_v17 }
  0xa2   : > { %v790_v39 = vadd.f32 1e-05, %v758_v1  ;;  %1970 = vrsqrt.f32 %v786_v59  ;;  %v740_v13 = vrot.slane %v739_v8, 1  ;;  %v763_v14 = vmul.f32 0.125, %v2671_v56 }
  0xa3   : > { %v791_v29 = vadd.f32 1e-05, %v759_v12  ;;  %1972 = vrsqrt.f32 %v787_v43  ;;  %v747_v53 = vrot.slane %v746_v48, 1  ;;  %v764_v42 = vmul.f32 0.125, %v2673_v57 }
  0xa4   : > { %v792_v16 = vadd.f32 1e-05, %v760_v23  ;;  %1974 = vrsqrt.f32 %v788_v51  ;;  %v727_v38 = vadd.f32 %v726_v2, %v725_v34  ;;  %v765_v41 = vmul.f32 0.125, %v2683_v22 }
  0xa5   : > { %v793_v61 = vadd.f32 1e-05, %v761_v35  ;;  %1976 = vrsqrt.f32 %v789_v15  ;;  %v734_v19 = vadd.f32 %v733_v46, %v732_v58  ;;  %v766_v17 = vmul.f32 0.125, %v2685_v25  ;;  %v2723_v58 = vpop.permute.xlu0 %880 }
  0xa6   : > { %v794_v6 = vadd.f32 1e-05, %v762_v50  ;;  %1978 = vrsqrt.f32 %v790_v39  ;;  %v741_v26 = vadd.f32 %v740_v13, %v739_v8  ;;  %v767_v56 = vmul.f32 0.125, %v2687_v62 }
  0xa7   : > { %v795_v0 = vadd.f32 1e-05, %v763_v14  ;;  %1980 = vrsqrt.f32 %v791_v29  ;;  %v748_v30 = vadd.f32 %v747_v53, %v746_v48  ;;  %v768_v57 = vmul.f32 0.125, %v2689_v54 }
  0xa8   : > { %v796_v31 = vadd.f32 1e-05, %v764_v42  ;;  %1982 = vrsqrt.f32 %v792_v16  ;;  %v769_v60 = vmul.f32 0.125, %v2691_v44  ;;  %v770_v22 = vmul.f32 0.125, %v2694_v24  ;;  %v4649_v42 = vld [vmem:[#allocation2_spill] sm:$0xff] }
  0xa9   : > { %v797_v47 = vadd.f32 1e-05, %v765_v41  ;;  %1984 = vrsqrt.f32 %v793_v61  ;;  %v771_v25 = vmul.f32 0.125, %v2697_v33  ;;  %v772_v3 = vmul.f32 0.125, %v2700_v21  ;;  %v2728_v15 = vpop.permute.xlu0 %918  ;;  %v4650_v41 = vld [vmem:[#allocation3_spill] sm:$0xff] }
  0xaa   : > { %v1961_v63 = vpop.eup %1960  ;;  %v798_v7 = vadd.f32 1e-05, %v766_v17  ;;  %1986 = vrsqrt.f32 %v794_v6  ;;  %v773_v10 = vmul.f32 0.125, %v699_v5  ;;  %v774_v37 = vmul.f32 0.125, %v706_v49 }
  0xab   : > { %v1963_v62 = vpop.eup %1962  ;;  %v799_v34 = vadd.f32 1e-05, %v767_v56  ;;  %1988 = vrsqrt.f32 %v795_v0  ;;  %v775_v44 = vmul.f32 0.125, %v713_v4  ;;  %v776_v18 = vmul.f32 0.125, %v720_v11 }
  0xac   : > { %v1965_v54 = vpop.eup %1964  ;;  %v800_v24 = vadd.f32 1e-05, %v768_v57  ;;  %1990 = vrsqrt.f32 %v796_v31  ;;  %v777_v8 = vmul.f32 0.125, %v727_v38  ;;  %v778_v48 = vmul.f32 0.125, %v734_v19 }
  0xad   : > { %v1967_v32 = vpop.eup %1966  ;;  %v801_v33 = vadd.f32 1e-05, %v769_v60  ;;  %1992 = vrsqrt.f32 %v797_v47  ;;  %v779_v40 = vmul.f32 0.125, %v741_v26  ;;  %v780_v36 = vmul.f32 0.125, %v748_v30  ;;  %v4652_v30 = vld [vmem:[#allocation5_spill] sm:$0xff]  ;;  %v4653_v47 = vld [vmem:[#allocation6_spill] sm:$0xff] }
  0xae   : > { %v1969_v21 = vpop.eup %1968  ;;  %v802_v45 = vadd.f32 1e-05, %v770_v22  ;;  %1994 = vrsqrt.f32 %v798_v7  ;;  %v803_v52 = vadd.f32 1e-05, %v771_v25  ;;  %v804_v49 = vadd.f32 1e-05, %v772_v3 }
  0xaf   : > { %v1971_v5 = vpop.eup %1970  ;;  %1996 = vrsqrt.f32 %v799_v34  ;;  %v845_v1 = vmul.f32 %v1961_v63, %v2412_v55  ;;  %v805_v4 = vadd.f32 1e-05, %v773_v10  ;;  %v806_v12 = vadd.f32 1e-05, %v774_v37  ;;  %v4654_v25 = vld [vmem:[#allocation7_spill] sm:$0xff] }
  0xb0   : > { %v1973_v59 = vpop.eup %1972  ;;  %1998 = vrsqrt.f32 %v800_v24  ;;  %v846_v43 = vmul.f32 %v1963_v62, %v2415_v27  ;;  %v807_v23 = vadd.f32 1e-05, %v775_v44  ;;  %v808_v51 = vadd.f32 1e-05, %v776_v18  ;;  %v4655_v44 = vld [vmem:[#allocation8_spill] sm:$0xff]  ;;  %v4656_v24 = vld [vmem:[#allocation9_spill] sm:$0xff] }
  0xb1   : > { %v1975_v11 = vpop.eup %1974  ;;  %2000 = vrsqrt.f32 %v801_v33  ;;  %v847_v2 = vmul.f32 %v1965_v54, %v2418_v9  ;;  %v809_v46 = vadd.f32 1e-05, %v777_v8  ;;  %v810_v50 = vadd.f32 1e-05, %v778_v48  ;;  %v4657_v33 = vld [vmem:[#allocation10_spill] sm:$0xff] }
  0xb2   : > { %v1977_v35 = vpop.eup %1976  ;;  %2002 = vrsqrt.f32 %v802_v45  ;;  %v848_v55 = vmul.f32 %v1967_v32, %v2421_v20  ;;  %v811_v13 = vadd.f32 1e-05, %v779_v40  ;;  %v849_v14 = vmul.f32 %v1969_v21, %v2424_v28  ;;  %v4651_v28 = vld [vmem:[#allocation4_spill] sm:$0xff] }
  0xb3   : > { %v1979_v39 = vpop.eup %1978  ;;  %2004 = vrsqrt.f32 %v803_v52  ;;  %v883_v27 = vmul.f32 %v2723_v58, %v845_v1  ;;  %v812_v53 = vadd.f32 1e-05, %v780_v36  ;;  %v850_v9 = vmul.f32 %v1971_v5, %v4649_v42  ;;  %v4658_v52 = vld [vmem:[#allocation11_spill] sm:$0xff] }
  0xb4   : > { %v1981_v29 = vpop.eup %1980  ;;  %2006 = vrsqrt.f32 %v804_v49  ;;  %v884_v16 = vmul.f32 %v2723_v58, %v846_v43  ;;  %v851_v61 = vmul.f32 %v1973_v59, %v4650_v41  ;;  %v885_v20 = vmul.f32 %v2723_v58, %v847_v2  ;;  %v4659_v43 = vld [vmem:[#allocation12_spill] sm:$0xff] }
  0xb5   : > { %v1983_v38 = vpop.eup %1982  ;;  %2008 = vrsqrt.f32 %v805_v4  ;;  %v2738_v19 = vadd.f32 %v2728_v15, %v883_v27  ;;  %v852_v6 = vmul.f32 %v1975_v11, %v4651_v28  ;;  %v886_v26 = vmul.f32 %v2723_v58, %v848_v55  ;;  %v4662_v27 = vld [vmem:[#allocation15_spill] sm:$0xff]  ;;  %v4664_v28 = vld [vmem:[#allocation17_spill] sm:$0xff] }
  0xb6   : > { %v1985_v17 = vpop.eup %1984  ;;  %2010 = vrsqrt.f32 %v806_v12  ;;  %v2743_v56 = vadd.f32 %v2728_v15, %v884_v16  ;;  %v853_v57 = vmul.f32 %v1977_v35, %v4652_v30  ;;  %v887_v31 = vmul.f32 %v2723_v58, %v849_v14 }
  0xb7   : > { %v1987_v0 = vpop.eup %1986  ;;  %2012 = vrsqrt.f32 %v807_v23  ;;  %v2748_v60 = vadd.f32 %v2728_v15, %v885_v20  ;;  %v854_v63 = vmul.f32 %v1979_v39, %v4653_v47  ;;  %v855_v3 = vmul.f32 %v1981_v29, %v4654_v25  ;;  %v4660_v23 = vld [vmem:[#allocation13_spill] sm:$0xff] }
  0xb8   : > { %v1989_v22 = vpop.eup %1988  ;;  %2014 = vrsqrt.f32 %v808_v51  ;;  %v888_v7 = vmul.f32 %v2723_v58, %v850_v9  ;;  %v889_v10 = vmul.f32 %v2723_v58, %v851_v61  ;;  %v2755_v37 = vadd.f32 %v2728_v15, %v886_v26 }
  0xb9   : > { %v1991_v62 = vpop.eup %1990  ;;  %2016 = vrsqrt.f32 %v809_v46  ;;  %v2758_v34 = vadd.f32 %v2728_v15, %v887_v31  ;;  %v856_v18 = vmul.f32 %v1983_v38, %v4655_v44  ;;  %v857_v32 = vmul.f32 %v1985_v17, %v4656_v24  ;;  %v4661_v46 = vld [vmem:[#allocation14_spill] sm:$0xff]  ;;  %v4663_v38 = vld [vmem:[#allocation16_spill] sm:$0xff] }
  0xba   : > { %v1993_v54 = vpop.eup %1992  ;;  %2018 = vrsqrt.f32 %v810_v50  ;;  %v890_v8 = vmul.f32 %v2723_v58, %v852_v6  ;;  %v858_v21 = vmul.f32 %v1987_v0, %v4657_v33  ;;  %v891_v40 = vmul.f32 %v2723_v58, %v853_v57  ;;  %v4665_v31 = vld [vmem:[#allocation18_spill] sm:$0xff]  ;;  %v4669_v24 = vld [vmem:[#allocation20_spill] sm:$0xff] }
  0xbb   : > { %v1995_v48 = vpop.eup %1994  ;;  %v2766_v36 = vadd.f32 %v2728_v15, %v888_v7  ;;  %v2769_v45 = vadd.f32 %v2728_v15, %v889_v10  ;;  %v859_v49 = vmul.f32 %v1989_v22, %v4658_v52  ;;  %v892_v1 = vmul.f32 %v2723_v58, %v854_v63  ;;  %v4667_v7 = vld [vmem:[#allocation19_spill] sm:$0xff] }
  0xbc   : > { %v1997_v5 = vpop.eup %1996  ;;  %v893_v59 = vmul.f32 %v2723_v58, %v855_v3  ;;  %v2775_v4 = vadd.f32 %v2728_v15, %v890_v8  ;;  %2020 = vrsqrt.f32 %v811_v13  ;;  %v860_v11 = vmul.f32 %v1991_v62, %v4659_v43 }
  0xbd   : > { %v1999_v12 = vpop.eup %1998  ;;  %v861_v51 = vmul.f32 %v1993_v54, %v4660_v23  ;;  %v2780_v2 = vadd.f32 %v2728_v15, %v891_v40  ;;  %2022 = vrsqrt.f32 %v812_v53  ;;  %v862_v50 = vmul.f32 %v1995_v48, %v4661_v46  ;;  %v4671_v40 = vld [vmem:[#allocation21_spill] sm:$0xff]  ;;  %v4675_v46 = vld [vmem:[#allocation23_spill] sm:$0xff] }
  0xbe   : > { %v2001_v35 = vpop.eup %2000  ;;  %v894_v55 = vmul.f32 %v2723_v58, %v856_v18  ;;  %v895_v39 = vmul.f32 %v2723_v58, %v857_v32  ;;  %v863_v29 = vmul.f32 %v1997_v5, %v4662_v27  ;;  %v896_v13 = vmul.f32 %v2723_v58, %v858_v21  ;;  %v4677_v27 = vld [vmem:[#allocation24_spill] sm:$0xff] }
  0xbf   : > { %v2003_v14 = vpop.eup %2002  ;;  %v2788_v42 = vadd.f32 %v2728_v15, %v892_v1  ;;  %v2791_v9 = vadd.f32 %v2728_v15, %v893_v59  ;;  %v864_v53 = vmul.f32 %v1999_v12, %v4663_v38  ;;  %v897_v41 = vmul.f32 %v2723_v58, %v859_v49  ;;  %v4673_v12 = vld [vmem:[#allocation22_spill] sm:$0xff] }
  0xc0   : > { %v2005_v16 = vpop.eup %2004  ;;  %v2796_v61 = vadd.f32 %v2728_v15, %v894_v55  ;;  %v2799_v20 = vadd.f32 %v2728_v15, %v895_v39  ;;  %v865_v6 = vmul.f32 %v2001_v35, %v4664_v28  ;;  %v898_v26 = vmul.f32 %v2723_v58, %v860_v11 }
  0xc1   : > { %v2007_v17 = vpop.eup %2006  ;;  %v899_v0 = vmul.f32 %v2723_v58, %v861_v51  ;;  %v2805_v30 = vadd.f32 %v2728_v15, %v896_v13  ;;  %v866_v22 = vmul.f32 %v2003_v14, %v4665_v31  ;;  %v900_v47 = vmul.f32 %v2723_v58, %v862_v50 }
  0xc2   : > { %v2009_v57 = vpop.eup %2008  ;;  %v2810_v63 = vadd.f32 %v2728_v15, %v897_v41  ;;  %v2813_v25 = vmul.f32 0.5, %v2738_v19  ;;  %v867_v62 = vmul.f32 %v2005_v16, %v4667_v7  ;;  %v901_v10 = vmul.f32 %v2723_v58, %v863_v29 }
  0xc3   : > { %v2011_v3 = vpop.eup %2010  ;;  %v2818_v54 = vadd.f32 %v2728_v15, %v898_v26  ;;  %v2821_v44 = vmul.f32 0.5, %v2743_v56  ;;  %v868_v32 = vmul.f32 %v2007_v17, %v4669_v24  ;;  %v902_v8 = vmul.f32 %v2723_v58, %v864_v53  ;;  %v4679_v53 = vld [vmem:[#allocation25_spill] sm:$0xff] }
  0xc4   : > { %4666 = vst [vmem:[#allocation29_spill] sm:$0xff] %v2813_v25  ;;  %v2013_v18 = vpop.eup %2012  ;;  %v2826_v48 = vadd.f32 %v2728_v15, %v899_v0  ;;  %v2829_v33 = vmul.f32 0.5, %v2748_v60  ;;  %v869_v5 = vmul.f32 %v2009_v57, %v4671_v40  ;;  %v903_v52 = vmul.f32 %v2723_v58, %v865_v6  ;;  %v4681_v0 = vld [vmem:[#allocation26_spill] sm:$0xff]  ;;  %v4686_v40 = vld [vmem:[#allocation27_spill] sm:$0xff] }
  0xc5   : > { %4668 = vst [vmem:[#allocation30_spill] sm:$0xff] %v2821_v44  ;;  %v2015_v21 = vpop.eup %2014  ;;  %v2834_v49 = vadd.f32 %v2728_v15, %v900_v47  ;;  %v2837_v1 = vmul.f32 0.5, %v2755_v37  ;;  %v870_v43 = vmul.f32 %v2011_v3, %v4673_v12  ;;  %v904_v11 = vmul.f32 %v2723_v58, %v866_v22 }
  0xc6   : > { %4670 = vst [vmem:[#allocation31_spill] sm:$0xff] %v2829_v33  ;;  %v2017_v59 = vpop.eup %2016  ;;  %v2842_v23 = vadd.f32 %v2728_v15, %v901_v10  ;;  %v2845_v51 = vmul.f32 0.5, %v2758_v34  ;;  %v871_v50 = vmul.f32 %v2013_v18, %v4675_v46  ;;  %v905_v55 = vmul.f32 %v2723_v58, %v867_v62 }
  0xc7   : > { %4672 = vst [vmem:[#allocation32_spill] sm:$0xff] %v2837_v1  ;;  %v2019_v35 = vpop.eup %2018  ;;  %v2850_v39 = vadd.f32 %v2728_v15, %v902_v8  ;;  %v2853_v14 = vmul.f32 0.5, %v2766_v36  ;;  %v872_v29 = vmul.f32 %v2015_v21, %v4677_v27  ;;  %v906_v13 = vmul.f32 %v2723_v58, %v868_v32 }
  0xc8   : > { %4674 = vst [vmem:[#allocation33_spill] sm:$0xff] %v2845_v51  ;;  %v2858_v16 = vadd.f32 %v2728_v15, %v903_v52  ;;  %v2861_v38 = vmul.f32 0.5, %v2769_v45  ;;  %v873_v41 = vmul.f32 %v2017_v59, %v4679_v53  ;;  %v907_v17 = vmul.f32 %v2723_v58, %v869_v5 }
  0xc9   : > { %4676 = vst [vmem:[#allocation2_spill] sm:$0xff] %v2853_v14  ;;  %v2866_v28 = vadd.f32 %v2728_v15, %v904_v11  ;;  %v2869_v6 = vmul.f32 0.5, %v2775_v4  ;;  %v2021_v26 = vpop.eup %2020  ;;  %v874_v57 = vmul.f32 %v2019_v35, %v4681_v0  ;;  %v908_v31 = vmul.f32 %v2723_v58, %v870_v43  ;;  %v4688_v43 = vld [vmem:[#allocation28_spill] sm:$0xff] }
  0xca   : > { %4678 = vst [vmem:[#allocation3_spill] sm:$0xff] %v2861_v38  ;;  %v943_v22 = vadd.f32 %v2728_v15, %v905_v55  ;;  %v2875_v47 = vmul.f32 0.5, %v2780_v2  ;;  %v2023_v3 = vpop.eup %2022  ;;  %v909_v7 = vmul.f32 %v2723_v58, %v871_v50  ;;  %v944_v62 = vadd.f32 %v2728_v15, %v906_v13 }
  0xcb   : > { %4680 = vst [vmem:[#allocation4_spill] sm:$0xff] %v2869_v6  ;;  %v945_v10 = vadd.f32 %v2728_v15, %v907_v17  ;;  %v2881_v18 = vmul.f32 0.5, %v2788_v42  ;;  %v910_v24 = vmul.f32 %v2723_v58, %v872_v29  ;;  %v946_v32 = vadd.f32 %v2728_v15, %v908_v31 }
  0xcc   : > { %4682 = vst [vmem:[#allocation5_spill] sm:$0xff] %v2875_v47  ;;  %v2886_v8 = vmul.f32 0.5, %v2791_v9  ;;  %v2889_v21 = vmul.f32 0.5, %v2796_v61  ;;  %v875_v5 = vmul.f32 %v2021_v26, %v4686_v40  ;;  %v911_v52 = vmul.f32 %v2723_v58, %v873_v41 }
  0xcd   : > { %4683 = vst [vmem:[#allocation6_spill] sm:$0xff] %v2881_v18  ;;  %v947_v59 = vadd.f32 %v2728_v15, %v909_v7  ;;  %v2895_v12 = vmul.f32 0.5, %v2799_v20  ;;  %v876_v11 = vmul.f32 %v2023_v3, %v4688_v43  ;;  %v912_v35 = vmul.f32 %v2723_v58, %v874_v57 }
  0xce   : > { %4684 = vst [vmem:[#allocation7_spill] sm:$0xff] %v2886_v8  ;;  %4685 = vst [vmem:[#allocation8_spill] sm:$0xff] %v2889_v21  ;;  %v948_v46 = vadd.f32 %v2728_v15, %v910_v24  ;;  %v2901_v50 = vmul.f32 0.5, %v2805_v30  ;;  %v2904_v55 = vmul.f32 0.5, %v2810_v63  ;;  %v2907_v27 = vmul.f32 0.5, %v2818_v54 }
  0xcf   : > { %4687 = vst [vmem:[#allocation9_spill] sm:$0xff] %v2895_v12  ;;  %v2910_v29 = vmul.f32 0.5, %v2826_v48  ;;  %v2913_v13 = vmul.f32 0.5, %v2834_v49  ;;  %v2916_v53 = vmul.f32 0.5, %v2842_v23  ;;  %v2919_v41 = vmul.f32 0.5, %v2850_v39 }
  0xd0   : > { %4689 = vst [vmem:[#allocation10_spill] sm:$0xff] %v2901_v50  ;;  %4690 = vst [vmem:[#allocation11_spill] sm:$0xff] %v2904_v55  ;;  %v2922_v17 = vmul.f32 0.5, %v2858_v16  ;;  %v2925_v26 = vmul.f32 0.5, %v2866_v28  ;;  %v2927_v0 = vmul.f32 0.5, %v943_v22  ;;  %v2929_v57 = vmul.f32 0.5, %v944_v62 }
  0xd1   : > { %4691 = vst [vmem:[#allocation12_spill] sm:$0xff] %v2907_v27  ;;  %4692 = vst [vmem:[#allocation13_spill] sm:$0xff] %v2910_v29  ;;  %v2931_v31 = vmul.f32 0.5, %v945_v10  ;;  %v2933_v3 = vmul.f32 0.5, %v946_v32  ;;  %v2935_v7 = vmul.f32 0.5, %v947_v59  ;;  %v2937_v24 = vmul.f32 0.5, %v948_v46 }
  0xd2   : > { %4693 = vst [vmem:[#allocation14_spill] sm:$0xff] %v2913_v13  ;;  %4694 = vst [vmem:[#allocation15_spill] sm:$0xff] %v2916_v53  ;;  %v2940_v40 = vmul.f32 0.70710677, %v2738_v19  ;;  %v2943_v43 = vmul.f32 0.70710677, %v2743_v56 }
  0xd3   : > { %4695 = vst [vmem:[#allocation16_spill] sm:$0xff] %v2919_v41  ;;  %4696 = vst [vmem:[#allocation17_spill] sm:$0xff] %v2922_v17  ;;  %v2959_v19 = vmul.f32 0.70710677, %v2766_v36  ;;  %v2962_v56 = vmul.f32 0.70710677, %v2769_v45  ;;  %v2978_v36 = vadd.f32 %v2728_v15, %v912_v35 }
  0xd4   : > { %4697 = vst [vmem:[#allocation18_spill] sm:$0xff] %v2925_v26  ;;  %4698 = vst [vmem:[#allocation19_spill] sm:$0xff] %v2927_v0  ;;  %v913_v26 = vmul.f32 %v2723_v58, %v875_v5  ;;  %v2947_v0 = vmul.f32 0.70710677, %v2748_v60  ;;  %v2965_v5 = vmul.f32 0.70710677, %v2775_v4  ;;  %v914_v60 = vmul.f32 %v2723_v58, %v876_v11 }
  0xd5   : > { %4699 = vst [vmem:[#allocation20_spill] sm:$0xff] %v2929_v57  ;;  %4700 = vst [vmem:[#allocation21_spill] sm:$0xff] %v2931_v31  ;;  %v2950_v57 = vmul.f32 0.70710677, %v2755_v37  ;;  %v2969_v37 = vmul.f32 0.70710677, %v2780_v2 }
  0xd6   : > { %4701 = vst [vmem:[#allocation22_spill] sm:$0xff] %v2933_v3  ;;  %4702 = vst [vmem:[#allocation23_spill] sm:$0xff] %v2935_v7  ;;  %v2953_v3 = vmul.f32 0.70710677, %v2758_v34  ;;  %v2956_v7 = vadd.f32 %v2728_v15, %v911_v52  ;;  %v2972_v34 = vmul.f32 0.70710677, %v2788_v42  ;;  %v2990_v2 = vadd.f32 %v2728_v15, %v913_v26 }
  0xd7   : > { %4703 = vst [vmem:[#allocation24_spill] sm:$0xff] %v2937_v24  ;;  %4704 = vst [vmem:[#allocation25_spill] sm:$0xff] %v2940_v40  ;;  %v2975_v52 = vmul.f32 0.70710677, %v2791_v9  ;;  %v2981_v45 = vmul.f32 0.70710677, %v2796_v61  ;;  %v3002_v61 = vadd.f32 %v2728_v15, %v914_v60 }
  0xd8   : > { %4705 = vst [vmem:[#allocation26_spill] sm:$0xff] %v2943_v43  ;;  %4706 = vst [vmem:[#allocation27_spill] sm:$0xff] %v2947_v0  ;;  %v2984_v4 = vmul.f32 0.70710677, %v2799_v20  ;;  %v2987_v58 = vmul.f32 0.70710677, %v2805_v30 }
  0xd9   : > { %4707 = vst [vmem:[#allocation28_spill] sm:$0xff] %v2950_v57  ;;  %4708 = vst [vmem:[#allocation34_spill] sm:$0xff] %v2953_v3  ;;  %v2993_v42 = vmul.f32 0.70710677, %v2810_v63  ;;  %v2996_v9 = vmul.f32 0.70710677, %v2818_v54 }
  0xda   : > { %4709 = vst [vmem:[#allocation35_spill] sm:$0xff] %v2959_v19  ;;  %4710 = vst [vmem:[#allocation36_spill] sm:$0xff] %v2962_v56  ;;  %v2999_v11 = vmul.f32 0.70710677, %v2826_v48  ;;  %v3005_v20 = vmul.f32 0.70710677, %v2834_v49 }
  0xdb   : > { %4711 = vst [vmem:[#allocation37_spill] sm:$0xff] %v2965_v5  ;;  %4712 = vst [vmem:[#allocation38_spill] sm:$0xff] %v2969_v37  ;;  %v3008_v30 = vmul.f32 0.70710677, %v2842_v23  ;;  %v3011_v35 = vmul.f32 0.70710677, %v2850_v39 }
  0xdc   : > { %4713 = vst [vmem:[#allocation39_spill] sm:$0xff] %v2972_v34  ;;  %4714 = vst [vmem:[#allocation40_spill] sm:$0xff] %v2975_v52  ;;  %v3014_v63 = vmul.f32 0.70710677, %v2858_v16  ;;  %v3017_v54 = vmul.f32 0.70710677, %v2866_v28 }
  0xdd   : > { %4715 = vst [vmem:[#allocation41_spill] sm:$0xff] %v2981_v45  ;;  %4716 = vst [vmem:[#allocation42_spill] sm:$0xff] %v2984_v4  ;;  %v3019_v48 = vmul.f32 0.70710677, %v943_v22  ;;  %v3021_v26 = vmul.f32 0.70710677, %v944_v62 }
  0xde   : > { %4717 = vst [vmem:[#allocation43_spill] sm:$0xff] %v2987_v58  ;;  %4718 = vst [vmem:[#allocation44_spill] sm:$0xff] %v2993_v42  ;;  %v3023_v15 = vmul.f32 0.70710677, %v945_v10  ;;  %v3025_v49 = vmul.f32 0.70710677, %v946_v32 }
  0xdf   : > { %4719 = vst [vmem:[#allocation45_spill] sm:$0xff] %v2996_v9  ;;  %4720 = vst [vmem:[#allocation46_spill] sm:$0xff] %v2999_v11  ;;  %v3027_v60 = vmul.f32 0.70710677, %v947_v59  ;;  %v3029_v23 = vmul.f32 0.70710677, %v948_v46 }
  0xe0   : > { %4721 = vst [vmem:[#allocation47_spill] sm:$0xff] %v3005_v20  ;;  %4722 = vst [vmem:[#allocation48_spill] sm:$0xff] %v3008_v30  ;;  %v3032_v39 = vmul.f32 0.70710677, %v2956_v7  ;;  %v3035_v16 = vmul.f32 0.70710677, %v2978_v36 }
  0xe1   : > { %4723 = vst [vmem:[#allocation49_spill] sm:$0xff] %v3011_v35  ;;  %4724 = vst [vmem:[#allocation50_spill] sm:$0xff] %v3014_v63  ;;  %v3038_v28 = vmul.f32 0.70710677, %v2990_v2  ;;  %v3041_v22 = vmul.f32 0.70710677, %v3002_v61 }
  0xe2   : > { %4725 = vst [vmem:[#allocation51_spill] sm:$0xff] %v3017_v54  ;;  %4726 = vst [vmem:[#allocation52_spill] sm:$0xff] %v3019_v48  ;;  %v3044_v62 = vand.u32 2147483647, %v2940_v40  ;;  %v3047_v10 = vand.u32 2147483647, %v2943_v43 }
  0xe3   : > { %4727 = vst [vmem:[#allocation53_spill] sm:$0xff] %v3021_v26  ;;  %4728 = vst [vmem:[#allocation54_spill] sm:$0xff] %v3023_v15  ;;  %v3050_v32 = vand.u32 2147483647, %v2947_v0  ;;  %v3053_v59 = vand.u32 2147483647, %v2950_v57 }
  0xe4   : > { %4729 = vst [vmem:[#allocation55_spill] sm:$0xff] %v3025_v49  ;;  %4730 = vst [vmem:[#allocation56_spill] sm:$0xff] %v3027_v60  ;;  %v3056_v46 = vand.u32 2147483647, %v2953_v3  ;;  %v3059_v24 = vand.u32 2147483647, %v2959_v19 }
  0xe5   : > { %4731 = vst [vmem:[#allocation57_spill] sm:$0xff] %v3029_v23  ;;  %4732 = vst [vmem:[#allocation58_spill] sm:$0xff] %v3032_v39  ;;  %v3062_v31 = vand.u32 2147483647, %v2962_v56  ;;  %v3065_v17 = vand.u32 2147483647, %v2965_v5 }
  0xe6   : > { %4733 = vst [vmem:[#allocation59_spill] sm:$0xff] %v3035_v16  ;;  %4734 = vst [vmem:[#allocation60_spill] sm:$0xff] %v3038_v28  ;;  %v3068_v41 = vand.u32 2147483647, %v2969_v37  ;;  %v3071_v53 = vand.u32 2147483647, %v2972_v34 }
  0xe7   : > { %4735 = vst [vmem:[#allocation61_spill] sm:$0xff] %v3041_v22  ;;  %v3074_v13 = vand.u32 2147483647, %v2975_v52  ;;  %v3077_v29 = vand.u32 2147483647, %v2981_v45  ;;  %v3162_v19 = vmul.f32 0.5, %v2956_v7 }
  0xe8   : > { %v3080_v27 = vand.u32 2147483647, %v2984_v4  ;;  %v3083_v55 = vand.u32 2147483647, %v2987_v58  ;;  %v3086_v50 = vand.u32 2147483647, %v2993_v42 }
  0xe9   : > { %v3089_v12 = vand.u32 2147483647, %v2996_v9  ;;  %v3092_v21 = vand.u32 2147483647, %v2999_v11  ;;  %v3095_v8 = vand.u32 2147483647, %v3005_v20 }
  0xea   : > { %4736 = vst [vmem:[#allocation62_spill] sm:$0xff] %v3086_v50  ;;  %v3098_v18 = vand.u32 2147483647, %v3008_v30  ;;  %v3101_v47 = vand.u32 2147483647, %v3011_v35  ;;  %4754 = vst [vmem:[#allocation80_spill] sm:$0xff] %v3162_v19 }
  0xeb   : > { %4737 = vst [vmem:[#allocation63_spill] sm:$0xff] %v3089_v12  ;;  %4738 = vst [vmem:[#allocation64_spill] sm:$0xff] %v3092_v21  ;;  %v3104_v6 = vand.u32 2147483647, %v3014_v63  ;;  %v3107_v38 = vand.u32 2147483647, %v3017_v54 }
  0xec   : > { %4739 = vst [vmem:[#allocation65_spill] sm:$0xff] %v3095_v8  ;;  %4740 = vst [vmem:[#allocation66_spill] sm:$0xff] %v3098_v18  ;;  %v3110_v14 = vand.u32 2147483647, %v3019_v48  ;;  %v3113_v51 = vand.u32 2147483647, %v3021_v26 }
  0xed   : > { %4741 = vst [vmem:[#allocation67_spill] sm:$0xff] %v3101_v47  ;;  %4742 = vst [vmem:[#allocation68_spill] sm:$0xff] %v3104_v6  ;;  %v3116_v1 = vand.u32 2147483647, %v3023_v15  ;;  %v3119_v33 = vand.u32 2147483647, %v3025_v49 }
  0xee   : > { %4743 = vst [vmem:[#allocation69_spill] sm:$0xff] %v3107_v38  ;;  %4744 = vst [vmem:[#allocation70_spill] sm:$0xff] %v3110_v14  ;;  %v3122_v44 = vand.u32 2147483647, %v3027_v60  ;;  %v3125_v25 = vand.u32 2147483647, %v3029_v23 }
  0xef   : > { %4745 = vst [vmem:[#allocation71_spill] sm:$0xff] %v3113_v51  ;;  %4746 = vst [vmem:[#allocation72_spill] sm:$0xff] %v3116_v1  ;;  %v3128_v54 = vand.u32 2147483647, %v3032_v39  ;;  %v3131_v48 = vand.u32 2147483647, %v3035_v16 }
  0xf0   : > { %4747 = vst [vmem:[#allocation73_spill] sm:$0xff] %v3119_v33  ;;  %4748 = vst [vmem:[#allocation74_spill] sm:$0xff] %v3122_v44  ;;  %v3134_v26 = vand.u32 2147483647, %v3038_v28  ;;  %v3137_v15 = vand.u32 2147483647, %v3041_v22 }
  0xf1   : > { %4749 = vst [vmem:[#allocation75_spill] sm:$0xff] %v3125_v25  ;;  %4750 = vst [vmem:[#allocation76_spill] sm:$0xff] %v3128_v54  ;;  %v1049_v49 = vmul.f32 0.3275911, %v3044_v62  ;;  %v1050_v60 = vmul.f32 0.3275911, %v3047_v10 }
  0xf2   : > { %4751 = vst [vmem:[#allocation77_spill] sm:$0xff] %v3131_v48  ;;  %4752 = vst [vmem:[#allocation78_spill] sm:$0xff] %v3134_v26  ;;  %v1051_v63 = vmul.f32 0.3275911, %v3050_v32  ;;  %v1052_v23 = vmul.f32 0.3275911, %v3053_v59 }
  0xf3   : > { %4753 = vst [vmem:[#allocation79_spill] sm:$0xff] %v3137_v15  ;;  %v1053_v39 = vmul.f32 0.3275911, %v3056_v46  ;;  %v1054_v35 = vmul.f32 0.3275911, %v3059_v24  ;;  %v1081_v0 = vadd.f32 1.0, %v1049_v49 }
  0xf4   : > { %v1055_v16 = vmul.f32 0.3275911, %v3062_v31  ;;  %v1056_v28 = vmul.f32 0.3275911, %v3065_v17  ;;  %v1057_v30 = vmul.f32 0.3275911, %v3068_v41 }
  0xf5   : > { %v1058_v22 = vmul.f32 0.3275911, %v3071_v53  ;;  %v1059_v20 = vmul.f32 0.3275911, %v3074_v13  ;;  %v1060_v11 = vmul.f32 0.3275911, %v3077_v29  ;;  %2024 = vrcp.f32 %v1081_v0 }
  0xf6   : > { %v1061_v9 = vmul.f32 0.3275911, %v3080_v27  ;;  %v1062_v42 = vmul.f32 0.3275911, %v3083_v55  ;;  %v1063_v58 = vmul.f32 0.3275911, %v3086_v50 }
  0xf7   : > { %v1064_v4 = vmul.f32 0.3275911, %v3089_v12  ;;  %v1065_v45 = vmul.f32 0.3275911, %v3092_v21  ;;  %v1066_v52 = vmul.f32 0.3275911, %v3095_v8 }
  0xf8   : > { %v1067_v34 = vmul.f32 0.3275911, %v3098_v18  ;;  %v1068_v37 = vmul.f32 0.3275911, %v3101_v47  ;;  %v1069_v5 = vmul.f32 0.3275911, %v3104_v6 }
  0xf9   : > { %v1070_v56 = vmul.f32 0.3275911, %v3107_v38  ;;  %v1071_v3 = vmul.f32 0.3275911, %v3110_v14  ;;  %v1072_v57 = vmul.f32 0.3275911, %v3113_v51 }
  0xfa   : > { %v3167_v43 = vmul.f32 0.5, %v2978_v36  ;;  %v1073_v40 = vmul.f32 0.3275911, %v3116_v1  ;;  %v1074_v18 = vmul.f32 0.3275911, %v3119_v33  ;;  %v1082_v47 = vadd.f32 1.0, %v1050_v60 }
  0xfb   : > { %v3172_v6 = vmul.f32 0.5, %v2990_v2  ;;  %v1075_v38 = vmul.f32 0.3275911, %v3122_v44  ;;  %v1076_v7 = vmul.f32 0.3275911, %v3125_v25  ;;  %v1083_v19 = vadd.f32 1.0, %v1051_v63 }
  0xfc   : > { %4755 = vst [vmem:[#allocation81_spill] sm:$0xff] %v3167_v43  ;;  %v3177_v14 = vmul.f32 0.5, %v3002_v61  ;;  %v1077_v49 = vmul.f32 0.3275911, %v3128_v54  ;;  %v1078_v36 = vmul.f32 0.3275911, %v3131_v48  ;;  %2026 = vrcp.f32 %v1082_v47 }
  0xfd   : > { %4756 = vst [vmem:[#allocation82_spill] sm:$0xff] %v3172_v6  ;;  %v1084_v43 = vadd.f32 1.0, %v1052_v23  ;;  %v1079_v1 = vmul.f32 0.3275911, %v3134_v26  ;;  %v1080_v60 = vmul.f32 0.3275911, %v3137_v15  ;;  %2028 = vrcp.f32 %v1083_v19 }
  0xfe   : > { %4757 = vst [vmem:[#allocation83_spill] sm:$0xff] %v3177_v14  ;;  %v1085_v33 = vadd.f32 1.0, %v1053_v39  ;;  %v1086_v2 = vadd.f32 1.0, %v1054_v35  ;;  %v1087_v6 = vadd.f32 1.0, %v1055_v16  ;;  %v1088_v44 = vadd.f32 1.0, %v1056_v28 }
  0xff   : > { %v1089_v25 = vadd.f32 1.0, %v1057_v30  ;;  %v1090_v63 = vadd.f32 1.0, %v1058_v22  ;;  %v1091_v51 = vadd.f32 1.0, %v1059_v20  ;;  %v1092_v61 = vadd.f32 1.0, %v1060_v11 }
 0x100   : > { %v1093_v14 = vadd.f32 1.0, %v1061_v9  ;;  %v1094_v54 = vadd.f32 1.0, %v1062_v42  ;;  %2030 = vrcp.f32 %v1084_v43  ;;  %v1095_v48 = vadd.f32 1.0, %v1063_v58 }
 0x101   : > { %v1096_v23 = vadd.f32 1.0, %v1064_v4  ;;  %v1097_v8 = vadd.f32 1.0, %v1065_v45  ;;  %2032 = vrcp.f32 %v1085_v33  ;;  %v1098_v26 = vadd.f32 1.0, %v1066_v52 }
 0x102   : > { %v1099_v15 = vadd.f32 1.0, %v1067_v34  ;;  %v1100_v39 = vadd.f32 1.0, %v1068_v37  ;;  %2034 = vrcp.f32 %v1086_v2  ;;  %v3183_v0 = vadd.f32 1.0, %v1069_v5  ;;  %v3216_v34 = vpop.eup %2024 }
 0x103   : > { %v3185_v35 = vadd.f32 1.0, %v1070_v56  ;;  %v3187_v47 = vadd.f32 1.0, %v1071_v3  ;;  %2036 = vrcp.f32 %v1087_v6  ;;  %v3189_v19 = vadd.f32 1.0, %v1072_v57  ;;  %4758 = vst [vmem:[#allocation84_spill] sm:$0xff] %v3216_v34 }
 0x104   : > { %v3191_v9 = vadd.f32 1.0, %v1073_v40  ;;  %v3193_v43 = vadd.f32 1.0, %v1074_v18  ;;  %2038 = vrcp.f32 %v1088_v44  ;;  %v3195_v45 = vadd.f32 1.0, %v1075_v38 }
 0x105   : > { %v3197_v33 = vadd.f32 1.0, %v1076_v7  ;;  %v3199_v37 = vadd.f32 1.0, %v1077_v49  ;;  %2040 = vrcp.f32 %v1089_v25  ;;  %v3201_v5 = vadd.f32 1.0, %v1078_v36 }
 0x106   : > { %v3203_v56 = vadd.f32 1.0, %v1079_v1  ;;  %v3205_v3 = vadd.f32 1.0, %v1080_v60  ;;  %2042 = vrcp.f32 %v1090_v63  ;;  %v1465_v6 = vsub.f32 0.0, %v3044_v62 }
 0x107   : > { %2044 = vrcp.f32 %v1091_v51  ;;  %v1466_v18 = vsub.f32 0.0, %v3047_v10  ;;  %v1467_v44 = vsub.f32 0.0, %v3050_v32  ;;  %v1468_v38 = vsub.f32 0.0, %v3053_v59 }
 0x108   : > { %2046 = vrcp.f32 %v1092_v61  ;;  %v1469_v57 = vsub.f32 0.0, %v3056_v46  ;;  %v1470_v25 = vsub.f32 0.0, %v3059_v24  ;;  %v1471_v1 = vsub.f32 0.0, %v3062_v31 }
 0x109   : > { %2048 = vrcp.f32 %v1093_v14  ;;  %v1472_v40 = vsub.f32 0.0, %v3065_v17  ;;  %v1473_v51 = vsub.f32 0.0, %v3068_v41  ;;  %v1474_v52 = vsub.f32 0.0, %v3071_v53  ;;  %v3221_v42 = vpop.eup %2026 }
 0x10a   : > { %2050 = vrcp.f32 %v1094_v54  ;;  %v1475_v4 = vsub.f32 0.0, %v3074_v13  ;;  %v1476_v58 = vsub.f32 0.0, %v3077_v29  ;;  %4759 = vst [vmem:[#allocation85_spill] sm:$0xff] %v3221_v42  ;;  %v1477_v14 = vsub.f32 0.0, %v3080_v27  ;;  %v3226_v30 = vpop.eup %2028 }
 0x10b   : > { %2052 = vrcp.f32 %v1095_v48  ;;  %v1478_v11 = vsub.f32 0.0, %v3083_v55  ;;  %4760 = vst [vmem:[#allocation86_spill] sm:$0xff] %v3226_v30  ;;  %v3257_v48 = vmul.f32 %v1465_v6, %v3044_v62  ;;  %v3267_v54 = vmul.f32 %v1467_v44, %v3050_v32 }
 0x10c   : > { %2054 = vrcp.f32 %v1096_v23  ;;  %v3264_v23 = vmul.f32 %v1466_v18, %v3047_v10  ;;  %v3273_v22 = vmul.f32 %v1468_v38, %v3053_v59  ;;  %v3276_v62 = vmul.f32 %v1469_v57, %v3056_v46 }
 0x10d   : > { %v3231_v7 = vpop.eup %2030  ;;  %2056 = vrcp.f32 %v1097_v8  ;;  %4781 = vst [vmem:[#allocation92_spill] sm:$0xff] %v3257_v48  ;;  %4784 = vst [vmem:[#allocation95_spill] sm:$0xff] %v3267_v54  ;;  %v1178_v10 = vmul.f32 1.0614054, %v3221_v42  ;;  %v3286_v32 = vmul.f32 %v1471_v1, %v3062_v31  ;;  %v1179_v46 = vmul.f32 1.0614054, %v3226_v30 }
 0x10e   : > { %4762 = vst [vmem:[#allocation87_spill] sm:$0xff] %v3231_v7  ;;  %v3236_v61 = vpop.eup %2032  ;;  %2058 = vrcp.f32 %v1098_v26  ;;  %4783 = vst [vmem:[#allocation94_spill] sm:$0xff] %v3264_v23  ;;  %v3299_v18 = vmul.f32 %v1474_v52, %v3071_v53  ;;  %v3308_v44 = vmul.f32 %v1476_v58, %v3077_v29  ;;  %v3315_v53 = vmul.f32 %v1477_v14, %v3080_v27 }
 0x10f   : > { %4766 = vst [vmem:[#allocation88_spill] sm:$0xff] %v3236_v61  ;;  %v3241_v21 = vpop.eup %2034  ;;  %2060 = vrcp.f32 %v1099_v15  ;;  %4786 = vst [vmem:[#allocation97_spill] sm:$0xff] %v3273_v22  ;;  %v3318_v38 = vmul.f32 %v1478_v11, %v3083_v55  ;;  %v1210_v57 = vadd.f32 -1.4531521, %v1178_v10  ;;  %v1211_v1 = vadd.f32 -1.4531521, %v1179_v46 }
 0x110   : > { %4770 = vst [vmem:[#allocation89_spill] sm:$0xff] %v3241_v21  ;;  %v3246_v36 = vpop.eup %2036  ;;  %2062 = vrcp.f32 %v1100_v39  ;;  %v1177_v39 = vmul.f32 1.0614054, %v3216_v34  ;;  %4787 = vst [vmem:[#allocation98_spill] sm:$0xff] %v3276_v62  ;;  %v1182_v29 = vmul.f32 1.0614054, %v3241_v21 }
 0x111   : > { %4774 = vst [vmem:[#allocation90_spill] sm:$0xff] %v3246_v36  ;;  %v3251_v50 = vpop.eup %2038  ;;  %2064 = vrcp.f32 %v3183_v0  ;;  %4790 = vst [vmem:[#allocation101_spill] sm:$0xff] %v3286_v32 }
 0x112   : > { %4778 = vst [vmem:[#allocation91_spill] sm:$0xff] %v3251_v50  ;;  %v3259_v60 = vpop.eup %2040  ;;  %2066 = vrcp.f32 %v3185_v35  ;;  %v3279_v35 = vmul.f32 %v1470_v25, %v3059_v24  ;;  %v3296_v24 = vmul.f32 %v1473_v51, %v3068_v41  ;;  %4794 = vst [vmem:[#allocation105_spill] sm:$0xff] %v3299_v18  ;;  %v1209_v31 = vadd.f32 -1.4531521, %v1177_v39 }
 0x113   : > { %4782 = vst [vmem:[#allocation93_spill] sm:$0xff] %v3259_v60  ;;  %v3269_v0 = vpop.eup %2042  ;;  %2068 = vrcp.f32 %v3187_v47  ;;  %v3289_v47 = vmul.f32 %v1472_v40, %v3065_v17  ;;  %v3305_v17 = vmul.f32 %v1475_v4, %v3074_v13  ;;  %4797 = vst [vmem:[#allocation108_spill] sm:$0xff] %v3308_v44  ;;  %v1180_v41 = vmul.f32 1.0614054, %v3231_v7 }
 0x114   : > { %4785 = vst [vmem:[#allocation96_spill] sm:$0xff] %v3269_v0  ;;  %4788 = vst [vmem:[#allocation99_spill] sm:$0xff] %v3279_v35  ;;  %v3281_v6 = vpop.eup %2044  ;;  %2070 = vrcp.f32 %v3189_v19  ;;  %v1181_v13 = vmul.f32 1.0614054, %v3236_v61  ;;  %v1184_v27 = vmul.f32 1.0614054, %v3251_v50  ;;  %v1241_v51 = vmul.f32 %v3216_v34, %v1209_v31 }
 0x115   : > { %4789 = vst [vmem:[#allocation100_spill] sm:$0xff] %v3281_v6  ;;  %4791 = vst [vmem:[#allocation102_spill] sm:$0xff] %v3289_v47  ;;  %v3291_v59 = vpop.eup %2046  ;;  %2072 = vrcp.f32 %v3191_v9  ;;  %v1186_v40 = vmul.f32 1.0614054, %v3269_v0  ;;  %v1212_v58 = vadd.f32 -1.4531521, %v1180_v41 }
 0x116   : > { %4792 = vst [vmem:[#allocation103_spill] sm:$0xff] %v3291_v59  ;;  %4793 = vst [vmem:[#allocation104_spill] sm:$0xff] %v3296_v24  ;;  %v3301_v19 = vpop.eup %2048  ;;  %2074 = vrcp.f32 %v3193_v43  ;;  %v1188_v4 = vmul.f32 1.0614054, %v3291_v59  ;;  %v1213_v11 = vadd.f32 -1.4531521, %v1181_v13 }
 0x117   : > { %4795 = vst [vmem:[#allocation106_spill] sm:$0xff] %v3301_v19  ;;  %4796 = vst [vmem:[#allocation107_spill] sm:$0xff] %v3305_v17  ;;  %v3310_v9 = vpop.eup %2050  ;;  %2076 = vrcp.f32 %v3195_v45  ;;  %v1183_v45 = vmul.f32 1.0614054, %v3246_v36  ;;  %v1214_v39 = vadd.f32 -1.4531521, %v1182_v29  ;;  %v1244_v63 = vmul.f32 %v3231_v7, %v1212_v58 }
 0x118   : > { %4798 = vst [vmem:[#allocation109_spill] sm:$0xff] %v3310_v9  ;;  %4799 = vst [vmem:[#allocation110_spill] sm:$0xff] %v3315_v53  ;;  %v3320_v43 = vpop.eup %2052  ;;  %2078 = vrcp.f32 %v3197_v33  ;;  %v1185_v33 = vmul.f32 1.0614054, %v3259_v60  ;;  %v1190_v46 = vmul.f32 1.0614054, %v3310_v9  ;;  %v1245_v49 = vmul.f32 %v3236_v61, %v1213_v11 }
 0x119   : > { %4800 = vst [vmem:[#allocation111_spill] sm:$0xff] %v3318_v38  ;;  %4801 = vst [vmem:[#allocation112_spill] sm:$0xff] %v3320_v43  ;;  %v3325_v25 = vpop.eup %2054  ;;  %2080 = vrcp.f32 %v3199_v37  ;;  %v1187_v37 = vmul.f32 1.0614054, %v3281_v6  ;;  %v1215_v31 = vadd.f32 -1.4531521, %v1183_v45 }
 0x11a   : > { %4802 = vst [vmem:[#allocation113_spill] sm:$0xff] %v3325_v25  ;;  %v3330_v55 = vpop.eup %2056  ;;  %2082 = vrcp.f32 %v3201_v5  ;;  %v1189_v5 = vmul.f32 1.0614054, %v3301_v19  ;;  %v1216_v16 = vadd.f32 -1.4531521, %v1184_v27 }
 0x11b   : > { %4803 = vst [vmem:[#allocation114_spill] sm:$0xff] %v3330_v55  ;;  %v3336_v52 = vpop.eup %2058  ;;  %2084 = vrcp.f32 %v3203_v56  ;;  %v1242_v56 = vmul.f32 %v3221_v42, %v1210_v57  ;;  %v1191_v41 = vmul.f32 1.0614054, %v3320_v43  ;;  %v1217_v8 = vadd.f32 -1.4531521, %v1185_v33 }
 0x11c   : > { %4804 = vst [vmem:[#allocation115_spill] sm:$0xff] %v3336_v52  ;;  %v3341_v14 = vpop.eup %2060  ;;  %2086 = vrcp.f32 %v3205_v3  ;;  %v1218_v15 = vadd.f32 -1.4531521, %v1186_v40  ;;  %v1243_v3 = vmul.f32 %v3226_v30, %v1211_v1  ;;  %v1192_v13 = vmul.f32 1.0614054, %v3325_v25 }
 0x11d   : > { %4805 = vst [vmem:[#allocation116_spill] sm:$0xff] %v3341_v14  ;;  %v3345_v10 = vpop.eup %2062  ;;  %v1219_v29 = vadd.f32 -1.4531521, %v1187_v37  ;;  %v1220_v2 = vadd.f32 -1.4531521, %v1188_v4  ;;  %v1246_v33 = vmul.f32 %v3241_v21, %v1214_v39  ;;  %v1247_v12 = vmul.f32 %v3246_v36, %v1215_v31 }
 0x11e   : > { %4806 = vst [vmem:[#allocation117_spill] sm:$0xff] %v3345_v10  ;;  %v3349_v26 = vpop.eup %2064  ;;  %v1193_v57 = vmul.f32 1.0614054, %v3330_v55  ;;  %v1221_v27 = vadd.f32 -1.4531521, %v1189_v5  ;;  %v1248_v37 = vmul.f32 %v3251_v50, %v1216_v16  ;;  %v1249_v5 = vmul.f32 %v3259_v60, %v1217_v8 }
 0x11f   : > { %4807 = vst [vmem:[#allocation118_spill] sm:$0xff] %v3349_v26  ;;  %v3353_v20 = vpop.eup %2066  ;;  %v1194_v1 = vmul.f32 1.0614054, %v3336_v52  ;;  %v1222_v28 = vadd.f32 -1.4531521, %v1190_v46  ;;  %v1250_v11 = vmul.f32 %v3269_v0, %v1218_v15  ;;  %v1251_v46 = vmul.f32 %v3281_v6, %v1219_v29 }
 0x120   : > { %4808 = vst [vmem:[#allocation119_spill] sm:$0xff] %v3353_v20  ;;  %v3357_v45 = vpop.eup %2068  ;;  %v1195_v58 = vmul.f32 1.0614054, %v3341_v14  ;;  %v1223_v38 = vadd.f32 -1.4531521, %v1191_v41  ;;  %v1252_v31 = vmul.f32 %v3291_v59, %v1220_v2  ;;  %v1253_v41 = vmul.f32 %v3301_v19, %v1221_v27 }
 0x121   : > { %4809 = vst [vmem:[#allocation120_spill] sm:$0xff] %v3357_v45  ;;  %v3362_v40 = vpop.eup %2070  ;;  %v1196_v39 = vmul.f32 1.0614054, %v3345_v10  ;;  %v1224_v44 = vadd.f32 -1.4531521, %v1192_v13  ;;  %v1254_v13 = vmul.f32 %v3310_v9, %v1222_v28 }
 0x122   : > { %4810 = vst [vmem:[#allocation121_spill] sm:$0xff] %v3362_v40  ;;  %v3367_v4 = vpop.eup %2072  ;;  %v1197_v16 = vmul.f32 1.0614054, %v3349_v26  ;;  %v1225_v18 = vadd.f32 -1.4531521, %v1193_v57  ;;  %v1255_v57 = vmul.f32 %v3320_v43, %v1223_v38 }
 0x123   : > { %4811 = vst [vmem:[#allocation122_spill] sm:$0xff] %v3367_v4  ;;  %v3372_v53 = vpop.eup %2074  ;;  %v3381_v24 = vadd.f32 1.4214138, %v1241_v51  ;;  %v1198_v15 = vmul.f32 1.0614054, %v3353_v20 }
 0x124   : > { %4812 = vst [vmem:[#allocation123_spill] sm:$0xff] %v3372_v53  ;;  %v3377_v17 = vpop.eup %2076  ;;  %v1226_v47 = vadd.f32 -1.4531521, %v1194_v1  ;;  %v3387_v32 = vadd.f32 1.4214138, %v1242_v56  ;;  %v1256_v1 = vmul.f32 %v3325_v25, %v1224_v44 }
 0x125   : > { %4813 = vst [vmem:[#allocation124_spill] sm:$0xff] %v3377_v17  ;;  %v3383_v8 = vpop.eup %2078  ;;  %v1199_v2 = vmul.f32 1.0614054, %v3357_v45  ;;  %v1227_v35 = vadd.f32 -1.4531521, %v1195_v58  ;;  %v1257_v58 = vmul.f32 %v3330_v55, %v1225_v18 }
 0x126   : > { %4814 = vst [vmem:[#allocation125_spill] sm:$0xff] %v3383_v8  ;;  %v3389_v29 = vpop.eup %2080  ;;  %v3393_v62 = vadd.f32 1.4214138, %v1243_v3  ;;  %v1200_v27 = vmul.f32 1.0614054, %v3362_v40  ;;  %v1258_v44 = vmul.f32 %v3336_v52, %v1226_v47 }
 0x127   : > { %4815 = vst [vmem:[#allocation126_spill] sm:$0xff] %v3389_v29  ;;  %v3395_v51 = vpop.eup %2082  ;;  %v1228_v22 = vadd.f32 -1.4531521, %v1196_v39  ;;  %v3399_v54 = vadd.f32 1.4214138, %v1244_v63 }
 0x128   : > { %4816 = vst [vmem:[#allocation127_spill] sm:$0xff] %v3395_v51  ;;  %v3401_v28 = vpop.eup %2084  ;;  %v1201_v56 = vmul.f32 1.0614054, %v3367_v4  ;;  %v1229_v23 = vadd.f32 -1.4531521, %v1197_v16  ;;  %v1259_v16 = vmul.f32 %v3341_v14, %v1227_v35 }
 0x129   : > { %4817 = vst [vmem:[#allocation128_spill] sm:$0xff] %v3401_v28  ;;  %v3405_v48 = vadd.f32 1.4214138, %v1245_v49  ;;  %v3407_v38 = vpop.eup %2086  ;;  %v1202_v3 = vmul.f32 1.0614054, %v3372_v53  ;;  %v1260_v55 = vmul.f32 %v3345_v10, %v1228_v22 }
 0x12a   : > { %4818 = vst [vmem:[#allocation129_spill] sm:$0xff] %v3407_v38  ;;  %v1203_v43 = vmul.f32 1.0614054, %v3377_v17  ;;  %v1230_v39 = vadd.f32 -1.4531521, %v1198_v15  ;;  %v1261_v47 = vmul.f32 %v3349_v26, %v1229_v23 }
 0x12b   : > { %v1204_v63 = vmul.f32 1.0614054, %v3383_v8  ;;  %v1205_v25 = vmul.f32 1.0614054, %v3389_v29  ;;  %v1231_v9 = vadd.f32 -1.4531521, %v1199_v2 }
 0x12c   : > { %v1206_v18 = vmul.f32 1.0614054, %v3395_v51  ;;  %v1232_v49 = vadd.f32 -1.4531521, %v1200_v27  ;;  %v1278_v19 = vadd.f32 1.4214138, %v1246_v33  ;;  %v1262_v60 = vmul.f32 %v3353_v20, %v1230_v39 }
 0x12d   : > { %v1207_v59 = vmul.f32 1.0614054, %v3401_v28  ;;  %v1208_v6 = vmul.f32 1.0614054, %v3407_v38  ;;  %v1233_v15 = vadd.f32 -1.4531521, %v1201_v56  ;;  %v1263_v14 = vmul.f32 %v3357_v45, %v1231_v9 }
 0x12e   : > { %v1234_v52 = vadd.f32 -1.4531521, %v1202_v3  ;;  %v1235_v0 = vadd.f32 -1.4531521, %v1203_v43  ;;  %v1279_v2 = vadd.f32 1.4214138, %v1247_v12  ;;  %v1264_v22 = vmul.f32 %v3362_v40, %v1232_v49 }
 0x12f   : > { %v1236_v50 = vadd.f32 -1.4531521, %v1204_v63  ;;  %v1237_v35 = vadd.f32 -1.4531521, %v1205_v25  ;;  %v1280_v27 = vadd.f32 1.4214138, %v1248_v37  ;;  %v1265_v56 = vmul.f32 %v3367_v4, %v1233_v15 }
 0x130   : > { %v1238_v36 = vadd.f32 -1.4531521, %v1206_v18  ;;  %v1281_v33 = vadd.f32 1.4214138, %v1249_v5  ;;  %v1282_v10 = vadd.f32 1.4214138, %v1250_v11  ;;  %v1266_v43 = vmul.f32 %v3372_v53, %v1234_v52 }
 0x131   : > { %v1239_v21 = vadd.f32 -1.4531521, %v1207_v59  ;;  %v1240_v61 = vadd.f32 -1.4531521, %v1208_v6  ;;  %v1283_v23 = vadd.f32 1.4214138, %v1251_v46  ;;  %v1267_v3 = vmul.f32 %v3377_v17, %v1235_v0 }
 0x132   : > { %v1284_v12 = vadd.f32 1.4214138, %v1252_v31  ;;  %v1285_v39 = vadd.f32 1.4214138, %v1253_v41  ;;  %v1268_v25 = vmul.f32 %v3383_v8, %v1236_v50  ;;  %v1269_v9 = vmul.f32 %v3389_v29, %v1237_v35  ;;  %v4819_v15 = vld [vmem:[#allocation62_spill] sm:$0xff] }
 0x133   : > { %v1286_v37 = vadd.f32 1.4214138, %v1254_v13  ;;  %v1287_v63 = vadd.f32 1.4214138, %v1255_v57  ;;  %v1270_v5 = vmul.f32 %v3395_v51, %v1238_v36  ;;  %v1288_v11 = vadd.f32 1.4214138, %v1256_v1 }
 0x134   : > { %v1289_v59 = vadd.f32 1.4214138, %v1257_v58  ;;  %v1290_v6 = vadd.f32 1.4214138, %v1258_v44  ;;  %v1271_v18 = vmul.f32 %v3401_v28, %v1239_v21  ;;  %v1272_v46 = vmul.f32 %v3407_v38, %v1240_v61  ;;  %v4822_v1 = vld [vmem:[#allocation63_spill] sm:$0xff]  ;;  %v4835_v38 = vld [vmem:[#allocation112_spill] sm:$0xff] }
 0x135   : > { %v1291_v52 = vadd.f32 1.4214138, %v1259_v16  ;;  %v1292_v49 = vadd.f32 1.4214138, %v1260_v55  ;;  %v1293_v0 = vadd.f32 1.4214138, %v1261_v47 }
 0x136   : > { %v1294_v31 = vadd.f32 1.4214138, %v1262_v60  ;;  %v1295_v41 = vadd.f32 1.4214138, %v1263_v14  ;;  %v4820_v50 = vsub.f32 0.0, %v4819_v15  ;;  %v4823_v58 = vsub.f32 0.0, %v4822_v1 }
 0x137   : > { %v1296_v13 = vadd.f32 1.4214138, %v1264_v22  ;;  %v1297_v57 = vadd.f32 1.4214138, %v1265_v56  ;;  %v1298_v36 = vadd.f32 1.4214138, %v1266_v43  ;;  %v1305_v60 = vmul.f32 %v3216_v34, %v3381_v24 }
 0x138   : > { %v3434_v35 = vmul.f32 %v4820_v50, %v4819_v15  ;;  %v3439_v44 = vmul.f32 %v4823_v58, %v4822_v1  ;;  %v1299_v21 = vadd.f32 1.4214138, %v1267_v3  ;;  %v1300_v61 = vadd.f32 1.4214138, %v1268_v25  ;;  %v4825_v43 = vld [vmem:[#allocation88_spill] sm:$0xff]  ;;  %v4826_v25 = vld [vmem:[#allocation89_spill] sm:$0xff] }
 0x139   : > { %v1301_v16 = vadd.f32 1.4214138, %v1269_v9  ;;  %v1302_v55 = vadd.f32 1.4214138, %v1270_v5  ;;  %v1303_v14 = vadd.f32 1.4214138, %v1271_v18  ;;  %v1306_v15 = vmul.f32 %v3221_v42, %v3387_v32 }
 0x13a   : > { %4821 = vst [vmem:[#allocation62_spill] sm:$0xff] %v3434_v35  ;;  %4824 = vst [vmem:[#allocation63_spill] sm:$0xff] %v3439_v44  ;;  %v1304_v47 = vadd.f32 1.4214138, %v1272_v46  ;;  %v1307_v22 = vmul.f32 %v3226_v30, %v3393_v62  ;;  %v1308_v56 = vmul.f32 %v3231_v7, %v3399_v54  ;;  %v1309_v3 = vmul.f32 %v4825_v43, %v3405_v48  ;;  %v4827_v50 = vld [vmem:[#allocation90_spill] sm:$0xff]  ;;  %v4828_v24 = vld [vmem:[#allocation91_spill] sm:$0xff] }
 0x13b   : > { %v1310_v9 = vmul.f32 %v4826_v25, %v1278_v19  ;;  %v1311_v1 = vmul.f32 %v4827_v50, %v1279_v2  ;;  %v1312_v5 = vmul.f32 %v4828_v24, %v1280_v27  ;;  %v4829_v18 = vld [vmem:[#allocation93_spill] sm:$0xff]  ;;  %v4830_v58 = vld [vmem:[#allocation96_spill] sm:$0xff]  ;;  %v4832_v42 = vld [vmem:[#allocation103_spill] sm:$0xff]  ;;  %v1319_v48 = vmul.f32 %v4835_v38, %v1287_v63 }
 0x13c   : > { %v1313_v46 = vmul.f32 %v4829_v18, %v1281_v33  ;;  %v1314_v44 = vmul.f32 %v4830_v58, %v1282_v10  ;;  %v4831_v32 = vld [vmem:[#allocation100_spill] sm:$0xff]  ;;  %v1316_v62 = vmul.f32 %v4832_v42, %v1284_v12  ;;  %v4833_v30 = vld [vmem:[#allocation106_spill] sm:$0xff]  ;;  %v4834_v54 = vld [vmem:[#allocation109_spill] sm:$0xff]  ;;  %v1326_v12 = vmul.f32 %v3353_v20, %v1294_v31 }
 0x13d   : > { %v1315_v35 = vmul.f32 %v4831_v32, %v1283_v23  ;;  %v1317_v34 = vmul.f32 %v4833_v30, %v1285_v39  ;;  %v1318_v7 = vmul.f32 %v4834_v54, %v1286_v37  ;;  %v4836_v43 = vld [vmem:[#allocation113_spill] sm:$0xff]  ;;  %v4837_v25 = vld [vmem:[#allocation114_spill] sm:$0xff]  ;;  %v4838_v50 = vld [vmem:[#allocation115_spill] sm:$0xff]  ;;  %v1325_v23 = vmul.f32 %v3349_v26, %v1293_v0 }
 0x13e   : > { %v1320_v19 = vmul.f32 %v4836_v43, %v1288_v11  ;;  %v1321_v2 = vmul.f32 %v4837_v25, %v1289_v59  ;;  %v1322_v27 = vmul.f32 %v4838_v50, %v1290_v6  ;;  %v4839_v24 = vld [vmem:[#allocation116_spill] sm:$0xff]  ;;  %v4840_v18 = vld [vmem:[#allocation117_spill] sm:$0xff]  ;;  %v1327_v39 = vmul.f32 %v3357_v45, %v1295_v41 }
 0x13f   : > { %v1323_v33 = vmul.f32 %v4839_v24, %v1291_v52  ;;  %v1324_v10 = vmul.f32 %v4840_v18, %v1292_v49  ;;  %v1328_v37 = vmul.f32 %v3362_v40, %v1296_v13  ;;  %v1329_v63 = vmul.f32 %v3367_v4, %v1297_v57  ;;  %v4841_v31 = vld [vmem:[#allocation129_spill] sm:$0xff]  ;;  %v4842_v57 = vld [vmem:[#allocation64_spill] sm:$0xff] }
 0x140   : > { %v1330_v11 = vmul.f32 %v3372_v53, %v1298_v36  ;;  %v1331_v59 = vmul.f32 %v3377_v17, %v1299_v21  ;;  %v1332_v6 = vmul.f32 %v3383_v8, %v1300_v61  ;;  %v1333_v52 = vmul.f32 %v3389_v29, %v1301_v16  ;;  %v4845_v16 = vld [vmem:[#allocation65_spill] sm:$0xff] }
 0x141   : > { %v1337_v24 = vadd.f32 -0.28449672, %v1305_v60  ;;  %v1334_v49 = vmul.f32 %v3395_v51, %v1302_v55  ;;  %v1335_v0 = vmul.f32 %v3401_v28, %v1303_v14  ;;  %v1336_v20 = vmul.f32 %v4841_v31, %v1304_v47  ;;  %v4849_v51 = vld [vmem:[#allocation85_spill] sm:$0xff] }
 0x142   : > { %v1338_v41 = vadd.f32 -0.28449672, %v1306_v15  ;;  %v1339_v45 = vadd.f32 -0.28449672, %v1307_v22  ;;  %v1340_v13 = vadd.f32 -0.28449672, %v1308_v56 }
 0x143   : > { %v1341_v40 = vadd.f32 -0.28449672, %v1309_v3  ;;  %v4843_v36 = vsub.f32 0.0, %v4842_v57  ;;  %v1342_v21 = vadd.f32 -0.28449672, %v1310_v9  ;;  %v4846_v60 = vsub.f32 0.0, %v4845_v16 }
 0x144   : > { %v1343_v61 = vadd.f32 -0.28449672, %v1311_v1  ;;  %v1344_v8 = vadd.f32 -0.28449672, %v1312_v5  ;;  %v1345_v14 = vadd.f32 -0.28449672, %v1313_v46  ;;  %v1370_v29 = vmul.f32 %v4849_v51, %v1338_v41 }
 0x145   : > { %v3481_v53 = vmul.f32 %v4843_v36, %v4842_v57  ;;  %v3486_v55 = vmul.f32 %v4846_v60, %v4845_v16  ;;  %v1346_v28 = vadd.f32 -0.28449672, %v1314_v44  ;;  %v1347_v47 = vadd.f32 -0.28449672, %v1315_v35  ;;  %v4848_v15 = vld [vmem:[#allocation84_spill] sm:$0xff]  ;;  %v4850_v1 = vld [vmem:[#allocation86_spill] sm:$0xff] }
 0x146   : > { %v1369_v22 = vmul.f32 %v4848_v15, %v1337_v24  ;;  %v1348_v56 = vadd.f32 -0.28449672, %v1316_v62  ;;  %v1349_v3 = vadd.f32 -0.28449672, %v1317_v34  ;;  %v1350_v31 = vadd.f32 -0.28449672, %v1318_v7 }
 0x147   : > { %4844 = vst [vmem:[#allocation96_spill] sm:$0xff] %v3481_v53  ;;  %4847 = vst [vmem:[#allocation100_spill] sm:$0xff] %v3486_v55  ;;  %v1351_v57 = vadd.f32 -0.28449672, %v1319_v48  ;;  %v1352_v36 = vadd.f32 -0.28449672, %v1320_v19  ;;  %v1371_v5 = vmul.f32 %v4850_v1, %v1339_v45 }
 0x148   : > { %v1353_v9 = vadd.f32 -0.28449672, %v1321_v2  ;;  %v1354_v53 = vadd.f32 -0.28449672, %v1322_v27  ;;  %v1355_v17 = vadd.f32 -0.28449672, %v1323_v33 }
 0x149   : > { %v1356_v4 = vadd.f32 -0.28449672, %v1324_v10  ;;  %v4851_v16 = vld [vmem:[#allocation87_spill] sm:$0xff]  ;;  %v1357_v46 = vadd.f32 -0.28449672, %v1325_v23  ;;  %v4852_v55 = vld [vmem:[#allocation88_spill] sm:$0xff] }
 0x14a   : > { %v1372_v60 = vmul.f32 %v4851_v16, %v1340_v13  ;;  %v1358_v44 = vadd.f32 -0.28449672, %v1326_v12  ;;  %v1359_v35 = vadd.f32 -0.28449672, %v1327_v39  ;;  %v1373_v24 = vmul.f32 %v4852_v55, %v1341_v40  ;;  %v4853_v15 = vld [vmem:[#allocation89_spill] sm:$0xff]  ;;  %v4854_v51 = vld [vmem:[#allocation90_spill] sm:$0xff] }
 0x14b   : > { %v1360_v62 = vadd.f32 -0.28449672, %v1328_v37  ;;  %v1361_v34 = vadd.f32 -0.28449672, %v1329_v63  ;;  %v1362_v7 = vadd.f32 -0.28449672, %v1330_v11  ;;  %v1374_v41 = vmul.f32 %v4853_v15, %v1342_v21 }
 0x14c   : > { %v1363_v48 = vadd.f32 -0.28449672, %v1331_v59  ;;  %v1364_v19 = vadd.f32 -0.28449672, %v1332_v6  ;;  %v1365_v2 = vadd.f32 -0.28449672, %v1333_v52  ;;  %v1375_v45 = vmul.f32 %v4854_v51, %v1343_v61 }
 0x14d   : > { %v1366_v27 = vadd.f32 -0.28449672, %v1334_v49  ;;  %v1367_v33 = vadd.f32 -0.28449672, %v1335_v0  ;;  %v1368_v10 = vadd.f32 -0.28449672, %v1336_v20  ;;  %v1378_v39 = vmul.f32 %v4830_v58, %v1346_v28 }
 0x14e   : > { %v4855_v1 = vld [vmem:[#allocation91_spill] sm:$0xff]  ;;  %v4856_v23 = vld [vmem:[#allocation93_spill] sm:$0xff]  ;;  %v1379_v40 = vmul.f32 %v4831_v32, %v1347_v47  ;;  %v1380_v37 = vmul.f32 %v4832_v42, %v1348_v56  ;;  %v1381_v63 = vmul.f32 %v4833_v30, %v1349_v3  ;;  %v1382_v11 = vmul.f32 %v4834_v54, %v1350_v31  ;;  %v4857_v52 = vld [vmem:[#allocation116_spill] sm:$0xff] }
 0x14f   : > { %v1376_v13 = vmul.f32 %v4855_v1, %v1344_v8  ;;  %v1377_v12 = vmul.f32 %v4856_v23, %v1345_v14  ;;  %v1383_v59 = vmul.f32 %v4835_v38, %v1351_v57  ;;  %v1384_v6 = vmul.f32 %v4836_v43, %v1352_v36  ;;  %v4858_v21 = vld [vmem:[#allocation119_spill] sm:$0xff]  ;;  %v4859_v14 = vld [vmem:[#allocation120_spill] sm:$0xff]  ;;  %v4860_v56 = vld [vmem:[#allocation121_spill] sm:$0xff] }
 0x150   : > { %v1385_v20 = vmul.f32 %v4837_v25, %v1353_v9  ;;  %v1386_v8 = vmul.f32 %v4838_v50, %v1354_v53  ;;  %v1387_v49 = vmul.f32 %v4857_v52, %v1355_v17  ;;  %v1388_v28 = vmul.f32 %v4840_v18, %v1356_v4  ;;  %v4861_v3 = vld [vmem:[#allocation122_spill] sm:$0xff]  ;;  %v4862_v38 = vld [vmem:[#allocation123_spill] sm:$0xff]  ;;  %v4863_v43 = vld [vmem:[#allocation124_spill] sm:$0xff] }
 0x151   : > { %v1389_v0 = vmul.f32 %v3349_v26, %v1357_v46  ;;  %v1390_v61 = vmul.f32 %v4858_v21, %v1358_v44  ;;  %v1391_v47 = vmul.f32 %v4859_v14, %v1359_v35  ;;  %v1392_v31 = vmul.f32 %v4860_v56, %v1360_v62  ;;  %v4864_v53 = vld [vmem:[#allocation125_spill] sm:$0xff]  ;;  %v4865_v17 = vld [vmem:[#allocation126_spill] sm:$0xff]  ;;  %v4866_v4 = vld [vmem:[#allocation127_spill] sm:$0xff] }
 0x152   : > { %v1393_v57 = vmul.f32 %v4861_v3, %v1361_v34  ;;  %v1394_v36 = vmul.f32 %v4862_v38, %v1362_v7  ;;  %v1395_v9 = vmul.f32 %v4863_v43, %v1363_v48  ;;  %v1401_v25 = vadd.f32 0.2548296, %v1369_v22  ;;  %v4867_v26 = vld [vmem:[#allocation128_spill] sm:$0xff]  ;;  %v4868_v21 = vld [vmem:[#allocation129_spill] sm:$0xff]  ;;  %v4869_v7 = vld [vmem:[#allocation66_spill] sm:$0xff] }
 0x153   : > { %v1396_v50 = vmul.f32 %v4864_v53, %v1364_v19  ;;  %v1397_v52 = vmul.f32 %v4865_v17, %v1365_v2  ;;  %v1398_v18 = vmul.f32 %v4866_v4, %v1366_v27  ;;  %v1402_v46 = vadd.f32 0.2548296, %v1370_v29  ;;  %v4871_v17 = vld [vmem:[#allocation84_spill] sm:$0xff] }
 0x154   : > { %v1399_v44 = vmul.f32 %v4867_v26, %v1367_v33  ;;  %v1400_v35 = vmul.f32 %v4868_v21, %v1368_v10  ;;  %v1403_v14 = vadd.f32 0.2548296, %v1371_v5  ;;  %v1404_v62 = vadd.f32 0.2548296, %v1372_v60  ;;  %v4872_v10 = vld [vmem:[#allocation85_spill] sm:$0xff] }
 0x155   : > { %v1405_v56 = vadd.f32 0.2548296, %v1373_v24  ;;  %v1406_v34 = vadd.f32 0.2548296, %v1374_v41  ;;  %v1407_v3 = vadd.f32 0.2548296, %v1375_v45  ;;  %v3526_v27 = vmul.f32 %v4871_v17, %v1401_v25 }
 0x156   : > { %v4870_v48 = vsub.f32 0.0, %v4869_v7  ;;  %v1408_v19 = vadd.f32 0.2548296, %v1376_v13  ;;  %v1409_v53 = vadd.f32 0.2548296, %v1377_v12  ;;  %v3529_v5 = vmul.f32 %v4872_v10, %v1402_v46  ;;  %v4873_v45 = vld [vmem:[#allocation86_spill] sm:$0xff] }
 0x157   : > { %v1410_v2 = vadd.f32 0.2548296, %v1378_v39  ;;  %v1411_v29 = vadd.f32 0.2548296, %v1379_v40  ;;  %v1412_v33 = vadd.f32 0.2548296, %v1380_v37  ;;  %v3532_v21 = vmul.f32 %v4873_v45, %v1403_v14 }
 0x158   : > { %v3523_v22 = vmul.f32 %v4870_v48, %v4869_v7  ;;  %v1413_v26 = vadd.f32 0.2548296, %v1381_v63  ;;  %v1414_v60 = vadd.f32 0.2548296, %v1382_v11  ;;  %v1415_v24 = vadd.f32 0.2548296, %v1383_v59 }
 0x159   : > { %v1416_v41 = vadd.f32 0.2548296, %v1384_v6  ;;  %v1417_v7 = vadd.f32 0.2548296, %v1385_v20  ;;  %v1418_v48 = vadd.f32 0.2548296, %v1386_v8  ;;  %v3535_v12 = vmul.f32 %v4851_v16, %v1404_v62 }
 0x15a   : > { %v1419_v13 = vadd.f32 0.2548296, %v1387_v49  ;;  %v1420_v25 = vadd.f32 0.2548296, %v1388_v28  ;;  %v1421_v39 = vadd.f32 0.2548296, %v1389_v0  ;;  %v3538_v37 = vmul.f32 %v4852_v55, %v1405_v56 }
 0x15b   : > { %v1422_v40 = vadd.f32 0.2548296, %v1390_v61  ;;  %v1423_v63 = vadd.f32 0.2548296, %v1391_v47  ;;  %v1424_v17 = vadd.f32 0.2548296, %v1392_v31  ;;  %v3541_v59 = vmul.f32 %v4853_v15, %v1406_v34 }
 0x15c   : > { %v1425_v11 = vadd.f32 0.2548296, %v1393_v57  ;;  %v1426_v6 = vadd.f32 0.2548296, %v1394_v36  ;;  %v1427_v14 = vadd.f32 0.2548296, %v1395_v9  ;;  %v3544_v8 = vmul.f32 %v4854_v51, %v1407_v3 }
 0x15d   : > { %v1428_v20 = vadd.f32 0.2548296, %v1396_v50  ;;  %v1429_v16 = vadd.f32 0.2548296, %v1397_v52  ;;  %v1430_v49 = vadd.f32 0.2548296, %v1398_v18  ;;  %v3547_v0 = vmul.f32 %v4855_v1, %v1408_v19 }
 0x15e   : > { %v1431_v28 = vadd.f32 0.2548296, %v1399_v44  ;;  %v1432_v55 = vadd.f32 0.2548296, %v1400_v35  ;;  %v3550_v61 = vmul.f32 %v4856_v23, %v1409_v53  ;;  %v3553_v47 = vmul.f32 %v4830_v58, %v1410_v2  ;;  %v4874_v51 = vld [vmem:[#allocation92_spill] sm:$0xff]  ;;  %v4875_v18 = vld [vmem:[#allocation94_spill] sm:$0xff] }
 0x15f   : > { %v3556_v15 = vmul.f32 %v4831_v32, %v1411_v29  ;;  %v3559_v50 = vmul.f32 %v4832_v42, %v1412_v33  ;;  %v1529_v52 = vmul.f32 1.442695, %v4874_v51  ;;  %v1531_v56 = vmul.f32 1.442695, %v4875_v18  ;;  %v4876_v31 = vld [vmem:[#allocation95_spill] sm:$0xff]  ;;  %v4877_v58 = vld [vmem:[#allocation112_spill] sm:$0xff] }
 0x160   : > { %v1533_v1 = vmul.f32 1.442695, %v4876_v31  ;;  %v3565_v3 = vmul.f32 %v4833_v30, %v1413_v26  ;;  %v3568_v23 = vmul.f32 %v4834_v54, %v1414_v60  ;;  %v3571_v57 = vmul.f32 %v4877_v58, %v1415_v24  ;;  %v4878_v32 = vld [vmem:[#allocation97_spill] sm:$0xff]  ;;  %v4880_v53 = vld [vmem:[#allocation114_spill] sm:$0xff]  ;;  %v4882_v62 = vld [vmem:[#allocation115_spill] sm:$0xff] }
 0x161   : > { %v1535_v36 = vmul.f32 1.442695, %v4878_v32  ;;  %v4879_v9 = vld [vmem:[#allocation113_spill] sm:$0xff]  ;;  %v3578_v46 = vmul.f32 %v4880_v53, %v1417_v7  ;;  %2088 = vpow2.f32 %v1529_v52  ;;  %v4881_v44 = vld [vmem:[#allocation98_spill] sm:$0xff]  ;;  %v3582_v30 = vmul.f32 %v4882_v62, %v1418_v48  ;;  %v4883_v26 = vld [vmem:[#allocation116_spill] sm:$0xff] }
 0x162   : > { %v3575_v42 = vmul.f32 %v4879_v9, %v1416_v41  ;;  %v1537_v35 = vmul.f32 1.442695, %v4881_v44  ;;  %v3585_v54 = vmul.f32 %v4883_v26, %v1419_v13  ;;  %2090 = vpow2.f32 %v1531_v56  ;;  %v4884_v34 = vld [vmem:[#allocation99_spill] sm:$0xff]  ;;  %v4885_v2 = vld [vmem:[#allocation117_spill] sm:$0xff]  ;;  %v4886_v33 = vld [vmem:[#allocation118_spill] sm:$0xff] }
 0x163   : > { %v1539_v19 = vmul.f32 1.442695, %v4884_v34  ;;  %v3589_v29 = vmul.f32 %v4885_v2, %v1420_v25  ;;  %v3592_v10 = vmul.f32 %v4886_v33, %v1421_v39  ;;  %2092 = vpow2.f32 %v1533_v1  ;;  %v4887_v60 = vld [vmem:[#allocation101_spill] sm:$0xff]  ;;  %v4888_v41 = vld [vmem:[#allocation119_spill] sm:$0xff]  ;;  %v4889_v7 = vld [vmem:[#allocation120_spill] sm:$0xff] }
 0x164   : > { %v1541_v24 = vmul.f32 1.442695, %v4887_v60  ;;  %v3596_v45 = vmul.f32 %v4888_v41, %v1422_v40  ;;  %v3599_v48 = vmul.f32 %v4889_v7, %v1423_v63  ;;  %2094 = vpow2.f32 %v1535_v36  ;;  %v4890_v13 = vld [vmem:[#allocation102_spill] sm:$0xff]  ;;  %v4891_v52 = vld [vmem:[#allocation121_spill] sm:$0xff]  ;;  %v4893_v39 = vld [vmem:[#allocation104_spill] sm:$0xff] }
 0x165   : > { %v1543_v51 = vmul.f32 1.442695, %v4890_v13  ;;  %v3603_v18 = vmul.f32 %v4891_v52, %v1424_v17  ;;  %v4892_v25 = vld [vmem:[#allocation122_spill] sm:$0xff]  ;;  %2096 = vpow2.f32 %v1537_v35  ;;  %v1545_v31 = vmul.f32 1.442695, %v4893_v39  ;;  %v4894_v63 = vld [vmem:[#allocation105_spill] sm:$0xff] }
 0x166   : > { %v3606_v56 = vmul.f32 %v4892_v25, %v1425_v11  ;;  %v3610_v1 = vmul.f32 %v4862_v38, %v1426_v6  ;;  %v3613_v40 = vmul.f32 %v4863_v43, %v1427_v14  ;;  %2098 = vpow2.f32 %v1539_v19  ;;  %v4895_v32 = vld [vmem:[#allocation125_spill] sm:$0xff]  ;;  %v4896_v17 = vld [vmem:[#allocation126_spill] sm:$0xff]  ;;  %v4898_v11 = vld [vmem:[#allocation107_spill] sm:$0xff] }
 0x167   : > { %v1547_v58 = vmul.f32 1.442695, %v4894_v63  ;;  %v3617_v36 = vmul.f32 %v4895_v32, %v1428_v20  ;;  %v3620_v9 = vmul.f32 %v4896_v17, %v1429_v16  ;;  %2100 = vpow2.f32 %v1541_v24  ;;  %v4900_v38 = vld [vmem:[#allocation128_spill] sm:$0xff]  ;;  %v4903_v35 = vld [vmem:[#allocation129_spill] sm:$0xff]  ;;  %v4905_v20 = vld [vmem:[#allocation67_spill] sm:$0xff] }
 0x168   : > { %v1549_v53 = vmul.f32 1.442695, %v4898_v11  ;;  %v3624_v44 = vmul.f32 %v4866_v4, %v1430_v49  ;;  %v3627_v6 = vmul.f32 %v4900_v38, %v1431_v28  ;;  %2102 = vpow2.f32 %v1543_v51  ;;  %v4902_v43 = vld [vmem:[#allocation108_spill] sm:$0xff]  ;;  %v4907_v34 = vld [vmem:[#allocation110_spill] sm:$0xff]  ;;  %v4910_v33 = vld [vmem:[#allocation69_spill] sm:$0xff] }
 0x169   : > { %4897 = vst [vmem:[#allocation103_spill] sm:$0xff] %v3620_v9  ;;  %v1551_v14 = vmul.f32 1.442695, %v4902_v43  ;;  %v3631_v62 = vmul.f32 %v4903_v35, %v1432_v55  ;;  %v4906_v26 = vsub.f32 0.0, %v4905_v20  ;;  %2104 = vpow2.f32 %v1545_v31  ;;  %v4908_v2 = vld [vmem:[#allocation68_spill] sm:$0xff]  ;;  %v4912_v24 = vld [vmem:[#allocation111_spill] sm:$0xff] }
 0x16a   : > { %4899 = vst [vmem:[#allocation106_spill] sm:$0xff] %v3624_v44  ;;  %4901 = vst [vmem:[#allocation109_spill] sm:$0xff] %v3627_v6  ;;  %v1553_v19 = vmul.f32 1.442695, %v4907_v34  ;;  %v4909_v4 = vsub.f32 0.0, %v4908_v2  ;;  %v4911_v28 = vsub.f32 0.0, %v4910_v33  ;;  %2106 = vpow2.f32 %v1547_v58 }
 0x16b   : > { %4904 = vst [vmem:[#allocation64_spill] sm:$0xff] %v3631_v62  ;;  %v1516_v16 = vmul.f32 %v4906_v26, %v4905_v20  ;;  %v1555_v41 = vmul.f32 1.442695, %v4912_v24  ;;  %v4913_v55 = vld [vmem:[#allocation70_spill] sm:$0xff]  ;;  %v4915_v51 = vld [vmem:[#allocation71_spill] sm:$0xff]  ;;  %2108 = vpow2.f32 %v1549_v53  ;;  %v4918_v63 = vld [vmem:[#allocation72_spill] sm:$0xff] }
 0x16c   : > { %v1517_v49 = vmul.f32 %v4909_v4, %v4908_v2  ;;  %v1518_v60 = vmul.f32 %v4911_v28, %v4910_v33  ;;  %v4914_v7 = vsub.f32 0.0, %v4913_v55  ;;  %v4916_v52 = vsub.f32 0.0, %v4915_v51  ;;  %v4917_v39 = vld [vmem:[#allocation62_spill] sm:$0xff]  ;;  %v4920_v11 = vld [vmem:[#allocation73_spill] sm:$0xff]  ;;  %v4922_v43 = vld [vmem:[#allocation63_spill] sm:$0xff] }
 0x16d   : > { %v1557_v31 = vmul.f32 1.442695, %v4917_v39  ;;  %v4919_v32 = vsub.f32 0.0, %v4918_v63  ;;  %v4921_v58 = vsub.f32 0.0, %v4920_v11  ;;  %2110 = vpow2.f32 %v1551_v14  ;;  %v4923_v20 = vld [vmem:[#allocation74_spill] sm:$0xff]  ;;  %v4925_v2 = vld [vmem:[#allocation75_spill] sm:$0xff] }
 0x16e   : > { %v1519_v13 = vmul.f32 %v4914_v7, %v4913_v55  ;;  %v1520_v25 = vmul.f32 %v4916_v52, %v4915_v51  ;;  %v1559_v35 = vmul.f32 1.442695, %v4922_v43  ;;  %v4924_v26 = vsub.f32 0.0, %v4923_v20  ;;  %v4927_v33 = vld [vmem:[#allocation96_spill] sm:$0xff]  ;;  %v2089_v24 = vpop.eup %2088  ;;  %v4930_v52 = vld [vmem:[#allocation77_spill] sm:$0xff] }
 0x16f   : > { %v1521_v17 = vmul.f32 %v4919_v32, %v4918_v63  ;;  %v1522_v38 = vmul.f32 %v4921_v58, %v4920_v11  ;;  %v4926_v53 = vsub.f32 0.0, %v4925_v2  ;;  %2112 = vpow2.f32 %v1553_v19  ;;  %v4928_v55 = vld [vmem:[#allocation76_spill] sm:$0xff]  ;;  %v2091_v11 = vpop.eup %2090  ;;  %v4933_v58 = vld [vmem:[#allocation78_spill] sm:$0xff]  ;;  %v4935_v19 = vld [vmem:[#allocation79_spill] sm:$0xff] }
 0x170   : > { %v1523_v34 = vmul.f32 %v4924_v26, %v4923_v20  ;;  %v1561_v28 = vmul.f32 1.442695, %v4927_v33  ;;  %v4929_v7 = vsub.f32 0.0, %v4928_v55  ;;  %v4931_v14 = vsub.f32 0.0, %v4930_v52  ;;  %v4932_v63 = vld [vmem:[#allocation100_spill] sm:$0xff]  ;;  %v2093_v33 = vpop.eup %2092 }
 0x171   : > { %v1524_v4 = vmul.f32 %v4926_v53, %v4925_v2  ;;  %2114 = vpow2.f32 %v1555_v41  ;;  %v1563_v32 = vmul.f32 1.442695, %v4932_v63  ;;  %v4934_v43 = vsub.f32 0.0, %v4933_v58  ;;  %v2095_v41 = vpop.eup %2094 }
 0x172   : > { %v1525_v51 = vmul.f32 %v4929_v7, %v4928_v55  ;;  %v1526_v39 = vmul.f32 %v4931_v14, %v4930_v52  ;;  %v4936_v26 = vsub.f32 0.0, %v4935_v19  ;;  %2116 = vpow2.f32 %v1557_v31  ;;  %v2097_v6 = vpop.eup %2096 }
 0x173   : > { %v1527_v20 = vmul.f32 %v4934_v43, %v4933_v58  ;;  %v1565_v53 = vmul.f32 1.442695, %v3523_v22  ;;  %2118 = vpow2.f32 %v1559_v35  ;;  %v1567_v55 = vmul.f32 1.442695, %v1516_v16  ;;  %v2099_v9 = vpop.eup %2098 }
 0x174   : > { %v1528_v2 = vmul.f32 %v4936_v26, %v4935_v19  ;;  %v1569_v7 = vmul.f32 1.442695, %v1517_v49  ;;  %v1571_v52 = vmul.f32 1.442695, %v1518_v60  ;;  %2120 = vpow2.f32 %v1561_v28  ;;  %v2101_v49 = vpop.eup %2100 }
 0x175   : > { %v1573_v14 = vmul.f32 1.442695, %v1519_v13  ;;  %v1575_v63 = vmul.f32 1.442695, %v1520_v25  ;;  %v1577_v62 = vmul.f32 1.442695, %v1521_v17  ;;  %2122 = vpow2.f32 %v1563_v32  ;;  %v2103_v17 = vpop.eup %2102 }
 0x176   : > { %v1579_v58 = vmul.f32 1.442695, %v1522_v38  ;;  %v1581_v43 = vmul.f32 1.442695, %v1523_v34  ;;  %v1583_v44 = vmul.f32 1.442695, %v1524_v4  ;;  %2124 = vpow2.f32 %v1565_v53 }
 0x177   : > { %v1585_v31 = vmul.f32 1.442695, %v1525_v51  ;;  %v3680_v22 = vmul.f32 %v2089_v24, %v3526_v27  ;;  %v3683_v16 = vmul.f32 %v2091_v11, %v3529_v5  ;;  %2126 = vpow2.f32 %v1567_v55  ;;  %v2105_v5 = vpop.eup %2104 }
 0x178   : > { %v1587_v60 = vmul.f32 1.442695, %v1526_v39  ;;  %v3686_v13 = vmul.f32 %v2093_v33, %v3532_v21  ;;  %v3689_v25 = vmul.f32 %v2095_v41, %v3535_v12  ;;  %2128 = vpow2.f32 %v1569_v7  ;;  %v2107_v12 = vpop.eup %2106 }
 0x179   : > { %v1589_v38 = vmul.f32 1.442695, %v1527_v20  ;;  %v3692_v35 = vmul.f32 %v2097_v6, %v3538_v37  ;;  %v3695_v27 = vmul.f32 %v2099_v9, %v3541_v59  ;;  %2130 = vpow2.f32 %v1571_v52  ;;  %v2109_v59 = vpop.eup %2108 }
 0x17a   : > { %v1591_v34 = vmul.f32 1.442695, %v1528_v2  ;;  %v3698_v4 = vmul.f32 %v2101_v49, %v3544_v8  ;;  %v3701_v21 = vmul.f32 %v2103_v17, %v3547_v0  ;;  %2132 = vpow2.f32 %v1573_v14  ;;  %v2111_v0 = vpop.eup %2110 }
 0x17b   : > { %v3704_v28 = vmul.f32 %v2105_v5, %v3550_v61  ;;  %v4541_v37 = vsub.f32 1.0, %v3680_v22  ;;  %v4540_v6 = vsub.f32 1.0, %v3683_v16  ;;  %2134 = vpow2.f32 %v1575_v63 }
 0x17c   : > { %v3709_v9 = vmul.f32 %v2107_v12, %v3553_v47  ;;  %v4537_v8 = vsub.f32 1.0, %v3686_v13  ;;  %v4536_v24 = vsub.f32 1.0, %v3689_v25  ;;  %2136 = vpow2.f32 %v1577_v62  ;;  %v2113_v32 = vpop.eup %2112 }
 0x17d   : > { %v3714_v51 = vmul.f32 %v2109_v59, %v3556_v15  ;;  %v4534_v61 = vsub.f32 1.0, %v3692_v35  ;;  %v4532_v39 = vsub.f32 1.0, %v3695_v27  ;;  %2138 = vpow2.f32 %v1579_v58 }
 0x17e   : > { %v3719_v11 = vmul.f32 %v2111_v0, %v3559_v50  ;;  %v4530_v47 = vsub.f32 1.0, %v3698_v4  ;;  %v4528_v20 = vsub.f32 1.0, %v3701_v21  ;;  %v2115_v19 = vpop.eup %2114  ;;  %2140 = vpow2.f32 %v1581_v43  ;;  %v4942_v0 = vld [vmem:[#allocation25_spill] sm:$0xff] }
 0x17f   : > { %v3724_v62 = vmul.f32 %v2113_v32, %v3565_v3  ;;  %v4529_v15 = vsub.f32 1.0, %v3704_v28  ;;  %v4531_v26 = vsub.f32 1.0, %v3709_v9  ;;  %v2117_v2 = vpop.eup %2116  ;;  %2142 = vpow2.f32 %v1583_v44 }
 0x180   : > { %v3729_v53 = vmul.f32 %v2115_v19, %v3568_v23  ;;  %v4533_v50 = vsub.f32 1.0, %v3714_v51  ;;  %v4535_v33 = vsub.f32 1.0, %v3719_v11  ;;  %v2119_v55 = vpop.eup %2118  ;;  %2144 = vpow2.f32 %v1585_v31 }
 0x181   : > { %v3734_v7 = vmul.f32 %v2117_v2, %v3571_v57  ;;  %v4538_v3 = vsub.f32 1.0, %v3724_v62  ;;  %v3739_v52 = vsub.f32 0.0, %v4541_v37  ;;  %v2121_v41 = vpop.eup %2120  ;;  %2146 = vpow2.f32 %v1587_v60  ;;  %v4955_v37 = vld [vmem:[#allocation37_spill] sm:$0xff] }
 0x182   : > { %v3742_v23 = vmul.f32 %v2119_v55, %v3575_v42  ;;  %v4539_v44 = vsub.f32 1.0, %v3729_v53  ;;  %v3747_v14 = vsub.f32 0.0, %v4540_v6  ;;  %v2123_v63 = vpop.eup %2122  ;;  %2148 = vpow2.f32 %v1589_v38 }
 0x183   : > { %v3750_v57 = vmul.f32 %v2121_v41, %v3578_v46  ;;  %v4542_v58 = vsub.f32 1.0, %v3734_v7  ;;  %v3755_v43 = vsub.f32 0.0, %v4537_v8  ;;  %v2125_v31 = vpop.eup %2124  ;;  %2150 = vpow2.f32 %v1591_v34 }
 0x184   : > { %4937 = vst [vmem:[#allocation65_spill] sm:$0xff] %v3742_v23  ;;  %v3758_v42 = vmul.f32 %v2123_v63, %v3582_v30  ;;  %v4543_v49 = vsub.f32 1.0, %v3742_v23  ;;  %v3763_v60 = vsub.f32 0.0, %v4536_v24  ;;  %v2127_v17 = vpop.eup %2126  ;;  %v3766_v46 = vmul.f32 %v2125_v31, %v3585_v54  ;;  %v4996_v23 = vld [vmem:[#allocation59_spill] sm:$0xff] }
 0x185   : > { %4938 = vst [vmem:[#allocation87_spill] sm:$0xff] %v3750_v57  ;;  %v4544_v38 = vsub.f32 1.0, %v3750_v57  ;;  %v3771_v5 = vsub.f32 0.0, %v4534_v61  ;;  %v3775_v30 = vsub.f32 0.0, %v4532_v39  ;;  %v2129_v34 = vpop.eup %2128  ;;  %v3778_v12 = vmul.f32 %v2127_v17, %v3589_v29  ;;  %v4944_v29 = vld [vmem:[#allocation26_spill] sm:$0xff] }
 0x186   : > { %4939 = vst [vmem:[#allocation88_spill] sm:$0xff] %v3758_v42  ;;  %4940 = vst [vmem:[#allocation89_spill] sm:$0xff] %v3766_v46  ;;  %v4546_v59 = vsub.f32 1.0, %v3758_v42  ;;  %vm1657_vm1 = vcmp.ge.f32.partialorder %v4942_v0, 0.0  ;;  %v3784_v54 = vsub.f32 0.0, %v4530_v47  ;;  %v3788_v32 = vsub.f32 0.0, %v4528_v20  ;;  %v2131_v19 = vpop.eup %2130 }
 0x187   : > { %4941 = vst [vmem:[#allocation90_spill] sm:$0xff] %v3778_v12  ;;  %v3791_v2 = vmul.f32 %v2129_v34, %v3592_v10  ;;  %v4549_v55 = vsub.f32 1.0, %v3766_v46  ;;  %vm1658_vm2 = vcmp.ge.f32.partialorder %v4944_v29, 0.0  ;;  %v3797_v41 = vsub.f32 0.0, %v4529_v15  ;;  %v2133_v31 = vpop.eup %2132  ;;  %v4946_v10 = vld [vmem:[#allocation27_spill] sm:$0xff]  ;;  %v4961_v20 = vld [vmem:[#allocation40_spill] sm:$0xff] }
 0x188   : > { %v3801_v63 = vsub.f32 0.0, %v4531_v26  ;;  %v3804_v17 = vmul.f32 %v2131_v19, %v3596_v45  ;;  %vm1659_vm3 = vcmp.ge.f32.partialorder %v4946_v10, 0.0  ;;  %v3810_v34 = vsub.f32 0.0, %v4533_v50  ;;  %v2135_v47 = vpop.eup %2134  ;;  %v4948_v45 = vld [vmem:[#allocation28_spill] sm:$0xff]  ;;  %v4966_v57 = vld [vmem:[#allocation42_spill] sm:$0xff]  ;;  %v4992_v0 = vld [vmem:[#allocation109_spill] sm:$0xff] }
 0x189   : > { %4943 = vst [vmem:[#allocation91_spill] sm:$0xff] %v3791_v2  ;;  %v3814_v15 = vsub.f32 0.0, %v4535_v33  ;;  %v3817_v26 = vmul.f32 %v2133_v31, %v3599_v48  ;;  %vm1660_vm4 = vcmp.ge.f32.partialorder %v4948_v45, 0.0  ;;  %v3823_v19 = vsub.f32 0.0, %v4538_v3  ;;  %v2137_v61 = vpop.eup %2136  ;;  %v4950_v48 = vld [vmem:[#allocation34_spill] sm:$0xff]  ;;  %v4951_v31 = vld [vmem:[#allocation35_spill] sm:$0xff] }
 0x18a   : > { %4945 = vst [vmem:[#allocation93_spill] sm:$0xff] %v3804_v17  ;;  %v3827_v50 = vsub.f32 0.0, %v4539_v44  ;;  %v3830_v33 = vmul.f32 %v2135_v47, %v3603_v18  ;;  %vm1661_vm5 = vcmp.ge.f32.partialorder %v4950_v48, 0.0  ;;  %vm1662_vm6 = vcmp.ge.f32.partialorder %v4951_v31, 0.0  ;;  %v2139_v44 = vpop.eup %2138  ;;  %v4954_v47 = vld [vmem:[#allocation36_spill] sm:$0xff]  ;;  %v4960_v18 = vld [vmem:[#allocation39_spill] sm:$0xff] }
 0x18b   : > { %4947 = vst [vmem:[#allocation123_spill] sm:$0xff] %v3817_v26  ;;  %v3837_v8 = vsub.f32 0.0, %v4542_v58  ;;  %v3841_v3 = vsub.f32 0.0, %v4543_v49  ;;  %v3844_v6 = vmul.f32 %v2137_v61, %v3606_v56  ;;  %vm1663_vm7 = vcmp.ge.f32.partialorder %v4954_v47, 0.0  ;;  %v2141_v49 = vpop.eup %2140  ;;  %v4959_v61 = vld [vmem:[#allocation38_spill] sm:$0xff]  ;;  %v4965_v56 = vld [vmem:[#allocation41_spill] sm:$0xff] }
 0x18c   : > { %4949 = vst [vmem:[#allocation124_spill] sm:$0xff] %v3830_v33  ;;  %vm1664_vm8 = vcmp.ge.f32.partialorder %v4955_v37, 0.0  ;;  %v3851_v24 = vsub.f32 0.0, %v4544_v38  ;;  %v3855_v58 = vsub.f32 0.0, %v4546_v59  ;;  %v3858_v39 = vmul.f32 %v2139_v44, %v3610_v1  ;;  %v4994_v44 = vld [vmem:[#allocation57_spill] sm:$0xff]  ;;  %v4998_v29 = vld [vmem:[#allocation64_spill] sm:$0xff] }
 0x18d   : > { %4952 = vst [vmem:[#allocation127_spill] sm:$0xff] %v3841_v3  ;;  %4953 = vst [vmem:[#allocation66_spill] sm:$0xff] %v3844_v6  ;;  %vm1665_vm9 = vcmp.ge.f32.partialorder %v4959_v61, 0.0  ;;  %vm1666_vm10 = vcmp.ge.f32.partialorder %v4960_v18, 0.0  ;;  %vm1667_vm11 = vcmp.ge.f32.partialorder %v4961_v20, 0.0  ;;  %v3866_v38 = vsub.f32 0.0, %v4549_v55 }
 0x18e   : > { %4956 = vst [vmem:[#allocation84_spill] sm:$0xff] %v3851_v24  ;;  %4957 = vst [vmem:[#allocation85_spill] sm:$0xff] %v3855_v58  ;;  %v4963_v42 = vsub.f32 1.0, %v3778_v12  ;;  %v2143_v58 = vpop.eup %2142  ;;  %v3873_v1 = vmul.f32 %v2141_v49, %v3613_v40  ;;  %vm1668_vm12 = vcmp.ge.f32.partialorder %v4965_v56, 0.0  ;;  %v4967_v24 = vld [vmem:[#allocation43_spill] sm:$0xff]  ;;  %v4968_v46 = vsub.f32 1.0, %v3791_v2 }
 0x18f   : > { %4958 = vst [vmem:[#allocation86_spill] sm:$0xff] %v3858_v39  ;;  %4962 = vst [vmem:[#allocation92_spill] sm:$0xff] %v3866_v38  ;;  %v4970_v12 = vsub.f32 1.0, %v3804_v17  ;;  %v3888_v40 = vmul.f32 %v2143_v58, %v3617_v36  ;;  %v4986_v3 = vld [vmem:[#allocation52_spill] sm:$0xff]  ;;  %vm1684_vm13 = vcmp.ge.f32.partialorder %v4994_v44, 0.0  ;;  %v4995_v38 = vld [vmem:[#allocation58_spill] sm:$0xff] }
 0x190   : > { %v3870_v59 = vsub.f32 0.0, %v4963_v42  ;;  %v3881_v55 = vsub.f32 0.0, %v4968_v46  ;;  %v4976_v46 = vsub.f32 1.0, %v3817_v26  ;;  %v1651_v58 = vsub.f32 1.0, %v3873_v1  ;;  %v5020_v18 = vld [vmem:[#allocation45_spill] sm:$0xff]  ;;  %v5025_v56 = vld [vmem:[#allocation46_spill] sm:$0xff] }
 0x191   : > { %v3885_v42 = vsub.f32 0.0, %v4970_v12  ;;  %v4977_v12 = vsub.f32 1.0, %v3830_v33  ;;  %v4983_v26 = vsub.f32 1.0, %v3844_v6  ;;  %v4985_v33 = vld [vmem:[#allocation106_spill] sm:$0xff]  ;;  %v1652_v49 = vsub.f32 1.0, %v3888_v40 }
 0x192   : > { %4964 = vst [vmem:[#allocation94_spill] sm:$0xff] %v3870_v59  ;;  %4969 = vst [vmem:[#allocation95_spill] sm:$0xff] %v3881_v55  ;;  %v2145_v59 = vpop.eup %2144  ;;  %v1711_v2 = vsub.f32 0.0, %v4976_v46  ;;  %v4978_v55 = vld [vmem:[#allocation103_spill] sm:$0xff]  ;;  %vm1679_vm0 = vcmp.ge.f32.partialorder %v4986_v3, 0.0  ;;  %vm1685_vm15 = vcmp.ge.f32.partialorder %v4995_v38, 0.0 }
 0x193   : > { %4971 = vst [vmem:[#allocation112_spill] sm:$0xff] %v3885_v42  ;;  %v1712_v17 = vsub.f32 0.0, %v4977_v12  ;;  %v2147_v42 = vpop.eup %2146  ;;  %v3900_v36 = vmul.f32 %v2145_v59, %v4978_v55  ;;  %v1713_v46 = vsub.f32 0.0, %v4983_v26  ;;  %v4984_v12 = vsub.f32 1.0, %v3680_v22  ;;  %v5083_v3 = vld [vmem:[#allocation9_spill] sm:$0xff] }
 0x194   : > { %v2149_v55 = vpop.eup %2148  ;;  %v1622_v1 = vmul.f32 %v2147_v42, %v4985_v33  ;;  %v4990_v26 = vsub.f32 1.0, %v3858_v39  ;;  %v4991_v22 = vsub.f32 1.0, %v3683_v16  ;;  %vm1686_vm14 = vcmp.ge.f32.partialorder %v4996_v23, 0.0  ;;  %v5017_v48 = vld [vmem:[#allocation127_spill] sm:$0xff] }
 0x195   : > { %v1721_v59 = vsel %vm1657_vm1, %v4984_v12, %v3739_v52  ;;  %v2151_v33 = vpop.eup %2150  ;;  %v1623_v42 = vmul.f32 %v2149_v55, %v4992_v0  ;;  %v1653_v40 = vsub.f32 1.0, %v3900_v36  ;;  %v4997_v16 = vsub.f32 1.0, %v3686_v13  ;;  %v4999_v0 = vld [vmem:[#allocation60_spill] sm:$0xff]  ;;  %v5000_v36 = vld [vmem:[#allocation61_spill] sm:$0xff] }
 0x196   : > { %v1714_v6 = vsub.f32 0.0, %v4990_v26  ;;  %v1722_v52 = vsel %vm1658_vm2, %v4991_v22, %v3747_v14  ;;  %v1715_v26 = vsub.f32 0.0, %v1651_v58  ;;  %v1624_v22 = vmul.f32 %v2151_v33, %v4998_v29  ;;  %v5032_v29 = vld [vmem:[#allocation92_spill] sm:$0xff] }
 0x197   : > { %v1723_v14 = vsel %vm1659_vm3, %v4997_v16, %v3755_v43  ;;  %v1654_v55 = vsub.f32 1.0, %v1622_v1  ;;  %vm1687_vm2 = vcmp.ge.f32.partialorder %v4999_v0, 0.0  ;;  %vm1688_vm1 = vcmp.ge.f32.partialorder %v5000_v36, 0.0 }
 0x198   : > { %v1716_v12 = vsub.f32 0.0, %v1652_v49  ;;  %v5001_v38 = vsub.f32 1.0, %v3689_v25  ;;  %v1655_v44 = vsub.f32 1.0, %v1623_v42  ;;  %v1717_v39 = vsub.f32 0.0, %v1653_v40  ;;  %v5030_v42 = vld [vmem:[#allocation47_spill] sm:$0xff] }
 0x199   : > { %v5002_v13 = vsub.f32 1.0, %v3692_v35  ;;  %v5003_v10 = vsub.f32 1.0, %v3695_v27  ;;  %v1656_v33 = vsub.f32 1.0, %v1624_v22  ;;  %v1718_v16 = vsub.f32 0.0, %v1654_v55 }
 0x19a   : > { %v1724_v23 = vsel %vm1660_vm4, %v5001_v38, %v3763_v60  ;;  %v5004_v25 = vsub.f32 1.0, %v3698_v4  ;;  %v5005_v35 = vsub.f32 1.0, %v3701_v21  ;;  %v5006_v27 = vsub.f32 1.0, %v3704_v28 }
 0x19b   : > { %v1725_v43 = vsel %vm1661_vm5, %v5002_v13, %v3771_v5  ;;  %v1726_v1 = vsel %vm1662_vm6, %v5003_v10, %v3775_v30  ;;  %v1719_v5 = vsub.f32 0.0, %v1655_v44  ;;  %v5007_v45 = vsub.f32 1.0, %v3709_v9  ;;  %v5035_v13 = vld [vmem:[#allocation48_spill] sm:$0xff] }
 0x19c   : > { %v1727_v60 = vsel %vm1663_vm7, %v5004_v25, %v3784_v54  ;;  %v1728_v38 = vsel %vm1664_vm8, %v5005_v35, %v3788_v32  ;;  %v1729_v30 = vsel %vm1665_vm9, %v5006_v27, %v3797_v41  ;;  %v5008_v54 = vsub.f32 1.0, %v3714_v51  ;;  %v5037_v25 = vld [vmem:[#allocation94_spill] sm:$0xff] }
 0x19d   : > { %v1730_v4 = vsel %vm1666_vm10, %v5007_v45, %v3801_v63  ;;  %v1720_v37 = vsub.f32 0.0, %v1656_v33  ;;  %v5009_v32 = vsub.f32 1.0, %v3719_v11  ;;  %v5010_v41 = vsub.f32 1.0, %v3724_v62  ;;  %v5038_v35 = vld [vmem:[#allocation90_spill] sm:$0xff]  ;;  %v5040_v45 = vld [vmem:[#allocation49_spill] sm:$0xff] }
 0x19e   : > { %v1731_v21 = vsel %vm1667_vm11, %v5008_v54, %v3810_v34  ;;  %vm5011_vm3 = vcmp.ge.f32.partialorder %v4966_v57, 0.0  ;;  %v5012_v63 = vsub.f32 1.0, %v3729_v53  ;;  %vm5013_vm4 = vcmp.ge.f32.partialorder %v4967_v24, 0.0  ;;  %v5015_v34 = vld [vmem:[#allocation44_spill] sm:$0xff]  ;;  %v5027_v24 = vld [vmem:[#allocation85_spill] sm:$0xff] }
 0x19f   : > { %v1732_v28 = vsel %vm1668_vm12, %v5009_v32, %v3814_v15  ;;  %v1733_v9 = vsel %vm5011_vm3, %v5010_v41, %v3823_v19  ;;  %v5014_v20 = vsub.f32 1.0, %v3734_v7  ;;  %vm5016_vm5 = vcmp.ge.f32.partialorder %v5015_v34, 0.0  ;;  %v5018_v15 = vld [vmem:[#allocation65_spill] sm:$0xff]  ;;  %v5022_v57 = vld [vmem:[#allocation84_spill] sm:$0xff]  ;;  %v5023_v19 = vld [vmem:[#allocation87_spill] sm:$0xff] }
 0x1a0   : > { %v1734_v51 = vsel %vm5013_vm4, %v5012_v63, %v3827_v50  ;;  %v5019_v31 = vsub.f32 1.0, %v5018_v15  ;;  %vm5021_vm6 = vcmp.ge.f32.partialorder %v5020_v18, 0.0  ;;  %v5024_v47 = vsub.f32 1.0, %v5023_v19  ;;  %v5028_v50 = vld [vmem:[#allocation88_spill] sm:$0xff]  ;;  %v5042_v32 = vld [vmem:[#allocation95_spill] sm:$0xff]  ;;  %v5048_v15 = vld [vmem:[#allocation93_spill] sm:$0xff] }
 0x1a1   : > { %v1735_v11 = vsel %vm5016_vm5, %v5014_v20, %v3837_v8  ;;  %vm5026_vm7 = vcmp.ge.f32.partialorder %v5025_v56, 0.0  ;;  %v5029_v61 = vsub.f32 1.0, %v5028_v50  ;;  %vm5031_vm8 = vcmp.ge.f32.partialorder %v5030_v42, 0.0  ;;  %v5033_v8 = vld [vmem:[#allocation89_spill] sm:$0xff]  ;;  %v5043_v41 = vld [vmem:[#allocation91_spill] sm:$0xff]  ;;  %v5045_v20 = vld [vmem:[#allocation50_spill] sm:$0xff] }
 0x1a2   : > { %v1736_v62 = vsel %vm5021_vm6, %v5019_v31, %v5017_v48  ;;  %v1737_v53 = vsel %vm5026_vm7, %v5024_v47, %v5022_v57  ;;  %v5034_v22 = vsub.f32 1.0, %v5033_v8  ;;  %vm5036_vm9 = vcmp.ge.f32.partialorder %v5035_v13, 0.0  ;;  %v5047_v48 = vld [vmem:[#allocation112_spill] sm:$0xff]  ;;  %v5050_v18 = vld [vmem:[#allocation51_spill] sm:$0xff] }
 0x1a3   : > { %v1738_v7 = vsel %vm5031_vm8, %v5029_v61, %v5027_v24  ;;  %v5039_v27 = vsub.f32 1.0, %v5038_v35  ;;  %vm5041_vm10 = vcmp.ge.f32.partialorder %v5040_v45, 0.0  ;;  %v5044_v63 = vsub.f32 1.0, %v5043_v41  ;;  %v5052_v19 = vld [vmem:[#allocation123_spill] sm:$0xff]  ;;  %v5054_v24 = vld [vmem:[#allocation124_spill] sm:$0xff]  ;;  %v5056_v61 = vld [vmem:[#allocation53_spill] sm:$0xff] }
 0x1a4   : > { %v1739_v10 = vsel %vm5036_vm9, %v5034_v22, %v5032_v29  ;;  %vm5046_vm11 = vcmp.ge.f32.partialorder %v5045_v20, 0.0  ;;  %v5049_v31 = vsub.f32 1.0, %v5048_v15  ;;  %vm5051_vm12 = vcmp.ge.f32.partialorder %v5050_v18, 0.0  ;;  %v5058_v29 = vld [vmem:[#allocation66_spill] sm:$0xff] }
 0x1a5   : > { %v1740_v54 = vsel %vm5041_vm10, %v5039_v27, %v5037_v25  ;;  %v1741_v34 = vsel %vm5046_vm11, %v5044_v63, %v5042_v32  ;;  %v5053_v47 = vsub.f32 1.0, %v5052_v19  ;;  %v5055_v50 = vsub.f32 1.0, %v5054_v24  ;;  %v5060_v22 = vld [vmem:[#allocation54_spill] sm:$0xff]  ;;  %v5064_v27 = vld [vmem:[#allocation55_spill] sm:$0xff]  ;;  %v5066_v32 = vld [vmem:[#allocation56_spill] sm:$0xff] }
 0x1a6   : > { %v1742_v57 = vsel %vm5051_vm12, %v5049_v31, %v5047_v48  ;;  %vm5057_vm3 = vcmp.ge.f32.partialorder %v5056_v61, 0.0  ;;  %v5059_v8 = vsub.f32 1.0, %v5058_v29  ;;  %vm5061_vm4 = vcmp.ge.f32.partialorder %v5060_v22, 0.0  ;;  %v5062_v25 = vld [vmem:[#allocation86_spill] sm:$0xff]  ;;  %v5077_v61 = vld [vmem:[#allocation3_spill] sm:$0xff]  ;;  %v5078_v29 = vld [vmem:[#allocation4_spill] sm:$0xff] }
 0x1a7   : > { %v1743_v56 = vsel %vm1679_vm0, %v5053_v47, %v1711_v2  ;;  %v1744_v42 = vsel %vm5057_vm3, %v5055_v50, %v1712_v17  ;;  %v5063_v35 = vsub.f32 1.0, %v5062_v25  ;;  %vm5065_vm5 = vcmp.ge.f32.partialorder %v5064_v27, 0.0  ;;  %v5079_v22 = vld [vmem:[#allocation5_spill] sm:$0xff]  ;;  %v5080_v25 = vld [vmem:[#allocation6_spill] sm:$0xff]  ;;  %v5081_v27 = vld [vmem:[#allocation7_spill] sm:$0xff] }
 0x1a8   : > { %v1745_v13 = vsel %vm5061_vm4, %v5059_v8, %v1713_v46  ;;  %vm5067_vm6 = vcmp.ge.f32.partialorder %v5066_v32, 0.0  ;;  %v1748_v2 = vsel %vm1684_vm13, %v1652_v49, %v1716_v12  ;;  %v1749_v20 = vsel %vm1685_vm15, %v1653_v40, %v1717_v39  ;;  %v5082_v32 = vld [vmem:[#allocation8_spill] sm:$0xff]  ;;  %v5084_v63 = vld [vmem:[#allocation10_spill] sm:$0xff]  ;;  %v5085_v17 = vld [vmem:[#allocation11_spill] sm:$0xff] }
 0x1a9   : > { %v1746_v45 = vsel %vm5065_vm5, %v5063_v35, %v1714_v6  ;;  %v1747_v41 = vsel %vm5067_vm6, %v1651_v58, %v1715_v26  ;;  %v1750_v48 = vsel %vm1686_vm14, %v1654_v55, %v1718_v16  ;;  %v1751_v46 = vsel %vm1687_vm2, %v1655_v44, %v1719_v5 }
 0x1aa   : > { %v1752_v15 = vsel %vm1688_vm1, %v1656_v33, %v1720_v37  ;;  %v1753_v31 = vadd.f32 1.0, %v1721_v59  ;;  %v1754_v6 = vadd.f32 1.0, %v1722_v52  ;;  %v1755_v18 = vadd.f32 1.0, %v1723_v14 }
 0x1ab   : > { %v1756_v19 = vadd.f32 1.0, %v1724_v23  ;;  %v1757_v58 = vadd.f32 1.0, %v1725_v43  ;;  %v1758_v26 = vadd.f32 1.0, %v1726_v1  ;;  %v1759_v47 = vadd.f32 1.0, %v1727_v60 }
 0x1ac   : > { %v1760_v49 = vadd.f32 1.0, %v1728_v38  ;;  %v1761_v12 = vadd.f32 1.0, %v1729_v30  ;;  %v1762_v24 = vadd.f32 1.0, %v1730_v4  ;;  %v1763_v39 = vadd.f32 1.0, %v1731_v21 }
 0x1ad   : > { %v1764_v40 = vadd.f32 1.0, %v1732_v28  ;;  %v1765_v50 = vadd.f32 1.0, %v1733_v9  ;;  %v1766_v55 = vadd.f32 1.0, %v1734_v51  ;;  %v1767_v16 = vadd.f32 1.0, %v1735_v11  ;;  %v5071_v28 = vld [vmem:[#allocation29_spill] sm:$0xff]  ;;  %v5072_v51 = vld [vmem:[#allocation30_spill] sm:$0xff] }
 0x1ae   : > { %v1768_v0 = vadd.f32 1.0, %v1736_v62  ;;  %v1769_v44 = vadd.f32 1.0, %v1737_v53  ;;  %v1770_v5 = vadd.f32 1.0, %v1738_v7  ;;  %v1771_v36 = vadd.f32 1.0, %v1739_v10  ;;  %v5073_v62 = vld [vmem:[#allocation31_spill] sm:$0xff]  ;;  %v5074_v7 = vld [vmem:[#allocation32_spill] sm:$0xff] }
 0x1af   : > { %v1772_v33 = vadd.f32 1.0, %v1740_v54  ;;  %v1773_v59 = vadd.f32 1.0, %v1741_v34  ;;  %v1774_v52 = vadd.f32 1.0, %v1742_v57  ;;  %v1775_v14 = vadd.f32 1.0, %v1743_v56  ;;  %v5075_v54 = vld [vmem:[#allocation33_spill] sm:$0xff]  ;;  %v5076_v57 = vld [vmem:[#allocation2_spill] sm:$0xff] }
 0x1b0   : > { %v1776_v23 = vadd.f32 1.0, %v1744_v42  ;;  %v1777_v43 = vadd.f32 1.0, %v1745_v13  ;;  %v1778_v1 = vadd.f32 1.0, %v1746_v45  ;;  %v1779_v60 = vadd.f32 1.0, %v1747_v41 }
 0x1b1   : > { %v1780_v38 = vadd.f32 1.0, %v1748_v2  ;;  %v1781_v30 = vadd.f32 1.0, %v1749_v20  ;;  %v1782_v4 = vadd.f32 1.0, %v1750_v48  ;;  %v1783_v21 = vadd.f32 1.0, %v1751_v46  ;;  %v5086_v46 = vld [vmem:[#allocation12_spill] sm:$0xff] }
 0x1b2   : > { %v1784_v37 = vadd.f32 1.0, %v1752_v15  ;;  %v4065_v9 = vmul.f32 %v1753_v31, %v5071_v28  ;;  %v4068_v11 = vmul.f32 %v1754_v6, %v5072_v51  ;;  %v4071_v53 = vmul.f32 %v1755_v18, %v5073_v62  ;;  %v5087_v31 = vld [vmem:[#allocation13_spill] sm:$0xff]  ;;  %v5088_v18 = vld [vmem:[#allocation14_spill] sm:$0xff] }
 0x1b3   : > { %v4074_v10 = vmul.f32 %v1756_v19, %v5074_v7  ;;  %v4077_v34 = vmul.f32 %v1757_v58, %v5075_v54  ;;  %v4080_v56 = vmul.f32 %v1758_v26, %v5076_v57  ;;  %v4083_v42 = vmul.f32 %v1759_v47, %v5077_v61  ;;  %v5089_v58 = vld [vmem:[#allocation15_spill] sm:$0xff]  ;;  %v5090_v47 = vld [vmem:[#allocation16_spill] sm:$0xff] }
 0x1b4   : > { %v4086_v8 = vmul.f32 %v1760_v49, %v5078_v29  ;;  %v4089_v13 = vmul.f32 %v1761_v12, %v5079_v22  ;;  %v4092_v35 = vmul.f32 %v1762_v24, %v5080_v25  ;;  %v4095_v45 = vmul.f32 %v1763_v39, %v5081_v27  ;;  %v5091_v12 = vld [vmem:[#allocation17_spill] sm:$0xff]  ;;  %v5092_v39 = vld [vmem:[#allocation18_spill] sm:$0xff] }
 0x1b5   : > { %v4098_v41 = vmul.f32 %v1764_v40, %v5082_v32  ;;  %v4101_v2 = vmul.f32 %v1765_v50, %v5083_v3  ;;  %v4104_v20 = vmul.f32 %v1766_v55, %v5084_v63  ;;  %v4107_v48 = vmul.f32 %v1767_v16, %v5085_v17  ;;  %v5093_v50 = vld [vmem:[#allocation19_spill] sm:$0xff]  ;;  %v5094_v16 = vld [vmem:[#allocation20_spill] sm:$0xff] }
 0x1b6   : > { %v4110_v15 = vmul.f32 %v1768_v0, %v5086_v46  ;;  %v4113_v6 = vmul.f32 %v1769_v44, %v5087_v31  ;;  %v4116_v19 = vmul.f32 %v1770_v5, %v5088_v18  ;;  %v4119_v26 = vmul.f32 %v1771_v36, %v5089_v58  ;;  %v5095_v44 = vld [vmem:[#allocation21_spill] sm:$0xff]  ;;  %v5096_v36 = vld [vmem:[#allocation22_spill] sm:$0xff] }
 0x1b7   : > { %v4122_v49 = vmul.f32 %v1772_v33, %v5090_v47  ;;  %v4125_v24 = vmul.f32 %v1773_v59, %v5091_v12  ;;  %v4128_v40 = vmul.f32 %v1774_v52, %v5092_v39  ;;  %v4131_v55 = vmul.f32 %v1775_v14, %v5093_v50  ;;  %v5097_v33 = vld [vmem:[#allocation23_spill] sm:$0xff]  ;;  %v5098_v59 = vld [vmem:[#allocation24_spill] sm:$0xff]  ;;  %v5100_v14 = vld [vmem:[#allocation81_spill] sm:$0xff] }
 0x1b8   : > { %v4134_v0 = vmul.f32 %v1776_v23, %v5094_v16  ;;  %v4137_v5 = vmul.f32 %v1777_v43, %v5095_v44  ;;  %v4140_v28 = vmul.f32 %v1778_v1, %v5096_v36  ;;  %v4143_v51 = vmul.f32 %v1779_v60, %v5097_v33  ;;  %v5099_v52 = vld [vmem:[#allocation80_spill] sm:$0xff]  ;;  %v5101_v23 = vld [vmem:[#allocation82_spill] sm:$0xff]  ;;  %v5102_v43 = vld [vmem:[#allocation83_spill] sm:$0xff] }
 0x1b9   : > { %v4146_v62 = vmul.f32 %v1780_v38, %v5098_v59  ;;  %v4149_v7 = vmul.f32 %v1781_v30, %v5099_v52  ;;  %v4152_v54 = vmul.f32 %v1782_v4, %v5100_v14  ;;  %v4155_v57 = vmul.f32 %v1783_v21, %v5101_v23 }
 0x1ba   : > { %v4158_v61 = vmul.f32 %v1784_v37, %v5102_v43  ;;  %v1817_v1 = vpack.c.bf16 %v4065_v9, %v4065_v9  ;;  %v1818_v60 = vpack.c.bf16 %v4068_v11, %v4068_v11  ;;  %v1819_v38 = vpack.c.bf16 %v4071_v53, %v4071_v53 }
 0x1bb   : > { %v1820_v30 = vpack.c.bf16 %v4074_v10, %v4074_v10  ;;  %v1821_v4 = vpack.c.bf16 %v4077_v34, %v4077_v34  ;;  %v1822_v21 = vpack.c.bf16 %v4080_v56, %v4080_v56  ;;  %v1823_v37 = vpack.c.bf16 %v4083_v42, %v4083_v42 }
 0x1bc   : > { %v1824_v9 = vpack.c.bf16 %v4086_v8, %v4086_v8  ;;  %v1825_v11 = vpack.c.bf16 %v4089_v13, %v4089_v13  ;;  %v1826_v53 = vpack.c.bf16 %v4092_v35, %v4092_v35  ;;  %v1827_v10 = vpack.c.bf16 %v4095_v45, %v4095_v45 }
 0x1bd   : > { %v1828_v34 = vpack.c.bf16 %v4098_v41, %v4098_v41  ;;  %v1829_v56 = vpack.c.bf16 %v4101_v2, %v4101_v2  ;;  %v1830_v42 = vpack.c.bf16 %v4104_v20, %v4104_v20  ;;  %v1831_v29 = vpack.c.bf16 %v4107_v48, %v4107_v48 }
 0x1be   : > { %v1832_v8 = vpack.c.bf16 %v4110_v15, %v4110_v15  ;;  %v1833_v22 = vpack.c.bf16 %v4113_v6, %v4113_v6  ;;  %v1834_v13 = vpack.c.bf16 %v4116_v19, %v4116_v19  ;;  %v1835_v25 = vpack.c.bf16 %v4119_v26, %v4119_v26 }
 0x1bf   : > { %v1836_v35 = vpack.c.bf16 %v4122_v49, %v4122_v49  ;;  %v1837_v27 = vpack.c.bf16 %v4125_v24, %v4125_v24  ;;  %v1838_v45 = vpack.c.bf16 %v4128_v40, %v4128_v40  ;;  %v1839_v32 = vpack.c.bf16 %v4131_v55, %v4131_v55 }
 0x1c0   : > { %v1840_v41 = vpack.c.bf16 %v4134_v0, %v4134_v0  ;;  %v1841_v3 = vpack.c.bf16 %v4137_v5, %v4137_v5  ;;  %v1842_v2 = vpack.c.bf16 %v4140_v28, %v4140_v28  ;;  %v1843_v63 = vpack.c.bf16 %v4143_v51, %v4143_v51 }
 0x1c1   : > { %v1844_v20 = vpack.c.bf16 %v4146_v62, %v4146_v62  ;;  %v1845_v17 = vpack.c.bf16 %v4149_v7, %v4149_v7  ;;  %v1846_v48 = vpack.c.bf16 %v4152_v54, %v4152_v54  ;;  %v1847_v46 = vpack.c.bf16 %v4155_v57, %v4155_v57 }
 0x1c2   : > { %v1848_v15 = vpack.c.bf16 %v4158_v61, %v4158_v61  ;;  %vm1849_vm13 = vcmask 60416  }
 0x1c3   : > { %1850 = vst.msk [vmem:[%s4208_s25] sm:$0xf] %vm1849_vm13, %v1817_v1  ;;  %1851 = vst.msk [vmem:[%s4208_s25 + $0x4] sm:$0xf] %vm1849_vm13, %v1818_v60 }
 0x1c4   : > { %1852 = vst.msk [vmem:[%s4208_s25 + $0x8] sm:$0xf] %vm1849_vm13, %v1819_v38  ;;  %1853 = vst.msk [vmem:[%s4208_s25 + $0xc] sm:$0xf] %vm1849_vm13, %v1820_v30 }
 0x1c5   : > { %1854 = vst.msk [vmem:[%s4208_s25 + $0x10] sm:$0xf] %vm1849_vm13, %v1821_v4  ;;  %1855 = vst.msk [vmem:[%s4208_s25 + $0x14] sm:$0xf] %vm1849_vm13, %v1822_v21 }
 0x1c6   : > { %1856 = vst.msk [vmem:[%s4208_s25 + $0x18] sm:$0xf] %vm1849_vm13, %v1823_v37  ;;  %1857 = vst.msk [vmem:[%s4208_s25 + $0x1c] sm:$0xf] %vm1849_vm13, %v1824_v9 }
 0x1c7   : > { %1858 = vst.msk [vmem:[%s4208_s25 + $0x20] sm:$0xf] %vm1849_vm13, %v1825_v11  ;;  %1859 = vst.msk [vmem:[%s4208_s25 + $0x24] sm:$0xf] %vm1849_vm13, %v1826_v53 }
 0x1c8   : > { %1860 = vst.msk [vmem:[%s4208_s25 + $0x28] sm:$0xf] %vm1849_vm13, %v1827_v10  ;;  %1861 = vst.msk [vmem:[%s4208_s25 + $0x2c] sm:$0xf] %vm1849_vm13, %v1828_v34 }
 0x1c9   : > { %1862 = vst.msk [vmem:[%s4208_s25 + $0x30] sm:$0xf] %vm1849_vm13, %v1829_v56  ;;  %1863 = vst.msk [vmem:[%s4208_s25 + $0x34] sm:$0xf] %vm1849_vm13, %v1830_v42 }
 0x1ca   : > { %1864 = vst.msk [vmem:[%s4208_s25 + $0x38] sm:$0xf] %vm1849_vm13, %v1831_v29  ;;  %1865 = vst.msk [vmem:[%s4208_s25 + $0x3c] sm:$0xf] %vm1849_vm13, %v1832_v8 }
 0x1cb   : > { %1866 = vst.msk [vmem:[%s4208_s25 + $0x40] sm:$0xf] %vm1849_vm13, %v1833_v22  ;;  %1867 = vst.msk [vmem:[%s4208_s25 + $0x44] sm:$0xf] %vm1849_vm13, %v1834_v13 }
 0x1cc   : > { %1868 = vst.msk [vmem:[%s4208_s25 + $0x48] sm:$0xf] %vm1849_vm13, %v1835_v25  ;;  %1869 = vst.msk [vmem:[%s4208_s25 + $0x4c] sm:$0xf] %vm1849_vm13, %v1836_v35 }
 0x1cd   : > { %1870 = vst.msk [vmem:[%s4208_s25 + $0x50] sm:$0xf] %vm1849_vm13, %v1837_v27  ;;  %1871 = vst.msk [vmem:[%s4208_s25 + $0x54] sm:$0xf] %vm1849_vm13, %v1838_v45 }
 0x1ce   : > { %1872 = vst.msk [vmem:[%s4208_s25 + $0x58] sm:$0xf] %vm1849_vm13, %v1839_v32  ;;  %1873 = vst.msk [vmem:[%s4208_s25 + $0x5c] sm:$0xf] %vm1849_vm13, %v1840_v41 }
 0x1cf   : > { %1874 = vst.msk [vmem:[%s4208_s25 + $0x60] sm:$0xf] %vm1849_vm13, %v1841_v3  ;;  %1875 = vst.msk [vmem:[%s4208_s25 + $0x64] sm:$0xf] %vm1849_vm13, %v1842_v2 }
 0x1d0   : > { %1876 = vst.msk [vmem:[%s4208_s25 + $0x68] sm:$0xf] %vm1849_vm13, %v1843_v63  ;;  %1877 = vst.msk [vmem:[%s4208_s25 + $0x6c] sm:$0xf] %vm1849_vm13, %v1844_v20 }
 0x1d1   : > { %1878 = vst.msk [vmem:[%s4208_s25 + $0x70] sm:$0xf] %vm1849_vm13, %v1845_v17  ;;  %1879 = vst.msk [vmem:[%s4208_s25 + $0x74] sm:$0xf] %vm1849_vm13, %v1846_v48 }
 0x1d2   : > { %1880 = vst.msk [vmem:[%s4208_s25 + $0x78] sm:$0xf] %vm1849_vm13, %v1847_v46  ;;  %1881 = vst.msk [vmem:[%s4208_s25 + $0x7c] sm:$0xf] %vm1849_vm13, %v1848_v15 }
 0x1d3 PF: > { %s13_s12 = sadd.s32 1, %s2158_s12  }
 0x1d4   : > { %p10_p4 = scmp.ge.s32.totalorder %s13_s12, 4  }
 0x1d6   :  { %12 = sbr.rel (!%p10_p4) target bundleno = 1 (0x1), region = 62 }

// kernel: forward.22
= control target key start
LH: loop header
LB: loop body
LE: loop exit
PB: predicated region body
PF: predicated region fallthrough
CT: control target
= control target key end

     0   :  { %s778_s12 = smov 0   ;;  %s780_s13 = smov 0   ;;  %s871_s0 = inlined_call_operand.vmem [shape: bf16[2,288,64], index: 0, kind: input, shape index: {}]   ;;  %s872_s1 = inlined_call_operand.vmem [shape: bf16[32,288], index: 1, kind: input, shape index: {}]   ;;  %s873_s2 = inlined_call_operand.vmem [shape: f32[32,1], index: 2, kind: input, shape index: {}]   ;;  %s874_s3 = inlined_call_operand.vmem [shape: f32[2,32,64], index: 3, kind: output, shape index: {}]  }
   0x1   :  { %s782_s14 = smov 0  }
   0x2 LB: > { %s25_s15 = sadd.s32 1, %s751_s13  ;;  %p606_p0 = scmp.ge.s32.totalorder %s755_s14, 1  ;;  %s755_s14 = sphi %s782_s14, %s13_s14   ;;  %s751_s13 = sphi %s780_s13, %s876_s13   ;;  %s747_s12 = sphi %s778_s12, %s875_s12  }
   0x3   : > { %p27_p1 = scmp.ge.s32.totalorder %s25_s15, 2  ;;  %p156_p2 = scmp.lt.s32.totalorder %s755_s14, 3 }
   0x5   : > { %s878_s15 = smov (%p27_p1, %s25_s15), 0  ;;  %p157_p3 = pnand %p606_p0, %p156_p2 }
   0x6   : > { %p186_p4 = scmp.lt.s32.totalorder (!%p157_p3), %s747_s12, 1 }
   0x7   : > { %160 = sbr.rel (%p157_p3) target bundleno = 263 (0x107), region = 32 }
   0xc   : > { %vm409_vm0 = vcmask 261120   ;;  %v726_v0 = vld [vmem:[%s872_s1 + $0x4] ss:$12 sps:$4 sm:$0xff]   ;;  %s880_s12 = smov (!%p186_p4, %s747_s12), 1  ;;  %v728_v1 = vld [vmem:[%s872_s1 + $0x8] ss:$12 sps:$4 sm:$0xff]  }
   0xd   : > { %448 = vmatprep.mubr.bf16.mxu0 %v726_v0  ;;  %s679_s20 = smul.u32 144, %s880_s12  ;;  %675 = vmatprep.mubr.msk.bf16.mxu1 %vm409_vm0, %v728_v1  ;;  %v757_v2 = vmov 0   ;;  %v247_v3 = vld [vmem:[%s873_s2] sm:$0xff]  ;;  %v249_v4 = vld [vmem:[%s873_s2 + $0x10] sm:$0xff]  ;;  %v248_v5 = vld [vmem:[%s873_s2 + $0x8] sm:$0xff]  ;;  %s638_s17 = sshll.u32 %s880_s12, 5 }
   0xe   : > { %705 = vset.pattern.permute.xlu0 %v757_v2  ;;  %706 = vset.pattern.permute.xlu1 %v757_v2  ;;  %v250_v6 = vld [vmem:[%s873_s2 + $0x18] sm:$0xff]  ;;  %v729_v22 = vld [vmem:[%s872_s1 + $0x20] ss:$12 sps:$4 sm:$0xff]   ;;  %vm514_vm1 = vcmask 523264  }
   0xf   : > { %253 = vperm.xlu0 %705, %v247_v3   ;;  %s815_s27 = scalar_lea.vmem %s871_s0, %s679_s20  ;;  %263 = vperm.xlu1 %706, %v249_v4   ;;  %v724_v26 = vld [vmem:[%s872_s1] ss:$12 sps:$4 sm:$0xff]   ;;  %v730_v27 = vld [vmem:[%s872_s1 + $0x1c] ss:$12 sps:$4 sm:$0xff]   ;;  %v732_v28 = vld [vmem:[%s872_s1 + $0x18] ss:$12 sps:$4 sm:$0xff]   ;;  %s201_s20 = scalar_lea.vmem %s874_s3, %s638_s17 }
  0x10   : > { %v707_v7 = vld [vmem:[%s815_s27 + $0x78] sm:$0xff]   ;;  %v709_v9 = vld [vmem:[%s815_s27 + $0x70] sm:$0xff]   ;;  %v711_v11 = vld [vmem:[%s815_s27 + $0x68] sm:$0xff]  }
  0x11   : > { %v708_v8 = vld [vmem:[%s815_s27 + $0x38] sm:$0xff]   ;;  %639 = vmatprep.subr.bf16.mxu0 %v707_v7  ;;  %v710_v10 = vld [vmem:[%s815_s27 + $0x30] sm:$0xff]   ;;  %v712_v12 = vld [vmem:[%s815_s27 + $0x28] sm:$0xff]  }
  0x12   : > { %640 = vmatpush3.bf16.msra.mxu0 %v708_v8  ;;  %v713_v13 = vld [vmem:[%s815_s27 + $0x60] sm:$0xff]   ;;  %v715_v15 = vld [vmem:[%s815_s27 + $0x58] sm:$0xff]   ;;  %v722_v17 = vld [vmem:[%s815_s27 + $0x88] sm:$0xff]  }
  0x13   : > { %258 = vperm.xlu0 %705, %v248_v5   ;;  %268 = vperm.xlu1 %706, %v250_v6   ;;  %v714_v14 = vld [vmem:[%s815_s27 + $0x20] sm:$0xff]   ;;  %v716_v16 = vld [vmem:[%s815_s27 + $0x18] sm:$0xff]   ;;  %v717_v18 = vld [vmem:[%s815_s27 + $0x50] sm:$0xff]  }
  0x14   : > { %641 = vmatprep.subr.bf16.mxu0 %v709_v9  ;;  %671 = vmatprep.subr.bf16.mxu1 %v722_v17  ;;  %v727_v19 = vld [vmem:[%s815_s27 + $0x80] sm:$0xff]   ;;  %v718_v20 = vld [vmem:[%s815_s27 + $0x10] sm:$0xff]   ;;  %v719_v21 = vld [vmem:[%s815_s27 + $0x48] sm:$0xff]  }
  0x15   : > { %672 = vmatpush3.bf16.msra.mxu1 %v722_v17  ;;  %v720_v23 = vld [vmem:[%s815_s27 + $0x8] sm:$0xff]   ;;  %v721_v24 = vld [vmem:[%s815_s27 + $0x40] sm:$0xff]  }
  0x16   : > { %642 = vmatpush3.bf16.msra.mxu0 %v710_v10  ;;  %673 = vmatprep.subr.bf16.mxu1 %v727_v19  ;;  %v723_v25 = vld [vmem:[%s815_s27] sm:$0xff]  }
  0x17   : > { %643 = vmatprep.subr.bf16.mxu0 %v711_v11 }
  0x19   : > { %674 = vmatpush3.bf16.msra.mxu1 %v727_v19 }
  0x1a   : > { %644 = vmatpush3.bf16.msra.mxu0 %v712_v12 }
  0x1b   : > { %645 = vmatprep.subr.bf16.mxu0 %v713_v13 }
  0x1c   : > { %676 = vmatmul.mubr.msk.bf16.vlgmr.msra.gmra.mxu1 %vm409_vm0, %v729_v22 }
  0x1e   : > { %646 = vmatpush3.bf16.msra.mxu0 %v714_v14 }
  0x1f   : > { %647 = vmatprep.subr.bf16.mxu0 %v715_v15 }
  0x22   : > { %648 = vmatpush3.bf16.msra.mxu0 %v716_v16 }
  0x23   : > { %649 = vmatprep.subr.bf16.mxu0 %v717_v18 }
  0x26   : > { %650 = vmatpush3.bf16.msra.mxu0 %v718_v20 }
  0x27   : > { %651 = vmatprep.subr.bf16.mxu0 %v719_v21 }
  0x2a   : > { %652 = vmatpush3.bf16.msra.mxu0 %v720_v23 }
  0x2b   : > { %653 = vmatprep.subr.bf16.mxu0 %v721_v24 }
  0x2e   : > { %654 = vmatpush3.bf16.msra.mxu0 %v723_v25 }
  0x31   : > { %449 = vmatmul.mubr.bf16.vlgmr.msra.gmra.mxu0 %v724_v26 }
  0x32   : > { %456 = vmatprep.mubr.bf16.mxu0 %v730_v27 }
  0x39   : > { %457 = vmatmul.mubr.bf16.gmra.mxu0 %v732_v28 }
  0x8a   : > { %v254_v30 = vpop.permute.xlu0 %253  ;;  %v264_v45 = vpop.permute.xlu1 %263 }
  0x8e   : > { %v259_v39 = vpop.permute.xlu0 %258  ;;  %v269_v54 = vpop.permute.xlu1 %268 }
  0xdc   : > { %v677_v29 = vpop.f32.mrf.mxu1 }
  0xde   : > { %v499_v32 = vpop.f32.mrf.mxu1 }
  0xe0   : > { %v678_v36 = vpop.f32.mrf.mxu1 }
  0xe2   : > { %v502_v43 = vpop.f32.mrf.mxu1 }
  0xf1   : > { %v655_v31 = vpop.f32.mrf.mxu0 }
  0xf3   : > { %v656_v33 = vpop.f32.mrf.mxu0 }
  0xf4   : > { %v657_v34 = vadd.f32 %v656_v33, %v655_v31 }
  0xf5   : > { %v658_v35 = vpop.f32.mrf.mxu0 }
  0xf6   : > { %v451_v37 = vadd.f32 %v657_v34, %v254_v30 }
  0xf7   : > { %v659_v38 = vpop.f32.mrf.mxu0 }
  0xf8   : > { %v660_v40 = vadd.f32 %v659_v38, %v658_v35  ;;  %v500_v41 = vadd.f32 %v499_v32, %v451_v37 }
  0xf9   : > { %v661_v42 = vpop.f32.mrf.mxu0 }
  0xfa   : > { %515 = vst.msk [vmem:[%s201_s20] sm:$0xff] %vm514_vm1, %v500_v41  ;;  %v454_v44 = vadd.f32 %v660_v40, %v259_v39 }
  0xfb   : > { %v662_v46 = vpop.f32.mrf.mxu0 }
  0xfc   : > { %v663_v47 = vadd.f32 %v662_v46, %v661_v42  ;;  %v503_v48 = vadd.f32 %v502_v43, %v454_v44 }
  0xfd   : > { %v664_v49 = vpop.f32.mrf.mxu0 }
  0xfe   : > { %v459_v50 = vadd.f32 %v663_v47, %v264_v45  ;;  %516 = vst.msk [vmem:[%s201_s20 + $0x8] sm:$0xff] %vm514_vm1, %v503_v48 }
  0xff   : > { %v665_v51 = vpop.f32.mrf.mxu0 }
 0x100   : > { %v508_v52 = vadd.f32 %v677_v29, %v459_v50  ;;  %v666_v53 = vadd.f32 %v665_v51, %v664_v49 }
 0x102   : > { %517 = vst.msk [vmem:[%s201_s20 + $0x10] sm:$0xff] %vm514_vm1, %v508_v52  ;;  %v462_v55 = vadd.f32 %v666_v53, %v269_v54 }
 0x104   : > { %v511_v56 = vadd.f32 %v678_v36, %v462_v55 }
 0x106   : > { %518 = vst.msk [vmem:[%s201_s20 + $0x18] sm:$0xff] %vm514_vm1, %v511_v56 }
 0x107 PF: > { %s13_s14 = sadd.s32 1, %s755_s14   ;;  %s875_s12 = smov %s751_s13 }
 0x108   : > { %p10_p5 = scmp.ge.s32.totalorder %s13_s14, 4   ;;  %s876_s13 = smov %s878_s15 }
 0x10a   :  { %12 = sbr.rel (!%p10_p5) target bundleno = 2 (0x2), region = 62 }

// kernel: forward.24
= control target key start
LH: loop header
LB: loop body
LE: loop exit
PB: predicated region body
PF: predicated region fallthrough
CT: control target
= control target key end

     0   :  { %s870_s15 = smov 0   ;;  %s872_s16 = smov 0   ;;  %s972_s0 = inlined_call_operand.vmem [shape: bf16[2,288,64], index: 0, kind: input, shape index: {}]   ;;  %s973_s1 = inlined_call_operand.vmem [shape: bf16[32,288], index: 1, kind: input, shape index: {}]   ;;  %s974_s2 = inlined_call_operand.vmem [shape: f32[32,1], index: 2, kind: input, shape index: {}]   ;;  %s975_s3 = inlined_call_operand.vmem [shape: f32[2,32,64], index: 3, kind: input, shape index: {}]   ;;  %s976_s4 = inlined_call_operand.vmem [shape: f32[2,32,64], index: 4, kind: output, shape index: {}]  }
   0x1   :  { %s874_s17 = smov 0  }
   0x2 LB: > { %s26_s18 = sadd.s32 1, %s838_s16  ;;  %p690_p0 = scmp.ge.s32.totalorder %s842_s17, 1  ;;  %s842_s17 = sphi %s874_s17, %s14_s17   ;;  %s838_s16 = sphi %s872_s16, %s978_s16   ;;  %s834_s15 = sphi %s870_s15, %s977_s15  }
   0x3   : > { %p28_p1 = scmp.ge.s32.totalorder %s26_s18, 2  ;;  %p196_p2 = scmp.lt.s32.totalorder %s842_s17, 3 }
   0x5   : > { %s980_s18 = smov (%p28_p1, %s26_s18), 0  ;;  %p197_p3 = pnand %p690_p0, %p196_p2 }
   0x6   : > { %p236_p4 = scmp.lt.s32.totalorder (!%p197_p3), %s834_s15, 1 }
   0x7   : > { %200 = sbr.rel (%p197_p3) target bundleno = 265 (0x109), region = 36 }
   0xc   : > { %vm467_vm0 = vcmask 261120   ;;  %v813_v0 = vld [vmem:[%s973_s1 + $0x4] ss:$12 sps:$4 sm:$0xff]   ;;  %s982_s15 = smov (!%p236_p4, %s834_s15), 1  ;;  %v815_v1 = vld [vmem:[%s973_s1 + $0x8] ss:$12 sps:$4 sm:$0xff]  }
   0xd   : > { %506 = vmatprep.mubr.bf16.mxu0 %v813_v0  ;;  %s766_s23 = smul.u32 144, %s982_s15  ;;  %762 = vmatprep.mubr.msk.bf16.mxu1 %vm467_vm0, %v815_v1  ;;  %v844_v2 = vmov 0   ;;  %v305_v3 = vld [vmem:[%s974_s2] sm:$0xff]  ;;  %v307_v4 = vld [vmem:[%s974_s2 + $0x10] sm:$0xff]  ;;  %v306_v5 = vld [vmem:[%s974_s2 + $0x8] sm:$0xff]  ;;  %s724_s21 = sshll.u32 %s982_s15, 5 }
   0xe   : > { %792 = vset.pattern.permute.xlu0 %v844_v2  ;;  %793 = vset.pattern.permute.xlu1 %v844_v2  ;;  %v308_v6 = vld [vmem:[%s974_s2 + $0x18] sm:$0xff]  ;;  %v816_v22 = vld [vmem:[%s973_s1 + $0x20] ss:$12 sps:$4 sm:$0xff]   ;;  %s950_s24 = scalar_lea.vmem %s975_s3, %s724_s21  ;;  %s259_s26 = scalar_lea.vmem %s976_s4, %s724_s21  ;;  %vm580_vm1 = vcmask 523264  }
   0xf   : > { %311 = vperm.xlu0 %792, %v305_v3   ;;  %s907_s30 = scalar_lea.vmem %s972_s0, %s766_s23  ;;  %321 = vperm.xlu1 %793, %v307_v4   ;;  %v811_v26 = vld [vmem:[%s973_s1] ss:$12 sps:$4 sm:$0xff]   ;;  %v817_v27 = vld [vmem:[%s973_s1 + $0x1c] ss:$12 sps:$4 sm:$0xff]   ;;  %v819_v28 = vld [vmem:[%s973_s1 + $0x18] ss:$12 sps:$4 sm:$0xff]  }
  0x10   : > { %v794_v7 = vld [vmem:[%s907_s30 + $0x78] sm:$0xff]   ;;  %v796_v9 = vld [vmem:[%s907_s30 + $0x70] sm:$0xff]   ;;  %v798_v11 = vld [vmem:[%s907_s30 + $0x68] sm:$0xff]  }
  0x11   : > { %v795_v8 = vld [vmem:[%s907_s30 + $0x38] sm:$0xff]   ;;  %726 = vmatprep.subr.bf16.mxu0 %v794_v7  ;;  %v797_v10 = vld [vmem:[%s907_s30 + $0x30] sm:$0xff]   ;;  %v799_v12 = vld [vmem:[%s907_s30 + $0x28] sm:$0xff]  }
  0x12   : > { %727 = vmatpush3.bf16.msra.mxu0 %v795_v8  ;;  %v800_v13 = vld [vmem:[%s907_s30 + $0x60] sm:$0xff]   ;;  %v802_v15 = vld [vmem:[%s907_s30 + $0x58] sm:$0xff]   ;;  %v809_v17 = vld [vmem:[%s907_s30 + $0x88] sm:$0xff]  }
  0x13   : > { %316 = vperm.xlu0 %792, %v306_v5   ;;  %326 = vperm.xlu1 %793, %v308_v6   ;;  %v801_v14 = vld [vmem:[%s907_s30 + $0x20] sm:$0xff]   ;;  %v803_v16 = vld [vmem:[%s907_s30 + $0x18] sm:$0xff]   ;;  %v804_v18 = vld [vmem:[%s907_s30 + $0x50] sm:$0xff]  }
  0x14   : > { %728 = vmatprep.subr.bf16.mxu0 %v796_v9  ;;  %758 = vmatprep.subr.bf16.mxu1 %v809_v17  ;;  %v814_v19 = vld [vmem:[%s907_s30 + $0x80] sm:$0xff]   ;;  %v805_v20 = vld [vmem:[%s907_s30 + $0x10] sm:$0xff]   ;;  %v806_v21 = vld [vmem:[%s907_s30 + $0x48] sm:$0xff]  }
  0x15   : > { %759 = vmatpush3.bf16.msra.mxu1 %v809_v17  ;;  %v807_v23 = vld [vmem:[%s907_s30 + $0x8] sm:$0xff]   ;;  %v808_v24 = vld [vmem:[%s907_s30 + $0x40] sm:$0xff]   ;;  %v574_v55 = vld [vmem:[%s950_s24 + $0x10] sm:$0xff] }
  0x16   : > { %729 = vmatpush3.bf16.msra.mxu0 %v797_v10  ;;  %760 = vmatprep.subr.bf16.mxu1 %v814_v19  ;;  %v810_v25 = vld [vmem:[%s907_s30] sm:$0xff]   ;;  %v573_v49 = vld [vmem:[%s950_s24 + $0x8] sm:$0xff]  ;;  %v575_v62 = vld [vmem:[%s950_s24 + $0x18] sm:$0xff] }
  0x17   : > { %730 = vmatprep.subr.bf16.mxu0 %v798_v11  ;;  %v572_v39 = vld [vmem:[%s950_s24] sm:$0xff] }
  0x19   : > { %761 = vmatpush3.bf16.msra.mxu1 %v814_v19 }
  0x1a   : > { %731 = vmatpush3.bf16.msra.mxu0 %v799_v12 }
  0x1b   : > { %732 = vmatprep.subr.bf16.mxu0 %v800_v13 }
  0x1c   : > { %763 = vmatmul.mubr.msk.bf16.vlgmr.msra.gmra.mxu1 %vm467_vm0, %v816_v22 }
  0x1e   : > { %733 = vmatpush3.bf16.msra.mxu0 %v801_v14 }
  0x1f   : > { %734 = vmatprep.subr.bf16.mxu0 %v802_v15 }
  0x22   : > { %735 = vmatpush3.bf16.msra.mxu0 %v803_v16 }
  0x23   : > { %736 = vmatprep.subr.bf16.mxu0 %v804_v18 }
  0x26   : > { %737 = vmatpush3.bf16.msra.mxu0 %v805_v20 }
  0x27   : > { %738 = vmatprep.subr.bf16.mxu0 %v806_v21 }
  0x2a   : > { %739 = vmatpush3.bf16.msra.mxu0 %v807_v23 }
  0x2b   : > { %740 = vmatprep.subr.bf16.mxu0 %v808_v24 }
  0x2e   : > { %741 = vmatpush3.bf16.msra.mxu0 %v810_v25 }
  0x31   : > { %507 = vmatmul.mubr.bf16.vlgmr.msra.gmra.mxu0 %v811_v26 }
  0x32   : > { %514 = vmatprep.mubr.bf16.mxu0 %v817_v27 }
  0x39   : > { %515 = vmatmul.mubr.bf16.gmra.mxu0 %v819_v28 }
  0x8a   : > { %v312_v30 = vpop.permute.xlu0 %311  ;;  %v322_v47 = vpop.permute.xlu1 %321 }
  0x8e   : > { %v317_v40 = vpop.permute.xlu0 %316  ;;  %v327_v59 = vpop.permute.xlu1 %326 }
  0xdc   : > { %v764_v29 = vpop.f32.mrf.mxu1 }
  0xde   : > { %v557_v32 = vpop.f32.mrf.mxu1 }
  0xe0   : > { %v765_v36 = vpop.f32.mrf.mxu1 }
  0xe2   : > { %v560_v44 = vpop.f32.mrf.mxu1 }
  0xf1   : > { %v742_v31 = vpop.f32.mrf.mxu0 }
  0xf3   : > { %v743_v33 = vpop.f32.mrf.mxu0 }
  0xf4   : > { %v744_v34 = vadd.f32 %v743_v33, %v742_v31 }
  0xf5   : > { %v745_v35 = vpop.f32.mrf.mxu0 }
  0xf6   : > { %v509_v37 = vadd.f32 %v744_v34, %v312_v30 }
  0xf7   : > { %v746_v38 = vpop.f32.mrf.mxu0 }
  0xf8   : > { %v747_v41 = vadd.f32 %v746_v38, %v745_v35  ;;  %v558_v42 = vadd.f32 %v557_v32, %v509_v37 }
  0xf9   : > { %v748_v43 = vpop.f32.mrf.mxu0 }
  0xfa   : > { %v576_v45 = vadd.f32 %v572_v39, %v558_v42  ;;  %v512_v46 = vadd.f32 %v747_v41, %v317_v40 }
  0xfb   : > { %v749_v48 = vpop.f32.mrf.mxu0 }
  0xfc   : > { %581 = vst.msk [vmem:[%s259_s26] sm:$0xff] %vm580_vm1, %v576_v45  ;;  %v750_v50 = vadd.f32 %v749_v48, %v748_v43  ;;  %v561_v51 = vadd.f32 %v560_v44, %v512_v46 }
  0xfd   : > { %v751_v52 = vpop.f32.mrf.mxu0 }
  0xfe   : > { %v517_v53 = vadd.f32 %v750_v50, %v322_v47  ;;  %v577_v54 = vadd.f32 %v573_v49, %v561_v51 }
  0xff   : > { %v752_v56 = vpop.f32.mrf.mxu0 }
 0x100   : > { %v566_v57 = vadd.f32 %v764_v29, %v517_v53  ;;  %582 = vst.msk [vmem:[%s259_s26 + $0x8] sm:$0xff] %vm580_vm1, %v577_v54  ;;  %v753_v58 = vadd.f32 %v752_v56, %v751_v52 }
 0x102   : > { %v578_v60 = vadd.f32 %v574_v55, %v566_v57  ;;  %v520_v61 = vadd.f32 %v753_v58, %v327_v59 }
 0x104   : > { %583 = vst.msk [vmem:[%s259_s26 + $0x10] sm:$0xff] %vm580_vm1, %v578_v60  ;;  %v569_v63 = vadd.f32 %v765_v36, %v520_v61 }
 0x106   : > { %v579_v0 = vadd.f32 %v575_v62, %v569_v63 }
 0x108   : > { %584 = vst.msk [vmem:[%s259_s26 + $0x18] sm:$0xff] %vm580_vm1, %v579_v0 }
 0x109 PF: > { %s14_s17 = sadd.s32 1, %s842_s17   ;;  %s977_s15 = smov %s838_s16 }
 0x10a   : > { %p11_p5 = scmp.ge.s32.totalorder %s14_s17, 4   ;;  %s978_s16 = smov %s980_s18 }
 0x10c   :  { %13 = sbr.rel (!%p11_p5) target bundleno = 2 (0x2), region = 69 }

// kernel: forward.34
= control target key start
LH: loop header
LB: loop body
LE: loop exit
PB: predicated region body
PF: predicated region fallthrough
CT: control target
= control target key end

     0   :  { %vm23_vm0 = vcmask 261120   ;;  %v241_v15 = vmov 0   ;;  %vm207_vm3 = vcmask 523264   ;;  %s316_s0 = inlined_call_operand.vmem [shape: f32[16,32], index: 0, kind: input, shape index: {}]   ;;  %s317_s3 = inlined_call_operand.vmem [shape: bf16[32,192], index: 3, kind: input, shape index: {}]   ;;  %s318_s1 = inlined_call_operand.vmem [shape: f32[1,32], index: 1, kind: input, shape index: {}]   ;;  %s319_s2 = inlined_call_operand.vmem [shape: f32[1,32], index: 2, kind: input, shape index: {}]   ;;  %s320_s4 = inlined_call_operand.vmem [shape: f32[1,192], index: 4, kind: input, shape index: {}]   ;;  %s321_s5 = inlined_call_operand.vmem [shape: f32[16,192], index: 5, kind: output, shape index: {}]  }
   0x1   :  { %v21_v0 = vld [vmem:[%s316_s0] sm:$0xff]  ;;  %v22_v1 = vld [vmem:[%s316_s0 + $0x8] sm:$0xff]  ;;  %v223_v14 = vld [vmem:[%s317_s3 + $0x14] ss:$8 sps:$4 sm:$0xff]   ;;  %195 = vmatprep.mubr.bf16.mxu0 %v241_v15 }
   0x2   :  { %v24_v2 = vsel %vm23_vm0, %v21_v0, 0.0  ;;  %v27_v3 = vsel %vm23_vm0, %v22_v1, 0.0  ;;  %v225_v16 = vld [vmem:[%s317_s3 + $0x10] ss:$8 sps:$4 sm:$0xff]   ;;  %175 = vmatprep.subr.bf16.mxu0 %v223_v14  ;;  %v226_v17 = vld [vmem:[%s317_s3 + $0x4] ss:$8 sps:$4 sm:$0xff]  }
   0x3   :  { %25 = vadd.xlane.f32.xlu0 %v24_v2  ;;  %176 = vmatpush1.bf16.msra.mxu0 %v225_v16  ;;  %v228_v18 = vld [vmem:[%s317_s3] ss:$8 sps:$4 sm:$0xff]  }
   0x4   :  { %177 = vmatprep.subr.bf16.mxu0 %v226_v17  ;;  %v215_v26 = vld [vmem:[%s318_s1] ss:$0 sm:$0xff] }
   0x5   :  { %v216_v28 = vld [vmem:[%s319_s2] ss:$0 sm:$0xff] }
   0x7   :  { %28 = vadd.xlane.f32.xlu0 %v27_v3  ;;  %178 = vmatpush1.bf16.msra.mxu0 %v228_v18 }
  0x8c   :  { %v26_v4 = vpop.xlane.xlu0 %25 }
  0x8d   :  { %v31_v5 = vmul.f32 0.03125, %v26_v4 }
  0x8f   :  { %v33_v6 = vsub.f32 %v21_v0, %v31_v5 }
  0x90   :  { %v29_v7 = vpop.xlane.xlu0 %28 }
  0x91   :  { %v32_v8 = vmul.f32 0.03125, %v29_v7  ;;  %v35_v9 = vmul.f32 %v33_v6, %v33_v6 }
  0x93   :  { %v34_v10 = vsub.f32 %v22_v1, %v32_v8  ;;  %v37_v11 = vsel %vm23_vm0, %v35_v9, 0.0 }
  0x94   :  { %38 = vadd.xlane.f32.xlu1 %v37_v11 }
  0x95   :  { %v36_v12 = vmul.f32 %v34_v10, %v34_v10 }
  0x97   :  { %v40_v13 = vsel %vm23_vm0, %v36_v12, 0.0 }
  0x98   :  { %41 = vadd.xlane.f32.xlu1 %v40_v13 }
 0x11d   :  { %v39_v19 = vpop.xlane.xlu1 %38 }
 0x11e   :  { %v43_v20 = vmul.f32 0.03125, %v39_v19 }
 0x120   :  { %v45_v21 = vadd.f32 1e-05, %v43_v20 }
 0x121   :  { %v42_v22 = vpop.xlane.xlu1 %41 }
 0x122   :  { %229 = vrsqrt.f32 %v45_v21  ;;  %v44_v23 = vmul.f32 0.03125, %v42_v22  ;;  %v130_v22 = vlaneseq }
 0x124   :  { %v46_v24 = vadd.f32 1e-05, %v44_v23  ;;  %v131_v23 = vshrl.u32 %v130_v22, 7 }
 0x126   :  { %231 = vrsqrt.f32 %v46_v24  ;;  %v132_v24 = vsub.s32 0, %v131_v23 }
 0x12f   :  { %v230_v25 = vpop.eup %229 }
 0x130   :  { %v49_v27 = vmul.f32 %v230_v25, %v33_v6  ;;  %v128_v25 = vld [vmem:[%s320_s4] sm:$0x3] }
 0x132   :  { %v58_v29 = vmul.f32 %v215_v26, %v49_v27  ;;  %v133_v27 = vrot.slane %v128_v25, %v132_v24 }
 0x133   :  { %v232_v30 = vpop.eup %231 }
 0x134   :  { %v50_v31 = vmul.f32 %v232_v30, %v34_v10  ;;  %v67_v32 = vadd.f32 %v216_v28, %v58_v29 }
 0x136   :  { %v59_v33 = vmul.f32 %v215_v26, %v50_v31  ;;  %v71_v34 = vmul.f32 0.70710677, %v67_v32  ;;  %v69_v16 = vmul.f32 0.5, %v67_v32  ;;  %v136_v26 = vsub.s32 1, %v131_v23 }
 0x138   :  { %v68_v35 = vadd.f32 %v216_v28, %v59_v33  ;;  %v73_v36 = vand.u32 2147483647, %v71_v34  ;;  %vm113_vm1 = vcmp.ge.f32.partialorder %v71_v34, 0.0  ;;  %v137_v28 = vrot.slane %v128_v25, %v136_v26 }
 0x13a   :  { %v72_v37 = vmul.f32 0.70710677, %v68_v35  ;;  %v75_v38 = vmul.f32 0.3275911, %v73_v36  ;;  %v101_v43 = vsub.f32 0.0, %v73_v36  ;;  %v70_v17 = vmul.f32 0.5, %v68_v35 }
 0x13c   :  { %v74_v39 = vand.u32 2147483647, %v72_v37  ;;  %v77_v40 = vadd.f32 1.0, %v75_v38  ;;  %v103_v45 = vmul.f32 %v101_v43, %v73_v36  ;;  %vm114_vm2 = vcmp.ge.f32.partialorder %v72_v37, 0.0 }
 0x13e   :  { %v76_v41 = vmul.f32 0.3275911, %v74_v39  ;;  %233 = vrcp.f32 %v77_v40  ;;  %v102_v44 = vsub.f32 0.0, %v74_v39  ;;  %v105_v49 = vmul.f32 1.442695, %v103_v45 }
 0x140   :  { %v78_v42 = vadd.f32 1.0, %v76_v41  ;;  %v104_v48 = vmul.f32 %v102_v44, %v74_v39 }
 0x142   :  { %235 = vrcp.f32 %v78_v42  ;;  %v107_v54 = vmul.f32 1.442695, %v104_v48 }
 0x143   :  { %237 = vpow2.f32 %v105_v49 }
 0x144   :  { %239 = vpow2.f32 %v107_v54 }
 0x14b   :  { %v234_v46 = vpop.eup %233 }
 0x14c   :  { %v83_v47 = vmul.f32 1.0614054, %v234_v46 }
 0x14e   :  { %v85_v50 = vadd.f32 -1.4531521, %v83_v47 }
 0x14f   :  { %v236_v51 = vpop.eup %235 }
 0x150   :  { %v84_v52 = vmul.f32 1.0614054, %v236_v51  ;;  %v87_v53 = vmul.f32 %v234_v46, %v85_v50  ;;  %v238_v3 = vpop.eup %237 }
 0x151   :  { %v240_v8 = vpop.eup %239 }
 0x152   :  { %v86_v55 = vadd.f32 -1.4531521, %v84_v52  ;;  %v89_v56 = vadd.f32 1.4214138, %v87_v53 }
 0x154   :  { %v88_v57 = vmul.f32 %v236_v51, %v86_v55  ;;  %v91_v58 = vmul.f32 %v234_v46, %v89_v56 }
 0x156   :  { %v90_v59 = vadd.f32 1.4214138, %v88_v57  ;;  %v93_v60 = vadd.f32 -0.28449672, %v91_v58 }
 0x158   :  { %v92_v61 = vmul.f32 %v236_v51, %v90_v59  ;;  %v95_v62 = vmul.f32 %v234_v46, %v93_v60 }
 0x15a   :  { %v94_v63 = vadd.f32 -0.28449672, %v92_v61  ;;  %v97_v0 = vadd.f32 0.2548296, %v95_v62 }
 0x15c   :  { %v96_v1 = vmul.f32 %v236_v51, %v94_v63  ;;  %v99_v2 = vmul.f32 %v234_v46, %v97_v0 }
 0x15e   :  { %v98_v4 = vadd.f32 0.2548296, %v96_v1  ;;  %v109_v5 = vmul.f32 %v238_v3, %v99_v2 }
 0x160   :  { %v100_v6 = vmul.f32 %v236_v51, %v98_v4  ;;  %v111_v7 = vsub.f32 1.0, %v109_v5 }
 0x162   :  { %v110_v9 = vmul.f32 %v240_v8, %v100_v6  ;;  %v115_v10 = vsub.f32 0.0, %v111_v7 }
 0x164   :  { %v112_v11 = vsub.f32 1.0, %v110_v9  ;;  %v117_v12 = vsel %vm113_vm1, %v111_v7, %v115_v10 }
 0x165   :  { %v119_v14 = vadd.f32 1.0, %v117_v12 }
 0x166   :  { %v116_v13 = vsub.f32 0.0, %v112_v11 }
 0x167   :  { %v121_v19 = vmul.f32 %v119_v14, %v69_v16 }
 0x168   :  { %v118_v15 = vsel %vm114_vm2, %v112_v11, %v116_v13 }
 0x169   :  { %v120_v18 = vadd.f32 1.0, %v118_v15 }
 0x16b   :  { %v122_v20 = vmul.f32 %v120_v18, %v70_v17 }
 0x16d   :  { %v123_v21 = vpack.c.bf16 %v122_v20, %v121_v19 }
 0x16f   :  { %221 = vmatmul.mubr.msk.bf16.vlgmr.msra.gmra.mxu0 %vm23_vm0, %v123_v21 }
 0x22f   :  { %v197_v29 = vpop.f32.mrf.mxu0 }
 0x230   :  { %v198_v30 = vadd.f32 %v197_v29, %v133_v27 }
 0x231   :  { %v199_v31 = vpop.f32.mrf.mxu0 }
 0x232   :  { %206 = vst [vmem:[%s321_s5] sm:$0xff] %v198_v30  ;;  %v200_v32 = vadd.f32 %v199_v31, %v137_v28 }
 0x233   :  { %v201_v33 = vpop.f32.mrf.mxu0 }
 0x234   :  { %208 = vst.msk [vmem:[%s321_s5 + $0x8] sm:$0xff] %vm207_vm3, %v200_v32  ;;  %v202_v34 = vadd.f32 %v201_v33, %v133_v27 }
 0x235   :  { %v203_v35 = vpop.f32.mrf.mxu0 }
 0x236   :  { %209 = vst [vmem:[%s321_s5 + $0x10] sm:$0xff] %v202_v34  ;;  %v204_v36 = vadd.f32 %v203_v35, %v137_v28 }
 0x238   :  { %210 = vst.msk [vmem:[%s321_s5 + $0x18] sm:$0xff] %vm207_vm3, %v204_v36 }

// kernel: forward.33
= control target key start
LH: loop header
LB: loop body
LE: loop exit
PB: predicated region body
PF: predicated region fallthrough
CT: control target
= control target key end

     0   :  { %vm197_vm0 = vcmask 261120   ;;  %s348_s1 = inlined_call_operand.vmem [shape: bf16[256,32], index: 1, kind: input, shape index: {}]   ;;  %s349_s0 = inlined_call_operand.vmem [shape: f32[16,256], index: 0, kind: input, shape index: {}]   ;;  %s350_s2 = inlined_call_operand.vmem [shape: f32[1,32], index: 2, kind: input, shape index: {}]   ;;  %s351_s3 = inlined_call_operand.vmem [shape: f32[16,32], index: 3, kind: output, shape index: {}]  }
   0x1   :  { %v243_v0 = vld [vmem:[%s348_s1 + $0x78] sm:$0xff]   ;;  %v245_v2 = vld [vmem:[%s348_s1 + $0x70] sm:$0xff]   ;;  %v247_v4 = vld [vmem:[%s348_s1 + $0x68] sm:$0xff]  }
   0x2   :  { %v244_v1 = vld [vmem:[%s348_s1 + $0x38] sm:$0xff]   ;;  %221 = vmatprep.subr.bf16.mxu0 %v243_v0  ;;  %v246_v3 = vld [vmem:[%s348_s1 + $0x30] sm:$0xff]   ;;  %v248_v5 = vld [vmem:[%s348_s1 + $0x28] sm:$0xff]  }
   0x3   :  { %222 = vmatpush3.bf16.msra.mxu0 %v244_v1  ;;  %v249_v6 = vld [vmem:[%s348_s1 + $0x60] sm:$0xff]   ;;  %v251_v8 = vld [vmem:[%s348_s1 + $0x58] sm:$0xff]   ;;  %v253_v10 = vld [vmem:[%s348_s1 + $0x50] sm:$0xff]  }
   0x4   :  { %223 = vmatprep.subr.bf16.mxu0 %v245_v2  ;;  %v250_v7 = vld [vmem:[%s348_s1 + $0x20] sm:$0xff]   ;;  %v252_v9 = vld [vmem:[%s348_s1 + $0x18] sm:$0xff]   ;;  %v16_v11 = vld [vmem:[%s349_s0 + $0x8] sm:$0xff] }
   0x5   :  { %v18_v12 = vld [vmem:[%s349_s0 + $0x18] sm:$0xff]  ;;  %v254_v14 = vld [vmem:[%s348_s1 + $0x10] sm:$0xff]   ;;  %v255_v15 = vld [vmem:[%s348_s1 + $0x48] sm:$0xff]  }
   0x6   :  { %v20_v13 = vpack.c.bf16 %v18_v12, %v16_v11  ;;  %v256_v16 = vld [vmem:[%s348_s1 + $0x8] sm:$0xff]   ;;  %v257_v17 = vld [vmem:[%s348_s1 + $0x40] sm:$0xff]   ;;  %v17_v20 = vld [vmem:[%s349_s0 + $0x10] sm:$0xff] }
   0x7   :  { %224 = vmatpush3.bf16.msra.mxu0 %v246_v3  ;;  %v258_v18 = vld [vmem:[%s348_s1] sm:$0xff]  }
   0x8   :  { %225 = vmatprep.subr.bf16.mxu0 %v247_v4  ;;  %188 = vmatprep.mubr.bf16.mxu0 %v20_v13  ;;  %v15_v19 = vld [vmem:[%s349_s0] sm:$0xff] }
   0x9   :  { %v19_v21 = vpack.c.bf16 %v17_v20, %v15_v19  ;;  %v204_v23 = vld [vmem:[%s350_s2] ss:$0 sm:$0xff] }
   0xb   :  { %226 = vmatpush3.bf16.msra.mxu0 %v248_v5 }
   0xc   :  { %227 = vmatprep.subr.bf16.mxu0 %v249_v6 }
   0xf   :  { %228 = vmatpush3.bf16.msra.mxu0 %v250_v7 }
  0x10   :  { %229 = vmatprep.subr.bf16.mxu0 %v251_v8 }
  0x13   :  { %230 = vmatpush3.bf16.msra.mxu0 %v252_v9 }
  0x14   :  { %231 = vmatprep.subr.bf16.mxu0 %v253_v10 }
  0x17   :  { %232 = vmatpush3.bf16.msra.mxu0 %v254_v14 }
  0x18   :  { %233 = vmatprep.subr.bf16.mxu0 %v255_v15 }
  0x1b   :  { %234 = vmatpush3.bf16.msra.mxu0 %v256_v16 }
  0x1c   :  { %235 = vmatprep.subr.bf16.mxu0 %v257_v17 }
  0x1f   :  { %236 = vmatpush3.bf16.msra.mxu0 %v258_v18 }
  0x22   :  { %189 = vmatmul.mubr.bf16.vlgmr.msra.gmra.mxu0 %v19_v21 }
  0xe2   :  { %v237_v22 = vpop.f32.mrf.mxu0 }
  0xe4   :  { %v238_v24 = vpop.f32.mrf.mxu0 }
  0xe5   :  { %v239_v25 = vadd.f32 %v238_v24, %v237_v22 }
  0xe6   :  { %v240_v26 = vpop.f32.mrf.mxu0 }
  0xe7   :  { %v191_v27 = vadd.f32 %v239_v25, %v204_v23 }
  0xe8   :  { %v241_v28 = vpop.f32.mrf.mxu0 }
  0xe9   :  { %198 = vst.msk [vmem:[%s351_s3] sm:$0xff] %vm197_vm0, %v191_v27  ;;  %v242_v29 = vadd.f32 %v241_v28, %v240_v26 }
  0xeb   :  { %v194_v30 = vadd.f32 %v242_v29, %v204_v23 }
  0xed   :  { %199 = vst.msk [vmem:[%s351_s3 + $0x8] sm:$0xff] %vm197_vm0, %v194_v30 }

// kernel: forward.35
= control target key start
LH: loop header
LB: loop body
LE: loop exit
PB: predicated region body
PF: predicated region fallthrough
CT: control target
= control target key end

     0   :  { %s1319_s12 = smov 0   ;;  %s1321_s13 = smov 0   ;;  %s1511_s0 = inlined_call_operand.vmem [shape: f32[2,8,2,96], index: 0, kind: input, shape index: {}]   ;;  %s1512_s1 = inlined_call_operand.vmem [shape: bf16[2,32,96], index: 1, kind: input, shape index: {}]   ;;  %s1513_s2 = inlined_call_operand.vmem [shape: f32[2,1,96], index: 2, kind: input, shape index: {}]   ;;  %s1514_s3 = inlined_call_operand.vmem [shape: f32[2,8,2,32], index: 3, kind: output, shape index: {}]  }
   0x1   :  { %s1323_s14 = smov 0  }
   0x2 LB: > { %s25_s15 = sadd.s32 1, %s1288_s13  ;;  %p1058_p0 = scmp.ge.s32.totalorder %s1292_s14, 1  ;;  %s1292_s14 = sphi %s1323_s14, %s13_s14   ;;  %s1288_s13 = sphi %s1321_s13, %s1516_s13   ;;  %s1284_s12 = sphi %s1319_s12, %s1515_s12  }
   0x3   : > { %p27_p1 = scmp.ge.s32.totalorder %s25_s15, 2  ;;  %p176_p2 = scmp.lt.s32.totalorder %s1292_s14, 3 }
   0x5   : > { %s1518_s15 = smov (%p27_p1, %s25_s15), 0  ;;  %p177_p3 = pnand %p1058_p0, %p176_p2 }
   0x6   : > { %p217_p4 = scmp.lt.s32.totalorder (!%p177_p3), %s1284_s12, 1  ;;  %s1296_s23 = smov (!%p177_p3), 64  }
   0x7   : > { %180 = sbr.rel (%p177_p3) target bundleno = 5514 (0x158a), region = 32  ;;  %s1297_s27 = smov (!%p177_p3), 96  }
   0x8   : > { %s1298_s28 = smov (!%p177_p3), 32  }
   0xc   : > { %vm249_vm0 = vcmask 254976   ;;  %v1294_v0 = vmov 0.0   ;;  %vm1295_vm1 = vmmov 0   ;;  %s1520_s12 = smov (!%p217_p4, %s1284_s12), 1  ;;  %vm277_vm2 = vcmask 261120  }
   0xd   : > { %1127 = vmatprep.subr.bf16.mxu0 %v1294_v0  ;;  %1131 = vmatprep.mubr.msk.bf16.mxu0 %vm1295_vm1, %v1294_v0  ;;  %250 = vst.msk [vmem:[#allocation2] sm:$0x3] %vm249_vm0, %v1294_v0  ;;  %s1345_s16 = sshll.u32 %s1520_s12, 4  ;;  %s233_s22 = scalar_lea.vmem %s1513_s2, %s1520_s12 }
   0xe   : > { %1135 = vmatprep.subr.bf16.mxu1 %v1294_v0  ;;  %1139 = vmatprep.mubr.msk.bf16.mxu1 %vm1295_vm1, %v1294_v0  ;;  %s230_s19 = scalar_lea.vmem %s1512_s1, %s1345_s16  ;;  %v1373_v5 = vld [vmem:[%s233_s22] ss:$0 sm:$0xff]  ;;  %s1381_s26 = scalar_lea.vmem %s1511_s0, %s1345_s16 }
   0xf   : > { %v1351_v1 = vld [vmem:[%s230_s19 + $0x8] sm:$0xff]   ;;  %v1354_v2 = vld [vmem:[%s230_s19] sm:$0xff]   ;;  %s1392_s4 = scalar_lea.vmem %s1514_s3, %s1345_s16 }
  0x10   : > { %1128 = vmatpush3.bf16.msra.mxu0 %v1351_v1  ;;  %1136 = vmatpush3.bf16.msra.mxu1 %v1351_v1  ;;  %v257_v11 = vld [vmem:[%s1381_s26] sm:$0x3]  ;;  %v1070_v36 = vld [vmem:[%s1381_s26 + $0x2] sm:$0x3]  ;;  %v1074_v61 = vld [vmem:[%s1381_s26 + $0x4] sm:$0x3] }
  0x11   : > { %1129 = vmatprep.subr.bf16.mxu0 %v1294_v0  ;;  %1137 = vmatprep.subr.bf16.mxu1 %v1294_v0 }
  0x14   : > { %v256_v3 = vld [vmem:[#allocation2] sm:$0x3]  ;;  %1130 = vmatpush3.bf16.msra.mxu0 %v1354_v2  ;;  %1138 = vmatpush3.bf16.msra.mxu1 %v1354_v2 }
  0x15   : > { %v258_v4 = vpack.c.bf16 %v256_v3, %v256_v3  ;;  %1143 = vmatprep.subr.bf16.mxu0 %v1294_v0  ;;  %1151 = vmatprep.subr.bf16.mxu1 %v1294_v0 }
  0x17   : > { %1132 = vmatmul.mubr.msk.bf16.vlgmr.msra.gmra.mxu0 %vm277_vm2, %v258_v4 }
  0x18   : > { %1144 = vmatpush3.bf16.msra.mxu0 %v1351_v1  ;;  %1147 = vmatprep.mubr.msk.bf16.mxu0 %vm1295_vm1, %v1294_v0 }
  0x19   : > { %1145 = vmatprep.subr.bf16.mxu0 %v1294_v0 }
  0x1c   : > { %1146 = vmatpush3.bf16.msra.mxu0 %v1354_v2 }
  0x1d   : > { %1159 = vmatprep.subr.bf16.mxu0 %v1294_v0 }
  0xd7   : > { %v315_v6 = vpop.f32.mrf.mxu0 }
  0xd8   : > { %v316_v7 = vadd.f32 %v1373_v5, %v315_v6 }
  0xd9   : > { %v1133_v8 = vpop.f32.mrf.mxu0 }
  0xda   : > { %329 = vrot.lane.b32.xlu0 %v316_v7, %s1296_s23  ;;  %v321_v12 = vadd.f32 %v316_v7, %v257_v11 }
  0xdb   : > { %v318_v9 = vpop.f32.mrf.mxu0 }
  0xdc   : > { %v1069_v13 = vmul.f32 -1.442695, %v321_v12 }
  0xdd   : > { %v1134_v10 = vpop.f32.mrf.mxu0 }
  0xde   : > { %1222 = vpow2.f32 %v1069_v13 }
  0xeb   : > { %v1223_v14 = vpop.eup %1222 }
  0xec   : > { %v325_v15 = vadd.f32 1.0, %v1223_v14 }
  0xee   : > { %1224 = vrcp.f32 %v325_v15 }
  0xfb   : > { %v1225_v16 = vpop.eup %1224 }
  0xfc   : > { %v339_v23 = vsub.f32 1.0, %v1225_v16 }
 0x14c   : > { %v330_v17 = vpop.permute.xlu0 %329 }
 0x14d   : > { %v332_v18 = vmul.f32 %v1225_v16, %v330_v17 }
 0x14f   : > { %334 = vrot.lane.b32.xlu0 %v332_v18, %s1296_s23 }
 0x1c1   : > { %v335_v19 = vpop.permute.xlu0 %334 }
 0x1c2   : > { %v337_v20 = vadd.f32 %v335_v19, %v257_v11 }
 0x1c4   : > { %1226 = vtanh.f32 %v337_v20 }
 0x1d1   : > { %v1227_v21 = vpop.eup %1226 }
 0x1d2   : > { %341 = vrot.lane.b32.xlu1 %v1227_v21, %s1297_s27 }
 0x1d6   : > { %346 = vrot.lane.b32.xlu1 %v256_v3, %s1298_s28 }
 0x244   : > { %v342_v22 = vpop.permute.xlu1 %341 }
 0x245   : > { %v344_v25 = vmul.f32 %v342_v22, %v339_v23 }
 0x248   : > { %v347_v24 = vpop.permute.xlu1 %346 }
 0x249   : > { %v349_v26 = vmul.f32 %v1225_v16, %v347_v24 }
 0x24b   : > { %v350_v27 = vadd.f32 %v349_v26, %v344_v25  ;;  %v1078_v26 = vld [vmem:[%s1381_s26 + $0x6] sm:$0x3] }
 0x24d   : > { %352 = vrot.lane.b32.xlu0 %v350_v27, %s1297_s27 }
 0x2bf   : > { %v353_v28 = vpop.permute.xlu0 %352 }
 0x2c0   : > { %356 = vst.msk [vmem:[#allocation2] sm:$0x3] %vm249_vm0, %v353_v28  ;;  %357 = vst.msk [vmem:[%s1392_s4] sm:$0x3] %vm249_vm0, %v353_v28 }
 0x2c7   : > { %v358_v29 = vld [vmem:[#allocation2] sm:$0x3] }
 0x2c8   : > { %v361_v30 = vpack.c.bf16 %v358_v29, %v358_v29 }
 0x2ca   : > { %1140 = vmatmul.mubr.msk.bf16.vlgmr.msra.gmra.mxu1 %vm277_vm2, %v361_v30 }
 0x2cb   : > { %1152 = vmatpush3.bf16.msra.mxu1 %v1351_v1  ;;  %1155 = vmatprep.mubr.msk.bf16.mxu1 %vm1295_vm1, %v1294_v0 }
 0x2cc   : > { %1153 = vmatprep.subr.bf16.mxu1 %v1294_v0 }
 0x2cf   : > { %1154 = vmatpush3.bf16.msra.mxu1 %v1354_v2 }
 0x2d0   : > { %1167 = vmatprep.subr.bf16.mxu1 %v1294_v0 }
 0x38a   : > { %v399_v31 = vpop.f32.mrf.mxu1 }
 0x38b   : > { %v400_v32 = vadd.f32 %v1373_v5, %v399_v31 }
 0x38c   : > { %v1141_v33 = vpop.f32.mrf.mxu1 }
 0x38d   : > { %413 = vrot.lane.b32.xlu1 %v400_v32, %s1296_s23  ;;  %v405_v37 = vadd.f32 %v1070_v36, %v400_v32 }
 0x38e   : > { %v402_v34 = vpop.f32.mrf.mxu1 }
 0x38f   : > { %v1072_v38 = vmul.f32 -1.442695, %v405_v37 }
 0x390   : > { %v1142_v35 = vpop.f32.mrf.mxu1 }
 0x391   : > { %1228 = vpow2.f32 %v1072_v38 }
 0x39e   : > { %v1229_v39 = vpop.eup %1228 }
 0x39f   : > { %v409_v40 = vadd.f32 1.0, %v1229_v39 }
 0x3a1   : > { %1230 = vrcp.f32 %v409_v40 }
 0x3ae   : > { %v1231_v41 = vpop.eup %1230 }
 0x3af   : > { %v423_v48 = vsub.f32 1.0, %v1231_v41 }
 0x3ff   : > { %v414_v42 = vpop.permute.xlu1 %413 }
 0x400   : > { %v416_v43 = vmul.f32 %v1231_v41, %v414_v42 }
 0x402   : > { %418 = vrot.lane.b32.xlu0 %v416_v43, %s1296_s23 }
 0x406   : > { %430 = vrot.lane.b32.xlu0 %v358_v29, %s1298_s28 }
 0x474   : > { %v419_v44 = vpop.permute.xlu0 %418 }
 0x475   : > { %v421_v45 = vadd.f32 %v1070_v36, %v419_v44 }
 0x477   : > { %1232 = vtanh.f32 %v421_v45 }
 0x478   : > { %v431_v47 = vpop.permute.xlu0 %430 }
 0x479   : > { %v433_v50 = vmul.f32 %v1231_v41, %v431_v47 }
 0x484   : > { %v1233_v46 = vpop.eup %1232 }
 0x485   : > { %425 = vrot.lane.b32.xlu1 %v1233_v46, %s1297_s27 }
 0x4f7   : > { %v426_v49 = vpop.permute.xlu1 %425 }
 0x4f8   : > { %v428_v51 = vmul.f32 %v426_v49, %v423_v48 }
 0x4fa   : > { %v434_v52 = vadd.f32 %v433_v50, %v428_v51  ;;  %v1082_v51 = vld [vmem:[%s1381_s26 + $0x8] sm:$0x3] }
 0x4fc   : > { %436 = vrot.lane.b32.xlu1 %v434_v52, %s1297_s27 }
 0x56e   : > { %v437_v53 = vpop.permute.xlu1 %436 }
 0x56f   : > { %439 = vst.msk [vmem:[#allocation2] sm:$0x3] %vm249_vm0, %v437_v53  ;;  %1073 = vst.msk [vmem:[%s1392_s4 + $0x2] sm:$0x3] %vm249_vm0, %v437_v53 }
 0x576   : > { %v442_v54 = vld [vmem:[#allocation2] sm:$0x3] }
 0x577   : > { %v445_v55 = vpack.c.bf16 %v442_v54, %v442_v54 }
 0x579   : > { %1148 = vmatmul.mubr.msk.bf16.vlgmr.msra.gmra.mxu0 %vm277_vm2, %v445_v55 }
 0x57a   : > { %1160 = vmatpush3.bf16.msra.mxu0 %v1351_v1  ;;  %1163 = vmatprep.mubr.msk.bf16.mxu0 %vm1295_vm1, %v1294_v0 }
 0x57b   : > { %1161 = vmatprep.subr.bf16.mxu0 %v1294_v0 }
 0x57e   : > { %1162 = vmatpush3.bf16.msra.mxu0 %v1354_v2 }
 0x57f   : > { %1175 = vmatprep.subr.bf16.mxu0 %v1294_v0 }
 0x639   : > { %v483_v56 = vpop.f32.mrf.mxu0 }
 0x63a   : > { %v484_v57 = vadd.f32 %v1373_v5, %v483_v56 }
 0x63b   : > { %v1149_v58 = vpop.f32.mrf.mxu0 }
 0x63c   : > { %497 = vrot.lane.b32.xlu0 %v484_v57, %s1296_s23  ;;  %v489_v62 = vadd.f32 %v1074_v61, %v484_v57 }
 0x63d   : > { %v486_v59 = vpop.f32.mrf.mxu0 }
 0x63e   : > { %v1076_v63 = vmul.f32 -1.442695, %v489_v62 }
 0x63f   : > { %v1150_v60 = vpop.f32.mrf.mxu0 }
 0x640   : > { %1234 = vpow2.f32 %v1076_v63 }
 0x64d   : > { %v1235_v3 = vpop.eup %1234 }
 0x64e   : > { %v493_v4 = vadd.f32 1.0, %v1235_v3 }
 0x650   : > { %1236 = vrcp.f32 %v493_v4 }
 0x65d   : > { %v1237_v6 = vpop.eup %1236 }
 0x65e   : > { %v507_v13 = vsub.f32 1.0, %v1237_v6 }
 0x6ae   : > { %v498_v7 = vpop.permute.xlu0 %497 }
 0x6af   : > { %v500_v8 = vmul.f32 %v1237_v6, %v498_v7 }
 0x6b1   : > { %502 = vrot.lane.b32.xlu1 %v500_v8, %s1296_s23 }
 0x6b5   : > { %514 = vrot.lane.b32.xlu1 %v442_v54, %s1298_s28 }
 0x723   : > { %v503_v9 = vpop.permute.xlu1 %502 }
 0x724   : > { %v505_v10 = vadd.f32 %v1074_v61, %v503_v9 }
 0x726   : > { %1238 = vtanh.f32 %v505_v10 }
 0x727   : > { %v515_v12 = vpop.permute.xlu1 %514 }
 0x728   : > { %v517_v15 = vmul.f32 %v1237_v6, %v515_v12 }
 0x733   : > { %v1239_v11 = vpop.eup %1238 }
 0x734   : > { %509 = vrot.lane.b32.xlu0 %v1239_v11, %s1297_s27 }
 0x7a6   : > { %v510_v14 = vpop.permute.xlu0 %509 }
 0x7a7   : > { %v512_v16 = vmul.f32 %v510_v14, %v507_v13 }
 0x7a9   : > { %v518_v17 = vadd.f32 %v517_v15, %v512_v16  ;;  %v1086_v16 = vld [vmem:[%s1381_s26 + $0xa] sm:$0x3] }
 0x7ab   : > { %520 = vrot.lane.b32.xlu0 %v518_v17, %s1297_s27 }
 0x81d   : > { %v521_v18 = vpop.permute.xlu0 %520 }
 0x81e   : > { %523 = vst.msk [vmem:[#allocation2] sm:$0x3] %vm249_vm0, %v521_v18  ;;  %1077 = vst.msk [vmem:[%s1392_s4 + $0x4] sm:$0x3] %vm249_vm0, %v521_v18 }
 0x825   : > { %v526_v19 = vld [vmem:[#allocation2] sm:$0x3] }
 0x826   : > { %v529_v20 = vpack.c.bf16 %v526_v19, %v526_v19 }
 0x828   : > { %1156 = vmatmul.mubr.msk.bf16.vlgmr.msra.gmra.mxu1 %vm277_vm2, %v529_v20 }
 0x829   : > { %1168 = vmatpush3.bf16.msra.mxu1 %v1351_v1  ;;  %1171 = vmatprep.mubr.msk.bf16.mxu1 %vm1295_vm1, %v1294_v0 }
 0x82a   : > { %1169 = vmatprep.subr.bf16.mxu1 %v1294_v0 }
 0x82d   : > { %1170 = vmatpush3.bf16.msra.mxu1 %v1354_v2 }
 0x82e   : > { %1183 = vmatprep.subr.bf16.mxu1 %v1294_v0 }
 0x8e8   : > { %v567_v21 = vpop.f32.mrf.mxu1 }
 0x8e9   : > { %v568_v22 = vadd.f32 %v1373_v5, %v567_v21 }
 0x8ea   : > { %v1157_v23 = vpop.f32.mrf.mxu1 }
 0x8eb   : > { %581 = vrot.lane.b32.xlu1 %v568_v22, %s1296_s23  ;;  %v573_v27 = vadd.f32 %v1078_v26, %v568_v22 }
 0x8ec   : > { %v570_v24 = vpop.f32.mrf.mxu1 }
 0x8ed   : > { %v1080_v28 = vmul.f32 -1.442695, %v573_v27 }
 0x8ee   : > { %v1158_v25 = vpop.f32.mrf.mxu1 }
 0x8ef   : > { %1240 = vpow2.f32 %v1080_v28 }
 0x8fc   : > { %v1241_v29 = vpop.eup %1240 }
 0x8fd   : > { %v577_v30 = vadd.f32 1.0, %v1241_v29 }
 0x8ff   : > { %1242 = vrcp.f32 %v577_v30 }
 0x90c   : > { %v1243_v31 = vpop.eup %1242 }
 0x90d   : > { %v591_v38 = vsub.f32 1.0, %v1243_v31 }
 0x95d   : > { %v582_v32 = vpop.permute.xlu1 %581 }
 0x95e   : > { %v584_v33 = vmul.f32 %v1243_v31, %v582_v32 }
 0x960   : > { %586 = vrot.lane.b32.xlu0 %v584_v33, %s1296_s23 }
 0x964   : > { %598 = vrot.lane.b32.xlu0 %v526_v19, %s1298_s28 }
 0x9d2   : > { %v587_v34 = vpop.permute.xlu0 %586 }
 0x9d3   : > { %v589_v35 = vadd.f32 %v1078_v26, %v587_v34 }
 0x9d5   : > { %1244 = vtanh.f32 %v589_v35 }
 0x9d6   : > { %v599_v37 = vpop.permute.xlu0 %598 }
 0x9d7   : > { %v601_v40 = vmul.f32 %v1243_v31, %v599_v37 }
 0x9e2   : > { %v1245_v36 = vpop.eup %1244 }
 0x9e3   : > { %593 = vrot.lane.b32.xlu1 %v1245_v36, %s1297_s27 }
 0xa55   : > { %v594_v39 = vpop.permute.xlu1 %593 }
 0xa56   : > { %v596_v41 = vmul.f32 %v594_v39, %v591_v38  ;;  %v1090_v38 = vld [vmem:[%s1381_s26 + $0xc] sm:$0x3] }
 0xa58   : > { %v602_v42 = vadd.f32 %v601_v40, %v596_v41 }
 0xa5a   : > { %604 = vrot.lane.b32.xlu1 %v602_v42, %s1297_s27 }
 0xacc   : > { %v605_v43 = vpop.permute.xlu1 %604 }
 0xacd   : > { %607 = vst.msk [vmem:[#allocation2] sm:$0x3] %vm249_vm0, %v605_v43  ;;  %1081 = vst.msk [vmem:[%s1392_s4 + $0x6] sm:$0x3] %vm249_vm0, %v605_v43 }
 0xad4   : > { %v610_v44 = vld [vmem:[#allocation2] sm:$0x3] }
 0xad5   : > { %v613_v45 = vpack.c.bf16 %v610_v44, %v610_v44 }
 0xad7   : > { %1164 = vmatmul.mubr.msk.bf16.vlgmr.msra.gmra.mxu0 %vm277_vm2, %v613_v45 }
 0xad8   : > { %1176 = vmatpush3.bf16.msra.mxu0 %v1351_v1  ;;  %1179 = vmatprep.mubr.msk.bf16.mxu0 %vm1295_vm1, %v1294_v0 }
 0xad9   : > { %1177 = vmatprep.subr.bf16.mxu0 %v1294_v0 }
 0xadc   : > { %1178 = vmatpush3.bf16.msra.mxu0 %v1354_v2 }
 0xb97   : > { %v651_v46 = vpop.f32.mrf.mxu0 }
 0xb98   : > { %v652_v47 = vadd.f32 %v1373_v5, %v651_v46 }
 0xb99   : > { %v1165_v48 = vpop.f32.mrf.mxu0 }
 0xb9a   : > { %665 = vrot.lane.b32.xlu0 %v652_v47, %s1296_s23  ;;  %v657_v52 = vadd.f32 %v1082_v51, %v652_v47 }
 0xb9b   : > { %v654_v49 = vpop.f32.mrf.mxu0 }
 0xb9c   : > { %v1084_v53 = vmul.f32 -1.442695, %v657_v52 }
 0xb9d   : > { %v1166_v50 = vpop.f32.mrf.mxu0 }
 0xb9e   : > { %1246 = vpow2.f32 %v1084_v53 }
 0xbab   : > { %v1247_v54 = vpop.eup %1246 }
 0xbac   : > { %v661_v55 = vadd.f32 1.0, %v1247_v54 }
 0xbae   : > { %1248 = vrcp.f32 %v661_v55 }
 0xbbb   : > { %v1249_v56 = vpop.eup %1248 }
 0xbbc   : > { %v675_v63 = vsub.f32 1.0, %v1249_v56 }
 0xc0c   : > { %v666_v57 = vpop.permute.xlu0 %665 }
 0xc0d   : > { %v668_v58 = vmul.f32 %v1249_v56, %v666_v57 }
 0xc0f   : > { %670 = vrot.lane.b32.xlu1 %v668_v58, %s1296_s23 }
 0xc13   : > { %682 = vrot.lane.b32.xlu1 %v610_v44, %s1298_s28 }
 0xc81   : > { %v671_v59 = vpop.permute.xlu1 %670 }
 0xc82   : > { %v673_v60 = vadd.f32 %v1082_v51, %v671_v59 }
 0xc84   : > { %1250 = vtanh.f32 %v673_v60 }
 0xc85   : > { %v683_v62 = vpop.permute.xlu1 %682 }
 0xc86   : > { %v685_v4 = vmul.f32 %v1249_v56, %v683_v62 }
 0xc91   : > { %v1251_v61 = vpop.eup %1250 }
 0xc92   : > { %677 = vrot.lane.b32.xlu0 %v1251_v61, %s1297_s27 }
 0xd04   : > { %v678_v3 = vpop.permute.xlu0 %677 }
 0xd05   : > { %v680_v6 = vmul.f32 %v678_v3, %v675_v63  ;;  %v1094_v63 = vld [vmem:[%s1381_s26 + $0xe] sm:$0x3] }
 0xd07   : > { %v686_v7 = vadd.f32 %v685_v4, %v680_v6 }
 0xd09   : > { %688 = vrot.lane.b32.xlu0 %v686_v7, %s1297_s27 }
 0xd7b   : > { %v689_v8 = vpop.permute.xlu0 %688 }
 0xd7c   : > { %691 = vst.msk [vmem:[#allocation2] sm:$0x3] %vm249_vm0, %v689_v8  ;;  %1085 = vst.msk [vmem:[%s1392_s4 + $0x8] sm:$0x3] %vm249_vm0, %v689_v8 }
 0xd83   : > { %v694_v9 = vld [vmem:[#allocation2] sm:$0x3] }
 0xd84   : > { %v697_v10 = vpack.c.bf16 %v694_v9, %v694_v9 }
 0xd86   : > { %1172 = vmatmul.mubr.msk.bf16.vlgmr.msra.gmra.mxu1 %vm277_vm2, %v697_v10 }
 0xd87   : > { %1184 = vmatpush3.bf16.msra.mxu1 %v1351_v1  ;;  %1187 = vmatprep.mubr.msk.bf16.mxu1 %vm1295_vm1, %v1294_v0 }
 0xd88   : > { %1185 = vmatprep.subr.bf16.mxu1 %v1294_v0 }
 0xd8b   : > { %1186 = vmatpush3.bf16.msra.mxu1 %v1354_v2 }
 0xe46   : > { %v735_v11 = vpop.f32.mrf.mxu1 }
 0xe47   : > { %v736_v12 = vadd.f32 %v1373_v5, %v735_v11 }
 0xe48   : > { %v1173_v13 = vpop.f32.mrf.mxu1 }
 0xe49   : > { %749 = vrot.lane.b32.xlu1 %v736_v12, %s1296_s23  ;;  %v741_v17 = vadd.f32 %v1086_v16, %v736_v12 }
 0xe4a   : > { %v738_v14 = vpop.f32.mrf.mxu1 }
 0xe4b   : > { %v1088_v18 = vmul.f32 -1.442695, %v741_v17 }
 0xe4c   : > { %v1174_v15 = vpop.f32.mrf.mxu1 }
 0xe4d   : > { %1252 = vpow2.f32 %v1088_v18 }
 0xe5a   : > { %v1253_v1 = vpop.eup %1252 }
 0xe5b   : > { %v745_v19 = vadd.f32 1.0, %v1253_v1 }
 0xe5d   : > { %1254 = vrcp.f32 %v745_v19 }
 0xe6a   : > { %v1255_v20 = vpop.eup %1254 }
 0xe6b   : > { %v759_v25 = vsub.f32 1.0, %v1255_v20 }
 0xebb   : > { %v750_v21 = vpop.permute.xlu1 %749 }
 0xebc   : > { %v752_v0 = vmul.f32 %v1255_v20, %v750_v21 }
 0xebe   : > { %754 = vrot.lane.b32.xlu0 %v752_v0, %s1296_s23 }
 0xec2   : > { %766 = vrot.lane.b32.xlu0 %v694_v9, %s1298_s28 }
 0xf30   : > { %v755_v2 = vpop.permute.xlu0 %754 }
 0xf31   : > { %v757_v22 = vadd.f32 %v1086_v16, %v755_v2 }
 0xf33   : > { %1256 = vtanh.f32 %v757_v22 }
 0xf34   : > { %v767_v24 = vpop.permute.xlu0 %766 }
 0xf35   : > { %v769_v27 = vmul.f32 %v1255_v20, %v767_v24 }
 0xf40   : > { %v1257_v23 = vpop.eup %1256 }
 0xf41   : > { %761 = vrot.lane.b32.xlu1 %v1257_v23, %s1297_s27 }
 0xfb3   : > { %v762_v26 = vpop.permute.xlu1 %761 }
 0xfb4   : > { %v764_v28 = vmul.f32 %v762_v26, %v759_v25 }
 0xfb6   : > { %v770_v29 = vadd.f32 %v769_v27, %v764_v28 }
 0xfb8   : > { %772 = vrot.lane.b32.xlu1 %v770_v29, %s1297_s27 }
0x102a   : > { %v773_v30 = vpop.permute.xlu1 %772 }
0x102b   : > { %775 = vst.msk [vmem:[#allocation2] sm:$0x3] %vm249_vm0, %v773_v30  ;;  %1089 = vst.msk [vmem:[%s1392_s4 + $0xa] sm:$0x3] %vm249_vm0, %v773_v30 }
0x1032   : > { %v778_v31 = vld [vmem:[#allocation2] sm:$0x3] }
0x1033   : > { %v781_v32 = vpack.c.bf16 %v778_v31, %v778_v31 }
0x1035   : > { %1180 = vmatmul.mubr.msk.bf16.vlgmr.msra.gmra.mxu0 %vm277_vm2, %v781_v32 }
0x10f5   : > { %v819_v33 = vpop.f32.mrf.mxu0 }
0x10f6   : > { %v820_v34 = vadd.f32 %v1373_v5, %v819_v33 }
0x10f7   : > { %v1181_v35 = vpop.f32.mrf.mxu0 }
0x10f8   : > { %833 = vrot.lane.b32.xlu0 %v820_v34, %s1296_s23  ;;  %v825_v39 = vadd.f32 %v1090_v38, %v820_v34 }
0x10f9   : > { %v822_v36 = vpop.f32.mrf.mxu0 }
0x10fa   : > { %v1092_v40 = vmul.f32 -1.442695, %v825_v39 }
0x10fb   : > { %v1182_v37 = vpop.f32.mrf.mxu0 }
0x10fc   : > { %1258 = vpow2.f32 %v1092_v40 }
0x1109   : > { %v1259_v41 = vpop.eup %1258 }
0x110a   : > { %v829_v42 = vadd.f32 1.0, %v1259_v41 }
0x110c   : > { %1260 = vrcp.f32 %v829_v42 }
0x1119   : > { %v1261_v43 = vpop.eup %1260 }
0x111a   : > { %v843_v50 = vsub.f32 1.0, %v1261_v43 }
0x116a   : > { %v834_v44 = vpop.permute.xlu0 %833 }
0x116b   : > { %v836_v45 = vmul.f32 %v1261_v43, %v834_v44 }
0x116d   : > { %838 = vrot.lane.b32.xlu1 %v836_v45, %s1296_s23 }
0x1171   : > { %850 = vrot.lane.b32.xlu1 %v778_v31, %s1298_s28 }
0x11df   : > { %v839_v46 = vpop.permute.xlu1 %838 }
0x11e0   : > { %v841_v47 = vadd.f32 %v1090_v38, %v839_v46 }
0x11e2   : > { %1262 = vtanh.f32 %v841_v47 }
0x11e3   : > { %v851_v49 = vpop.permute.xlu1 %850 }
0x11e4   : > { %v853_v52 = vmul.f32 %v1261_v43, %v851_v49 }
0x11ef   : > { %v1263_v48 = vpop.eup %1262 }
0x11f0   : > { %845 = vrot.lane.b32.xlu0 %v1263_v48, %s1297_s27 }
0x1262   : > { %v846_v51 = vpop.permute.xlu0 %845 }
0x1263   : > { %v848_v53 = vmul.f32 %v846_v51, %v843_v50 }
0x1265   : > { %v854_v54 = vadd.f32 %v853_v52, %v848_v53 }
0x1267   : > { %856 = vrot.lane.b32.xlu0 %v854_v54, %s1297_s27 }
0x12d9   : > { %v857_v55 = vpop.permute.xlu0 %856 }
0x12da   : > { %859 = vst.msk [vmem:[#allocation2] sm:$0x3] %vm249_vm0, %v857_v55  ;;  %1093 = vst.msk [vmem:[%s1392_s4 + $0xc] sm:$0x3] %vm249_vm0, %v857_v55 }
0x12e1   : > { %v862_v56 = vld [vmem:[#allocation2] sm:$0x3] }
0x12e2   : > { %v865_v57 = vpack.c.bf16 %v862_v56, %v862_v56 }
0x12e4   : > { %1188 = vmatmul.mubr.msk.bf16.vlgmr.msra.gmra.mxu1 %vm277_vm2, %v865_v57 }
0x13a4   : > { %v903_v58 = vpop.f32.mrf.mxu1 }
0x13a5   : > { %v904_v59 = vadd.f32 %v1373_v5, %v903_v58 }
0x13a6   : > { %v1189_v60 = vpop.f32.mrf.mxu1 }
0x13a7   : > { %917 = vrot.lane.b32.xlu1 %v904_v59, %s1296_s23  ;;  %v909_v3 = vadd.f32 %v1094_v63, %v904_v59 }
0x13a8   : > { %v906_v61 = vpop.f32.mrf.mxu1 }
0x13a9   : > { %v1096_v4 = vmul.f32 -1.442695, %v909_v3 }
0x13aa   : > { %v1190_v62 = vpop.f32.mrf.mxu1 }
0x13ab   : > { %1264 = vpow2.f32 %v1096_v4 }
0x13b8   : > { %v1265_v6 = vpop.eup %1264 }
0x13b9   : > { %v913_v7 = vadd.f32 1.0, %v1265_v6 }
0x13bb   : > { %1266 = vrcp.f32 %v913_v7 }
0x13c8   : > { %v1267_v8 = vpop.eup %1266 }
0x13c9   : > { %v927_v14 = vsub.f32 1.0, %v1267_v8 }
0x1419   : > { %v918_v9 = vpop.permute.xlu1 %917 }
0x141a   : > { %v920_v10 = vmul.f32 %v1267_v8, %v918_v9 }
0x141c   : > { %922 = vrot.lane.b32.xlu0 %v920_v10, %s1296_s23 }
0x1420   : > { %934 = vrot.lane.b32.xlu0 %v862_v56, %s1298_s28 }
0x148e   : > { %v923_v5 = vpop.permute.xlu0 %922 }
0x148f   : > { %v925_v11 = vadd.f32 %v1094_v63, %v923_v5 }
0x1491   : > { %1268 = vtanh.f32 %v925_v11 }
0x1492   : > { %v935_v13 = vpop.permute.xlu0 %934 }
0x1493   : > { %v937_v16 = vmul.f32 %v1267_v8, %v935_v13 }
0x149e   : > { %v1269_v12 = vpop.eup %1268 }
0x149f   : > { %929 = vrot.lane.b32.xlu1 %v1269_v12, %s1297_s27 }
0x1511   : > { %v930_v15 = vpop.permute.xlu1 %929 }
0x1512   : > { %v932_v17 = vmul.f32 %v930_v15, %v927_v14 }
0x1514   : > { %v938_v18 = vadd.f32 %v937_v16, %v932_v17 }
0x1516   : > { %940 = vrot.lane.b32.xlu1 %v938_v18, %s1297_s27 }
0x1588   : > { %v941_v1 = vpop.permute.xlu1 %940 }
0x1589   : > { %943 = vst.msk [vmem:[#allocation2] sm:$0x3] %vm249_vm0, %v941_v1  ;;  %1097 = vst.msk [vmem:[%s1392_s4 + $0xe] sm:$0x3] %vm249_vm0, %v941_v1 }
0x158a PF: > { %s13_s14 = sadd.s32 1, %s1292_s14   ;;  %s1515_s12 = smov %s1288_s13 }
0x158b   : > { %p10_p5 = scmp.ge.s32.totalorder %s13_s14, 4   ;;  %s1516_s13 = smov %s1518_s15 }
0x158d   :  { %12 = sbr.rel (!%p10_p5) target bundleno = 2 (0x2), region = 86 }

// kernel: forward.36
= control target key start
LH: loop header
LB: loop body
LE: loop exit
PB: predicated region body
PF: predicated region fallthrough
CT: control target
= control target key end

     0   :  { %vm23_vm0 = vcmask 523264   ;;  %v274_v15 = vmov 0   ;;  %s363_s0 = inlined_call_operand.vmem [shape: f32[16,64], index: 0, kind: input, shape index: {}]   ;;  %s364_s3 = inlined_call_operand.vmem [shape: bf16[64,192], index: 3, kind: input, shape index: {}]   ;;  %s365_s1 = inlined_call_operand.vmem [shape: f32[1,64], index: 1, kind: input, shape index: {}]   ;;  %s366_s2 = inlined_call_operand.vmem [shape: f32[1,64], index: 2, kind: input, shape index: {}]   ;;  %s367_s4 = inlined_call_operand.vmem [shape: f32[1,192], index: 4, kind: input, shape index: {}]   ;;  %s368_s5 = inlined_call_operand.vmem [shape: f32[16,192], index: 5, kind: output, shape index: {}]  }
   0x1   :  { %v21_v0 = vld [vmem:[%s363_s0] sm:$0xff]  ;;  %v22_v1 = vld [vmem:[%s363_s0 + $0x8] sm:$0xff]  ;;  %v250_v14 = vld [vmem:[%s364_s3 + $0x34] ss:$8 sps:$4 sm:$0xff]   ;;  %219 = vmatprep.mubr.bf16.mxu0 %v274_v15 }
   0x2   :  { %v24_v2 = vsel %vm23_vm0, %v21_v0, 0.0  ;;  %v27_v3 = vsel %vm23_vm0, %v22_v1, 0.0  ;;  %v252_v16 = vld [vmem:[%s364_s3 + $0x30] ss:$8 sps:$4 sm:$0xff]   ;;  %195 = vmatprep.subr.bf16.mxu0 %v250_v14  ;;  %v253_v17 = vld [vmem:[%s364_s3 + $0x24] ss:$8 sps:$4 sm:$0xff]  }
   0x3   :  { %25 = vadd.xlane.f32.xlu0 %v24_v2  ;;  %196 = vmatpush1.bf16.msra.mxu0 %v252_v16  ;;  %v255_v18 = vld [vmem:[%s364_s3 + $0x20] ss:$8 sps:$4 sm:$0xff]   ;;  %v256_v19 = vld [vmem:[%s364_s3 + $0x14] ss:$8 sps:$4 sm:$0xff]   ;;  %v258_v20 = vld [vmem:[%s364_s3 + $0x10] ss:$8 sps:$4 sm:$0xff]  }
   0x4   :  { %197 = vmatprep.subr.bf16.mxu0 %v253_v17  ;;  %v259_v21 = vld [vmem:[%s364_s3 + $0x4] ss:$8 sps:$4 sm:$0xff]   ;;  %v261_v22 = vld [vmem:[%s364_s3] ss:$8 sps:$4 sm:$0xff]  }
   0x5   :  { %v238_v30 = vld [vmem:[%s365_s1] ss:$0 sm:$0xff] }
   0x6   :  { %v239_v32 = vld [vmem:[%s366_s2] ss:$0 sm:$0xff] }
   0x7   :  { %28 = vadd.xlane.f32.xlu0 %v27_v3  ;;  %198 = vmatpush1.bf16.msra.mxu0 %v255_v18 }
   0x8   :  { %199 = vmatprep.subr.bf16.mxu0 %v256_v19 }
   0xb   :  { %200 = vmatpush1.bf16.msra.mxu0 %v258_v20 }
   0xc   :  { %201 = vmatprep.subr.bf16.mxu0 %v259_v21 }
   0xf   :  { %202 = vmatpush1.bf16.msra.mxu0 %v261_v22 }
  0x8c   :  { %v26_v4 = vpop.xlane.xlu0 %25 }
  0x8d   :  { %v31_v5 = vmul.f32 0.015625, %v26_v4 }
  0x8f   :  { %v33_v6 = vsub.f32 %v21_v0, %v31_v5 }
  0x90   :  { %v29_v7 = vpop.xlane.xlu0 %28 }
  0x91   :  { %v32_v8 = vmul.f32 0.015625, %v29_v7  ;;  %v35_v9 = vmul.f32 %v33_v6, %v33_v6 }
  0x93   :  { %v34_v10 = vsub.f32 %v22_v1, %v32_v8  ;;  %v37_v11 = vsel %vm23_vm0, %v35_v9, 0.0 }
  0x94   :  { %38 = vadd.xlane.f32.xlu1 %v37_v11 }
  0x95   :  { %v36_v12 = vmul.f32 %v34_v10, %v34_v10 }
  0x97   :  { %v40_v13 = vsel %vm23_vm0, %v36_v12, 0.0 }
  0x98   :  { %41 = vadd.xlane.f32.xlu1 %v40_v13 }
 0x11d   :  { %v39_v23 = vpop.xlane.xlu1 %38 }
 0x11e   :  { %v43_v24 = vmul.f32 0.015625, %v39_v23 }
 0x120   :  { %v45_v25 = vadd.f32 1e-05, %v43_v24 }
 0x121   :  { %v42_v26 = vpop.xlane.xlu1 %41 }
 0x122   :  { %262 = vrsqrt.f32 %v45_v25  ;;  %v44_v27 = vmul.f32 0.015625, %v42_v26  ;;  %v134_v26 = vlaneseq }
 0x124   :  { %v46_v28 = vadd.f32 1e-05, %v44_v27  ;;  %v135_v27 = vshrl.u32 %v134_v26, 7 }
 0x126   :  { %264 = vrsqrt.f32 %v46_v28  ;;  %v136_v28 = vsub.s32 0, %v135_v27 }
 0x12f   :  { %v263_v29 = vpop.eup %262 }
 0x130   :  { %v49_v31 = vmul.f32 %v263_v29, %v33_v6  ;;  %v132_v29 = vld [vmem:[%s367_s4] sm:$0x3] }
 0x132   :  { %v58_v33 = vmul.f32 %v238_v30, %v49_v31  ;;  %v137_v31 = vrot.slane %v132_v29, %v136_v28 }
 0x133   :  { %v265_v34 = vpop.eup %264 }
 0x134   :  { %v50_v35 = vmul.f32 %v265_v34, %v34_v10  ;;  %v67_v36 = vadd.f32 %v239_v32, %v58_v33 }
 0x136   :  { %v59_v37 = vmul.f32 %v238_v30, %v50_v35  ;;  %v71_v38 = vmul.f32 0.70710677, %v67_v36  ;;  %v69_v20 = vmul.f32 0.5, %v67_v36  ;;  %v140_v30 = vsub.s32 1, %v135_v27 }
 0x138   :  { %v68_v39 = vadd.f32 %v239_v32, %v59_v37  ;;  %v73_v40 = vand.u32 2147483647, %v71_v38  ;;  %vm113_vm1 = vcmp.ge.f32.partialorder %v71_v38, 0.0  ;;  %v141_v32 = vrot.slane %v132_v29, %v140_v30 }
 0x13a   :  { %v72_v41 = vmul.f32 0.70710677, %v68_v39  ;;  %v75_v42 = vmul.f32 0.3275911, %v73_v40  ;;  %v101_v47 = vsub.f32 0.0, %v73_v40  ;;  %v70_v21 = vmul.f32 0.5, %v68_v39 }
 0x13c   :  { %v74_v43 = vand.u32 2147483647, %v72_v41  ;;  %v77_v44 = vadd.f32 1.0, %v75_v42  ;;  %v103_v49 = vmul.f32 %v101_v47, %v73_v40  ;;  %vm114_vm2 = vcmp.ge.f32.partialorder %v72_v41, 0.0 }
 0x13e   :  { %v76_v45 = vmul.f32 0.3275911, %v74_v43  ;;  %266 = vrcp.f32 %v77_v44  ;;  %v102_v48 = vsub.f32 0.0, %v74_v43  ;;  %v105_v53 = vmul.f32 1.442695, %v103_v49 }
 0x140   :  { %v78_v46 = vadd.f32 1.0, %v76_v45  ;;  %v104_v52 = vmul.f32 %v102_v48, %v74_v43 }
 0x142   :  { %268 = vrcp.f32 %v78_v46  ;;  %v107_v58 = vmul.f32 1.442695, %v104_v52 }
 0x143   :  { %270 = vpow2.f32 %v105_v53 }
 0x144   :  { %272 = vpow2.f32 %v107_v58 }
 0x14b   :  { %v267_v50 = vpop.eup %266 }
 0x14c   :  { %v83_v51 = vmul.f32 1.0614054, %v267_v50 }
 0x14e   :  { %v85_v54 = vadd.f32 -1.4531521, %v83_v51 }
 0x14f   :  { %v269_v55 = vpop.eup %268 }
 0x150   :  { %v84_v56 = vmul.f32 1.0614054, %v269_v55  ;;  %v87_v57 = vmul.f32 %v267_v50, %v85_v54  ;;  %v271_v7 = vpop.eup %270 }
 0x151   :  { %v273_v12 = vpop.eup %272 }
 0x152   :  { %v86_v59 = vadd.f32 -1.4531521, %v84_v56  ;;  %v89_v60 = vadd.f32 1.4214138, %v87_v57 }
 0x154   :  { %v88_v61 = vmul.f32 %v269_v55, %v86_v59  ;;  %v91_v62 = vmul.f32 %v267_v50, %v89_v60 }
 0x156   :  { %v90_v63 = vadd.f32 1.4214138, %v88_v61  ;;  %v93_v0 = vadd.f32 -0.28449672, %v91_v62 }
 0x158   :  { %v92_v1 = vmul.f32 %v269_v55, %v90_v63  ;;  %v95_v2 = vmul.f32 %v267_v50, %v93_v0 }
 0x15a   :  { %v94_v3 = vadd.f32 -0.28449672, %v92_v1  ;;  %v97_v4 = vadd.f32 0.2548296, %v95_v2 }
 0x15c   :  { %v96_v5 = vmul.f32 %v269_v55, %v94_v3  ;;  %v99_v6 = vmul.f32 %v267_v50, %v97_v4 }
 0x15e   :  { %v98_v8 = vadd.f32 0.2548296, %v96_v5  ;;  %v109_v9 = vmul.f32 %v271_v7, %v99_v6 }
 0x160   :  { %v100_v10 = vmul.f32 %v269_v55, %v98_v8  ;;  %v111_v11 = vsub.f32 1.0, %v109_v9 }
 0x162   :  { %v110_v13 = vmul.f32 %v273_v12, %v100_v10  ;;  %v115_v14 = vsub.f32 0.0, %v111_v11 }
 0x164   :  { %v112_v15 = vsub.f32 1.0, %v110_v13  ;;  %v117_v16 = vsel %vm113_vm1, %v111_v11, %v115_v14 }
 0x165   :  { %v119_v18 = vadd.f32 1.0, %v117_v16 }
 0x166   :  { %v116_v17 = vsub.f32 0.0, %v112_v15 }
 0x167   :  { %v121_v23 = vmul.f32 %v119_v18, %v69_v20 }
 0x168   :  { %v118_v19 = vsel %vm114_vm2, %v112_v15, %v116_v17 }
 0x169   :  { %v120_v22 = vadd.f32 1.0, %v118_v19 }
 0x16b   :  { %v122_v24 = vmul.f32 %v120_v22, %v70_v21 }
 0x16d   :  { %v123_v25 = vpack.c.bf16 %v122_v24, %v121_v23 }
 0x16f   :  { %248 = vmatmul.mubr.msk.bf16.vlgmr.msra.gmra.mxu0 %vm23_vm0, %v123_v25 }
 0x22f   :  { %v221_v33 = vpop.f32.mrf.mxu0 }
 0x230   :  { %v222_v34 = vadd.f32 %v221_v33, %v137_v31 }
 0x231   :  { %v223_v35 = vpop.f32.mrf.mxu0 }
 0x232   :  { %230 = vst [vmem:[%s368_s5] sm:$0xff] %v222_v34  ;;  %v224_v36 = vadd.f32 %v223_v35, %v141_v32 }
 0x233   :  { %v225_v37 = vpop.f32.mrf.mxu0 }
 0x234   :  { %231 = vst.msk [vmem:[%s368_s5 + $0x8] sm:$0xff] %vm23_vm0, %v224_v36  ;;  %v226_v38 = vadd.f32 %v225_v37, %v137_v31 }
 0x235   :  { %v227_v39 = vpop.f32.mrf.mxu0 }
 0x236   :  { %232 = vst [vmem:[%s368_s5 + $0x10] sm:$0xff] %v226_v38  ;;  %v228_v40 = vadd.f32 %v227_v39, %v141_v32 }
 0x238   :  { %233 = vst.msk [vmem:[%s368_s5 + $0x18] sm:$0xff] %vm23_vm0, %v228_v40 }

// kernel: forward.37
= control target key start
LH: loop header
LB: loop body
LE: loop exit
PB: predicated region body
PF: predicated region fallthrough
CT: control target
= control target key end

     0   :  { %s688_s12 = smov 0   ;;  %s690_s13 = smov 0   ;;  %s757_s0 = inlined_call_operand.vmem [shape: f32[2,2,8,96], index: 0, kind: input, shape index: {}]   ;;  %s758_s1 = inlined_call_operand.vmem [shape: bf16[2,32,96], index: 1, kind: input, shape index: {}]   ;;  %s759_s2 = inlined_call_operand.vmem [shape: f32[2,1,96], index: 2, kind: input, shape index: {}]   ;;  %s760_s3 = inlined_call_operand.vmem [shape: f32[2,2,8,32], index: 3, kind: output, shape index: {}]  }
   0x1   :  { %s692_s14 = smov 0  }
   0x2 LB: > { %s25_s15 = sadd.s32 1, %s657_s13  ;;  %p553_p0 = scmp.ge.s32.totalorder %s661_s14, 1  ;;  %s661_s14 = sphi %s692_s14, %s13_s14   ;;  %s657_s13 = sphi %s690_s13, %s762_s13   ;;  %s653_s12 = sphi %s688_s12, %s761_s12  }
   0x3   : > { %p27_p1 = scmp.ge.s32.totalorder %s25_s15, 2  ;;  %p176_p2 = scmp.lt.s32.totalorder %s661_s14, 3 }
   0x5   : > { %s764_s15 = smov (%p27_p1, %s25_s15), 0  ;;  %p177_p3 = pnand %p553_p0, %p176_p2 }
   0x6   : > { %p217_p4 = scmp.lt.s32.totalorder (!%p177_p3), %s653_s12, 1  ;;  %s665_s23 = smov (!%p177_p3), 64  }
   0x7   : > { %180 = sbr.rel (%p177_p3) target bundleno = 1392 (0x570), region = 32  ;;  %s666_s27 = smov (!%p177_p3), 96  }
   0x8   : > { %s667_s28 = smov (!%p177_p3), 32  }
   0xc   : > { %vm249_vm0 = vcmask 261120   ;;  %v663_v0 = vmov 0.0   ;;  %vm664_vm1 = vmmov 0   ;;  %s766_s12 = smov (!%p217_p4, %s653_s12), 1 }
   0xd   : > { %580 = vmatprep.subr.bf16.mxu0 %v663_v0  ;;  %584 = vmatprep.mubr.msk.bf16.mxu0 %vm664_vm1, %v663_v0  ;;  %250 = vst.msk [vmem:[#allocation2] sm:$0xff] %vm249_vm0, %v663_v0  ;;  %s707_s16 = sshll.u32 %s766_s12, 4  ;;  %s233_s22 = scalar_lea.vmem %s759_s2, %s766_s12 }
   0xe   : > { %588 = vmatprep.subr.bf16.mxu1 %v663_v0  ;;  %592 = vmatprep.mubr.msk.bf16.mxu1 %vm664_vm1, %v663_v0  ;;  %s230_s19 = scalar_lea.vmem %s758_s1, %s707_s16  ;;  %v560_v5 = vld [vmem:[%s233_s22] ss:$0 sm:$0xff]  ;;  %s722_s26 = scalar_lea.vmem %s757_s0, %s707_s16 }
   0xf   : > { %v625_v1 = vld [vmem:[%s230_s19 + $0x8] sm:$0xff]   ;;  %v626_v2 = vld [vmem:[%s230_s19] sm:$0xff]   ;;  %s733_s4 = scalar_lea.vmem %s760_s3, %s707_s16 }
  0x10   : > { %581 = vmatpush3.bf16.msra.mxu0 %v625_v1  ;;  %589 = vmatpush3.bf16.msra.mxu1 %v625_v1  ;;  %v257_v11 = vld [vmem:[%s722_s26] sm:$0xff]  ;;  %v565_v36 = vld [vmem:[%s722_s26 + $0x8] sm:$0xff] }
  0x11   : > { %582 = vmatprep.subr.bf16.mxu0 %v663_v0  ;;  %590 = vmatprep.subr.bf16.mxu1 %v663_v0 }
  0x14   : > { %v256_v3 = vld [vmem:[#allocation2] sm:$0xff]  ;;  %583 = vmatpush3.bf16.msra.mxu0 %v626_v2  ;;  %591 = vmatpush3.bf16.msra.mxu1 %v626_v2 }
  0x15   : > { %v258_v4 = vpack.c.bf16 %v256_v3, %v256_v3 }
  0x17   : > { %585 = vmatmul.mubr.msk.bf16.vlgmr.msra.gmra.mxu0 %vm249_vm0, %v258_v4 }
  0xd7   : > { %v315_v6 = vpop.f32.mrf.mxu0 }
  0xd8   : > { %v316_v7 = vadd.f32 %v560_v5, %v315_v6 }
  0xd9   : > { %v586_v8 = vpop.f32.mrf.mxu0 }
  0xda   : > { %329 = vrot.lane.b32.xlu0 %v316_v7, %s665_s23  ;;  %v321_v12 = vadd.f32 %v316_v7, %v257_v11 }
  0xdb   : > { %v318_v9 = vpop.f32.mrf.mxu0 }
  0xdc   : > { %v564_v13 = vmul.f32 -1.442695, %v321_v12 }
  0xdd   : > { %v587_v10 = vpop.f32.mrf.mxu0 }
  0xde   : > { %627 = vpow2.f32 %v564_v13 }
  0xeb   : > { %v628_v14 = vpop.eup %627 }
  0xec   : > { %v325_v15 = vadd.f32 1.0, %v628_v14 }
  0xee   : > { %629 = vrcp.f32 %v325_v15 }
  0xfb   : > { %v630_v16 = vpop.eup %629 }
  0xfc   : > { %v339_v23 = vsub.f32 1.0, %v630_v16 }
 0x14c   : > { %v330_v17 = vpop.permute.xlu0 %329 }
 0x14d   : > { %v332_v18 = vmul.f32 %v630_v16, %v330_v17 }
 0x14f   : > { %334 = vrot.lane.b32.xlu0 %v332_v18, %s665_s23 }
 0x1c1   : > { %v335_v19 = vpop.permute.xlu0 %334 }
 0x1c2   : > { %v337_v20 = vadd.f32 %v335_v19, %v257_v11 }
 0x1c4   : > { %631 = vtanh.f32 %v337_v20 }
 0x1d1   : > { %v632_v21 = vpop.eup %631 }
 0x1d2   : > { %341 = vrot.lane.b32.xlu1 %v632_v21, %s666_s27 }
 0x1d6   : > { %346 = vrot.lane.b32.xlu1 %v256_v3, %s667_s28 }
 0x244   : > { %v342_v22 = vpop.permute.xlu1 %341 }
 0x245   : > { %v344_v25 = vmul.f32 %v342_v22, %v339_v23 }
 0x248   : > { %v347_v24 = vpop.permute.xlu1 %346 }
 0x249   : > { %v349_v26 = vmul.f32 %v630_v16, %v347_v24 }
 0x24b   : > { %v350_v27 = vadd.f32 %v349_v26, %v344_v25 }
 0x24d   : > { %352 = vrot.lane.b32.xlu0 %v350_v27, %s666_s27 }
 0x2bf   : > { %v353_v28 = vpop.permute.xlu0 %352 }
 0x2c0   : > { %355 = vst.msk [vmem:[#allocation2] sm:$0xff] %vm249_vm0, %v353_v28  ;;  %356 = vst.msk [vmem:[%s733_s4] sm:$0xff] %vm249_vm0, %v353_v28 }
 0x2c7   : > { %v357_v29 = vld [vmem:[#allocation2] sm:$0xff] }
 0x2c8   : > { %v360_v30 = vpack.c.bf16 %v357_v29, %v357_v29 }
 0x2ca   : > { %593 = vmatmul.mubr.msk.bf16.vlgmr.msra.gmra.mxu1 %vm249_vm0, %v360_v30 }
 0x38a   : > { %v398_v31 = vpop.f32.mrf.mxu1 }
 0x38b   : > { %v399_v32 = vadd.f32 %v560_v5, %v398_v31 }
 0x38c   : > { %v594_v33 = vpop.f32.mrf.mxu1 }
 0x38d   : > { %412 = vrot.lane.b32.xlu1 %v399_v32, %s665_s23  ;;  %v404_v37 = vadd.f32 %v565_v36, %v399_v32 }
 0x38e   : > { %v401_v34 = vpop.f32.mrf.mxu1 }
 0x38f   : > { %v567_v38 = vmul.f32 -1.442695, %v404_v37 }
 0x390   : > { %v595_v35 = vpop.f32.mrf.mxu1 }
 0x391   : > { %633 = vpow2.f32 %v567_v38 }
 0x39e   : > { %v634_v39 = vpop.eup %633 }
 0x39f   : > { %v408_v40 = vadd.f32 1.0, %v634_v39 }
 0x3a1   : > { %635 = vrcp.f32 %v408_v40 }
 0x3ae   : > { %v636_v41 = vpop.eup %635 }
 0x3af   : > { %v422_v48 = vsub.f32 1.0, %v636_v41 }
 0x3ff   : > { %v413_v42 = vpop.permute.xlu1 %412 }
 0x400   : > { %v415_v43 = vmul.f32 %v636_v41, %v413_v42 }
 0x402   : > { %417 = vrot.lane.b32.xlu0 %v415_v43, %s665_s23 }
 0x406   : > { %429 = vrot.lane.b32.xlu0 %v357_v29, %s667_s28 }
 0x474   : > { %v418_v44 = vpop.permute.xlu0 %417 }
 0x475   : > { %v420_v45 = vadd.f32 %v565_v36, %v418_v44 }
 0x477   : > { %637 = vtanh.f32 %v420_v45 }
 0x478   : > { %v430_v47 = vpop.permute.xlu0 %429 }
 0x479   : > { %v432_v50 = vmul.f32 %v636_v41, %v430_v47 }
 0x484   : > { %v638_v46 = vpop.eup %637 }
 0x485   : > { %424 = vrot.lane.b32.xlu1 %v638_v46, %s666_s27 }
 0x4f7   : > { %v425_v49 = vpop.permute.xlu1 %424 }
 0x4f8   : > { %v427_v51 = vmul.f32 %v425_v49, %v422_v48 }
 0x4fa   : > { %v433_v52 = vadd.f32 %v432_v50, %v427_v51 }
 0x4fc   : > { %435 = vrot.lane.b32.xlu1 %v433_v52, %s666_s27 }
 0x56e   : > { %v436_v53 = vpop.permute.xlu1 %435 }
 0x56f   : > { %438 = vst.msk [vmem:[#allocation2] sm:$0xff] %vm249_vm0, %v436_v53  ;;  %568 = vst.msk [vmem:[%s733_s4 + $0x8] sm:$0xff] %vm249_vm0, %v436_v53 }
 0x570 PF: > { %s13_s14 = sadd.s32 1, %s661_s14   ;;  %s761_s12 = smov %s657_s13 }
 0x571   : > { %p10_p5 = scmp.ge.s32.totalorder %s13_s14, 4   ;;  %s762_s13 = smov %s764_s15 }
 0x573   :  { %12 = sbr.rel (!%p10_p5) target bundleno = 2 (0x2), region = 74 }

// kernel: forward.39
= control target key start
LH: loop header
LB: loop body
LE: loop exit
PB: predicated region body
PF: predicated region fallthrough
CT: control target
= control target key end

     0   :  { %v364_v1 = vmov 0.0   ;;  %vm365_vm0 = vmmov 0   ;;  %s438_s0 = inlined_call_operand.vmem [shape: f32[16,64], index: 0, kind: input, shape index: {}]   ;;  %s439_s1 = inlined_call_operand.vmem [shape: bf16[64,32], index: 1, kind: input, shape index: {}]   ;;  %s440_s2 = inlined_call_operand.vmem [shape: f32[1,32], index: 2, kind: input, shape index: {}]   ;;  %s441_s3 = inlined_call_operand.vmem [shape: bf16[32,30], index: 3, kind: input, shape index: {}]   ;;  %s442_s4 = inlined_call_operand.vmem [shape: f32[1,30], index: 4, kind: input, shape index: {}]   ;;  %s443_s5 = inlined_call_operand.hbm [shape: f32[16,30], index: 5, kind: output, shape index: {}]  }
   0x1   :  { %v320_v0 = vld [vmem:[%s439_s1 + $0x18] sm:$0xff]   ;;  %295 = vmatprep.subr.bf16.mxu0 %v364_v1  ;;  %307 = vmatprep.subr.bf16.mxu1 %v364_v1  ;;  %v321_v2 = vld [vmem:[%s439_s1 + $0x10] sm:$0xff]   ;;  %v322_v3 = vld [vmem:[%s439_s1 + $0x8] sm:$0xff]  }
   0x2   :  { %296 = vmatpush3.bf16.msra.mxu0 %v320_v0  ;;  %303 = vmatprep.mubr.msk.bf16.mxu0 %vm365_vm0, %v364_v1 }
   0x3   :  { %297 = vmatprep.subr.bf16.mxu0 %v364_v1  ;;  %311 = vmatprep.mubr.msk.bf16.mxu1 %vm365_vm0, %v364_v1 }
   0x6   :  { %298 = vmatpush3.bf16.msra.mxu0 %v321_v2 }
   0x7   :  { %10 = vsyncpa [#allocation3], 0  ;;  %299 = vmatprep.subr.bf16.mxu0 %v364_v1  ;;  %v323_v4 = vld [vmem:[%s439_s1] sm:$0xff]   ;;  %v23_v6 = vld [vmem:[%s438_s0 + $0x8] sm:$0xff]  ;;  %vm64_vm1 = vcmask 523264   ;;  %vm187_vm4 = vcmask 261120  }
   0x8   :  { %v22_v5 = vld [vmem:[%s438_s0] sm:$0xff]  ;;  %v324_v8 = vld [vmem:[%s441_s3 + $0x8] sm:$0xff]   ;;  %vm232_vm5 = vcmask 244736  }
   0x9   :  { %v24_v7 = vpack.c.bf16 %v23_v6, %v22_v5  ;;  %308 = vmatpush3.bf16.msra.mxu1 %v324_v8  ;;  %v325_v9 = vld [vmem:[%s441_s3] sm:$0xff]   ;;  %s366_s3 = smov [#allocation2]  }
   0xa   :  { %300 = vmatpush3.bf16.msra.mxu0 %v322_v3  ;;  %309 = vmatprep.subr.bf16.mxu1 %v364_v1  ;;  %v277_v10 = vld [vmem:[%s440_s2] ss:$0 sm:$0xff] }
   0xb   :  { %301 = vmatprep.subr.bf16.mxu0 %v364_v1 }
   0xd   :  { %310 = vmatpush3.bf16.msra.mxu1 %v325_v9 }
   0xe   :  { %302 = vmatpush3.bf16.msra.mxu0 %v323_v4  ;;  %v283_v4 = vld [vmem:[%s442_s4] ss:$0 sm:$0xff]  ;;  %s266_s4 = sshll.u32 %s366_s3, 4  ;;  %s267_s4 = int_to_ptr.vmem [resolvable:$true] %s266_s4 }
   0xf   :  { %s342_s10 = scalar_lea.vmem %s267_s4, 256  ;;  %p347_p1 = scmp.lt.s32.totalorder %s267_s4, %s267_s4 }
  0x10   :  { %p343_p0 = scmp.ne.s32.totalorder %s267_s4, %s342_s10  ;;  %p348_p2 = scmp.lt.s32.totalorder %s342_s10, %s342_s10 }
  0x11   :  { %304 = vmatmul.mubr.msk.bf16.vlgmr.msra.gmra.mxu0 %vm64_vm1, %v24_v7 }
  0x12   :  { %p349_p3 = por %p348_p2, %p347_p1 }
  0x14   :  { %p350_p4 = pnand %p349_p3, %p343_p0 }
  0xd1   :  { %v102_v11 = vpop.f32.mrf.mxu0 }
  0xd2   :  { %v103_v12 = vadd.f32 %v277_v10, %v102_v11 }
  0xd3   :  { %v305_v13 = vpop.f32.mrf.mxu0 }
  0xd4   :  { %v111_v14 = vmul.f32 0.70710677, %v103_v12  ;;  %v109_v62 = vmul.f32 0.5, %v103_v12 }
  0xd5   :  { %v105_v15 = vpop.f32.mrf.mxu0 }
  0xd6   :  { %v113_v16 = vand.u32 2147483647, %v111_v14  ;;  %v106_v17 = vadd.f32 %v277_v10, %v105_v15  ;;  %vm153_vm2 = vcmp.ge.f32.partialorder %v111_v14, 0.0 }
  0xd7   :  { %v306_v18 = vpop.f32.mrf.mxu0 }
  0xd8   :  { %v115_v19 = vmul.f32 0.3275911, %v113_v16  ;;  %v112_v20 = vmul.f32 0.70710677, %v106_v17  ;;  %v141_v25 = vsub.f32 0.0, %v113_v16  ;;  %v110_v63 = vmul.f32 0.5, %v106_v17 }
  0xda   :  { %v117_v21 = vadd.f32 1.0, %v115_v19  ;;  %v114_v22 = vand.u32 2147483647, %v112_v20  ;;  %v143_v26 = vmul.f32 %v141_v25, %v113_v16  ;;  %vm154_vm3 = vcmp.ge.f32.partialorder %v112_v20, 0.0 }
  0xdc   :  { %326 = vrcp.f32 %v117_v21  ;;  %v116_v23 = vmul.f32 0.3275911, %v114_v22  ;;  %v142_v27 = vsub.f32 0.0, %v114_v22  ;;  %v145_v30 = vmul.f32 1.442695, %v143_v26 }
  0xde   :  { %v118_v24 = vadd.f32 1.0, %v116_v23  ;;  %v144_v31 = vmul.f32 %v142_v27, %v114_v22 }
  0xe0   :  { %328 = vrcp.f32 %v118_v24  ;;  %v147_v36 = vmul.f32 1.442695, %v144_v31 }
  0xe1   :  { %330 = vpow2.f32 %v145_v30 }
  0xe2   :  { %332 = vpow2.f32 %v147_v36 }
  0xe9   :  { %v327_v28 = vpop.eup %326 }
  0xea   :  { %v123_v29 = vmul.f32 1.0614054, %v327_v28 }
  0xec   :  { %v125_v32 = vadd.f32 -1.4531521, %v123_v29 }
  0xed   :  { %v329_v33 = vpop.eup %328 }
  0xee   :  { %v127_v34 = vmul.f32 %v327_v28, %v125_v32  ;;  %v124_v35 = vmul.f32 1.0614054, %v329_v33  ;;  %v331_v49 = vpop.eup %330 }
  0xef   :  { %v333_v54 = vpop.eup %332 }
  0xf0   :  { %v129_v37 = vadd.f32 1.4214138, %v127_v34  ;;  %v126_v38 = vadd.f32 -1.4531521, %v124_v35 }
  0xf2   :  { %v131_v39 = vmul.f32 %v327_v28, %v129_v37  ;;  %v128_v40 = vmul.f32 %v329_v33, %v126_v38 }
  0xf4   :  { %v133_v41 = vadd.f32 -0.28449672, %v131_v39  ;;  %v130_v42 = vadd.f32 1.4214138, %v128_v40 }
  0xf6   :  { %v135_v43 = vmul.f32 %v327_v28, %v133_v41  ;;  %v132_v44 = vmul.f32 %v329_v33, %v130_v42 }
  0xf8   :  { %v137_v45 = vadd.f32 0.2548296, %v135_v43  ;;  %v134_v46 = vadd.f32 -0.28449672, %v132_v44 }
  0xfa   :  { %v139_v47 = vmul.f32 %v327_v28, %v137_v45  ;;  %v136_v48 = vmul.f32 %v329_v33, %v134_v46 }
  0xfc   :  { %v149_v50 = vmul.f32 %v331_v49, %v139_v47  ;;  %v138_v51 = vadd.f32 0.2548296, %v136_v48 }
  0xfe   :  { %v151_v52 = vsub.f32 1.0, %v149_v50  ;;  %v140_v53 = vmul.f32 %v329_v33, %v138_v51 }
 0x100   :  { %v155_v55 = vsub.f32 0.0, %v151_v52  ;;  %v150_v56 = vmul.f32 %v333_v54, %v140_v53 }
 0x102   :  { %v157_v57 = vsel %vm153_vm2, %v151_v52, %v155_v55  ;;  %v152_v58 = vsub.f32 1.0, %v150_v56 }
 0x103   :  { %v159_v60 = vadd.f32 1.0, %v157_v57 }
 0x104   :  { %v156_v59 = vsub.f32 0.0, %v152_v58 }
 0x105   :  { %v161_v1 = vmul.f32 %v159_v60, %v109_v62 }
 0x106   :  { %v158_v61 = vsel %vm154_vm3, %v152_v58, %v156_v59 }
 0x107   :  { %v160_v0 = vadd.f32 1.0, %v158_v61 }
 0x109   :  { %v162_v2 = vmul.f32 %v160_v0, %v110_v63 }
 0x10b   :  { %v163_v3 = vpack.c.bf16 %v162_v2, %v161_v1 }
 0x10d   :  { %312 = vmatmul.mubr.msk.bf16.vlgmr.msra.gmra.mxu1 %vm187_vm4, %v163_v3 }
 0x1cd   :  { %v225_v5 = vpop.f32.mrf.mxu1 }
 0x1ce   :  { %v226_v6 = vadd.f32 %v283_v4, %v225_v5 }
 0x1cf   :  { %v313_v7 = vpop.f32.mrf.mxu1 }
 0x1d0   :  { %v233_v8 = vsel %vm232_vm5, %v226_v6, -inf }
 0x1d1   :  { %234 = vmax.xlane.f32.xlu0 %v233_v8  ;;  %v228_v9 = vpop.f32.mrf.mxu1 }
 0x1d2   :  { %v229_v10 = vadd.f32 %v283_v4, %v228_v9 }
 0x1d3   :  { %v314_v11 = vpop.f32.mrf.mxu1 }
 0x1d4   :  { %v236_v12 = vsel %vm232_vm5, %v229_v10, -inf }
 0x1d5   :  { %237 = vmax.xlane.f32.xlu0 %v236_v12 }
 0x25a   :  { %v235_v13 = vpop.xlane.xlu0 %234 }
 0x25b   :  { %v239_v14 = vsub.f32 %v226_v6, %v235_v13 }
 0x25d   :  { %v241_v15 = vmul.f32 1.442695, %v239_v14 }
 0x25e   :  { %v238_v16 = vpop.xlane.xlu0 %237 }
 0x25f   :  { %334 = vpow2.f32 %v241_v15  ;;  %v240_v17 = vsub.f32 %v229_v10, %v238_v16 }
 0x261   :  { %v243_v18 = vmul.f32 1.442695, %v240_v17 }
 0x263   :  { %336 = vpow2.f32 %v243_v18 }
 0x26c   :  { %v335_v19 = vpop.eup %334 }
 0x26d   :  { %v245_v20 = vsel %vm232_vm5, %v335_v19, 0.0 }
 0x26e   :  { %246 = vadd.xlane.f32.xlu1 %v245_v20 }
 0x270   :  { %v337_v21 = vpop.eup %336 }
 0x271   :  { %v248_v22 = vsel %vm232_vm5, %v337_v21, 0.0 }
 0x272   :  { %249 = vadd.xlane.f32.xlu1 %v248_v22 }
 0x2f7   :  { %v247_v23 = vpop.xlane.xlu1 %246 }
 0x2f8   :  { %338 = vlog2.f32 %v247_v23 }
 0x2fb   :  { %v250_v24 = vpop.xlane.xlu1 %249 }
 0x2fc   :  { %340 = vlog2.f32 %v250_v24 }
 0x305   :  { %v339_v25 = vpop.eup %338 }
 0x306   :  { %v252_v26 = vmul.f32 0.6931472, %v339_v25 }
 0x308   :  { %v255_v27 = vadd.f32 %v252_v26, %v235_v13 }
 0x309   :  { %v341_v28 = vpop.eup %340 }
 0x30a   :  { %v257_v29 = vsub.f32 %v226_v6, %v255_v27  ;;  %v254_v30 = vmul.f32 0.6931472, %v341_v28 }
 0x30c   :  { %259 = vst.msk [vmem:[#allocation2] sm:$0xff] %vm232_vm5, %v257_v29  ;;  %v256_v31 = vadd.f32 %v254_v30, %v238_v16 }
 0x30e   :  { %v258_v32 = vsub.f32 %v229_v10, %v256_v31 }
 0x310   :  { %260 = vst.msk [vmem:[#allocation2 + $0x8] sm:$0xff] %vm232_vm5, %v258_v32 }
 0x311   :  { %353 = shalt.err (!%p350_p4)
}
 0x312   :  { %s367_s11 = smov 128   ;;  %s368_s12 = smov 8  }
 0x313   :  { %272 = dma.vmem_to_hbm [thread:$0]  %s267_s4, 256, %s443_s5, [#allocation3], %s367_s11, %s367_s11, %s368_s12  }
 0x314   :  { %362 = dma.done.wait [#allocation3], 256  }
 0x315   :  { %363 = vsyncadd [#allocation3], 4294967040 }
 0x316   :  { %276 = vsyncpa [#allocation3], 1 }

// kernel: forward.38
= control target key start
LH: loop header
LB: loop body
LE: loop exit
PB: predicated region body
PF: predicated region fallthrough
CT: control target
= control target key end

     0   :  { %v39_v0 = vlaneseq  ;;  %v2754_v2 = vmov 0   ;;  %v2755_v3 = vmov 1966171168   ;;  %vm146_vm0 = vcmask 523264   ;;  %s2761_s26 = smov 96   ;;  %s3336_s1 = inlined_call_operand.vmem [shape: bf16[64,192], index: 1, kind: input, shape index: {}]   ;;  %s3337_s0 = inlined_call_operand.vmem [shape: bf16[8,2,64], index: 0, kind: input, shape index: {}]   ;;  %s3338_s2 = inlined_call_operand.vmem [shape: f32[1,192], index: 2, kind: input, shape index: {}]   ;;  %s3339_s3 = inlined_call_operand.vmem [shape: bf16[64,64], index: 3, kind: input, shape index: {}]   ;;  %s3340_s4 = inlined_call_operand.vmem [shape: f32[1,64], index: 4, kind: input, shape index: {}]   ;;  %s3341_s5 = inlined_call_operand.vmem [shape: f32[8,2,64], index: 5, kind: output, shape index: {}]  }
   0x1   :  { %v2674_v1 = vld [vmem:[%s3336_s1 + $0x34] ss:$8 sps:$4 sm:$0xff]   ;;  %182 = vmatprep.mubr.bf16.mxu0 %v2754_v2  ;;  %v62_v4 = vunpack.c.l.s4 %v2755_v3  ;;  %v2676_v5 = vld [vmem:[%s3336_s1 + $0x30] ss:$8 sps:$4 sm:$0xff]   ;;  %v2677_v7 = vld [vmem:[%s3336_s1 + $0x24] ss:$8 sps:$4 sm:$0xff]  }
   0x2   :  { %v40_v6 = vshrl.u32 %v39_v0, 7  ;;  %158 = vmatprep.subr.bf16.mxu0 %v2674_v1  ;;  %v2679_v9 = vld [vmem:[%s3336_s1 + $0x20] ss:$8 sps:$4 sm:$0xff]   ;;  %v2680_v10 = vld [vmem:[%s3336_s1 + $0x14] ss:$8 sps:$4 sm:$0xff]   ;;  %v2757_v44 = vmov 0.0  }
   0x3   :  { %v63_v8 = vunpack.c.0.s8 %v62_v4  ;;  %159 = vmatpush1.bf16.msra.mxu0 %v2676_v5  ;;  %v2682_v12 = vld [vmem:[%s3336_s1 + $0x10] ss:$8 sps:$4 sm:$0xff]   ;;  %v21_v13 = vld [vmem:[%s3337_s0] sm:$0x1]  ;;  %v22_v14 = vld [vmem:[%s3337_s0 + $0x1] sm:$0x1]  ;;  %2442 = vmatprep.subr.bf16.mxu1 %v2757_v44 }
   0x4   :  { %160 = vmatprep.subr.bf16.mxu0 %v2677_v7  ;;  %v23_v15 = vld [vmem:[%s3337_s0 + $0x2] sm:$0x1]  ;;  %v24_v16 = vld [vmem:[%s3337_s0 + $0x3] sm:$0x1]  ;;  %v25_v17 = vld [vmem:[%s3337_s0 + $0x4] sm:$0x1]  ;;  %v57_v18 = vcombine.low %v21_v13, %v22_v14 }
   0x5   :  { %v66_v11 = vsub.s32 %v63_v8, %v40_v6  ;;  %v26_v19 = vld [vmem:[%s3337_s0 + $0x5] sm:$0x1]  ;;  %v27_v20 = vld [vmem:[%s3337_s0 + $0x6] sm:$0x1]  ;;  %v28_v21 = vld [vmem:[%s3337_s0 + $0x7] sm:$0x1]  ;;  %v58_v22 = vcombine.low %v23_v15, %v24_v16 }
   0x6   :  { %v2683_v23 = vld [vmem:[%s3336_s1 + $0x4] ss:$8 sps:$4 sm:$0xff]   ;;  %v59_v24 = vcombine.low %v25_v17, %v26_v19  ;;  %v60_v25 = vcombine.low %v27_v20, %v28_v21  ;;  %v2685_v30 = vld [vmem:[%s3336_s1] ss:$8 sps:$4 sm:$0xff]   ;;  %v2756_v36 = vmov 1983009808  }
   0x7   :  { %161 = vmatpush1.bf16.msra.mxu0 %v2679_v9  ;;  %v67_v26 = vrot.slane %v57_v18, %v66_v11  ;;  %v74_v27 = vrot.slane %v58_v22, %v66_v11  ;;  %v200_v37 = vunpack.c.l.s4 %v2756_v36  ;;  %v41_v38 = vsub.s32 0, %v40_v6  ;;  %v37_v40 = vld [vmem:[%s3338_s2] sm:$0x3]  ;;  %s2759_s1 = smov 64   ;;  %s2760_s2 = smov 32  }
   0x8   :  { %162 = vmatprep.subr.bf16.mxu0 %v2680_v10  ;;  %v81_v28 = vrot.slane %v59_v24, %v66_v11  ;;  %v88_v29 = vrot.slane %v60_v25, %v66_v11  ;;  %v45_v39 = vsub.s32 1, %v40_v6  ;;  %vm2758_vm1 = vmmov 0  }
   0x9   :  { %v89_v31 = vcombine.low %v67_v26, %v74_v27  ;;  %v201_v41 = vunpack.c.0.s8 %v200_v37  ;;  %v42_v42 = vrot.slane %v37_v40, %v41_v38  ;;  %2444 = vmatprep.mubr.msk.bf16.mxu1 %vm2758_vm1, %v2757_v44  ;;  %vm332_vm2 = vcmask 261120  }
   0xa   :  { %v90_v32 = vcombine.low %v81_v28, %v88_v29  ;;  %v46_v43 = vrot.slane %v37_v40, %v45_v39  ;;  %vm831_vm3 = vcmask 1040384   ;;  %vm730_vm4 = vcmask 9216  }
   0xb   :  { %163 = vmatpush1.bf16.msra.mxu0 %v2682_v12  ;;  %v97_v33 = vrot.slane %v89_v31, %v66_v11  ;;  %v2846_v47 = vsub.s32 %v201_v41, %v40_v6  ;;  %vm827_vm5 = vcmask 15360   ;;  %vm2313_vm6 = vcmask 517120  }
   0xc   :  { %164 = vmatprep.subr.bf16.mxu0 %v2683_v23  ;;  %v104_v34 = vrot.slane %v90_v32, %v66_v11 }
   0xe   :  { %v105_v35 = vcombine.low %v97_v33, %v104_v34 }
   0xf   :  { %165 = vmatpush1.bf16.msra.mxu0 %v2685_v30 }
  0x10   :  { %2466 = vmatprep.subr.bf16.mxu0 %v2757_v44 }
  0x12   :  { %2334 = vmatmul.mubr.msk.bf16.vlgmr.msra.gmra.mxu0 %vm146_vm0, %v105_v35 }
  0x13   :  { %2468 = vmatprep.mubr.msk.bf16.mxu0 %vm2758_vm1, %v2757_v44 }
  0xd2   :  { %v184_v45 = vpop.f32.mrf.mxu0 }
  0xd3   :  { %v185_v48 = vadd.f32 %v184_v45, %v42_v42 }
  0xd4   :  { %v186_v46 = vpop.f32.mrf.mxu0 }
  0xd5   :  { %v187_v49 = vadd.f32 %v186_v46, %v46_v43 }
  0xd6   :  { %v188_v50 = vpop.f32.mrf.mxu0 }
  0xd7   :  { %v197_v51 = vcombine.low %v185_v48, %v187_v49  ;;  %v198_v52 = vcombine.high %v185_v48, %v187_v49  ;;  %v189_v56 = vadd.f32 %v188_v50, %v42_v42 }
  0xd8   :  { %v190_v53 = vpop.f32.mrf.mxu0 }
  0xd9   :  { %v205_v54 = vrot.slane %v197_v51, %v2846_v47  ;;  %v212_v55 = vrot.slane %v198_v52, %v2846_v47  ;;  %v191_v57 = vadd.f32 %v190_v53, %v46_v43 }
  0xdb   :  { %v213_v58 = vcombine.high %v205_v54, %v205_v54  ;;  %v215_v59 = vcombine.low %v189_v56, %v191_v57  ;;  %v216_v60 = vcombine.high %v189_v56, %v191_v57  ;;  %v214_v61 = vcombine.high %v212_v55, %v212_v55 }
  0xdc   :  { %v2854_v62 = vpack.c.bf16 %v212_v55, %v212_v55  ;;  %v2856_v63 = vpack.c.bf16 %v205_v54, %v205_v54  ;;  %v255_v2 = vrot.slane %v205_v54, %v2846_v47  ;;  %v271_v4 = vrot.slane %v212_v55, %v2846_v47 }
  0xdd   :  { %v223_v0 = vrot.slane %v215_v59, %v2846_v47  ;;  %v230_v1 = vrot.slane %v216_v60, %v2846_v47  ;;  %v263_v3 = vrot.slane %v213_v58, %v2846_v47  ;;  %v2867_v7 = vpack.c.bf16 %v214_v61, %v214_v61 }
  0xde   :  { %429 = vrot.lane.b32.xlu1 %v2854_v62, %s2759_s1  ;;  %330 = vrot.lane.b32.xlu0 %v2856_v63, %s2759_s1  ;;  %v2869_v8 = vpack.c.bf16 %v213_v58, %v213_v58  ;;  %v279_v10 = vrot.slane %v214_v61, %v2846_v47  ;;  %v2880_v13 = vcombine.high %v255_v2, %v255_v2 }
  0xdf   :  { %v231_v5 = vcombine.high %v223_v0, %v223_v0  ;;  %v232_v6 = vcombine.high %v230_v1, %v230_v1  ;;  %v2871_v9 = vcombine.high %v263_v3, %v263_v3  ;;  %v287_v11 = vrot.slane %v223_v0, %v2846_v47 }
  0xe0   :  { %v2882_v14 = vcombine.high %v271_v4, %v271_v4  ;;  %v2884_v15 = vcombine.high %v279_v10, %v279_v10  ;;  %v2886_v16 = vpack.c.bf16 %v223_v0, %v223_v0  ;;  %v303_v18 = vrot.slane %v230_v1, %v2846_v47 }
  0xe1   :  { %v295_v12 = vrot.slane %v231_v5, %v2846_v47  ;;  %v311_v19 = vrot.slane %v232_v6, %v2846_v47  ;;  %v2892_v20 = vpack.c.bf16 %v231_v5, %v231_v5  ;;  %v2894_v21 = vcombine.high %v287_v11, %v287_v11 }
  0xe2   :  { %478 = vrot.lane.b32.xlu1 %v2867_v7, %s2759_s1  ;;  %380 = vrot.lane.b32.xlu0 %v2869_v8, %s2759_s1  ;;  %v2654_v22 = vpack.i.bf16 %v2871_v9, %v2880_v13  ;;  %v2659_v23 = vpack.i.bf16 %v2884_v15, %v2882_v14  ;;  %v2906_v25 = vcombine.high %v303_v18, %v303_v18 }
  0xe3   :  { %v2888_v17 = vcombine.high %v295_v12, %v295_v12  ;;  %v2900_v24 = vcombine.high %v311_v19, %v311_v19  ;;  %v2910_v27 = vpack.c.bf16 %v232_v6, %v232_v6  ;;  %v2912_v28 = vpack.c.bf16 %v230_v1, %v230_v1 }
  0xe4   :  { %v321_v40 = vpack.c.bf16 %v2880_v13, %v2880_v13  ;;  %v322_v50 = vpack.c.bf16 %v2871_v9, %v2871_v9 }
  0xe5   :  { %v2664_v26 = vpack.i.bf16 %v2888_v17, %v2894_v21  ;;  %v2669_v29 = vpack.i.bf16 %v2900_v24, %v2906_v25 }
  0xe6   :  { %576 = vrot.lane.b32.xlu1 %v2892_v20, %s2759_s1  ;;  %527 = vrot.lane.b32.xlu0 %v2886_v16, %s2759_s1  ;;  %v833_v43 = vsel %vm831_vm3, %v321_v40, 0  ;;  %v879_v51 = vsel %vm831_vm3, %v322_v50, 0 }
  0xea   :  { %674 = vrot.lane.b32.xlu1 %v2910_v27, %s2759_s1  ;;  %625 = vrot.lane.b32.xlu0 %v2912_v28, %s2759_s1 }
 0x150   :  { %v331_v30 = vpop.permute.xlu0 %330  ;;  %v430_v36 = vpop.permute.xlu1 %429 }
 0x151   :  { %v337_v31 = vsel %vm332_vm2, %v331_v30, 0  ;;  %v435_v38 = vsel %vm332_vm2, %v430_v36, 0 }
 0x152   :  { %2443 = vmatpush3.bf16.xpose.msra.mxu1 %v337_v31 }
 0x153   :  { %2448 = vmatprep.subr.bf16.mxu1 %v2757_v44 }
 0x154   :  { %v381_v32 = vpop.permute.xlu0 %380  ;;  %v479_v41 = vpop.permute.xlu1 %478 }
 0x155   :  { %v386_v34 = vsel %vm332_vm2, %v381_v32, 0  ;;  %v484_v42 = vsel %vm332_vm2, %v479_v41, 0 }
 0x158   :  { %v528_v33 = vpop.permute.xlu0 %527  ;;  %v577_v45 = vpop.permute.xlu1 %576 }
 0x159   :  { %v533_v35 = vsel %vm332_vm2, %v528_v33, 0  ;;  %2445 = vmatmul.mubr.msk.bf16.vlgmr.msra.gmra.mxu1 %vm332_vm2, %v2856_v63  ;;  %v582_v46 = vsel %vm332_vm2, %v577_v45, 0 }
 0x15a   :  { %2449 = vmatpush3.bf16.xpose.msra.mxu1 %v386_v34  ;;  %2467 = vmatpush3.bf16.xpose.msra.mxu0 %v533_v35 }
 0x15b   :  { %2450 = vmatprep.mubr.msk.bf16.mxu1 %vm2758_vm1, %v2757_v44  ;;  %2454 = vmatprep.subr.bf16.mxu1 %v2757_v44 }
 0x15c   :  { %2478 = vmatprep.subr.bf16.mxu0 %v2757_v44  ;;  %v626_v37 = vpop.permute.xlu0 %625  ;;  %v675_v48 = vpop.permute.xlu1 %674 }
 0x15d   :  { %v631_v39 = vsel %vm332_vm2, %v626_v37, 0  ;;  %v680_v49 = vsel %vm332_vm2, %v675_v48, 0 }
 0x161   :  { %2451 = vmatmul.mubr.msk.bf16.vlgmr.msra.gmra.mxu1 %vm332_vm2, %v2869_v8  ;;  %2469 = vmatmul.mubr.msk.bf16.vlgmr.msra.gmra.mxu0 %vm332_vm2, %v2886_v16 }
 0x162   :  { %2455 = vmatpush3.bf16.xpose.msra.mxu1 %v435_v38  ;;  %2479 = vmatpush3.bf16.xpose.msra.mxu0 %v631_v39 }
 0x163   :  { %2456 = vmatprep.mubr.msk.bf16.mxu1 %vm2758_vm1, %v2757_v44  ;;  %2480 = vmatprep.mubr.msk.bf16.mxu0 %vm2758_vm1, %v2757_v44 }
 0x164   :  { %2460 = vmatprep.subr.bf16.mxu1 %v2757_v44  ;;  %2490 = vmatprep.subr.bf16.mxu0 %v2757_v44 }
 0x169   :  { %2457 = vmatmul.mubr.msk.bf16.vlgmr.msra.gmra.mxu1 %vm332_vm2, %v2854_v62  ;;  %2481 = vmatmul.mubr.msk.bf16.vlgmr.msra.gmra.mxu0 %vm332_vm2, %v2912_v28 }
 0x16a   :  { %2461 = vmatpush3.bf16.xpose.msra.mxu1 %v484_v42  ;;  %2491 = vmatpush3.bf16.msra.mxu0 %v833_v43 }
 0x16b   :  { %2462 = vmatprep.mubr.msk.bf16.mxu1 %vm2758_vm1, %v2757_v44  ;;  %2472 = vmatprep.subr.bf16.mxu1 %v2757_v44 }
 0x16c   :  { %2492 = vmatprep.mubr.msk.bf16.mxu0 %vm2758_vm1, %v2757_v44  ;;  %2502 = vmatprep.subr.bf16.mxu0 %v2757_v44 }
 0x171   :  { %2463 = vmatmul.mubr.msk.bf16.vlgmr.msra.gmra.mxu1 %vm332_vm2, %v2867_v7 }
 0x172   :  { %2473 = vmatpush3.bf16.xpose.msra.mxu1 %v582_v46  ;;  %2474 = vmatprep.mubr.msk.bf16.mxu1 %vm2758_vm1, %v2757_v44 }
 0x173   :  { %2484 = vmatprep.subr.bf16.mxu1 %v2757_v44 }
 0x179   :  { %2475 = vmatmul.mubr.msk.bf16.vlgmr.msra.gmra.mxu1 %vm332_vm2, %v2892_v20 }
 0x17a   :  { %2485 = vmatpush3.bf16.xpose.msra.mxu1 %v680_v49  ;;  %2486 = vmatprep.mubr.msk.bf16.mxu1 %vm2758_vm1, %v2757_v44 }
 0x17b   :  { %2496 = vmatprep.subr.bf16.mxu1 %v2757_v44 }
 0x181   :  { %2487 = vmatmul.mubr.msk.bf16.vlgmr.msra.gmra.mxu1 %vm332_vm2, %v2910_v27 }
 0x182   :  { %2497 = vmatpush3.bf16.msra.mxu1 %v879_v51  ;;  %2498 = vmatprep.mubr.msk.bf16.mxu1 %vm2758_vm1, %v2757_v44 }
 0x183   :  { %2508 = vmatprep.subr.bf16.mxu1 %v2757_v44 }
 0x219   :  { %v373_v52 = vpop.f32.mrf.mxu1 }
 0x21a   :  { %v722_v53 = vmul.f32 0.17677669, %v373_v52 }
 0x21b   :  { %v2446_v54 = vpop.f32.mrf.mxu1 }
 0x21c   :  { %v731_v55 = vsel %vm730_vm4, %v722_v53, -inf }
 0x21d   :  { %v376_v56 = vpop.f32.mrf.mxu1  ;;  %732 = vmax.xlane.f32.xlu0 %v731_v55 }
 0x21f   :  { %v2447_v57 = vpop.f32.mrf.mxu1 }
 0x221   :  { %v422_v58 = vpop.f32.mrf.mxu1  ;;  %v569_v59 = vpop.f32.mrf.mxu0 }
 0x222   :  { %v723_v60 = vmul.f32 0.17677669, %v422_v58  ;;  %v726_v1 = vmul.f32 0.17677669, %v569_v59 }
 0x223   :  { %v2452_v61 = vpop.f32.mrf.mxu1  ;;  %v2470_v0 = vpop.f32.mrf.mxu0 }
 0x224   :  { %v734_v2 = vsel %vm730_vm4, %v723_v60, -inf  ;;  %v743_v10 = vsel %vm730_vm4, %v726_v1, -inf }
 0x225   :  { %735 = vmax.xlane.f32.xlu1 %v734_v2  ;;  %v425_v3 = vpop.f32.mrf.mxu1  ;;  %v572_v4 = vpop.f32.mrf.mxu0 }
 0x227   :  { %v2453_v5 = vpop.f32.mrf.mxu1  ;;  %v2471_v6 = vpop.f32.mrf.mxu0 }
 0x229   :  { %v471_v11 = vpop.f32.mrf.mxu1  ;;  %744 = vmax.xlane.f32.xlu1 %v743_v10  ;;  %v667_v12 = vpop.f32.mrf.mxu0 }
 0x22a   :  { %v724_v18 = vmul.f32 0.17677669, %v471_v11  ;;  %v728_v19 = vmul.f32 0.17677669, %v667_v12 }
 0x22b   :  { %v2458_v30 = vpop.f32.mrf.mxu1  ;;  %v2482_v31 = vpop.f32.mrf.mxu0 }
 0x22c   :  { %v737_v32 = vsel %vm730_vm4, %v724_v18, -inf  ;;  %v749_v33 = vsel %vm730_vm4, %v728_v19, -inf }
 0x22d   :  { %738 = vmax.xlane.f32.xlu0 %v737_v32  ;;  %v474_v34 = vpop.f32.mrf.mxu1  ;;  %750 = vmax.xlane.f32.xlu1 %v749_v33  ;;  %v670_v35 = vpop.f32.mrf.mxu0 }
 0x22f   :  { %v2459_v36 = vpop.f32.mrf.mxu1  ;;  %v2483_v37 = vpop.f32.mrf.mxu0 }
 0x231   :  { %v520_v38 = vpop.f32.mrf.mxu1 }
 0x232   :  { %v725_v39 = vmul.f32 0.17677669, %v520_v38 }
 0x233   :  { %v2464_v40 = vpop.f32.mrf.mxu1 }
 0x234   :  { %v740_v41 = vsel %vm730_vm4, %v725_v39, -inf }
 0x235   :  { %741 = vmax.xlane.f32.xlu0 %v740_v41  ;;  %v523_v42 = vpop.f32.mrf.mxu1 }
 0x237   :  { %v2465_v43 = vpop.f32.mrf.mxu1 }
 0x239   :  { %v618_v45 = vpop.f32.mrf.mxu1 }
 0x23a   :  { %v727_v46 = vmul.f32 0.17677669, %v618_v45 }
 0x23b   :  { %v2476_v48 = vpop.f32.mrf.mxu1 }
 0x23c   :  { %v746_v49 = vsel %vm730_vm4, %v727_v46, -inf }
 0x23d   :  { %747 = vmax.xlane.f32.xlu0 %v746_v49  ;;  %v621_v50 = vpop.f32.mrf.mxu1 }
 0x23f   :  { %v2477_v51 = vpop.f32.mrf.mxu1 }
 0x241   :  { %v716_v52 = vpop.f32.mrf.mxu1 }
 0x242   :  { %v729_v54 = vmul.f32 0.17677669, %v716_v52 }
 0x243   :  { %v2488_v55 = vpop.f32.mrf.mxu1 }
 0x244   :  { %v752_v56 = vsel %vm730_vm4, %v729_v54, -inf }
 0x245   :  { %753 = vmax.xlane.f32.xlu0 %v752_v56  ;;  %v719_v57 = vpop.f32.mrf.mxu1 }
 0x247   :  { %v2489_v58 = vpop.f32.mrf.mxu1 }
 0x2a6   :  { %v733_v59 = vpop.xlane.xlu0 %732 }
 0x2a7   :  { %v755_v61 = vsub.f32 %v722_v53, %v733_v59 }
 0x2a9   :  { %v763_v0 = vmul.f32 1.442695, %v755_v61  ;;  %v324_v61 = vpack.c.bf16 %v2884_v15, %v2884_v15 }
 0x2ab   :  { %2690 = vpow2.f32 %v763_v0 }
 0x2ae   :  { %v736_v2 = vpop.xlane.xlu1 %735 }
 0x2af   :  { %v756_v3 = vsub.f32 %v723_v60, %v736_v2 }
 0x2b1   :  { %v765_v4 = vmul.f32 1.442695, %v756_v3 }
 0x2b2   :  { %v745_v5 = vpop.xlane.xlu1 %744 }
 0x2b3   :  { %2692 = vpow2.f32 %v765_v4  ;;  %v759_v6 = vsub.f32 %v726_v1, %v745_v5  ;;  %v971_v4 = vsel %vm831_vm3, %v324_v61, 0 }
 0x2b5   :  { %v771_v33 = vmul.f32 1.442695, %v759_v6 }
 0x2b6   :  { %v739_v10 = vpop.xlane.xlu0 %738  ;;  %v751_v11 = vpop.xlane.xlu1 %750 }
 0x2b7   :  { %v757_v12 = vsub.f32 %v724_v18, %v739_v10  ;;  %v761_v34 = vsub.f32 %v728_v19, %v751_v11  ;;  %v325_v11 = vpack.c.bf16 %v2894_v21, %v2894_v21 }
 0x2b8   :  { %v2984_v30 = vpop.eup %2690 }
 0x2b9   :  { %v767_v31 = vmul.f32 1.442695, %v757_v12  ;;  %v779_v32 = vsel %vm730_vm4, %v2984_v30, 0.0  ;;  %v775_v53 = vmul.f32 1.442695, %v761_v34 }
 0x2ba   :  { %780 = vadd.xlane.f32.xlu1 %v779_v32 }
 0x2bb   :  { %2694 = vpow2.f32 %v767_v31  ;;  %v1017_v31 = vsel %vm831_vm3, %v325_v11, 0 }
 0x2bc   :  { %2696 = vpow2.f32 %v771_v33 }
 0x2bd   :  { %2698 = vpow2.f32 %v775_v53 }
 0x2be   :  { %v742_v60 = vpop.xlane.xlu0 %741 }
 0x2bf   :  { %v758_v35 = vsub.f32 %v725_v39, %v742_v60  ;;  %v326_v60 = vpack.c.bf16 %v2888_v17, %v2888_v17 }
 0x2c0   :  { %v2988_v36 = vpop.eup %2692 }
 0x2c1   :  { %v769_v1 = vmul.f32 1.442695, %v758_v35  ;;  %v782_v18 = vsel %vm730_vm4, %v2988_v36, 0.0 }
 0x2c2   :  { %783 = vadd.xlane.f32.xlu0 %v782_v18 }
 0x2c3   :  { %2700 = vpow2.f32 %v769_v1 }
 0x2c6   :  { %v748_v37 = vpop.xlane.xlu0 %747 }
 0x2c7   :  { %v760_v38 = vsub.f32 %v727_v46, %v748_v37 }
 0x2c8   :  { %v2992_v40 = vpop.eup %2694 }
 0x2c9   :  { %v773_v19 = vmul.f32 1.442695, %v760_v38  ;;  %v785_v41 = vsel %vm730_vm4, %v2992_v40, 0.0  ;;  %v2996_v42 = vpop.eup %2696  ;;  %v1063_v38 = vsel %vm831_vm3, %v326_v60, 0 }
 0x2ca   :  { %786 = vadd.xlane.f32.xlu1 %v785_v41  ;;  %v791_v39 = vsel %vm730_vm4, %v2996_v42, 0.0  ;;  %v3000_v45 = vpop.eup %2698 }
 0x2cb   :  { %2702 = vpow2.f32 %v773_v19  ;;  %v797_v51 = vsel %vm730_vm4, %v3000_v45, 0.0 }
 0x2ce   :  { %v754_v43 = vpop.xlane.xlu0 %753  ;;  %792 = vadd.xlane.f32.xlu1 %v791_v39 }
 0x2cf   :  { %v762_v48 = vsub.f32 %v729_v54, %v754_v43 }
 0x2d0   :  { %v3002_v49 = vpop.eup %2700 }
 0x2d1   :  { %v777_v46 = vmul.f32 1.442695, %v762_v48  ;;  %v788_v50 = vsel %vm730_vm4, %v3002_v49, 0.0  ;;  %v328_v48 = vpack.c.bf16 %v2900_v24, %v2900_v24 }
 0x2d2   :  { %789 = vadd.xlane.f32.xlu0 %v788_v50  ;;  %798 = vadd.xlane.f32.xlu1 %v797_v51 }
 0x2d3   :  { %2704 = vpow2.f32 %v777_v46 }
 0x2d8   :  { %v3008_v52 = vpop.eup %2702 }
 0x2d9   :  { %v794_v55 = vsel %vm730_vm4, %v3008_v52, 0.0 }
 0x2da   :  { %795 = vadd.xlane.f32.xlu0 %v794_v55  ;;  %v1155_v55 = vsel %vm831_vm3, %v328_v48, 0 }
 0x2e0   :  { %v3012_v56 = vpop.eup %2704 }
 0x2e1   :  { %v800_v54 = vsel %vm730_vm4, %v3012_v56, 0.0 }
 0x2e2   :  { %801 = vadd.xlane.f32.xlu0 %v800_v54 }
 0x2e3   :  { %1231 = vrot.lane.b32.xlu1 %v2856_v63, %s2760_s2 }
 0x2e7   :  { %1229 = vrot.lane.b32.xlu1 %v2856_v63, %s2761_s26 }
 0x2eb   :  { %1279 = vrot.lane.b32.xlu1 %v2869_v8, %s2761_s26 }
 0x2ef   :  { %1381 = vrot.lane.b32.xlu1 %v2867_v7, %s2760_s2 }
 0x2f3   :  { %1379 = vrot.lane.b32.xlu1 %v2867_v7, %s2761_s26 }
 0x2f7   :  { %1481 = vrot.lane.b32.xlu1 %v2892_v20, %s2760_s2 }
 0x2f8   :  { %1281 = vrot.lane.b32.xlu0 %v2869_v8, %s2760_s2 }
 0x2fb   :  { %1479 = vrot.lane.b32.xlu1 %v2892_v20, %s2761_s26  ;;  %v323_v20 = vpack.c.bf16 %v2882_v14, %v2882_v14 }
 0x2fc   :  { %1331 = vrot.lane.b32.xlu0 %v2854_v62, %s2760_s2 }
 0x2ff   :  { %1581 = vrot.lane.b32.xlu1 %v2910_v27, %s2760_s2 }
 0x300   :  { %1329 = vrot.lane.b32.xlu0 %v2854_v62, %s2761_s26 }
 0x303   :  { %1579 = vrot.lane.b32.xlu1 %v2910_v27, %s2761_s26 }
 0x304   :  { %1431 = vrot.lane.b32.xlu0 %v2886_v16, %s2760_s2 }
 0x308   :  { %1429 = vrot.lane.b32.xlu0 %v2886_v16, %s2761_s26  ;;  %v925_v16 = vsel %vm831_vm3, %v323_v20, 0 }
 0x30c   :  { %1531 = vrot.lane.b32.xlu0 %v2912_v28, %s2760_s2 }
 0x310   :  { %1529 = vrot.lane.b32.xlu0 %v2912_v28, %s2761_s26 }
 0x343   :  { %v781_v63 = vpop.xlane.xlu1 %780 }
 0x344   :  { %2706 = vrcp.f32 %v781_v63 }
 0x34b   :  { %v784_v7 = vpop.xlane.xlu0 %783 }
 0x34c   :  { %2708 = vrcp.f32 %v784_v7 }
 0x351   :  { %v2707_v62 = vpop.eup %2706 }
 0x352   :  { %v811_v8 = vmul.f32 %v2707_v62, %v2984_v30 }
 0x353   :  { %v787_v27 = vpop.xlane.xlu1 %786 }
 0x354   :  { %v819_v57 = vpack.c.bf16 %v811_v8, %v811_v8  ;;  %2710 = vrcp.f32 %v787_v27 }
 0x356   :  { %2493 = vmatmul.mubr.msk.bf16.vlgmr.msra.gmra.mxu0 %vm827_vm5, %v819_v57 }
 0x357   :  { %2503 = vmatpush3.bf16.msra.mxu0 %v925_v16  ;;  %2504 = vmatprep.mubr.msk.bf16.mxu0 %vm2758_vm1, %v2757_v44  ;;  %v793_v28 = vpop.xlane.xlu1 %792 }
 0x358   :  { %2514 = vmatprep.subr.bf16.mxu0 %v2757_v44  ;;  %2712 = vrcp.f32 %v793_v28 }
 0x359   :  { %v2709_v58 = vpop.eup %2708 }
 0x35a   :  { %v812_v59 = vmul.f32 %v2709_v58, %v2988_v36  ;;  %v327_v36 = vpack.c.bf16 %v2906_v25, %v2906_v25 }
 0x35b   :  { %v790_v0 = vpop.xlane.xlu0 %789  ;;  %v799_v3 = vpop.xlane.xlu1 %798 }
 0x35c   :  { %2714 = vrcp.f32 %v790_v0  ;;  %v820_v2 = vpack.c.bf16 %v812_v59, %v812_v59  ;;  %v1109_v19 = vsel %vm831_vm3, %v327_v36, 0 }
 0x35d   :  { %2716 = vrcp.f32 %v799_v3 }
 0x35e   :  { %2499 = vmatmul.mubr.msk.bf16.vlgmr.msra.gmra.mxu1 %vm827_vm5, %v820_v2 }
 0x35f   :  { %2509 = vmatpush3.bf16.msra.mxu1 %v971_v4  ;;  %2510 = vmatprep.mubr.msk.bf16.mxu1 %vm2758_vm1, %v2757_v44  ;;  %v1232_v33 = vpop.permute.xlu1 %1231 }
 0x360   :  { %2520 = vmatprep.subr.bf16.mxu1 %v2757_v44  ;;  %v1237_v54 = vsel %vm332_vm2, %v1232_v33, 0 }
 0x361   :  { %v2711_v5 = vpop.eup %2710 }
 0x362   :  { %v813_v10 = vmul.f32 %v2711_v5, %v2992_v40 }
 0x363   :  { %v796_v6 = vpop.xlane.xlu0 %795  ;;  %v1230_v40 = vpop.permute.xlu1 %1229 }
 0x364   :  { %2718 = vrcp.f32 %v796_v6  ;;  %v821_v12 = vpack.c.bf16 %v813_v10, %v813_v10 }
 0x365   :  { %v2713_v30 = vpop.eup %2712 }
 0x366   :  { %2505 = vmatmul.mubr.msk.bf16.vlgmr.msra.gmra.mxu0 %vm827_vm5, %v821_v12  ;;  %v815_v34 = vmul.f32 %v2713_v30, %v2996_v42 }
 0x367   :  { %2515 = vmatpush3.bf16.msra.mxu0 %v1017_v31  ;;  %2516 = vmatprep.mubr.msk.bf16.mxu0 %vm2758_vm1, %v2757_v44  ;;  %v1280_v50 = vpop.permute.xlu1 %1279 }
 0x368   :  { %2526 = vmatprep.subr.bf16.mxu0 %v2757_v44  ;;  %v823_v18 = vpack.c.bf16 %v815_v34, %v815_v34 }
 0x369   :  { %v2715_v32 = vpop.eup %2714 }
 0x36a   :  { %v814_v53 = vmul.f32 %v2715_v32, %v3002_v49  ;;  %v2717_v37 = vpop.eup %2716 }
 0x36b   :  { %v802_v35 = vpop.xlane.xlu0 %801  ;;  %v817_v39 = vmul.f32 %v2717_v37, %v3000_v45  ;;  %v1382_v7 = vpop.permute.xlu1 %1381 }
 0x36c   :  { %2720 = vrcp.f32 %v802_v35  ;;  %v822_v1 = vpack.c.bf16 %v814_v53, %v814_v53 }
 0x36d   :  { %v825_v51 = vpack.c.bf16 %v817_v39, %v817_v39 }
 0x36e   :  { %2511 = vmatmul.mubr.msk.bf16.vlgmr.msra.gmra.mxu1 %vm827_vm5, %v822_v1  ;;  %2517 = vmatmul.mubr.msk.bf16.vlgmr.msra.gmra.mxu0 %vm827_vm5, %v823_v18 }
 0x36f   :  { %2521 = vmatpush3.bf16.msra.mxu1 %v1063_v38  ;;  %v1282_v41 = vpop.permute.xlu0 %1281  ;;  %2527 = vmatpush3.bf16.msra.mxu0 %v1109_v19  ;;  %v1380_v57 = vpop.permute.xlu1 %1379 }
 0x370   :  { %2522 = vmatprep.mubr.msk.bf16.mxu1 %vm2758_vm1, %v2757_v44  ;;  %2528 = vmatprep.mubr.msk.bf16.mxu0 %vm2758_vm1, %v2757_v44  ;;  %v1287_v8 = vsel %vm332_vm2, %v1282_v41, 0 }
 0x371   :  { %v2719_v42 = vpop.eup %2718  ;;  %2532 = vmatprep.subr.bf16.mxu1 %v2757_v44  ;;  %2538 = vmatprep.subr.bf16.mxu0 %v2757_v44 }
 0x372   :  { %v816_v43 = vmul.f32 %v2719_v42, %v3008_v52 }
 0x373   :  { %v1332_v49 = vpop.permute.xlu0 %1331  ;;  %v1482_v28 = vpop.permute.xlu1 %1481 }
 0x374   :  { %v824_v46 = vpack.c.bf16 %v816_v43, %v816_v43  ;;  %v1337_v20 = vsel %vm332_vm2, %v1332_v49, 0  ;;  %v1487_v0 = vsel %vm332_vm2, %v1482_v28, 0 }
 0x376   :  { %2523 = vmatmul.mubr.msk.bf16.vlgmr.msra.gmra.mxu1 %vm827_vm5, %v824_v46  ;;  %2529 = vmatmul.mubr.msk.bf16.vlgmr.msra.gmra.mxu0 %vm827_vm5, %v825_v51 }
 0x377   :  { %2533 = vmatpush3.bf16.msra.mxu1 %v1155_v55  ;;  %2539 = vmatpush3.bf16.xpose.msra.mxu0 %v1237_v54  ;;  %v1330_v52 = vpop.permute.xlu0 %1329  ;;  %v1480_v61 = vpop.permute.xlu1 %1479 }
 0x378   :  { %2534 = vmatprep.mubr.msk.bf16.mxu1 %vm2758_vm1, %v2757_v44  ;;  %2540 = vmatprep.mubr.msk.bf16.mxu0 %vm2758_vm1, %v2757_v44 }
 0x379   :  { %v2721_v45 = vpop.eup %2720  ;;  %2544 = vmatprep.subr.bf16.mxu1 %v2757_v44  ;;  %2550 = vmatprep.subr.bf16.mxu0 %v2757_v44 }
 0x37a   :  { %v818_v63 = vmul.f32 %v2721_v45, %v3012_v56  ;;  %v1387_v56 = vsel %vm332_vm2, %v1382_v7, 0 }
 0x37b   :  { %v1432_v27 = vpop.permute.xlu0 %1431  ;;  %v1582_v3 = vpop.permute.xlu1 %1581 }
 0x37c   :  { %v826_v62 = vpack.c.bf16 %v818_v63, %v818_v63  ;;  %v1437_v58 = vsel %vm332_vm2, %v1432_v27, 0  ;;  %v1587_v4 = vsel %vm332_vm2, %v1582_v3, 0 }
 0x37e   :  { %2535 = vmatmul.mubr.msk.bf16.vlgmr.msra.gmra.mxu1 %vm827_vm5, %v826_v62  ;;  %2541 = vmatmul.mubr.msk.bf16.vlgmr.msra.gmra.mxu0 %vm332_vm2, %v1230_v40 }
 0x37f   :  { %2545 = vmatpush3.bf16.xpose.msra.mxu1 %v1287_v8  ;;  %2551 = vmatpush3.bf16.xpose.msra.mxu0 %v1337_v20  ;;  %v1430_v16 = vpop.permute.xlu0 %1429  ;;  %v1580_v6 = vpop.permute.xlu1 %1579 }
 0x380   :  { %2546 = vmatprep.mubr.msk.bf16.mxu1 %vm2758_vm1, %v2757_v44  ;;  %2552 = vmatprep.mubr.msk.bf16.mxu0 %vm2758_vm1, %v2757_v44 }
 0x381   :  { %2556 = vmatprep.subr.bf16.mxu1 %v2757_v44  ;;  %2562 = vmatprep.subr.bf16.mxu0 %v2757_v44 }
 0x383   :  { %v1532_v59 = vpop.permute.xlu0 %1531 }
 0x384   :  { %v1537_v2 = vsel %vm332_vm2, %v1532_v59, 0 }
 0x386   :  { %2547 = vmatmul.mubr.msk.bf16.vlgmr.msra.gmra.mxu1 %vm332_vm2, %v1280_v50  ;;  %2553 = vmatmul.mubr.msk.bf16.vlgmr.msra.gmra.mxu0 %vm332_vm2, %v1330_v52 }
 0x387   :  { %2557 = vmatpush3.bf16.xpose.msra.mxu1 %v1387_v56  ;;  %2563 = vmatpush3.bf16.xpose.msra.mxu0 %v1437_v58  ;;  %v1530_v5 = vpop.permute.xlu0 %1529 }
 0x388   :  { %2558 = vmatprep.mubr.msk.bf16.mxu1 %vm2758_vm1, %v2757_v44  ;;  %2564 = vmatprep.mubr.msk.bf16.mxu0 %vm2758_vm1, %v2757_v44 }
 0x389   :  { %2568 = vmatprep.subr.bf16.mxu1 %v2757_v44  ;;  %2574 = vmatprep.subr.bf16.mxu0 %v2757_v44 }
 0x38e   :  { %2559 = vmatmul.mubr.msk.bf16.vlgmr.msra.gmra.mxu1 %vm332_vm2, %v1380_v57  ;;  %2565 = vmatmul.mubr.msk.bf16.vlgmr.msra.gmra.mxu0 %vm332_vm2, %v1430_v16 }
 0x38f   :  { %2569 = vmatpush3.bf16.xpose.msra.mxu1 %v1487_v0  ;;  %2575 = vmatpush3.bf16.xpose.msra.mxu0 %v1537_v2 }
 0x390   :  { %2570 = vmatprep.mubr.msk.bf16.mxu1 %vm2758_vm1, %v2757_v44  ;;  %2576 = vmatprep.mubr.msk.bf16.mxu0 %vm2758_vm1, %v2757_v44 }
 0x391   :  { %2580 = vmatprep.subr.bf16.mxu1 %v2757_v44  ;;  %2586 = vmatprep.subr.bf16.mxu0 %v2757_v44 }
 0x396   :  { %2571 = vmatmul.mubr.msk.bf16.vlgmr.msra.gmra.mxu1 %vm332_vm2, %v1480_v61  ;;  %2577 = vmatmul.mubr.msk.bf16.vlgmr.msra.gmra.mxu0 %vm332_vm2, %v1530_v5 }
 0x397   :  { %2581 = vmatpush3.bf16.xpose.msra.mxu1 %v1587_v4  ;;  %2582 = vmatprep.mubr.msk.bf16.mxu1 %vm2758_vm1, %v2757_v44 }
 0x398   :  { %2592 = vmatprep.subr.bf16.mxu1 %v2757_v44  ;;  %2588 = vmatprep.mubr.msk.bf16.mxu0 %vm2758_vm1, %v2757_v44 }
 0x39e   :  { %2583 = vmatmul.mubr.msk.bf16.vlgmr.msra.gmra.mxu1 %vm332_vm2, %v1580_v6 }
 0x39f   :  { %2594 = vmatprep.mubr.msk.bf16.mxu1 %vm2758_vm1, %v2757_v44 }
 0x416   :  { %v3144_v10 = vpop.f32.mrf.mxu0 }
 0x418   :  { %v2494_v11 = vpop.f32.mrf.mxu0 }
 0x41a   :  { %v872_v12 = vpop.f32.mrf.mxu0 }
 0x41c   :  { %v2495_v30 = vpop.f32.mrf.mxu0 }
 0x41e   :  { %v3146_v31 = vpop.f32.mrf.mxu1 }
 0x420   :  { %v2500_v32 = vpop.f32.mrf.mxu1 }
 0x422   :  { %v918_v33 = vpop.f32.mrf.mxu1 }
 0x424   :  { %v2501_v34 = vpop.f32.mrf.mxu1 }
 0x426   :  { %v3148_v53 = vpop.f32.mrf.mxu0 }
 0x428   :  { %v2506_v60 = vpop.f32.mrf.mxu0 }
 0x42a   :  { %v964_v35 = vpop.f32.mrf.mxu0 }
 0x42c   :  { %v2507_v36 = vpop.f32.mrf.mxu0 }
 0x42e   :  { %v3150_v1 = vpop.f32.mrf.mxu1  ;;  %v3152_v18 = vpop.f32.mrf.mxu0 }
 0x430   :  { %v2512_v37 = vpop.f32.mrf.mxu1  ;;  %v2518_v38 = vpop.f32.mrf.mxu0 }
 0x432   :  { %v1010_v40 = vpop.f32.mrf.mxu1  ;;  %v1056_v19 = vpop.f32.mrf.mxu0 }
 0x434   :  { %v2513_v41 = vpop.f32.mrf.mxu1  ;;  %v2519_v42 = vpop.f32.mrf.mxu0 }
 0x436   :  { %v3154_v39 = vpop.f32.mrf.mxu1  ;;  %v3156_v43 = vpop.f32.mrf.mxu0 }
 0x438   :  { %v2524_v48 = vpop.f32.mrf.mxu1  ;;  %v2530_v49 = vpop.f32.mrf.mxu0 }
 0x43a   :  { %v1102_v46 = vpop.f32.mrf.mxu1  ;;  %v1148_v50 = vpop.f32.mrf.mxu0 }
 0x43c   :  { %v2525_v51 = vpop.f32.mrf.mxu1  ;;  %v2531_v55 = vpop.f32.mrf.mxu0 }
 0x43e   :  { %v3158_v54 = vpop.f32.mrf.mxu1  ;;  %v1273_v45 = vpop.f32.mrf.mxu0 }
 0x43f   :  { %v1629_v52 = vmul.f32 0.17677669, %v1273_v45 }
 0x440   :  { %v2536_v63 = vpop.f32.mrf.mxu1  ;;  %v2542_v7 = vpop.f32.mrf.mxu0 }
 0x441   :  { %v1637_v62 = vsel %vm730_vm4, %v1629_v52, -inf }
 0x442   :  { %v1194_v8 = vpop.f32.mrf.mxu1  ;;  %v1276_v20 = vpop.f32.mrf.mxu0  ;;  %1638 = vmax.xlane.f32.xlu0 %v1637_v62 }
 0x444   :  { %v2537_v27 = vpop.f32.mrf.mxu1  ;;  %v2543_v57 = vpop.f32.mrf.mxu0 }
 0x446   :  { %v1323_v56 = vpop.f32.mrf.mxu1  ;;  %v1373_v28 = vpop.f32.mrf.mxu0 }
 0x447   :  { %v1630_v16 = vmul.f32 0.17677669, %v1323_v56  ;;  %v1631_v58 = vmul.f32 0.17677669, %v1373_v28 }
 0x448   :  { %v2548_v59 = vpop.f32.mrf.mxu1  ;;  %v2554_v61 = vpop.f32.mrf.mxu0 }
 0x449   :  { %v1640_v0 = vsel %vm730_vm4, %v1630_v16, -inf  ;;  %v1643_v3 = vsel %vm730_vm4, %v1631_v58, -inf }
 0x44a   :  { %1641 = vmax.xlane.f32.xlu1 %v1640_v0  ;;  %v1326_v2 = vpop.f32.mrf.mxu1  ;;  %1644 = vmax.xlane.f32.xlu0 %v1643_v3  ;;  %v1376_v4 = vpop.f32.mrf.mxu0 }
 0x44c   :  { %v2549_v5 = vpop.f32.mrf.mxu1  ;;  %v2555_v6 = vpop.f32.mrf.mxu0 }
 0x44e   :  { %v1423_v11 = vpop.f32.mrf.mxu1  ;;  %v1473_v30 = vpop.f32.mrf.mxu0 }
 0x44f   :  { %v1632_v12 = vmul.f32 0.17677669, %v1423_v11  ;;  %v1633_v32 = vmul.f32 0.17677669, %v1473_v30 }
 0x450   :  { %v2560_v33 = vpop.f32.mrf.mxu1  ;;  %v2566_v34 = vpop.f32.mrf.mxu0 }
 0x451   :  { %v1646_v60 = vsel %vm730_vm4, %v1632_v12, -inf  ;;  %v1649_v36 = vsel %vm730_vm4, %v1633_v32, -inf }
 0x452   :  { %v1426_v35 = vpop.f32.mrf.mxu1  ;;  %1647 = vmax.xlane.f32.xlu0 %v1646_v60  ;;  %1650 = vmax.xlane.f32.xlu1 %v1649_v36  ;;  %v1476_v37 = vpop.f32.mrf.mxu0 }
 0x454   :  { %v2561_v38 = vpop.f32.mrf.mxu1  ;;  %v2567_v40 = vpop.f32.mrf.mxu0 }
 0x456   :  { %v1523_v19 = vpop.f32.mrf.mxu1  ;;  %v1573_v42 = vpop.f32.mrf.mxu0 }
 0x457   :  { %v1634_v41 = vmul.f32 0.17677669, %v1523_v19  ;;  %v1635_v48 = vmul.f32 0.17677669, %v1573_v42 }
 0x458   :  { %v2572_v49 = vpop.f32.mrf.mxu1  ;;  %v2578_v46 = vpop.f32.mrf.mxu0 }
 0x459   :  { %v1652_v50 = vsel %vm730_vm4, %v1634_v41, -inf  ;;  %v1655_v55 = vsel %vm730_vm4, %v1635_v48, -inf }
 0x45a   :  { %v1526_v51 = vpop.f32.mrf.mxu1  ;;  %1653 = vmax.xlane.f32.xlu0 %v1652_v50  ;;  %1656 = vmax.xlane.f32.xlu1 %v1655_v55  ;;  %v1576_v45 = vpop.f32.mrf.mxu0 }
 0x45c   :  { %v2573_v63 = vpop.f32.mrf.mxu1  ;;  %v2579_v7 = vpop.f32.mrf.mxu0 }
 0x45e   :  { %v1623_v62 = vpop.f32.mrf.mxu1 }
 0x45f   :  { %v1636_v8 = vmul.f32 0.17677669, %v1623_v62 }
 0x460   :  { %v2584_v20 = vpop.f32.mrf.mxu1 }
 0x461   :  { %v1658_v27 = vsel %vm730_vm4, %v1636_v8, -inf }
 0x462   :  { %v1626_v57 = vpop.f32.mrf.mxu1  ;;  %1659 = vmax.xlane.f32.xlu0 %v1658_v27 }
 0x464   :  { %v2585_v56 = vpop.f32.mrf.mxu1 }
 0x46b   :  { %2655 = vrot.lane.b32.xlu1 %v2654_v22, %s2761_s26 }
 0x4cb   :  { %v1639_v28 = vpop.xlane.xlu0 %1638 }
 0x4cc   :  { %v1661_v59 = vsub.f32 %v1629_v52, %v1639_v28 }
 0x4ce   :  { %v1669_v61 = vmul.f32 1.442695, %v1661_v59 }
 0x4d0   :  { %2722 = vpow2.f32 %v1669_v61 }
 0x4d3   :  { %v1642_v0 = vpop.xlane.xlu1 %1641  ;;  %v1645_v3 = vpop.xlane.xlu0 %1644 }
 0x4d4   :  { %v1662_v2 = vsub.f32 %v1630_v16, %v1642_v0  ;;  %v1663_v4 = vsub.f32 %v1631_v58, %v1645_v3 }
 0x4d6   :  { %v1671_v5 = vmul.f32 1.442695, %v1662_v2  ;;  %v1673_v6 = vmul.f32 1.442695, %v1663_v4 }
 0x4d8   :  { %2724 = vpow2.f32 %v1671_v5 }
 0x4d9   :  { %2726 = vpow2.f32 %v1673_v6 }
 0x4db   :  { %v1648_v11 = vpop.xlane.xlu0 %1647  ;;  %v1651_v30 = vpop.xlane.xlu1 %1650 }
 0x4dc   :  { %v1664_v33 = vsub.f32 %v1632_v12, %v1648_v11  ;;  %v1665_v34 = vsub.f32 %v1633_v32, %v1651_v30 }
 0x4dd   :  { %v2723_v60 = vpop.eup %2722 }
 0x4de   :  { %v1675_v35 = vmul.f32 1.442695, %v1664_v33  ;;  %v1677_v9 = vmul.f32 1.442695, %v1665_v34  ;;  %v1685_v13 = vsel %vm730_vm4, %v2723_v60, 0.0 }
 0x4df   :  { %1686 = vadd.xlane.f32.xlu1 %v1685_v13 }
 0x4e0   :  { %2728 = vpow2.f32 %v1675_v35 }
 0x4e1   :  { %2730 = vpow2.f32 %v1677_v9 }
 0x4e3   :  { %v1654_v22 = vpop.xlane.xlu0 %1653  ;;  %v1657_v52 = vpop.xlane.xlu1 %1656 }
 0x4e4   :  { %v1666_v16 = vsub.f32 %v1634_v41, %v1654_v22  ;;  %v1667_v36 = vsub.f32 %v1635_v48, %v1657_v52 }
 0x4e5   :  { %v2725_v58 = vpop.eup %2724 }
 0x4e6   :  { %v3173_v37 = vpop.eup %2726  ;;  %v1679_v38 = vmul.f32 1.442695, %v1666_v16  ;;  %v1688_v40 = vsel %vm730_vm4, %v2725_v58, 0.0  ;;  %v1681_v12 = vmul.f32 1.442695, %v1667_v36 }
 0x4e7   :  { %1689 = vadd.xlane.f32.xlu0 %v1688_v40  ;;  %v1691_v32 = vsel %vm730_vm4, %v3173_v37, 0.0  ;;  %v2656_v19 = vpop.permute.xlu1 %2655 }
 0x4e8   :  { %2732 = vpow2.f32 %v1679_v38  ;;  %1692 = vadd.xlane.f32.xlu1 %v1691_v32  ;;  %v2658_v42 = vunpack.i.h.bf16 %v2656_v19  ;;  %v2657_v49 = vunpack.i.l.bf16 %v2656_v19 }
 0x4e9   :  { %2734 = vpow2.f32 %v1681_v12 }
 0x4ea   :  { %v1222_v46 = vpack.c.bf16 %v2658_v42, %v2658_v42  ;;  %v1221_v41 = vpack.c.bf16 %v2657_v49, %v2657_v49 }
 0x4eb   :  { %v1660_v50 = vpop.xlane.xlu0 %1659 }
 0x4ec   :  { %v1668_v48 = vsub.f32 %v1636_v8, %v1660_v50  ;;  %v1737_v55 = vsel %vm831_vm3, %v1221_v41, 0  ;;  %v1783_v45 = vsel %vm831_vm3, %v1222_v46, 0 }
 0x4ed   :  { %v3178_v51 = vpop.eup %2728  ;;  %2587 = vmatpush3.bf16.msra.mxu0 %v1737_v55  ;;  %2593 = vmatpush3.bf16.msra.mxu1 %v1783_v45 }
 0x4ee   :  { %v3182_v63 = vpop.eup %2730  ;;  %v1683_v7 = vmul.f32 1.442695, %v1668_v48  ;;  %v1694_v62 = vsel %vm730_vm4, %v3178_v51, 0.0  ;;  %2598 = vmatprep.subr.bf16.mxu0 %v2757_v44  ;;  %2604 = vmatprep.subr.bf16.mxu1 %v2757_v44 }
 0x4ef   :  { %v1697_v20 = vsel %vm730_vm4, %v3182_v63, 0.0  ;;  %1695 = vadd.xlane.f32.xlu0 %v1694_v62 }
 0x4f0   :  { %2736 = vpow2.f32 %v1683_v7  ;;  %1698 = vadd.xlane.f32.xlu1 %v1697_v20 }
 0x4f5   :  { %v3190_v8 = vpop.eup %2732 }
 0x4f6   :  { %v1700_v27 = vsel %vm730_vm4, %v3190_v8, 0.0  ;;  %v3194_v57 = vpop.eup %2734 }
 0x4f7   :  { %1701 = vadd.xlane.f32.xlu0 %v1700_v27  ;;  %v1703_v56 = vsel %vm730_vm4, %v3194_v57, 0.0 }
 0x4fb   :  { %1704 = vadd.xlane.f32.xlu0 %v1703_v56 }
 0x4fd   :  { %v3198_v28 = vpop.eup %2736 }
 0x4fe   :  { %v1706_v59 = vsel %vm730_vm4, %v3198_v28, 0.0 }
 0x4ff   :  { %1707 = vadd.xlane.f32.xlu0 %v1706_v59 }
 0x501   :  { %2665 = vrot.lane.b32.xlu1 %v2664_v26, %s2761_s26 }
 0x505   :  { %2670 = vrot.lane.b32.xlu1 %v2669_v29, %s2761_s26 }
 0x515   :  { %2660 = vrot.lane.b32.xlu0 %v2659_v23, %s2761_s26 }
 0x568   :  { %v1687_v61 = vpop.xlane.xlu1 %1686 }
 0x569   :  { %2738 = vrcp.f32 %v1687_v61 }
 0x570   :  { %v1690_v0 = vpop.xlane.xlu0 %1689 }
 0x571   :  { %2740 = vrcp.f32 %v1690_v0  ;;  %v1693_v5 = vpop.xlane.xlu1 %1692 }
 0x572   :  { %2742 = vrcp.f32 %v1693_v5 }
 0x576   :  { %v2739_v2 = vpop.eup %2738 }
 0x577   :  { %v1717_v3 = vmul.f32 %v2739_v2, %v2723_v60 }
 0x578   :  { %v1696_v17 = vpop.xlane.xlu0 %1695 }
 0x579   :  { %v1725_v4 = vpack.c.bf16 %v1717_v3, %v1717_v3  ;;  %2744 = vrcp.f32 %v1696_v17  ;;  %v1699_v23 = vpop.xlane.xlu1 %1698 }
 0x57a   :  { %2746 = vrcp.f32 %v1699_v23 }
 0x57b   :  { %2589 = vmatmul.mubr.msk.bf16.vlgmr.msra.gmra.mxu0 %vm827_vm5, %v1725_v4 }
 0x57c   :  { %2600 = vmatprep.mubr.msk.bf16.mxu0 %vm2758_vm1, %v2757_v44 }
 0x57d   :  { %v2666_v29 = vpop.permute.xlu1 %2665 }
 0x57e   :  { %v2741_v21 = vpop.eup %2740  ;;  %v2668_v33 = vunpack.i.h.bf16 %v2666_v29  ;;  %v2667_v34 = vunpack.i.l.bf16 %v2666_v29 }
 0x57f   :  { %v1718_v24 = vmul.f32 %v2741_v21, %v2725_v58  ;;  %v2743_v6 = vpop.eup %2742  ;;  %v2686_v21 = vld [vmem:[%s3339_s3 + $0x18] sm:$0xff]  }
 0x580   :  { %v1702_v14 = vpop.xlane.xlu0 %1701  ;;  %v1719_v9 = vmul.f32 %v2743_v6, %v3173_v37  ;;  %v1226_v16 = vpack.c.bf16 %v2668_v33, %v2668_v33  ;;  %v1225_v58 = vpack.c.bf16 %v2667_v34, %v2667_v34 }
 0x581   :  { %v1726_v15 = vpack.c.bf16 %v1718_v24, %v1718_v24  ;;  %2748 = vrcp.f32 %v1702_v14  ;;  %v2671_v40 = vpop.permute.xlu1 %2670 }
 0x582   :  { %v1727_v32 = vpack.c.bf16 %v1719_v9, %v1719_v9  ;;  %v2673_v42 = vunpack.i.h.bf16 %v2671_v40  ;;  %v2672_v49 = vunpack.i.l.bf16 %v2671_v40  ;;  %v1921_v46 = vsel %vm831_vm3, %v1225_v58, 0  ;;  %v2689_v9 = vld [vmem:[%s3339_s3] sm:$0xff]  }
 0x583   :  { %2595 = vmatmul.mubr.msk.bf16.vlgmr.msra.gmra.mxu1 %vm827_vm5, %v1726_v15  ;;  %v1967_v41 = vsel %vm831_vm3, %v1226_v16, 0 }
 0x584   :  { %v1705_v25 = vpop.xlane.xlu0 %1704  ;;  %2606 = vmatprep.mubr.msk.bf16.mxu1 %vm2758_vm1, %v2757_v44  ;;  %v1227_v55 = vpack.c.bf16 %v2672_v49, %v2672_v49 }
 0x585   :  { %2750 = vrcp.f32 %v1705_v25  ;;  %v2687_v25 = vld [vmem:[%s3339_s3 + $0x10] sm:$0xff]  }
 0x586   :  { %v2745_v11 = vpop.eup %2744  ;;  %v2013_v27 = vsel %vm831_vm3, %v1227_v55, 0 }
 0x587   :  { %v1720_v52 = vmul.f32 %v2745_v11, %v3178_v51  ;;  %v2747_v12 = vpop.eup %2746  ;;  %v1228_v51 = vpack.c.bf16 %v2673_v42, %v2673_v42 }
 0x588   :  { %v1708_v26 = vpop.xlane.xlu0 %1707  ;;  %v1721_v50 = vmul.f32 %v2747_v12, %v3182_v63 }
 0x589   :  { %2752 = vrcp.f32 %v1708_v26  ;;  %v1728_v19 = vpack.c.bf16 %v1720_v52, %v1720_v52  ;;  %v2059_v63 = vsel %vm831_vm3, %v1228_v51, 0 }
 0x58a   :  { %v1729_v7 = vpack.c.bf16 %v1721_v50, %v1721_v50 }
 0x58c   :  { %v2661_v30 = vpop.permute.xlu0 %2660 }
 0x58d   :  { %v2663_v60 = vunpack.i.h.bf16 %v2661_v30  ;;  %v2662_v35 = vunpack.i.l.bf16 %v2661_v30  ;;  %v2688_v30 = vld [vmem:[%s3339_s3 + $0x8] sm:$0xff]  }
 0x58e   :  { %v2749_v37 = vpop.eup %2748 }
 0x58f   :  { %v1224_v13 = vpack.c.bf16 %v2663_v60, %v2663_v60  ;;  %v1223_v22 = vpack.c.bf16 %v2662_v35, %v2662_v35  ;;  %v1722_v48 = vmul.f32 %v2749_v37, %v3190_v8 }
 0x591   :  { %v1829_v36 = vsel %vm831_vm3, %v1223_v22, 0  ;;  %v1875_v38 = vsel %vm831_vm3, %v1224_v13, 0  ;;  %v1730_v62 = vpack.c.bf16 %v1722_v48, %v1722_v48 }
 0x592   :  { %2599 = vmatpush3.bf16.msra.mxu0 %v1829_v36  ;;  %2605 = vmatpush3.bf16.msra.mxu1 %v1875_v38  ;;  %v2751_v45 = vpop.eup %2750 }
 0x593   :  { %2610 = vmatprep.subr.bf16.mxu0 %v2757_v44  ;;  %2616 = vmatprep.subr.bf16.mxu1 %v2757_v44  ;;  %v1723_v8 = vmul.f32 %v2751_v45, %v3194_v57 }
 0x595   :  { %2601 = vmatmul.mubr.msk.bf16.vlgmr.msra.gmra.mxu0 %vm827_vm5, %v1727_v32  ;;  %2607 = vmatmul.mubr.msk.bf16.vlgmr.msra.gmra.mxu1 %vm827_vm5, %v1728_v19  ;;  %v1731_v59 = vpack.c.bf16 %v1723_v8, %v1723_v8 }
 0x596   :  { %2611 = vmatpush3.bf16.msra.mxu0 %v1921_v46  ;;  %2617 = vmatpush3.bf16.msra.mxu1 %v1967_v41  ;;  %v2753_v20 = vpop.eup %2752 }
 0x597   :  { %2612 = vmatprep.mubr.msk.bf16.mxu0 %vm2758_vm1, %v2757_v44  ;;  %2618 = vmatprep.mubr.msk.bf16.mxu1 %vm2758_vm1, %v2757_v44  ;;  %v1724_v56 = vmul.f32 %v2753_v20, %v3198_v28 }
 0x598   :  { %2622 = vmatprep.subr.bf16.mxu0 %v2757_v44  ;;  %2628 = vmatprep.subr.bf16.mxu1 %v2757_v44 }
 0x599   :  { %v1732_v61 = vpack.c.bf16 %v1724_v56, %v1724_v56 }
 0x59d   :  { %2613 = vmatmul.mubr.msk.bf16.vlgmr.msra.gmra.mxu0 %vm827_vm5, %v1729_v7  ;;  %2619 = vmatmul.mubr.msk.bf16.vlgmr.msra.gmra.mxu1 %vm827_vm5, %v1730_v62 }
 0x59e   :  { %2623 = vmatpush3.bf16.msra.mxu0 %v2013_v27  ;;  %2629 = vmatpush3.bf16.msra.mxu1 %v2059_v63 }
 0x59f   :  { %2624 = vmatprep.mubr.msk.bf16.mxu0 %vm2758_vm1, %v2757_v44  ;;  %2630 = vmatprep.mubr.msk.bf16.mxu1 %vm2758_vm1, %v2757_v44 }
 0x5a0   :  { %2634 = vmatprep.subr.bf16.mxu0 %v2757_v44 }
 0x5a5   :  { %2625 = vmatmul.mubr.msk.bf16.vlgmr.msra.gmra.mxu0 %vm827_vm5, %v1731_v59  ;;  %2631 = vmatmul.mubr.msk.bf16.vlgmr.msra.gmra.mxu1 %vm827_vm5, %v1732_v61 }
 0x5a6   :  { %2642 = vmatprep.mubr.msk.bf16.mxu0 %vm2758_vm1, %v2757_v44  ;;  %2635 = vmatpush3.bf16.msra.mxu0 %v2686_v21 }
 0x5a7   :  { %2636 = vmatprep.subr.bf16.mxu0 %v2757_v44 }
 0x5aa   :  { %2637 = vmatpush3.bf16.msra.mxu0 %v2687_v25 }
 0x5ab   :  { %2638 = vmatprep.subr.bf16.mxu0 %v2757_v44 }
 0x5ae   :  { %2639 = vmatpush3.bf16.msra.mxu0 %v2688_v30 }
 0x5af   :  { %2640 = vmatprep.subr.bf16.mxu0 %v2757_v44 }
 0x5b2   :  { %2641 = vmatpush3.bf16.msra.mxu0 %v2689_v9 }
 0x63b   :  { %v1773_v0 = vpop.f32.mrf.mxu0 }
 0x63c   :  { %2109 = vrot.lane.b32.xlu1 %v1773_v0, %s2760_s2 }
 0x63d   :  { %v2590_v2 = vpop.f32.mrf.mxu0 }
 0x63f   :  { %v1776_v3 = vpop.f32.mrf.mxu0 }
 0x641   :  { %v2591_v4 = vpop.f32.mrf.mxu0 }
 0x643   :  { %v1819_v57 = vpop.f32.mrf.mxu1 }
 0x644   :  { %2111 = vrot.lane.b32.xlu1 %v1819_v57, %s2760_s2 }
 0x645   :  { %v2596_v28 = vpop.f32.mrf.mxu1 }
 0x647   :  { %v1822_v5 = vpop.f32.mrf.mxu1 }
 0x649   :  { %v2597_v17 = vpop.f32.mrf.mxu1 }
 0x655   :  { %v1865_v24 = vpop.f32.mrf.mxu0  ;;  %v1911_v14 = vpop.f32.mrf.mxu1 }
 0x656   :  { %2115 = vrot.lane.b32.xlu1 %v1911_v14, %s2760_s2  ;;  %2113 = vrot.lane.b32.xlu0 %v1865_v24, %s2760_s2 }
 0x657   :  { %v2602_v15 = vpop.f32.mrf.mxu0  ;;  %v2608_v23 = vpop.f32.mrf.mxu1 }
 0x659   :  { %v1868_v26 = vpop.f32.mrf.mxu0  ;;  %v1914_v29 = vpop.f32.mrf.mxu1 }
 0x65b   :  { %v2603_v6 = vpop.f32.mrf.mxu0  ;;  %v2609_v11 = vpop.f32.mrf.mxu1 }
 0x65d   :  { %v1957_v33 = vpop.f32.mrf.mxu0  ;;  %v2003_v34 = vpop.f32.mrf.mxu1 }
 0x65e   :  { %2119 = vrot.lane.b32.xlu1 %v2003_v34, %s2760_s2  ;;  %2117 = vrot.lane.b32.xlu0 %v1957_v33, %s2760_s2 }
 0x65f   :  { %v2614_v60 = vpop.f32.mrf.mxu0  ;;  %v2620_v35 = vpop.f32.mrf.mxu1 }
 0x661   :  { %v1960_v13 = vpop.f32.mrf.mxu0  ;;  %v2006_v22 = vpop.f32.mrf.mxu1 }
 0x663   :  { %v2615_v52 = vpop.f32.mrf.mxu0  ;;  %v2621_v16 = vpop.f32.mrf.mxu1 }
 0x665   :  { %v2049_v58 = vpop.f32.mrf.mxu0  ;;  %v2095_v36 = vpop.f32.mrf.mxu1 }
 0x666   :  { %2123 = vrot.lane.b32.xlu1 %v2095_v36, %s2760_s2  ;;  %2121 = vrot.lane.b32.xlu0 %v2049_v58, %s2760_s2 }
 0x667   :  { %v2626_v38 = vpop.f32.mrf.mxu0  ;;  %v2632_v40 = vpop.f32.mrf.mxu1 }
 0x669   :  { %v2052_v12 = vpop.f32.mrf.mxu0  ;;  %v2098_v32 = vpop.f32.mrf.mxu1 }
 0x66b   :  { %v2627_v44 = vpop.f32.mrf.mxu0  ;;  %v2633_v19 = vpop.f32.mrf.mxu1 }
 0x6ae   :  { %v2110_v37 = vpop.permute.xlu1 %2109 }
 0x6af   :  { %v2133_v20 = vsel %vm332_vm2, %v3144_v10, %v2110_v37 }
 0x6b6   :  { %v2112_v42 = vpop.permute.xlu1 %2111 }
 0x6b7   :  { %v2134_v55 = vsel %vm332_vm2, %v3146_v31, %v2112_v42 }
 0x6b8   :  { %v2149_v27 = vcombine.low %v2133_v20, %v2134_v55 }
 0x6ba   :  { %v2157_v59 = vrot.slane %v2149_v27, %v2846_v47 }
 0x6c8   :  { %v2116_v49 = vpop.permute.xlu1 %2115  ;;  %v2114_v46 = vpop.permute.xlu0 %2113 }
 0x6c9   :  { %v2136_v48 = vsel %vm332_vm2, %v3150_v1, %v2116_v49  ;;  %v2135_v51 = vsel %vm332_vm2, %v3148_v53, %v2114_v46 }
 0x6ca   :  { %v2150_v62 = vcombine.low %v2135_v51, %v2136_v48 }
 0x6cc   :  { %v2164_v56 = vrot.slane %v2150_v62, %v2846_v47 }
 0x6ce   :  { %v2165_v10 = vcombine.low %v2157_v59, %v2164_v56 }
 0x6d0   :  { %v2120_v41 = vpop.permute.xlu1 %2119  ;;  %v2118_v50 = vpop.permute.xlu0 %2117 }
 0x6d1   :  { %v2138_v45 = vsel %vm332_vm2, %v3154_v39, %v2120_v41  ;;  %v2137_v7 = vsel %vm332_vm2, %v3152_v18, %v2118_v50 }
 0x6d2   :  { %v2166_v63 = vcombine.low %v2137_v7, %v2138_v45 }
 0x6d4   :  { %v2174_v18 = vrot.slane %v2166_v63, %v2846_v47 }
 0x6d8   :  { %v2124_v8 = vpop.permute.xlu1 %2123  ;;  %v2122_v1 = vpop.permute.xlu0 %2121 }
 0x6d9   :  { %v2140_v53 = vsel %vm332_vm2, %v3158_v54, %v2124_v8  ;;  %v2139_v31 = vsel %vm332_vm2, %v3156_v43, %v2122_v1  ;;  %v2367_v54 = vld [vmem:[%s3340_s4] ss:$0 sm:$0xff] }
 0x6da   :  { %v2167_v39 = vcombine.low %v2139_v31, %v2140_v53 }
 0x6dc   :  { %v2181_v61 = vrot.slane %v2167_v39, %v2846_v47 }
 0x6de   :  { %v2182_v0 = vcombine.low %v2174_v18, %v2181_v61 }
 0x6e0   :  { %v2185_v2 = vpack.c.bf16 %v2182_v0, %v2165_v10 }
 0x6e2   :  { %2643 = vmatmul.mubr.msk.bf16.vlgmr.msra.gmra.mxu0 %vm146_vm0, %v2185_v2 }
 0x7a2   :  { %v2262_v3 = vpop.f32.mrf.mxu0 }
 0x7a3   :  { %v2263_v43 = vadd.f32 %v2367_v54, %v2262_v3 }
 0x7a4   :  { %v2644_v4 = vpop.f32.mrf.mxu0 }
 0x7a5   :  { %v2271_v57 = vcombine.high %v2263_v43, %v2263_v43  ;;  %v2278_v28 = vrot.slane %v2263_v43, %v2846_v47 }
 0x7a6   :  { %v2265_v5 = vpop.f32.mrf.mxu0 }
 0x7a7   :  { %v2285_v17 = vrot.slane %v2271_v57, %v2846_v47  ;;  %v2286_v21 = vcombine.high %v2278_v28, %v2278_v28  ;;  %2314 = vst.msk [vmem:[%s3341_s5] sm:$0x3] %vm2313_vm6, %v2278_v28  ;;  %v2266_v24 = vadd.f32 %v2367_v54, %v2265_v5 }
 0x7a8   :  { %v2645_v14 = vpop.f32.mrf.mxu0 }
 0x7a9   :  { %v2287_v15 = vcombine.high %v2285_v17, %v2285_v17  ;;  %2315 = vst.msk [vmem:[%s3341_s5 + $0x2] sm:$0x3] %vm2313_vm6, %v2286_v21  ;;  %2316 = vst.msk [vmem:[%s3341_s5 + $0x4] sm:$0x3] %vm2313_vm6, %v2285_v17  ;;  %v2288_v23 = vcombine.high %v2266_v24, %v2266_v24  ;;  %v2295_v25 = vrot.slane %v2266_v24, %v2846_v47 }
 0x7ab   :  { %2317 = vst.msk [vmem:[%s3341_s5 + $0x6] sm:$0x3] %vm2313_vm6, %v2287_v15  ;;  %v2302_v26 = vrot.slane %v2288_v23, %v2846_v47  ;;  %v2303_v29 = vcombine.high %v2295_v25, %v2295_v25  ;;  %2318 = vst.msk [vmem:[%s3341_s5 + $0x8] sm:$0x3] %vm2313_vm6, %v2295_v25 }
 0x7ad   :  { %v2304_v6 = vcombine.high %v2302_v26, %v2302_v26  ;;  %2319 = vst.msk [vmem:[%s3341_s5 + $0xa] sm:$0x3] %vm2313_vm6, %v2303_v29  ;;  %2320 = vst.msk [vmem:[%s3341_s5 + $0xc] sm:$0x3] %vm2313_vm6, %v2302_v26 }
 0x7af   :  { %2321 = vst.msk [vmem:[%s3341_s5 + $0xe] sm:$0x3] %vm2313_vm6, %v2304_v6 }

</bundles_post_ra>
